<compile_context>
chip_gen: v5e
topology: v5e:2x2
jax: 0.10.0
libtpu: 0.0.40
codegen_flags: <defaults>
</compile_context>

<pallas_src>
import functools

import jax
import jax.numpy as jnp
from jax import lax
from jax.experimental import pallas as pl
from jax.experimental.pallas import tpu as pltpu


def _vmem():
    return pl.BlockSpec(memory_space=pltpu.MemorySpace.VMEM)


# -------------- fused fc1 + ReLU + fc2 + deconv1(as GEMM) + ReLU -------------
def _fc_deconv1_kernel(z_ref, w1_ref, b1_ref, w2_ref, b2_ref, wd1_ref, o_ref):
    h = jnp.dot(z_ref[...], w1_ref[...], preferred_element_type=jnp.float32)
    h = jnp.maximum(h + b1_ref[...], 0.0)
    h2 = jnp.dot(h, w2_ref[...], preferred_element_type=jnp.float32) + b2_ref[...]
    y = jnp.dot(h2, wd1_ref[...], preferred_element_type=jnp.float32)
    o_ref[...] = jnp.maximum(y, 0.0)


def fc_deconv1(z, w1, b1, w2, b2, wd1_mat):
    B = z.shape[0]
    N = wd1_mat.shape[1]
    return pl.pallas_call(
        _fc_deconv1_kernel,
        out_shape=jax.ShapeDtypeStruct((B, N), jnp.float32),
        in_specs=[_vmem() for _ in range(6)],
        out_specs=_vmem(),
    )(z, w1, b1, w2, b2, wd1_mat)


# -------- single-shot GEMM + fused activation (taps folded into K dim) -------
def _gemm_act_kernel(x_ref, w_ref, o_ref, *, act):
    y = jnp.dot(x_ref[...], w_ref[...], preferred_element_type=jnp.float32)
    if act == "relu":
        y = jnp.maximum(y, 0.0)
    elif act == "sigmoid":
        # exp -> EUP, approx reciprocal -> EUP slot (no VALU divide sequence)
        y = pl.reciprocal(1.0 + jnp.exp(-y), approx=True)
    o_ref[...] = y


def gemm_act(x, w, act):
    M = x.shape[0]
    N = w.shape[1]
    return pl.pallas_call(
        functools.partial(_gemm_act_kernel, act=act),
        out_shape=jax.ShapeDtypeStruct((M, N), jnp.float32),
        in_specs=[_vmem(), _vmem()],
        out_specs=_vmem(),
    )(x, w)


# --------------- ConvTranspose2d as im2col + one GEMM kernel -----------------
def conv_transpose2d(x, w, stride, padding, act):
    """x: (B, H, W, C_in) NHWC.  w: (C_in, C_out, KH, KW) (PyTorch ConvT layout)."""
    B, H, W, C_in = x.shape
    _, C_out, KH, KW = w.shape

    ph, pw = KH - 1 - padding, KW - 1 - padding
    # dilate-by-stride + edge-pad in ONE op (interior padding) -- no scatter HLO
    xp = lax.pad(
        x,
        jnp.array(0.0, dtype=x.dtype),
        ((0, 0, 0), (ph, ph, stride - 1), (pw, pw, stride - 1), (0, 0, 0)),
    )
    Hp, Wp = xp.shape[1], xp.shape[2]
    Ho, Wo = Hp - KH + 1, Wp - KW + 1

    # im2col: fold the KH*KW taps into the contraction dim -> (M, KH*KW*C_in)
    cols = [xp[:, kh:kh + Ho, kw:kw + Wo, :] for kh in range(KH) for kw in range(KW)]
    patches = jnp.concatenate(cols, axis=-1).reshape(B * Ho * Wo, KH * KW * C_in)

    # flipped-kernel weight matrix matching the (kh, kw, c_in) column ordering
    wmat = jnp.flip(w, axis=(2, 3)).transpose(2, 3, 0, 1).reshape(KH * KW * C_in, C_out)

    y = gemm_act(patches, wmat, act)          # Pallas hot path, single grid point
    return y.reshape(B, Ho, Wo, C_out)


# ---------------------------------- model ------------------------------------
def decoder_forward(z, params):
    B = z.shape[0]

    # first ConvT has a 1x1 spatial input: it is exactly h2 @ reshape(dw1).
    C_in1, C1, K1h, K1w = params["dw1"].shape
    wd1_mat = params["dw1"].transpose(0, 2, 3, 1).reshape(C_in1, K1h * K1w * C1)

    y1 = fc_deconv1(z, params["w1"], params["b1"], params["w2"], params["b2"], wd1_mat)
    x = y1.reshape(B, K1h, K1w, C1)           # (B, 4, 4, 32) NHWC, ReLU applied

    x = conv_transpose2d(x, params["dw2"], stride=2, padding=1, act="relu")     # (B,7,7,16)
    x = conv_transpose2d(x, params["dw3"], stride=2, padding=1, act="relu")     # (B,14,14,8)
    x = conv_transpose2d(x, params["dw4"], stride=2, padding=1, act="sigmoid")  # (B,28,28,1)
    return x.transpose(0, 3, 1, 2)            # back to PyTorch NCHW: (B, 1, 28, 28)


def init_params(key, n_hidden, n_embedd):
    ks = jax.random.split(key, 8)

    def u(k, shape, fan_in):
        bound = 1.0 / float(fan_in) ** 0.5
        return jax.random.uniform(k, shape, jnp.float32, -bound, bound)

    nh = n_hidden
    return {
        "w1": u(ks[0], (n_embedd, 512), n_embedd),
        "b1": u(ks[1], (1, 512), n_embedd),
        "w2": u(ks[2], (512, 1024), 512),
        "b2": u(ks[3], (1, 1024), 512),
        # PyTorch ConvTranspose2d weight layout: (C_in, C_out, KH, KW); bias=False
        "dw1": u(ks[4], (1024, nh * 8, 4, 4), nh * 8 * 16),
        "dw2": u(ks[5], (nh * 8, nh * 4, 3, 3), nh * 4 * 9),
        "dw3": u(ks[6], (nh * 4, nh * 2, 4, 4), nh * 2 * 16),
        "dw4": u(ks[7], (nh * 2, 1, 4, 4), 1 * 16),
    }


if __name__ == "__main__":
    n_hidden, n_embedd, batch = 4, 32, 2
    key = jax.random.PRNGKey(0)
    kp, kz = jax.random.split(key)
    params = init_params(kp, n_hidden, n_embedd)
    z = jax.random.normal(kz, (batch, n_embedd), jnp.float32)

    fwd = jax.jit(decoder_forward)
    out = fwd(z, params)
    jax.block_until_ready(out)

    assert out.shape == (batch, 1, 28, 28), out.shape
    assert out.dtype == jnp.float32
    assert bool(jnp.all(jnp.isfinite(out)))
    # sigmoid range (small tolerance for the approx-reciprocal epilogue)
    assert bool(jnp.all((out >= 0.0) & (out <= 1.0 + 1e-2)))
    print("KERNEL_OK")
</pallas_src>

<mosaic_0001>
module attributes {stable_mosaic.version = 11 : i64} {
  func.func @_fc_deconv1_kernel(%arg0: memref<2x32xf32, #tpu.memory_space<vmem>>, %arg1: memref<32x512xf32, #tpu.memory_space<vmem>>, %arg2: memref<1x512xf32, #tpu.memory_space<vmem>>, %arg3: memref<512x1024xf32, #tpu.memory_space<vmem>>, %arg4: memref<1x1024xf32, #tpu.memory_space<vmem>>, %arg5: memref<1024x512xf32, #tpu.memory_space<vmem>>, %arg6: memref<2x512xf32, #tpu.memory_space<vmem>>) attributes {dimension_semantics = [], scalar_prefetch = 0 : i64, scratch_operands = 0 : i64, tpu.core_type = #tpu.core_type<tc>} {
    %c0 = arith.constant 0 : index
    %c0_0 = arith.constant 0 : index
    %0 = vector.load %arg0[%c0, %c0_0] : memref<2x32xf32, #tpu.memory_space<vmem>>, vector<2x32xf32>
    %c0_1 = arith.constant 0 : index
    %c0_2 = arith.constant 0 : index
    %1 = vector.load %arg1[%c0_1, %c0_2] : memref<32x512xf32, #tpu.memory_space<vmem>>, vector<32x512xf32>
    %cst = arith.constant dense<0.000000e+00> : vector<2x512xf32>
    %2 = tpu.matmul %0, %1, %cst {dimension_numbers = #tpu.dot_dimension_numbers<[1], [0], [0], [1], [0, 0, 1, 1], [], []>} : vector<2x32xf32>, vector<32x512xf32>, vector<2x512xf32> -> vector<2x512xf32>
    %c0_3 = arith.constant 0 : index
    %c0_4 = arith.constant 0 : index
    %3 = vector.load %arg2[%c0_3, %c0_4] : memref<1x512xf32, #tpu.memory_space<vmem>>, vector<1x512xf32>
    %4 = vector.broadcast %3 : vector<1x512xf32> to vector<2x512xf32>
    %5 = arith.addf %2, %4 : vector<2x512xf32>
    %cst_5 = arith.constant 0.000000e+00 : f32
    %6 = vector.broadcast %cst_5 : f32 to vector<2x512xf32>
    %7 = arith.maximumf %5, %6 : vector<2x512xf32>
    %c0_6 = arith.constant 0 : index
    %c0_7 = arith.constant 0 : index
    %8 = vector.load %arg3[%c0_6, %c0_7] : memref<512x1024xf32, #tpu.memory_space<vmem>>, vector<512x1024xf32>
    %cst_8 = arith.constant dense<0.000000e+00> : vector<2x1024xf32>
    %9 = tpu.matmul %7, %8, %cst_8 {dimension_numbers = #tpu.dot_dimension_numbers<[1], [0], [0], [1], [0, 0, 1, 1], [], []>} : vector<2x512xf32>, vector<512x1024xf32>, vector<2x1024xf32> -> vector<2x1024xf32>
    %c0_9 = arith.constant 0 : index
    %c0_10 = arith.constant 0 : index
    %10 = vector.load %arg4[%c0_9, %c0_10] : memref<1x1024xf32, #tpu.memory_space<vmem>>, vector<1x1024xf32>
    %11 = vector.broadcast %10 : vector<1x1024xf32> to vector<2x1024xf32>
    %12 = arith.addf %9, %11 : vector<2x1024xf32>
    %c0_11 = arith.constant 0 : index
    %c0_12 = arith.constant 0 : index
    %13 = vector.load %arg5[%c0_11, %c0_12] : memref<1024x512xf32, #tpu.memory_space<vmem>>, vector<1024x512xf32>
    %cst_13 = arith.constant dense<0.000000e+00> : vector<2x512xf32>
    %14 = tpu.matmul %12, %13, %cst_13 {dimension_numbers = #tpu.dot_dimension_numbers<[1], [0], [0], [1], [0, 0, 1, 1], [], []>} : vector<2x1024xf32>, vector<1024x512xf32>, vector<2x512xf32> -> vector<2x512xf32>
    %cst_14 = arith.constant 0.000000e+00 : f32
    %15 = vector.broadcast %cst_14 : f32 to vector<2x512xf32>
    %16 = arith.maximumf %14, %15 : vector<2x512xf32>
    %c0_15 = arith.constant 0 : index
    %c0_16 = arith.constant 0 : index
    %17 = vector.load %arg6[%c0_15, %c0_16] : memref<2x512xf32, #tpu.memory_space<vmem>>, vector<2x512xf32>
    tpu.vector_store %arg6[%c0_15, %c0_16], %16 {strides = array<i32>} : memref<2x512xf32, #tpu.memory_space<vmem>>, vector<2x512xf32>,
    return
  }
}

module attributes {stable_mosaic.version = 11 : i64} {
  func.func @_gemm_act_kernel(%arg0: memref<98x288xf32, #tpu.memory_space<vmem>>, %arg1: memref<288x16xf32, #tpu.memory_space<vmem>>, %arg2: memref<98x16xf32, #tpu.memory_space<vmem>>) attributes {dimension_semantics = [], scalar_prefetch = 0 : i64, scratch_operands = 0 : i64, tpu.core_type = #tpu.core_type<tc>} {
    %c0 = arith.constant 0 : index
    %c0_0 = arith.constant 0 : index
    %0 = vector.load %arg0[%c0, %c0_0] : memref<98x288xf32, #tpu.memory_space<vmem>>, vector<98x288xf32>
    %c0_1 = arith.constant 0 : index
    %c0_2 = arith.constant 0 : index
    %1 = vector.load %arg1[%c0_1, %c0_2] : memref<288x16xf32, #tpu.memory_space<vmem>>, vector<288x16xf32>
    %cst = arith.constant dense<0.000000e+00> : vector<98x16xf32>
    %2 = tpu.matmul %0, %1, %cst {dimension_numbers = #tpu.dot_dimension_numbers<[1], [0], [0], [1], [0, 0, 1, 1], [], []>} : vector<98x288xf32>, vector<288x16xf32>, vector<98x16xf32> -> vector<98x16xf32>
    %cst_3 = arith.constant 0.000000e+00 : f32
    %3 = vector.broadcast %cst_3 : f32 to vector<98x16xf32>
    %4 = arith.maximumf %2, %3 : vector<98x16xf32>
    %c0_4 = arith.constant 0 : index
    %c0_5 = arith.constant 0 : index
    %5 = vector.load %arg2[%c0_4, %c0_5] : memref<98x16xf32, #tpu.memory_space<vmem>>, vector<98x16xf32>
    tpu.vector_store %arg2[%c0_4, %c0_5], %4 {strides = array<i32>} : memref<98x16xf32, #tpu.memory_space<vmem>>, vector<98x16xf32>,
    return
  }
}

module attributes {stable_mosaic.version = 11 : i64} {
  func.func @_gemm_act_kernel(%arg0: memref<392x256xf32, #tpu.memory_space<vmem>>, %arg1: memref<256x8xf32, #tpu.memory_space<vmem>>, %arg2: memref<392x8xf32, #tpu.memory_space<vmem>>) attributes {dimension_semantics = [], scalar_prefetch = 0 : i64, scratch_operands = 0 : i64, tpu.core_type = #tpu.core_type<tc>} {
    %c0 = arith.constant 0 : index
    %c0_0 = arith.constant 0 : index
    %0 = vector.load %arg0[%c0, %c0_0] : memref<392x256xf32, #tpu.memory_space<vmem>>, vector<392x256xf32>
    %c0_1 = arith.constant 0 : index
    %c0_2 = arith.constant 0 : index
    %1 = vector.load %arg1[%c0_1, %c0_2] : memref<256x8xf32, #tpu.memory_space<vmem>>, vector<256x8xf32>
    %cst = arith.constant dense<0.000000e+00> : vector<392x8xf32>
    %2 = tpu.matmul %0, %1, %cst {dimension_numbers = #tpu.dot_dimension_numbers<[1], [0], [0], [1], [0, 0, 1, 1], [], []>} : vector<392x256xf32>, vector<256x8xf32>, vector<392x8xf32> -> vector<392x8xf32>
    %cst_3 = arith.constant 0.000000e+00 : f32
    %3 = vector.broadcast %cst_3 : f32 to vector<392x8xf32>
    %4 = arith.maximumf %2, %3 : vector<392x8xf32>
    %c0_4 = arith.constant 0 : index
    %c0_5 = arith.constant 0 : index
    %5 = vector.load %arg2[%c0_4, %c0_5] : memref<392x8xf32, #tpu.memory_space<vmem>>, vector<392x8xf32>
    tpu.vector_store %arg2[%c0_4, %c0_5], %4 {strides = array<i32>} : memref<392x8xf32, #tpu.memory_space<vmem>>, vector<392x8xf32>,
    return
  }
}

module attributes {stable_mosaic.version = 11 : i64} {
  func.func @_gemm_act_kernel(%arg0: memref<1568x128xf32, #tpu.memory_space<vmem>>, %arg1: memref<128x1xf32, #tpu.memory_space<vmem>>, %arg2: memref<1568x1xf32, #tpu.memory_space<vmem>>) attributes {dimension_semantics = [], scalar_prefetch = 0 : i64, scratch_operands = 0 : i64, tpu.core_type = #tpu.core_type<tc>} {
    %c0 = arith.constant 0 : index
    %c0_0 = arith.constant 0 : index
    %0 = vector.load %arg0[%c0, %c0_0] : memref<1568x128xf32, #tpu.memory_space<vmem>>, vector<1568x128xf32>
    %c0_1 = arith.constant 0 : index
    %c0_2 = arith.constant 0 : index
    %1 = vector.load %arg1[%c0_1, %c0_2] : memref<128x1xf32, #tpu.memory_space<vmem>>, vector<128x1xf32>
    %cst = arith.constant dense<0.000000e+00> : vector<1568x1xf32>
    %2 = tpu.matmul %0, %1, %cst {dimension_numbers = #tpu.dot_dimension_numbers<[1], [0], [0], [1], [0, 0, 1, 1], [], []>} : vector<1568x128xf32>, vector<128x1xf32>, vector<1568x1xf32> -> vector<1568x1xf32>
    %cst_3 = arith.constant 0.000000e+00 : f32
    %3 = vector.broadcast %cst_3 : f32 to vector<1568x1xf32>
    %4 = arith.subf %3, %2 : vector<1568x1xf32>
    %5 = math.exp %4 : vector<1568x1xf32>
    %cst_4 = arith.constant 1.000000e+00 : f32
    %6 = vector.broadcast %cst_4 : f32 to vector<1568x1xf32>
    %7 = arith.addf %6, %5 : vector<1568x1xf32>
    %8 = tpu.reciprocal %7 {approx = true} : vector<1568x1xf32> -> vector<1568x1xf32>
    %c0_5 = arith.constant 0 : index
    %c0_6 = arith.constant 0 : index
    %9 = vector.load %arg2[%c0_5, %c0_6] : memref<1568x1xf32, #tpu.memory_space<vmem>>, vector<1568x1xf32>
    tpu.vector_store %arg2[%c0_5, %c0_6], %8 {strides = array<i32>} : memref<1568x1xf32, #tpu.memory_space<vmem>>, vector<1568x1xf32>,
    return
  }
}

</mosaic_0001>

<bundles_post_ra>
// kernel: decoder_forward.5
= control target key start
LH: loop header
LB: loop body
LE: loop exit
PB: predicated region body
PF: predicated region fallthrough
CT: control target
= control target key end

     0   :  { %vm86_vm0 = vcmask 261120   ;;  %vm307_vm1 = vcmask 130048   ;;  %vm320_vm2 = vcmask 123904   ;;  %s747_s1 = inlined_call_operand.vmem [shape: f32[288,16], index: 1, kind: input, shape index: {}]   ;;  %s748_s0 = inlined_call_operand.vmem [shape: f32[98,288], index: 0, kind: input, shape index: {}]   ;;  %s749_s2 = inlined_call_operand.vmem [shape: f32[98,16], index: 2, kind: output, shape index: {}]  }
   0x1   :  { %v65_v0 = vld [vmem:[%s747_s1 + $0x78] sm:$0xff]  ;;  %v64_v3 = vld [vmem:[%s747_s1 + $0x70] sm:$0xff]  ;;  %v63_v6 = vld [vmem:[%s747_s1 + $0x68] sm:$0xff] }
   0x2   :  { %v396_v1 = vld [vmem:[%s747_s1 + $0xf8] sm:$0xff]  ;;  %126 = vmatpush.msra.mxu0 %v65_v0  ;;  %339 = vmatpush.msra.mxu3 %v65_v0  ;;  %v409_v4 = vld [vmem:[%s747_s1 + $0xf0] sm:$0xff]  ;;  %v424_v7 = vld [vmem:[%s747_s1 + $0xe8] sm:$0xff] }
   0x3   :  { %v401_v2 = vld [vmem:[%s747_s1 + $0x118] sm:$0xff]  ;;  %v414_v5 = vld [vmem:[%s747_s1 + $0x110] sm:$0xff]  ;;  %182 = vmatpush.msra.mxu1 %v396_v1  ;;  %v429_v8 = vld [vmem:[%s747_s1 + $0x108] sm:$0xff] }
   0x4   :  { %250 = vmatpush.msra.mxu2 %v401_v2  ;;  %127 = vmatpush.msra.mxu0 %v64_v3  ;;  %v62_v9 = vld [vmem:[%s747_s1 + $0x60] sm:$0xff]  ;;  %v13_v12 = vld [vmem:[%s748_s0 + $0x10] sm:$0xff]  ;;  %v61_v13 = vld [vmem:[%s747_s1 + $0x58] sm:$0xff] }
   0x5   :  { %340 = vmatpush.msra.mxu3 %v64_v3  ;;  %183 = vmatpush.msra.mxu1 %v409_v4  ;;  %v439_v10 = vld [vmem:[%s747_s1 + $0xe0] sm:$0xff]  ;;  %v457_v14 = vld [vmem:[%s747_s1 + $0xd8] sm:$0xff]  ;;  %v60_v15 = vld [vmem:[%s747_s1 + $0x50] sm:$0xff] }
   0x6   :  { %251 = vmatpush.msra.mxu2 %v414_v5  ;;  %128 = vmatpush.msra.mxu0 %v63_v6  ;;  %v444_v11 = vld [vmem:[%s747_s1 + $0x100] sm:$0xff]  ;;  %v468_v16 = vld [vmem:[%s747_s1 + $0xd0] sm:$0xff]  ;;  %v59_v17 = vld [vmem:[%s747_s1 + $0x48] sm:$0xff] }
   0x7   :  { %341 = vmatpush.msra.mxu3 %v63_v6  ;;  %184 = vmatpush.msra.mxu1 %v424_v7  ;;  %v477_v18 = vld [vmem:[%s747_s1 + $0xc8] sm:$0xff]  ;;  %v58_v19 = vld [vmem:[%s747_s1 + $0x40] sm:$0xff]  ;;  %v57_v22 = vld [vmem:[%s747_s1 + $0x38] sm:$0xff] }
   0x8   :  { %252 = vmatpush.msra.mxu2 %v429_v8  ;;  %129 = vmatpush.msra.mxu0 %v62_v9  ;;  %v486_v20 = vld [vmem:[%s747_s1 + $0xc0] sm:$0xff]  ;;  %v16_v21 = vld [vmem:[%s748_s0 + $0x28] sm:$0xff]  ;;  %v498_v23 = vld [vmem:[%s747_s1 + $0xb8] sm:$0xff] }
   0x9   :  { %342 = vmatpush.msra.mxu3 %v62_v9  ;;  %185 = vmatpush.msra.mxu1 %v439_v10  ;;  %v56_v24 = vld [vmem:[%s747_s1 + $0x30] sm:$0xff]  ;;  %v55_v26 = vld [vmem:[%s747_s1 + $0x28] sm:$0xff]  ;;  %v54_v28 = vld [vmem:[%s747_s1 + $0x20] sm:$0xff] }
   0xa   :  { %253 = vmatpush.msra.mxu2 %v444_v11  ;;  %130 = vmatpush.msra.mxu0 %v61_v13  ;;  %v508_v25 = vld [vmem:[%s747_s1 + $0xb0] sm:$0xff]  ;;  %v517_v27 = vld [vmem:[%s747_s1 + $0xa8] sm:$0xff]  ;;  %v526_v29 = vld [vmem:[%s747_s1 + $0xa0] sm:$0xff] }
   0xb   :  { %326 = vmatmul.msk.f32.vlgmr.msra.gmra.mxu2 %vm86_vm0, %v13_v12  ;;  %343 = vmatpush.msra.mxu3 %v61_v13  ;;  %v19_v30 = vld [vmem:[%s748_s0 + $0x40] sm:$0xff]  ;;  %v53_v31 = vld [vmem:[%s747_s1 + $0x18] sm:$0xff]  ;;  %v52_v33 = vld [vmem:[%s747_s1 + $0x10] sm:$0xff] }
   0xc   :  { %186 = vmatpush.msra.mxu1 %v457_v14  ;;  %131 = vmatpush.msra.mxu0 %v60_v15  ;;  %v538_v32 = vld [vmem:[%s747_s1 + $0x98] sm:$0xff]  ;;  %v68_v34 = vld [vmem:[%s747_s1 + $0x90] sm:$0xff]  ;;  %v51_v35 = vld [vmem:[%s747_s1 + $0x8] sm:$0xff] }
   0xd   :  { %344 = vmatpush.msra.mxu3 %v60_v15  ;;  %v67_v36 = vld [vmem:[%s747_s1 + $0x88] sm:$0xff]  ;;  %v50_v37 = vld [vmem:[%s747_s1] sm:$0xff]  ;;  %v38_v40 = vld [vmem:[%s748_s0 + $0xd8] sm:$0xff] }
   0xe   :  { %187 = vmatpush.msra.mxu1 %v468_v16  ;;  %132 = vmatpush.msra.mxu0 %v59_v17  ;;  %v66_v38 = vld [vmem:[%s747_s1 + $0x80] sm:$0xff]  ;;  %v12_v41 = vld [vmem:[%s748_s0 + $0x8] sm:$0xff]  ;;  %v22_v42 = vld [vmem:[%s748_s0 + $0x58] sm:$0xff] }
   0xf   :  { %345 = vmatpush.msra.mxu3 %v59_v17  ;;  %v11_v39 = vld [vmem:[%s748_s0] sm:$0xff]  ;;  %v14_v43 = vld [vmem:[%s748_s0 + $0x18] sm:$0xff]  ;;  %v41_v44 = vld [vmem:[%s748_s0 + $0xf0] sm:$0xff] }
  0x10   :  { %188 = vmatpush.msra.mxu1 %v477_v18  ;;  %133 = vmatpush.msra.mxu0 %v58_v19  ;;  %v15_v45 = vld [vmem:[%s748_s0 + $0x20] sm:$0xff]  ;;  %v25_v46 = vld [vmem:[%s748_s0 + $0x70] sm:$0xff]  ;;  %v44_v48 = vld [vmem:[%s748_s0 + $0x108] sm:$0xff] }
  0x11   :  { %346 = vmatpush.msra.mxu3 %v58_v19  ;;  %v17_v47 = vld [vmem:[%s748_s0 + $0x30] sm:$0xff]  ;;  %v18_v49 = vld [vmem:[%s748_s0 + $0x38] sm:$0xff]  ;;  %v28_v50 = vld [vmem:[%s748_s0 + $0x88] sm:$0xff] }
  0x12   :  { %189 = vmatpush.msra.mxu1 %v486_v20  ;;  %134 = vmatpush.msra.mxu0 %v57_v22  ;;  %v20_v51 = vld [vmem:[%s748_s0 + $0x48] sm:$0xff]  ;;  %v47_v52 = vld [vmem:[%s748_s0 + $0x120] sm:$0x3]  ;;  %v21_v53 = vld [vmem:[%s748_s0 + $0x50] sm:$0xff] }
  0x13   :  { %327 = vmatmul.msk.f32.gmra.mxu2 %vm86_vm0, %v16_v21  ;;  %347 = vmatpush.msra.mxu3 %v57_v22  ;;  %v31_v54 = vld [vmem:[%s748_s0 + $0xa0] sm:$0xff]  ;;  %v24_v57 = vld [vmem:[%s748_s0 + $0x68] sm:$0xff]  ;;  %v34_v58 = vld [vmem:[%s748_s0 + $0xb8] sm:$0xff] }
  0x14   :  { %190 = vmatpush.msra.mxu1 %v498_v23  ;;  %135 = vmatpush.msra.mxu0 %v56_v24  ;;  %v23_v55 = vld [vmem:[%s748_s0 + $0x60] sm:$0xff]  ;;  %v26_v59 = vld [vmem:[%s748_s0 + $0x78] sm:$0xff]  ;;  %v37_v62 = vld [vmem:[%s748_s0 + $0xd0] sm:$0xff] }
  0x15   :  { %348 = vmatpush.msra.mxu3 %v56_v24  ;;  %v39_v56 = vld [vmem:[%s748_s0 + $0xe0] sm:$0xff]  ;;  %v42_v60 = vld [vmem:[%s748_s0 + $0xf8] sm:$0xff]  ;;  %v29_v63 = vld [vmem:[%s748_s0 + $0x90] sm:$0xff] }
  0x16   :  { %191 = vmatpush.msra.mxu1 %v508_v25  ;;  %136 = vmatpush.msra.mxu0 %v55_v26  ;;  %v27_v61 = vld [vmem:[%s748_s0 + $0x80] sm:$0xff]  ;;  %v45_v0 = vld [vmem:[%s748_s0 + $0x110] sm:$0xff]  ;;  %v32_v3 = vld [vmem:[%s748_s0 + $0xa8] sm:$0xff] }
  0x17   :  { %349 = vmatpush.msra.mxu3 %v55_v26  ;;  %v43_v6 = vld [vmem:[%s748_s0 + $0x100] sm:$0xff]  ;;  %v36_v9 = vld [vmem:[%s748_s0 + $0xc8] sm:$0xff] }
  0x18   :  { %192 = vmatpush.msra.mxu1 %v517_v27  ;;  %137 = vmatpush.msra.mxu0 %v54_v28 }
  0x19   :  { %350 = vmatpush.msra.mxu3 %v54_v28 }
  0x1a   :  { %193 = vmatpush.msra.mxu1 %v526_v29  ;;  %138 = vmatpush.msra.mxu0 %v53_v31 }
  0x1b   :  { %328 = vmatmul.msk.f32.gmra.mxu2 %vm86_vm0, %v19_v30  ;;  %351 = vmatpush.msra.mxu3 %v53_v31 }
  0x1c   :  { %194 = vmatpush.msra.mxu1 %v538_v32  ;;  %139 = vmatpush.msra.mxu0 %v52_v33 }
  0x1d   :  { %352 = vmatpush.msra.mxu3 %v52_v33 }
  0x1e   :  { %195 = vmatpush.msra.mxu1 %v68_v34  ;;  %140 = vmatpush.msra.mxu0 %v51_v35 }
  0x1f   :  { %353 = vmatpush.msra.mxu3 %v51_v35 }
  0x20   :  { %196 = vmatpush.msra.mxu1 %v67_v36  ;;  %141 = vmatpush.msra.mxu0 %v50_v37 }
  0x21   :  { %354 = vmatpush.msra.mxu3 %v50_v37  ;;  %142 = vmatmul.f32.vlgmr.msra.gmra.mxu0 %v11_v39 }
  0x22   :  { %197 = vmatpush.msra.mxu1 %v66_v38  ;;  %169 = vmatmul.f32.vlgmr.msra.gmra.mxu3 %v38_v40 }
  0x23   :  { %355 = vmatpush.msrb.mxu3 %v396_v1  ;;  %198 = vmatmul.f32.vlgmr.msra.gmra.mxu1 %v12_v41  ;;  %v30_v1 = vld [vmem:[%s748_s0 + $0x98] sm:$0xff] }
  0x24   :  { %329 = vmatmul.msk.f32.gmra.mxu2 %vm86_vm0, %v22_v42 }
  0x25   :  { %356 = vmatpush.msrb.mxu3 %v409_v4  ;;  %v48_v4 = vld [vmem:[%s748_s0 + $0x128] sm:$0x3] }
  0x27   :  { %357 = vmatpush.msrb.mxu3 %v424_v7  ;;  %v35_v7 = vld [vmem:[%s748_s0 + $0xc0] sm:$0xff] }
  0x29   :  { %358 = vmatpush.msrb.mxu3 %v439_v10  ;;  %145 = vmatmul.f32.gmra.mxu0 %v14_v43  ;;  %v46_v10 = vld [vmem:[%s748_s0 + $0x118] sm:$0xff] }
  0x2a   :  { %172 = vmatmul.f32.gmra.mxu3 %v41_v44 }
  0x2b   :  { %359 = vmatpush.msrb.mxu3 %v457_v14  ;;  %201 = vmatmul.f32.gmra.mxu1 %v15_v45 }
  0x2c   :  { %330 = vmatmul.msk.f32.gmra.mxu2 %vm86_vm0, %v25_v46 }
  0x2d   :  { %360 = vmatpush.msrb.mxu3 %v468_v16 }
  0x2f   :  { %361 = vmatpush.msrb.mxu3 %v477_v18 }
  0x31   :  { %362 = vmatpush.msrb.mxu3 %v486_v20  ;;  %148 = vmatmul.f32.gmra.mxu0 %v17_v47 }
  0x32   :  { %175 = vmatmul.f32.gmra.mxu3 %v44_v48 }
  0x33   :  { %363 = vmatpush.msrb.mxu3 %v498_v23  ;;  %204 = vmatmul.f32.gmra.mxu1 %v18_v49 }
  0x34   :  { %331 = vmatmul.msk.f32.gmra.mxu2 %vm86_vm0, %v28_v50 }
  0x35   :  { %364 = vmatpush.msrb.mxu3 %v508_v25 }
  0x37   :  { %365 = vmatpush.msrb.mxu3 %v517_v27 }
  0x39   :  { %366 = vmatpush.msrb.mxu3 %v526_v29  ;;  %151 = vmatmul.f32.gmra.mxu0 %v20_v51 }
  0x3a   :  { %178 = vmatmul.f32.gmra.mxu3 %v47_v52 }
  0x3b   :  { %367 = vmatpush.msrb.mxu3 %v538_v32  ;;  %207 = vmatmul.f32.gmra.mxu1 %v21_v53 }
  0x3c   :  { %332 = vmatmul.msk.f32.gmra.mxu2 %vm86_vm0, %v31_v54 }
  0x3d   :  { %368 = vmatpush.msrb.mxu3 %v68_v34 }
  0x3f   :  { %369 = vmatpush.msrb.mxu3 %v67_v36 }
  0x41   :  { %370 = vmatpush.msrb.mxu3 %v66_v38  ;;  %154 = vmatmul.f32.gmra.mxu0 %v23_v55 }
  0x42   :  { %225 = vmatmul.f32.vlgmr.msrb.gmra.mxu3 %v39_v56 }
  0x43   :  { %210 = vmatmul.f32.gmra.mxu1 %v24_v57  ;;  %371 = vmatpush.msra.mxu3 %v401_v2  ;;  %v40_v2 = vld [vmem:[%s748_s0 + $0xe8] sm:$0xff] }
  0x44   :  { %333 = vmatmul.msk.f32.gmra.mxu2 %vm86_vm0, %v34_v58 }
  0x45   :  { %372 = vmatpush.msra.mxu3 %v414_v5  ;;  %v33_v5 = vld [vmem:[%s748_s0 + $0xb0] sm:$0xff] }
  0x47   :  { %373 = vmatpush.msra.mxu3 %v429_v8  ;;  %v49_v8 = vld [vmem:[%s748_s0 + $0x130] sm:$0x3] }
  0x49   :  { %374 = vmatpush.msra.mxu3 %v444_v11  ;;  %157 = vmatmul.f32.gmra.mxu0 %v26_v59 }
  0x4a   :  { %228 = vmatmul.f32.gmra.mxu3 %v42_v60 }
  0x4b   :  { %213 = vmatmul.f32.gmra.mxu1 %v27_v61 }
  0x4c   :  { %334 = vmatmul.msk.f32.gmra.mxu2 %vm86_vm0, %v37_v62 }
  0x51   :  { %160 = vmatmul.f32.gmra.mxu0 %v29_v63 }
  0x52   :  { %231 = vmatmul.f32.gmra.mxu3 %v45_v0 }
  0x53   :  { %216 = vmatmul.f32.gmra.mxu1 %v30_v1 }
  0x54   :  { %335 = vmatmul.msk.f32.gmra.mxu2 %vm86_vm0, %v40_v2 }
  0x59   :  { %163 = vmatmul.f32.gmra.mxu0 %v32_v3 }
  0x5a   :  { %234 = vmatmul.f32.gmra.mxu3 %v48_v4 }
  0x5b   :  { %219 = vmatmul.f32.gmra.mxu1 %v33_v5 }
  0x5c   :  { %336 = vmatmul.msk.f32.gmra.mxu2 %vm86_vm0, %v43_v6 }
  0x61   :  { %166 = vmatmul.f32.gmra.mxu0 %v35_v7 }
  0x62   :  { %338 = vmatmul.msk.f32.vlgmr.msra.gmra.mxu3 %vm86_vm0, %v49_v8 }
  0x63   :  { %222 = vmatmul.f32.gmra.mxu1 %v36_v9 }
  0x64   :  { %337 = vmatmul.msk.f32.gmra.mxu2 %vm86_vm0, %v46_v10 }
  0x8e   :  { %v255_v11 = vpop.f32.mrf.mxu2 }
  0x96   :  { %v258_v12 = vpop.f32.mrf.mxu2 }
  0x9e   :  { %v261_v13 = vpop.f32.mrf.mxu2  ;;  %v143_v14 = vpop.f32.mrf.mxu0 }
  0xa0   :  { %v199_v15 = vpop.f32.mrf.mxu1 }
  0xa1   :  { %v200_v16 = vadd.f32 %v199_v15, %v143_v14 }
  0xa3   :  { %v256_v17 = vadd.f32 %v255_v11, %v200_v16 }
  0xa5   :  { %v294_v18 = vmax.f32 %v256_v17, 0.0  ;;  %v170_v19 = vpop.f32.mrf.mxu3 }
  0xa6   :  { %v146_v21 = vpop.f32.mrf.mxu0 }
  0xa7   :  { %308 = vst.msk [vmem:[%s749_s2] sm:$0xff] %vm307_vm1, %v294_v18  ;;  %v264_v20 = vpop.f32.mrf.mxu2 }
  0xa8   :  { %v202_v22 = vpop.f32.mrf.mxu1 }
  0xa9   :  { %v203_v23 = vadd.f32 %v202_v22, %v146_v21 }
  0xab   :  { %v259_v24 = vadd.f32 %v258_v12, %v203_v23 }
  0xad   :  { %v295_v25 = vmax.f32 %v259_v24, 0.0  ;;  %v173_v26 = vpop.f32.mrf.mxu3 }
  0xae   :  { %v149_v28 = vpop.f32.mrf.mxu0 }
  0xaf   :  { %309 = vst.msk [vmem:[%s749_s2 + $0x8] sm:$0xff] %vm307_vm1, %v295_v25  ;;  %v267_v27 = vpop.f32.mrf.mxu2 }
  0xb0   :  { %v205_v29 = vpop.f32.mrf.mxu1 }
  0xb1   :  { %v206_v30 = vadd.f32 %v205_v29, %v149_v28 }
  0xb3   :  { %v262_v31 = vadd.f32 %v261_v13, %v206_v30 }
  0xb5   :  { %v296_v32 = vmax.f32 %v262_v31, 0.0  ;;  %v176_v33 = vpop.f32.mrf.mxu3 }
  0xb6   :  { %v152_v35 = vpop.f32.mrf.mxu0 }
  0xb7   :  { %310 = vst.msk [vmem:[%s749_s2 + $0x10] sm:$0xff] %vm307_vm1, %v296_v32  ;;  %v270_v34 = vpop.f32.mrf.mxu2 }
  0xb8   :  { %v208_v36 = vpop.f32.mrf.mxu1 }
  0xb9   :  { %v209_v37 = vadd.f32 %v208_v36, %v152_v35 }
  0xbb   :  { %v265_v38 = vadd.f32 %v264_v20, %v209_v37 }
  0xbd   :  { %v297_v39 = vmax.f32 %v265_v38, 0.0  ;;  %v179_v40 = vpop.f32.mrf.mxu3 }
  0xbe   :  { %v155_v42 = vpop.f32.mrf.mxu0 }
  0xbf   :  { %311 = vst.msk [vmem:[%s749_s2 + $0x18] sm:$0xff] %vm307_vm1, %v297_v39  ;;  %v273_v41 = vpop.f32.mrf.mxu2 }
  0xc0   :  { %v211_v43 = vpop.f32.mrf.mxu1 }
  0xc1   :  { %v212_v44 = vadd.f32 %v211_v43, %v155_v42 }
  0xc3   :  { %v268_v45 = vadd.f32 %v267_v27, %v212_v44 }
  0xc5   :  { %v298_v46 = vmax.f32 %v268_v45, 0.0  ;;  %v226_v47 = vpop.f32.mrf.mxu3 }
  0xc6   :  { %v158_v49 = vpop.f32.mrf.mxu0  ;;  %v227_v62 = vadd.f32 %v226_v47, %v170_v19 }
  0xc7   :  { %312 = vst.msk [vmem:[%s749_s2 + $0x20] sm:$0xff] %vm307_vm1, %v298_v46  ;;  %v276_v48 = vpop.f32.mrf.mxu2 }
  0xc8   :  { %v214_v50 = vpop.f32.mrf.mxu1 }
  0xc9   :  { %v215_v51 = vadd.f32 %v214_v50, %v158_v49 }
  0xcb   :  { %v271_v52 = vadd.f32 %v270_v34, %v215_v51 }
  0xcd   :  { %v299_v53 = vmax.f32 %v271_v52, 0.0  ;;  %v229_v54 = vpop.f32.mrf.mxu3 }
  0xce   :  { %v161_v56 = vpop.f32.mrf.mxu0  ;;  %v230_v8 = vadd.f32 %v229_v54, %v173_v26 }
  0xcf   :  { %313 = vst.msk [vmem:[%s749_s2 + $0x28] sm:$0xff] %vm307_vm1, %v299_v53  ;;  %v279_v55 = vpop.f32.mrf.mxu2 }
  0xd0   :  { %v217_v57 = vpop.f32.mrf.mxu1 }
  0xd1   :  { %v218_v58 = vadd.f32 %v217_v57, %v161_v56 }
  0xd3   :  { %v274_v59 = vadd.f32 %v273_v41, %v218_v58 }
  0xd5   :  { %v300_v60 = vmax.f32 %v274_v59, 0.0  ;;  %v232_v61 = vpop.f32.mrf.mxu3 }
  0xd6   :  { %v164_v0 = vpop.f32.mrf.mxu0  ;;  %v233_v19 = vadd.f32 %v232_v61, %v176_v33 }
  0xd7   :  { %314 = vst.msk [vmem:[%s749_s2 + $0x30] sm:$0xff] %vm307_vm1, %v300_v60  ;;  %v282_v63 = vpop.f32.mrf.mxu2 }
  0xd8   :  { %v283_v1 = vadd.f32 %v282_v63, %v227_v62  ;;  %v220_v2 = vpop.f32.mrf.mxu1 }
  0xd9   :  { %v221_v3 = vadd.f32 %v220_v2, %v164_v0 }
  0xda   :  { %v303_v4 = vmax.f32 %v283_v1, 0.0 }
  0xdb   :  { %v277_v5 = vadd.f32 %v276_v48, %v221_v3 }
  0xdc   :  { %317 = vst.msk [vmem:[%s749_s2 + $0x48] sm:$0xff] %vm307_vm1, %v303_v4 }
  0xdd   :  { %v301_v6 = vmax.f32 %v277_v5, 0.0  ;;  %v235_v7 = vpop.f32.mrf.mxu3 }
  0xde   :  { %v167_v10 = vpop.f32.mrf.mxu0  ;;  %v236_v16 = vadd.f32 %v235_v7, %v179_v40 }
  0xdf   :  { %315 = vst.msk [vmem:[%s749_s2 + $0x38] sm:$0xff] %vm307_vm1, %v301_v6  ;;  %v285_v9 = vpop.f32.mrf.mxu2 }
  0xe0   :  { %v286_v11 = vadd.f32 %v285_v9, %v230_v8  ;;  %v223_v12 = vpop.f32.mrf.mxu1 }
  0xe1   :  { %v224_v13 = vadd.f32 %v223_v12, %v167_v10 }
  0xe2   :  { %v304_v14 = vmax.f32 %v286_v11, 0.0 }
  0xe3   :  { %v280_v15 = vadd.f32 %v279_v55, %v224_v13 }
  0xe4   :  { %318 = vst.msk [vmem:[%s749_s2 + $0x50] sm:$0xff] %vm307_vm1, %v304_v14 }
  0xe5   :  { %v302_v17 = vmax.f32 %v280_v15, 0.0  ;;  %v291_v18 = vpop.f32.mrf.mxu3 }
  0xe6   :  { %v292_v20 = vadd.f32 %v291_v18, %v236_v16 }
  0xe7   :  { %316 = vst.msk [vmem:[%s749_s2 + $0x40] sm:$0xff] %vm307_vm1, %v302_v17  ;;  %v288_v21 = vpop.f32.mrf.mxu2 }
  0xe8   :  { %v289_v22 = vadd.f32 %v288_v21, %v233_v19  ;;  %v306_v23 = vmax.f32 %v292_v20, 0.0 }
  0xea   :  { %v305_v24 = vmax.f32 %v289_v22, 0.0  ;;  %321 = vst.msk [vmem:[%s749_s2 + $0x60] sm:$0x3] %vm320_vm2, %v306_v23 }
  0xec   :  { %319 = vst.msk [vmem:[%s749_s2 + $0x58] sm:$0xff] %vm307_vm1, %v305_v24 }

// kernel: decoder_forward.4
= control target key start
LH: loop header
LB: loop body
LE: loop exit
PB: predicated region body
PF: predicated region fallthrough
CT: control target
= control target key end

     0   :  { %vm50_vm0 = vcmask 261120   ;;  %vm2471_vm1 = vcmask 1041408   ;;  %vm2473_vm2 = vcmask 1045508   ;;  %vm2475_vm3 = vcmask 1043456   ;;  %s5764_s1 = inlined_call_operand.vmem [shape: f32[32,512], index: 1, kind: input, shape index: {}]   ;;  %s5765_s0 = inlined_call_operand.vmem [shape: f32[2,32], index: 0, kind: input, shape index: {}]   ;;  %s5766_s3 = inlined_call_operand.vmem [shape: f32[512,1024], index: 3, kind: input, shape index: {}]   ;;  %s5767_s2 = inlined_call_operand.vmem [shape: f32[1,512], index: 2, kind: input, shape index: {}]   ;;  %s5768_s5 = inlined_call_operand.vmem [shape: f32[1024,512], index: 5, kind: input, shape index: {}]   ;;  %s5769_s4 = inlined_call_operand.vmem [shape: f32[1,1024], index: 4, kind: input, shape index: {}]   ;;  %s5770_s6 = inlined_call_operand.vmem [shape: f32[2,512], index: 6, kind: output, shape index: {}]  }
   0x1   :  { %v36_v0 = vld [vmem:[%s5764_s1 + $0x60] sm:$0xff]  ;;  %v37_v1 = vld [vmem:[%s5764_s1 + $0x68] sm:$0xff]  ;;  %v38_v2 = vld [vmem:[%s5764_s1 + $0x70] sm:$0xff] }
   0x2   :  { %66 = vmatpush.msra.mxu0 %v36_v0  ;;  %86 = vmatpush.msra.mxu1 %v37_v1  ;;  %v39_v3 = vld [vmem:[%s5764_s1 + $0x78] sm:$0xff]  ;;  %v32_v4 = vld [vmem:[%s5764_s1 + $0x40] sm:$0xff]  ;;  %v33_v5 = vld [vmem:[%s5764_s1 + $0x48] sm:$0xff] }
   0x3   :  { %106 = vmatpush.msra.mxu2 %v38_v2  ;;  %126 = vmatpush.msra.mxu3 %v39_v3  ;;  %v34_v6 = vld [vmem:[%s5764_s1 + $0x50] sm:$0xff]  ;;  %v35_v7 = vld [vmem:[%s5764_s1 + $0x58] sm:$0xff]  ;;  %v28_v8 = vld [vmem:[%s5764_s1 + $0x20] sm:$0xff] }
   0x4   :  { %67 = vmatpush.msra.mxu0 %v32_v4  ;;  %87 = vmatpush.msra.mxu1 %v33_v5  ;;  %v29_v9 = vld [vmem:[%s5764_s1 + $0x28] sm:$0xff]  ;;  %v30_v10 = vld [vmem:[%s5764_s1 + $0x30] sm:$0xff]  ;;  %v31_v11 = vld [vmem:[%s5764_s1 + $0x38] sm:$0xff] }
   0x5   :  { %107 = vmatpush.msra.mxu2 %v34_v6  ;;  %127 = vmatpush.msra.mxu3 %v35_v7  ;;  %v24_v12 = vld [vmem:[%s5764_s1] sm:$0xff]  ;;  %v25_v13 = vld [vmem:[%s5764_s1 + $0x8] sm:$0xff]  ;;  %v26_v14 = vld [vmem:[%s5764_s1 + $0x10] sm:$0xff] }
   0x6   :  { %68 = vmatpush.msra.mxu0 %v28_v8  ;;  %88 = vmatpush.msra.mxu1 %v29_v9  ;;  %v27_v15 = vld [vmem:[%s5764_s1 + $0x18] sm:$0xff]  ;;  %v23_v16 = vld [vmem:[%s5765_s0] sm:$0x3] }
   0x7   :  { %108 = vmatpush.msra.mxu2 %v30_v10  ;;  %128 = vmatpush.msra.mxu3 %v31_v11  ;;  %v258_v17 = vld [vmem:[%s5766_s3 + $0x3c0] sm:$0xff] }
   0x8   :  { %69 = vmatpush.msra.mxu0 %v24_v12  ;;  %89 = vmatpush.msra.mxu1 %v25_v13  ;;  %v386_v18 = vld [vmem:[%s5766_s3 + $0x7c0] sm:$0xff] }
   0x9   :  { %109 = vmatpush.msra.mxu2 %v26_v14  ;;  %129 = vmatpush.msra.mxu3 %v27_v15  ;;  %v514_v19 = vld [vmem:[%s5766_s3 + $0xbc0] sm:$0xff]  ;;  %v259_v15 = vld [vmem:[%s5766_s3 + $0x3c8] sm:$0xff] }
   0xa   :  { %2483 = vmatmul.msk.f32.vlgmr.msra.gmra.mxu0 %vm50_vm0, %v23_v16  ;;  %2484 = vmatmul.msk.f32.vlgmr.msra.gmra.mxu1 %vm50_vm0, %v23_v16  ;;  %v642_v20 = vld [vmem:[%s5766_s3 + $0xfc0] sm:$0xff] }
   0xb   :  { %2485 = vmatmul.msk.f32.vlgmr.msra.gmra.mxu2 %vm50_vm0, %v23_v16  ;;  %2486 = vmatmul.msk.f32.vlgmr.msra.gmra.mxu3 %vm50_vm0, %v23_v16  ;;  %v250_v21 = vld [vmem:[%s5766_s3 + $0x380] sm:$0xff]  ;;  %v387_v16 = vld [vmem:[%s5766_s3 + $0x7c8] sm:$0xff] }
   0xc   :  { %v378_v22 = vld [vmem:[%s5766_s3 + $0x780] sm:$0xff]  ;;  %668 = vmatpush.msrb.mxu0 %v258_v17  ;;  %688 = vmatpush.msrb.mxu1 %v386_v18 }
   0xd   :  { %v506_v23 = vld [vmem:[%s5766_s3 + $0xb80] sm:$0xff]  ;;  %708 = vmatpush.msrb.mxu2 %v514_v19  ;;  %728 = vmatpush.msrb.mxu3 %v642_v20  ;;  %v251_v19 = vld [vmem:[%s5766_s3 + $0x388] sm:$0xff] }
   0xe   :  { %v634_v24 = vld [vmem:[%s5766_s3 + $0xf80] sm:$0xff]  ;;  %669 = vmatpush.msrb.mxu0 %v250_v21  ;;  %689 = vmatpush.msrb.mxu1 %v378_v22  ;;  %v379_v20 = vld [vmem:[%s5766_s3 + $0x788] sm:$0xff] }
   0xf   :  { %v242_v25 = vld [vmem:[%s5766_s3 + $0x340] sm:$0xff]  ;;  %709 = vmatpush.msrb.mxu2 %v506_v23  ;;  %729 = vmatpush.msrb.mxu3 %v634_v24  ;;  %v515_v21 = vld [vmem:[%s5766_s3 + $0xbc8] sm:$0xff] }
  0x10   :  { %v370_v26 = vld [vmem:[%s5766_s3 + $0x740] sm:$0xff]  ;;  %670 = vmatpush.msrb.mxu0 %v242_v25  ;;  %v643_v22 = vld [vmem:[%s5766_s3 + $0xfc8] sm:$0xff] }
  0x11   :  { %v498_v27 = vld [vmem:[%s5766_s3 + $0xb40] sm:$0xff]  ;;  %690 = vmatpush.msrb.mxu1 %v370_v26  ;;  %v243_v23 = vld [vmem:[%s5766_s3 + $0x348] sm:$0xff] }
  0x12   :  { %v626_v28 = vld [vmem:[%s5766_s3 + $0xf40] sm:$0xff]  ;;  %710 = vmatpush.msrb.mxu2 %v498_v27  ;;  %v371_v24 = vld [vmem:[%s5766_s3 + $0x748] sm:$0xff] }
  0x13   :  { %v234_v29 = vld [vmem:[%s5766_s3 + $0x300] sm:$0xff]  ;;  %730 = vmatpush.msrb.mxu3 %v626_v28  ;;  %v507_v25 = vld [vmem:[%s5766_s3 + $0xb88] sm:$0xff] }
  0x14   :  { %v362_v30 = vld [vmem:[%s5766_s3 + $0x700] sm:$0xff]  ;;  %671 = vmatpush.msrb.mxu0 %v234_v29  ;;  %v635_v26 = vld [vmem:[%s5766_s3 + $0xf88] sm:$0xff] }
  0x15   :  { %v490_v31 = vld [vmem:[%s5766_s3 + $0xb00] sm:$0xff]  ;;  %691 = vmatpush.msrb.mxu1 %v362_v30  ;;  %v235_v27 = vld [vmem:[%s5766_s3 + $0x308] sm:$0xff] }
  0x16   :  { %v618_v32 = vld [vmem:[%s5766_s3 + $0xf00] sm:$0xff]  ;;  %711 = vmatpush.msrb.mxu2 %v490_v31  ;;  %v363_v28 = vld [vmem:[%s5766_s3 + $0x708] sm:$0xff] }
  0x17   :  { %v226_v33 = vld [vmem:[%s5766_s3 + $0x2c0] sm:$0xff]  ;;  %731 = vmatpush.msrb.mxu3 %v618_v32  ;;  %v499_v29 = vld [vmem:[%s5766_s3 + $0xb48] sm:$0xff] }
  0x18   :  { %v354_v34 = vld [vmem:[%s5766_s3 + $0x6c0] sm:$0xff]  ;;  %672 = vmatpush.msrb.mxu0 %v226_v33  ;;  %v627_v30 = vld [vmem:[%s5766_s3 + $0xf48] sm:$0xff] }
  0x19   :  { %v482_v35 = vld [vmem:[%s5766_s3 + $0xac0] sm:$0xff]  ;;  %692 = vmatpush.msrb.mxu1 %v354_v34  ;;  %v227_v31 = vld [vmem:[%s5766_s3 + $0x2c8] sm:$0xff] }
  0x1a   :  { %v610_v36 = vld [vmem:[%s5766_s3 + $0xec0] sm:$0xff]  ;;  %712 = vmatpush.msrb.mxu2 %v482_v35  ;;  %v355_v32 = vld [vmem:[%s5766_s3 + $0x6c8] sm:$0xff] }
  0x1b   :  { %v218_v37 = vld [vmem:[%s5766_s3 + $0x280] sm:$0xff]  ;;  %732 = vmatpush.msrb.mxu3 %v610_v36  ;;  %v491_v33 = vld [vmem:[%s5766_s3 + $0xb08] sm:$0xff] }
  0x1c   :  { %v346_v38 = vld [vmem:[%s5766_s3 + $0x680] sm:$0xff]  ;;  %673 = vmatpush.msrb.mxu0 %v218_v37  ;;  %v619_v34 = vld [vmem:[%s5766_s3 + $0xf08] sm:$0xff] }
  0x1d   :  { %v474_v39 = vld [vmem:[%s5766_s3 + $0xa80] sm:$0xff]  ;;  %693 = vmatpush.msrb.mxu1 %v346_v38  ;;  %v219_v35 = vld [vmem:[%s5766_s3 + $0x288] sm:$0xff] }
  0x1e   :  { %v602_v40 = vld [vmem:[%s5766_s3 + $0xe80] sm:$0xff]  ;;  %713 = vmatpush.msrb.mxu2 %v474_v39  ;;  %v347_v36 = vld [vmem:[%s5766_s3 + $0x688] sm:$0xff] }
  0x1f   :  { %v210_v41 = vld [vmem:[%s5766_s3 + $0x240] sm:$0xff]  ;;  %733 = vmatpush.msrb.mxu3 %v602_v40  ;;  %v483_v37 = vld [vmem:[%s5766_s3 + $0xac8] sm:$0xff] }
  0x20   :  { %v338_v42 = vld [vmem:[%s5766_s3 + $0x640] sm:$0xff]  ;;  %674 = vmatpush.msrb.mxu0 %v210_v41  ;;  %v611_v38 = vld [vmem:[%s5766_s3 + $0xec8] sm:$0xff] }
  0x21   :  { %v466_v43 = vld [vmem:[%s5766_s3 + $0xa40] sm:$0xff]  ;;  %694 = vmatpush.msrb.mxu1 %v338_v42  ;;  %v211_v39 = vld [vmem:[%s5766_s3 + $0x248] sm:$0xff] }
  0x22   :  { %v594_v44 = vld [vmem:[%s5766_s3 + $0xe40] sm:$0xff]  ;;  %714 = vmatpush.msrb.mxu2 %v466_v43  ;;  %v339_v40 = vld [vmem:[%s5766_s3 + $0x648] sm:$0xff] }
  0x23   :  { %v202_v45 = vld [vmem:[%s5766_s3 + $0x200] sm:$0xff]  ;;  %734 = vmatpush.msrb.mxu3 %v594_v44  ;;  %v475_v41 = vld [vmem:[%s5766_s3 + $0xa88] sm:$0xff] }
  0x24   :  { %v330_v46 = vld [vmem:[%s5766_s3 + $0x600] sm:$0xff]  ;;  %675 = vmatpush.msrb.mxu0 %v202_v45  ;;  %v603_v42 = vld [vmem:[%s5766_s3 + $0xe88] sm:$0xff] }
  0x25   :  { %v458_v47 = vld [vmem:[%s5766_s3 + $0xa00] sm:$0xff]  ;;  %695 = vmatpush.msrb.mxu1 %v330_v46  ;;  %v203_v43 = vld [vmem:[%s5766_s3 + $0x208] sm:$0xff] }
  0x26   :  { %v586_v48 = vld [vmem:[%s5766_s3 + $0xe00] sm:$0xff]  ;;  %715 = vmatpush.msrb.mxu2 %v458_v47  ;;  %v331_v44 = vld [vmem:[%s5766_s3 + $0x608] sm:$0xff] }
  0x27   :  { %v194_v49 = vld [vmem:[%s5766_s3 + $0x1c0] sm:$0xff]  ;;  %735 = vmatpush.msrb.mxu3 %v586_v48  ;;  %v467_v45 = vld [vmem:[%s5766_s3 + $0xa48] sm:$0xff] }
  0x28   :  { %v322_v50 = vld [vmem:[%s5766_s3 + $0x5c0] sm:$0xff]  ;;  %676 = vmatpush.msrb.mxu0 %v194_v49  ;;  %v595_v46 = vld [vmem:[%s5766_s3 + $0xe48] sm:$0xff] }
  0x29   :  { %v450_v51 = vld [vmem:[%s5766_s3 + $0x9c0] sm:$0xff]  ;;  %696 = vmatpush.msrb.mxu1 %v322_v50  ;;  %v195_v47 = vld [vmem:[%s5766_s3 + $0x1c8] sm:$0xff] }
  0x2a   :  { %v578_v52 = vld [vmem:[%s5766_s3 + $0xdc0] sm:$0xff]  ;;  %716 = vmatpush.msrb.mxu2 %v450_v51  ;;  %v323_v48 = vld [vmem:[%s5766_s3 + $0x5c8] sm:$0xff] }
  0x2b   :  { %v186_v53 = vld [vmem:[%s5766_s3 + $0x180] sm:$0xff]  ;;  %736 = vmatpush.msrb.mxu3 %v578_v52  ;;  %v459_v49 = vld [vmem:[%s5766_s3 + $0xa08] sm:$0xff] }
  0x2c   :  { %v314_v54 = vld [vmem:[%s5766_s3 + $0x580] sm:$0xff]  ;;  %677 = vmatpush.msrb.mxu0 %v186_v53  ;;  %v587_v50 = vld [vmem:[%s5766_s3 + $0xe08] sm:$0xff] }
  0x2d   :  { %v442_v55 = vld [vmem:[%s5766_s3 + $0x980] sm:$0xff]  ;;  %697 = vmatpush.msrb.mxu1 %v314_v54  ;;  %v187_v51 = vld [vmem:[%s5766_s3 + $0x188] sm:$0xff] }
  0x2e   :  { %v570_v56 = vld [vmem:[%s5766_s3 + $0xd80] sm:$0xff]  ;;  %717 = vmatpush.msrb.mxu2 %v442_v55  ;;  %v315_v52 = vld [vmem:[%s5766_s3 + $0x588] sm:$0xff] }
  0x2f   :  { %v178_v57 = vld [vmem:[%s5766_s3 + $0x140] sm:$0xff]  ;;  %737 = vmatpush.msrb.mxu3 %v570_v56  ;;  %v451_v53 = vld [vmem:[%s5766_s3 + $0x9c8] sm:$0xff] }
  0x30   :  { %v306_v58 = vld [vmem:[%s5766_s3 + $0x540] sm:$0xff]  ;;  %678 = vmatpush.msrb.mxu0 %v178_v57  ;;  %v579_v54 = vld [vmem:[%s5766_s3 + $0xdc8] sm:$0xff] }
  0x31   :  { %v434_v59 = vld [vmem:[%s5766_s3 + $0x940] sm:$0xff]  ;;  %698 = vmatpush.msrb.mxu1 %v306_v58  ;;  %v179_v55 = vld [vmem:[%s5766_s3 + $0x148] sm:$0xff] }
  0x32   :  { %v562_v60 = vld [vmem:[%s5766_s3 + $0xd40] sm:$0xff]  ;;  %718 = vmatpush.msrb.mxu2 %v434_v59  ;;  %v307_v56 = vld [vmem:[%s5766_s3 + $0x548] sm:$0xff] }
  0x33   :  { %v170_v61 = vld [vmem:[%s5766_s3 + $0x100] sm:$0xff]  ;;  %738 = vmatpush.msrb.mxu3 %v562_v60  ;;  %v443_v57 = vld [vmem:[%s5766_s3 + $0x988] sm:$0xff] }
  0x34   :  { %v298_v62 = vld [vmem:[%s5766_s3 + $0x500] sm:$0xff]  ;;  %679 = vmatpush.msrb.mxu0 %v170_v61  ;;  %v571_v58 = vld [vmem:[%s5766_s3 + $0xd88] sm:$0xff] }
  0x35   :  { %v426_v63 = vld [vmem:[%s5766_s3 + $0x900] sm:$0xff]  ;;  %699 = vmatpush.msrb.mxu1 %v298_v62  ;;  %v171_v59 = vld [vmem:[%s5766_s3 + $0x108] sm:$0xff] }
  0x36   :  { %v554_v0 = vld [vmem:[%s5766_s3 + $0xd00] sm:$0xff]  ;;  %719 = vmatpush.msrb.mxu2 %v426_v63  ;;  %v299_v60 = vld [vmem:[%s5766_s3 + $0x508] sm:$0xff] }
  0x37   :  { %v162_v1 = vld [vmem:[%s5766_s3 + $0xc0] sm:$0xff]  ;;  %739 = vmatpush.msrb.mxu3 %v554_v0  ;;  %v163_v61 = vld [vmem:[%s5766_s3 + $0xc8] sm:$0xff] }
  0x38   :  { %v290_v2 = vld [vmem:[%s5766_s3 + $0x4c0] sm:$0xff]  ;;  %680 = vmatpush.msrb.mxu0 %v162_v1  ;;  %v291_v62 = vld [vmem:[%s5766_s3 + $0x4c8] sm:$0xff] }
  0x39   :  { %v418_v3 = vld [vmem:[%s5766_s3 + $0x8c0] sm:$0xff]  ;;  %700 = vmatpush.msrb.mxu1 %v290_v2  ;;  %v155_v63 = vld [vmem:[%s5766_s3 + $0x88] sm:$0xff] }
  0x3a   :  { %v546_v4 = vld [vmem:[%s5766_s3 + $0xcc0] sm:$0xff]  ;;  %720 = vmatpush.msrb.mxu2 %v418_v3  ;;  %v283_v0 = vld [vmem:[%s5766_s3 + $0x488] sm:$0xff] }
  0x3b   :  { %v154_v5 = vld [vmem:[%s5766_s3 + $0x80] sm:$0xff]  ;;  %740 = vmatpush.msrb.mxu3 %v546_v4  ;;  %v435_v1 = vld [vmem:[%s5766_s3 + $0x948] sm:$0xff] }
  0x3c   :  { %v282_v6 = vld [vmem:[%s5766_s3 + $0x480] sm:$0xff]  ;;  %681 = vmatpush.msrb.mxu0 %v154_v5  ;;  %v563_v2 = vld [vmem:[%s5766_s3 + $0xd48] sm:$0xff] }
  0x3d   :  { %v410_v7 = vld [vmem:[%s5766_s3 + $0x880] sm:$0xff]  ;;  %701 = vmatpush.msrb.mxu1 %v282_v6  ;;  %v147_v3 = vld [vmem:[%s5766_s3 + $0x48] sm:$0xff] }
  0x3e   :  { %v538_v8 = vld [vmem:[%s5766_s3 + $0xc80] sm:$0xff]  ;;  %721 = vmatpush.msrb.mxu2 %v410_v7  ;;  %v275_v4 = vld [vmem:[%s5766_s3 + $0x448] sm:$0xff] }
  0x3f   :  { %v146_v9 = vld [vmem:[%s5766_s3 + $0x40] sm:$0xff]  ;;  %741 = vmatpush.msrb.mxu3 %v538_v8  ;;  %v427_v5 = vld [vmem:[%s5766_s3 + $0x908] sm:$0xff] }
  0x40   :  { %v274_v10 = vld [vmem:[%s5766_s3 + $0x440] sm:$0xff]  ;;  %682 = vmatpush.msrb.mxu0 %v146_v9  ;;  %v555_v6 = vld [vmem:[%s5766_s3 + $0xd08] sm:$0xff] }
  0x41   :  { %v402_v11 = vld [vmem:[%s5766_s3 + $0x840] sm:$0xff]  ;;  %702 = vmatpush.msrb.mxu1 %v274_v10  ;;  %v139_v7 = vld [vmem:[%s5766_s3 + $0x8] sm:$0xff] }
  0x42   :  { %v530_v12 = vld [vmem:[%s5766_s3 + $0xc40] sm:$0xff]  ;;  %722 = vmatpush.msrb.mxu2 %v402_v11  ;;  %v267_v8 = vld [vmem:[%s5766_s3 + $0x408] sm:$0xff] }
  0x43   :  { %v138_v13 = vld [vmem:[%s5766_s3] sm:$0xff]  ;;  %742 = vmatpush.msrb.mxu3 %v530_v12  ;;  %v419_v9 = vld [vmem:[%s5766_s3 + $0x8c8] sm:$0xff] }
  0x44   :  { %v266_v14 = vld [vmem:[%s5766_s3 + $0x400] sm:$0xff]  ;;  %683 = vmatpush.msrb.mxu0 %v138_v13  ;;  %v547_v10 = vld [vmem:[%s5766_s3 + $0xcc8] sm:$0xff] }
  0x45   :  { %v394_v17 = vld [vmem:[%s5766_s3 + $0x800] sm:$0xff]  ;;  %703 = vmatpush.msrb.mxu1 %v266_v14  ;;  %v411_v11 = vld [vmem:[%s5766_s3 + $0x888] sm:$0xff] }
  0x46   :  { %v522_v18 = vld [vmem:[%s5766_s3 + $0xc00] sm:$0xff]  ;;  %748 = vmatpush.msra.mxu0 %v259_v15  ;;  %723 = vmatpush.msrb.mxu2 %v394_v17  ;;  %v539_v12 = vld [vmem:[%s5766_s3 + $0xc88] sm:$0xff] }
  0x47   :  { %768 = vmatpush.msra.mxu1 %v387_v16  ;;  %743 = vmatpush.msrb.mxu3 %v522_v18  ;;  %v403_v13 = vld [vmem:[%s5766_s3 + $0x848] sm:$0xff]  ;;  %v40_v17 = vld [vmem:[%s5767_s2] sm:$0xf] }
  0x48   :  { %749 = vmatpush.msra.mxu0 %v251_v19  ;;  %788 = vmatpush.msra.mxu2 %v515_v21  ;;  %v531_v14 = vld [vmem:[%s5766_s3 + $0xc48] sm:$0xff]  ;;  %v42_v18 = vperm.slane %v40_v17, 0  ;;  %v43_v19 = vperm.slane %v40_v17, 1 }
  0x49   :  { %769 = vmatpush.msra.mxu1 %v379_v20  ;;  %808 = vmatpush.msra.mxu3 %v643_v22  ;;  %v395_v15 = vld [vmem:[%s5766_s3 + $0x808] sm:$0xff] }
  0x4a   :  { %750 = vmatpush.msra.mxu0 %v243_v23  ;;  %789 = vmatpush.msra.mxu2 %v507_v25  ;;  %v523_v16 = vld [vmem:[%s5766_s3 + $0xc08] sm:$0xff] }
  0x4b   :  { %770 = vmatpush.msra.mxu1 %v371_v24  ;;  %809 = vmatpush.msra.mxu3 %v635_v26  ;;  %v260_v26 = vld [vmem:[%s5766_s3 + $0x3d0] sm:$0xff] }
  0x4c   :  { %751 = vmatpush.msra.mxu0 %v235_v27  ;;  %790 = vmatpush.msra.mxu2 %v499_v29  ;;  %v388_v27 = vld [vmem:[%s5766_s3 + $0x7d0] sm:$0xff]  ;;  %v45_v29 = vperm.slane %v40_v17, 3 }
  0x4d   :  { %771 = vmatpush.msra.mxu1 %v363_v28  ;;  %810 = vmatpush.msra.mxu3 %v627_v30  ;;  %v44_v28 = vperm.slane %v40_v17, 2  ;;  %v252_v30 = vld [vmem:[%s5766_s3 + $0x390] sm:$0xff] }
  0x4e   :  { %752 = vmatpush.msra.mxu0 %v227_v31  ;;  %791 = vmatpush.msra.mxu2 %v491_v33  ;;  %v380_v31 = vld [vmem:[%s5766_s3 + $0x790] sm:$0xff] }
  0x4f   :  { %772 = vmatpush.msra.mxu1 %v355_v32  ;;  %811 = vmatpush.msra.mxu3 %v619_v34  ;;  %v244_v34 = vld [vmem:[%s5766_s3 + $0x350] sm:$0xff] }
  0x50   :  { %753 = vmatpush.msra.mxu0 %v219_v35  ;;  %792 = vmatpush.msra.mxu2 %v483_v37  ;;  %v372_v35 = vld [vmem:[%s5766_s3 + $0x750] sm:$0xff] }
  0x51   :  { %773 = vmatpush.msra.mxu1 %v347_v36  ;;  %812 = vmatpush.msra.mxu3 %v611_v38  ;;  %v284_v17 = vld [vmem:[%s5766_s3 + $0x490] sm:$0xff] }
  0x52   :  { %754 = vmatpush.msra.mxu0 %v211_v39  ;;  %793 = vmatpush.msra.mxu2 %v475_v41  ;;  %v364_v41 = vld [vmem:[%s5766_s3 + $0x710] sm:$0xff] }
  0x53   :  { %774 = vmatpush.msra.mxu1 %v339_v40  ;;  %813 = vmatpush.msra.mxu3 %v603_v42  ;;  %v236_v40 = vld [vmem:[%s5766_s3 + $0x310] sm:$0xff] }
  0x54   :  { %755 = vmatpush.msra.mxu0 %v203_v43  ;;  %794 = vmatpush.msra.mxu2 %v467_v45  ;;  %v516_v42 = vld [vmem:[%s5766_s3 + $0xbd0] sm:$0xff] }
  0x55   :  { %775 = vmatpush.msra.mxu1 %v331_v44  ;;  %814 = vmatpush.msra.mxu3 %v595_v46  ;;  %v644_v43 = vld [vmem:[%s5766_s3 + $0xfd0] sm:$0xff] }
  0x56   :  { %756 = vmatpush.msra.mxu0 %v195_v47  ;;  %795 = vmatpush.msra.mxu2 %v459_v49  ;;  %v356_v44 = vld [vmem:[%s5766_s3 + $0x6d0] sm:$0xff] }
  0x57   :  { %776 = vmatpush.msra.mxu1 %v323_v48  ;;  %815 = vmatpush.msra.mxu3 %v587_v50  ;;  %v228_v45 = vld [vmem:[%s5766_s3 + $0x2d0] sm:$0xff] }
  0x58   :  { %757 = vmatpush.msra.mxu0 %v187_v51  ;;  %796 = vmatpush.msra.mxu2 %v451_v53  ;;  %v508_v46 = vld [vmem:[%s5766_s3 + $0xb90] sm:$0xff] }
  0x59   :  { %777 = vmatpush.msra.mxu1 %v315_v52  ;;  %816 = vmatpush.msra.mxu3 %v579_v54  ;;  %v636_v47 = vld [vmem:[%s5766_s3 + $0xf90] sm:$0xff] }
  0x5a   :  { %758 = vmatpush.msra.mxu0 %v179_v55  ;;  %797 = vmatpush.msra.mxu2 %v443_v57  ;;  %v220_v48 = vld [vmem:[%s5766_s3 + $0x290] sm:$0xff] }
  0x5b   :  { %778 = vmatpush.msra.mxu1 %v307_v56  ;;  %817 = vmatpush.msra.mxu3 %v571_v58  ;;  %v348_v49 = vld [vmem:[%s5766_s3 + $0x690] sm:$0xff] }
  0x5c   :  { %759 = vmatpush.msra.mxu0 %v171_v59  ;;  %798 = vmatpush.msra.mxu2 %v435_v1  ;;  %v500_v50 = vld [vmem:[%s5766_s3 + $0xb50] sm:$0xff] }
  0x5d   :  { %779 = vmatpush.msra.mxu1 %v299_v60  ;;  %818 = vmatpush.msra.mxu3 %v563_v2  ;;  %v628_v51 = vld [vmem:[%s5766_s3 + $0xf50] sm:$0xff] }
  0x5e   :  { %760 = vmatpush.msra.mxu0 %v163_v61  ;;  %799 = vmatpush.msra.mxu2 %v427_v5  ;;  %v212_v52 = vld [vmem:[%s5766_s3 + $0x250] sm:$0xff] }
  0x5f   :  { %780 = vmatpush.msra.mxu1 %v291_v62  ;;  %819 = vmatpush.msra.mxu3 %v555_v6  ;;  %v340_v53 = vld [vmem:[%s5766_s3 + $0x650] sm:$0xff] }
  0x60   :  { %761 = vmatpush.msra.mxu0 %v155_v63  ;;  %800 = vmatpush.msra.mxu2 %v419_v9  ;;  %v492_v54 = vld [vmem:[%s5766_s3 + $0xb10] sm:$0xff] }
  0x61   :  { %781 = vmatpush.msra.mxu1 %v283_v0  ;;  %820 = vmatpush.msra.mxu3 %v547_v10  ;;  %v620_v55 = vld [vmem:[%s5766_s3 + $0xf10] sm:$0xff] }
  0x62   :  { %762 = vmatpush.msra.mxu0 %v147_v3  ;;  %801 = vmatpush.msra.mxu2 %v411_v11  ;;  %v204_v56 = vld [vmem:[%s5766_s3 + $0x210] sm:$0xff] }
  0x63   :  { %782 = vmatpush.msra.mxu1 %v275_v4  ;;  %821 = vmatpush.msra.mxu3 %v539_v12  ;;  %v332_v57 = vld [vmem:[%s5766_s3 + $0x610] sm:$0xff] }
  0x64   :  { %763 = vmatpush.msra.mxu0 %v139_v7  ;;  %802 = vmatpush.msra.mxu2 %v403_v13  ;;  %v484_v58 = vld [vmem:[%s5766_s3 + $0xad0] sm:$0xff] }
  0x65   :  { %783 = vmatpush.msra.mxu1 %v267_v8  ;;  %822 = vmatpush.msra.mxu3 %v531_v14  ;;  %v612_v59 = vld [vmem:[%s5766_s3 + $0xed0] sm:$0xff] }
  0x66   :  { %803 = vmatpush.msra.mxu2 %v395_v15  ;;  %v196_v60 = vld [vmem:[%s5766_s3 + $0x1d0] sm:$0xff] }
  0x67   :  { %823 = vmatpush.msra.mxu3 %v523_v16  ;;  %v324_v61 = vld [vmem:[%s5766_s3 + $0x5d0] sm:$0xff] }
  0x68   :  { %v476_v62 = vld [vmem:[%s5766_s3 + $0xa90] sm:$0xff] }
  0x69   :  { %v604_v63 = vld [vmem:[%s5766_s3 + $0xe90] sm:$0xff] }
  0x6a   :  { %v188_v0 = vld [vmem:[%s5766_s3 + $0x190] sm:$0xff] }
  0x6b   :  { %v316_v1 = vld [vmem:[%s5766_s3 + $0x590] sm:$0xff] }
  0x6c   :  { %v468_v2 = vld [vmem:[%s5766_s3 + $0xa50] sm:$0xff] }
  0x6d   :  { %v596_v3 = vld [vmem:[%s5766_s3 + $0xe50] sm:$0xff] }
  0x6e   :  { %v180_v4 = vld [vmem:[%s5766_s3 + $0x150] sm:$0xff] }
  0x6f   :  { %v308_v5 = vld [vmem:[%s5766_s3 + $0x550] sm:$0xff] }
  0x70   :  { %v460_v6 = vld [vmem:[%s5766_s3 + $0xa10] sm:$0xff] }
  0x71   :  { %v588_v7 = vld [vmem:[%s5766_s3 + $0xe10] sm:$0xff] }
  0x72   :  { %v172_v8 = vld [vmem:[%s5766_s3 + $0x110] sm:$0xff] }
  0x73   :  { %v300_v9 = vld [vmem:[%s5766_s3 + $0x510] sm:$0xff] }
  0x74   :  { %v452_v10 = vld [vmem:[%s5766_s3 + $0x9d0] sm:$0xff] }
  0x75   :  { %v580_v11 = vld [vmem:[%s5766_s3 + $0xdd0] sm:$0xff] }
  0x76   :  { %v164_v12 = vld [vmem:[%s5766_s3 + $0xd0] sm:$0xff] }
  0x77   :  { %v292_v13 = vld [vmem:[%s5766_s3 + $0x4d0] sm:$0xff] }
  0x78   :  { %v444_v14 = vld [vmem:[%s5766_s3 + $0x990] sm:$0xff] }
  0x79   :  { %v572_v15 = vld [vmem:[%s5766_s3 + $0xd90] sm:$0xff] }
  0x7a   :  { %v156_v16 = vld [vmem:[%s5766_s3 + $0x90] sm:$0xff] }
  0x87   :  { %v71_v20 = vpop.f32.mrf.mxu0  ;;  %v91_v21 = vpop.f32.mrf.mxu1 }
  0x88   :  { %v72_v22 = vadd.f32 %v71_v20, %v42_v18  ;;  %v92_v23 = vadd.f32 %v91_v21, %v43_v19  ;;  %v436_v18 = vld [vmem:[%s5766_s3 + $0x950] sm:$0xff] }
  0x89   :  { %v564_v19 = vld [vmem:[%s5766_s3 + $0xd50] sm:$0xff] }
  0x8a   :  { %v2960_v24 = vmax.f32 %v72_v22, 0.0  ;;  %v2962_v25 = vmax.f32 %v92_v23, 0.0  ;;  %v148_v20 = vld [vmem:[%s5766_s3 + $0x50] sm:$0xff] }
  0x8b   :  { %v276_v21 = vld [vmem:[%s5766_s3 + $0x450] sm:$0xff] }
  0x8c   :  { %684 = vmatmul.f32.vlgmr.msrb.gmra.mxu0 %v2960_v24  ;;  %704 = vmatmul.f32.vlgmr.msrb.gmra.mxu1 %v2962_v25  ;;  %v428_v22 = vld [vmem:[%s5766_s3 + $0x910] sm:$0xff] }
  0x8d   :  { %828 = vmatpush.msrb.mxu0 %v260_v26  ;;  %848 = vmatpush.msrb.mxu1 %v388_v27  ;;  %v556_v23 = vld [vmem:[%s5766_s3 + $0xd10] sm:$0xff] }
  0x8e   :  { %v111_v32 = vpop.f32.mrf.mxu2  ;;  %v131_v33 = vpop.f32.mrf.mxu3  ;;  %v140_v26 = vld [vmem:[%s5766_s3 + $0x10] sm:$0xff] }
  0x8f   :  { %v112_v36 = vadd.f32 %v111_v32, %v44_v28  ;;  %v132_v37 = vadd.f32 %v131_v33, %v45_v29  ;;  %829 = vmatpush.msrb.mxu0 %v252_v30  ;;  %849 = vmatpush.msrb.mxu1 %v380_v31  ;;  %v268_v27 = vld [vmem:[%s5766_s3 + $0x410] sm:$0xff]  ;;  %v261_v30 = vld [vmem:[%s5766_s3 + $0x3d8] sm:$0xff] }
  0x90   :  { %v420_v28 = vld [vmem:[%s5766_s3 + $0x8d0] sm:$0xff]  ;;  %v389_v31 = vld [vmem:[%s5766_s3 + $0x7d8] sm:$0xff] }
  0x91   :  { %v2984_v38 = vmax.f32 %v112_v36, 0.0  ;;  %v2986_v39 = vmax.f32 %v132_v37, 0.0  ;;  %830 = vmatpush.msrb.mxu0 %v244_v34  ;;  %850 = vmatpush.msrb.mxu1 %v372_v35  ;;  %v548_v29 = vld [vmem:[%s5766_s3 + $0xcd0] sm:$0xff]  ;;  %v253_v34 = vld [vmem:[%s5766_s3 + $0x398] sm:$0xff] }
  0x92   :  { %v412_v32 = vld [vmem:[%s5766_s3 + $0x890] sm:$0xff]  ;;  %v381_v35 = vld [vmem:[%s5766_s3 + $0x798] sm:$0xff] }
  0x93   :  { %724 = vmatmul.f32.vlgmr.msrb.gmra.mxu2 %v2984_v38  ;;  %744 = vmatmul.f32.vlgmr.msrb.gmra.mxu3 %v2986_v39  ;;  %v540_v33 = vld [vmem:[%s5766_s3 + $0xc90] sm:$0xff] }
  0x94   :  { %831 = vmatpush.msrb.mxu0 %v236_v40  ;;  %851 = vmatpush.msrb.mxu1 %v364_v41  ;;  %v404_v36 = vld [vmem:[%s5766_s3 + $0x850] sm:$0xff]  ;;  %v245_v40 = vld [vmem:[%s5766_s3 + $0x358] sm:$0xff] }
  0x95   :  { %868 = vmatpush.msrb.mxu2 %v516_v42  ;;  %888 = vmatpush.msrb.mxu3 %v644_v43  ;;  %v532_v37 = vld [vmem:[%s5766_s3 + $0xc50] sm:$0xff]  ;;  %v373_v41 = vld [vmem:[%s5766_s3 + $0x758] sm:$0xff] }
  0x96   :  { %764 = vmatmul.f32.vlgmr.msra.gmra.mxu0 %v2960_v24  ;;  %852 = vmatpush.msrb.mxu1 %v356_v44  ;;  %v396_v42 = vld [vmem:[%s5766_s3 + $0x810] sm:$0xff]  ;;  %v237_v44 = vld [vmem:[%s5766_s3 + $0x318] sm:$0xff] }
  0x97   :  { %832 = vmatpush.msrb.mxu0 %v228_v45  ;;  %869 = vmatpush.msrb.mxu2 %v508_v46  ;;  %v524_v43 = vld [vmem:[%s5766_s3 + $0xc10] sm:$0xff]  ;;  %v365_v45 = vld [vmem:[%s5766_s3 + $0x718] sm:$0xff] }
  0x98   :  { %889 = vmatpush.msrb.mxu3 %v636_v47  ;;  %784 = vmatmul.f32.vlgmr.msra.gmra.mxu1 %v2962_v25  ;;  %v517_v46 = vld [vmem:[%s5766_s3 + $0xbd8] sm:$0xff] }
  0x99   :  { %833 = vmatpush.msrb.mxu0 %v220_v48  ;;  %853 = vmatpush.msrb.mxu1 %v348_v49  ;;  %v645_v47 = vld [vmem:[%s5766_s3 + $0xfd8] sm:$0xff] }
  0x9a   :  { %870 = vmatpush.msrb.mxu2 %v500_v50  ;;  %890 = vmatpush.msrb.mxu3 %v628_v51  ;;  %v229_v48 = vld [vmem:[%s5766_s3 + $0x2d8] sm:$0xff] }
  0x9b   :  { %834 = vmatpush.msrb.mxu0 %v212_v52  ;;  %854 = vmatpush.msrb.mxu1 %v340_v53  ;;  %v357_v49 = vld [vmem:[%s5766_s3 + $0x6d8] sm:$0xff] }
  0x9c   :  { %871 = vmatpush.msrb.mxu2 %v492_v54  ;;  %891 = vmatpush.msrb.mxu3 %v620_v55  ;;  %v509_v50 = vld [vmem:[%s5766_s3 + $0xb98] sm:$0xff] }
  0x9d   :  { %804 = vmatmul.f32.vlgmr.msra.gmra.mxu2 %v2984_v38  ;;  %824 = vmatmul.f32.vlgmr.msra.gmra.mxu3 %v2986_v39  ;;  %v637_v51 = vld [vmem:[%s5766_s3 + $0xf98] sm:$0xff] }
  0x9e   :  { %835 = vmatpush.msrb.mxu0 %v204_v56  ;;  %855 = vmatpush.msrb.mxu1 %v332_v57  ;;  %v221_v52 = vld [vmem:[%s5766_s3 + $0x298] sm:$0xff] }
  0x9f   :  { %872 = vmatpush.msrb.mxu2 %v484_v58  ;;  %892 = vmatpush.msrb.mxu3 %v612_v59  ;;  %v349_v53 = vld [vmem:[%s5766_s3 + $0x698] sm:$0xff] }
  0xa0   :  { %836 = vmatpush.msrb.mxu0 %v196_v60  ;;  %856 = vmatpush.msrb.mxu1 %v324_v61  ;;  %v501_v54 = vld [vmem:[%s5766_s3 + $0xb58] sm:$0xff] }
  0xa1   :  { %873 = vmatpush.msrb.mxu2 %v476_v62  ;;  %893 = vmatpush.msrb.mxu3 %v604_v63  ;;  %v629_v55 = vld [vmem:[%s5766_s3 + $0xf58] sm:$0xff] }
  0xa2   :  { %837 = vmatpush.msrb.mxu0 %v188_v0  ;;  %857 = vmatpush.msrb.mxu1 %v316_v1  ;;  %v213_v56 = vld [vmem:[%s5766_s3 + $0x258] sm:$0xff] }
  0xa3   :  { %874 = vmatpush.msrb.mxu2 %v468_v2  ;;  %894 = vmatpush.msrb.mxu3 %v596_v3  ;;  %v341_v57 = vld [vmem:[%s5766_s3 + $0x658] sm:$0xff] }
  0xa4   :  { %838 = vmatpush.msrb.mxu0 %v180_v4  ;;  %858 = vmatpush.msrb.mxu1 %v308_v5  ;;  %v493_v58 = vld [vmem:[%s5766_s3 + $0xb18] sm:$0xff] }
  0xa5   :  { %875 = vmatpush.msrb.mxu2 %v460_v6  ;;  %895 = vmatpush.msrb.mxu3 %v588_v7  ;;  %v621_v59 = vld [vmem:[%s5766_s3 + $0xf18] sm:$0xff] }
  0xa6   :  { %839 = vmatpush.msrb.mxu0 %v172_v8  ;;  %859 = vmatpush.msrb.mxu1 %v300_v9  ;;  %v205_v60 = vld [vmem:[%s5766_s3 + $0x218] sm:$0xff] }
  0xa7   :  { %876 = vmatpush.msrb.mxu2 %v452_v10  ;;  %896 = vmatpush.msrb.mxu3 %v580_v11  ;;  %v333_v61 = vld [vmem:[%s5766_s3 + $0x618] sm:$0xff] }
  0xa8   :  { %840 = vmatpush.msrb.mxu0 %v164_v12  ;;  %860 = vmatpush.msrb.mxu1 %v292_v13  ;;  %v485_v62 = vld [vmem:[%s5766_s3 + $0xad8] sm:$0xff] }
  0xa9   :  { %877 = vmatpush.msrb.mxu2 %v444_v14  ;;  %897 = vmatpush.msrb.mxu3 %v572_v15  ;;  %v613_v63 = vld [vmem:[%s5766_s3 + $0xed8] sm:$0xff] }
  0xaa   :  { %841 = vmatpush.msrb.mxu0 %v156_v16  ;;  %861 = vmatpush.msrb.mxu1 %v284_v17  ;;  %v197_v0 = vld [vmem:[%s5766_s3 + $0x1d8] sm:$0xff] }
  0xab   :  { %878 = vmatpush.msrb.mxu2 %v436_v18  ;;  %898 = vmatpush.msrb.mxu3 %v564_v19  ;;  %v325_v1 = vld [vmem:[%s5766_s3 + $0x5d8] sm:$0xff] }
  0xac   :  { %842 = vmatpush.msrb.mxu0 %v148_v20  ;;  %862 = vmatpush.msrb.mxu1 %v276_v21  ;;  %v477_v2 = vld [vmem:[%s5766_s3 + $0xa98] sm:$0xff] }
  0xad   :  { %879 = vmatpush.msrb.mxu2 %v428_v22  ;;  %899 = vmatpush.msrb.mxu3 %v556_v23  ;;  %v605_v3 = vld [vmem:[%s5766_s3 + $0xe98] sm:$0xff] }
  0xae   :  { %843 = vmatpush.msrb.mxu0 %v140_v26  ;;  %863 = vmatpush.msrb.mxu1 %v268_v27  ;;  %v189_v4 = vld [vmem:[%s5766_s3 + $0x198] sm:$0xff] }
  0xaf   :  { %880 = vmatpush.msrb.mxu2 %v420_v28  ;;  %900 = vmatpush.msrb.mxu3 %v548_v29  ;;  %v317_v5 = vld [vmem:[%s5766_s3 + $0x598] sm:$0xff] }
  0xb0   :  { %844 = vmatmul.f32.vlgmr.msrb.gmra.mxu0 %v2960_v24  ;;  %864 = vmatmul.f32.vlgmr.msrb.gmra.mxu1 %v2962_v25  ;;  %v469_v6 = vld [vmem:[%s5766_s3 + $0xa58] sm:$0xff] }
  0xb1   :  { %908 = vmatpush.msra.mxu0 %v261_v30  ;;  %928 = vmatpush.msra.mxu1 %v389_v31  ;;  %v597_v7 = vld [vmem:[%s5766_s3 + $0xe58] sm:$0xff] }
  0xb2   :  { %881 = vmatpush.msrb.mxu2 %v412_v32  ;;  %901 = vmatpush.msrb.mxu3 %v540_v33  ;;  %v181_v8 = vld [vmem:[%s5766_s3 + $0x158] sm:$0xff] }
  0xb3   :  { %909 = vmatpush.msra.mxu0 %v253_v34  ;;  %929 = vmatpush.msra.mxu1 %v381_v35  ;;  %v309_v9 = vld [vmem:[%s5766_s3 + $0x558] sm:$0xff]  ;;  %v262_v34 = vld [vmem:[%s5766_s3 + $0x3e0] sm:$0xff] }
  0xb4   :  { %882 = vmatpush.msrb.mxu2 %v404_v36  ;;  %902 = vmatpush.msrb.mxu3 %v532_v37  ;;  %v461_v10 = vld [vmem:[%s5766_s3 + $0xa18] sm:$0xff]  ;;  %v390_v35 = vld [vmem:[%s5766_s3 + $0x7e0] sm:$0xff] }
  0xb5   :  { %910 = vmatpush.msra.mxu0 %v245_v40  ;;  %930 = vmatpush.msra.mxu1 %v373_v41  ;;  %v589_v11 = vld [vmem:[%s5766_s3 + $0xe18] sm:$0xff]  ;;  %v254_v40 = vld [vmem:[%s5766_s3 + $0x3a0] sm:$0xff] }
  0xb6   :  { %883 = vmatpush.msrb.mxu2 %v396_v42  ;;  %903 = vmatpush.msrb.mxu3 %v524_v43  ;;  %v173_v12 = vld [vmem:[%s5766_s3 + $0x118] sm:$0xff]  ;;  %v382_v41 = vld [vmem:[%s5766_s3 + $0x7a0] sm:$0xff] }
  0xb7   :  { %884 = vmatmul.f32.vlgmr.msrb.gmra.mxu2 %v2984_v38  ;;  %904 = vmatmul.f32.vlgmr.msrb.gmra.mxu3 %v2986_v39  ;;  %v301_v13 = vld [vmem:[%s5766_s3 + $0x518] sm:$0xff] }
  0xb8   :  { %911 = vmatpush.msra.mxu0 %v237_v44  ;;  %931 = vmatpush.msra.mxu1 %v365_v45  ;;  %v453_v14 = vld [vmem:[%s5766_s3 + $0x9d8] sm:$0xff]  ;;  %v246_v44 = vld [vmem:[%s5766_s3 + $0x360] sm:$0xff] }
  0xb9   :  { %948 = vmatpush.msra.mxu2 %v517_v46  ;;  %968 = vmatpush.msra.mxu3 %v645_v47  ;;  %v581_v15 = vld [vmem:[%s5766_s3 + $0xdd8] sm:$0xff]  ;;  %v374_v45 = vld [vmem:[%s5766_s3 + $0x760] sm:$0xff] }
  0xba   :  { %912 = vmatpush.msra.mxu0 %v229_v48  ;;  %932 = vmatpush.msra.mxu1 %v357_v49  ;;  %v165_v16 = vld [vmem:[%s5766_s3 + $0xd8] sm:$0xff]  ;;  %v238_v48 = vld [vmem:[%s5766_s3 + $0x320] sm:$0xff] }
  0xbb   :  { %949 = vmatpush.msra.mxu2 %v509_v50  ;;  %969 = vmatpush.msra.mxu3 %v637_v51  ;;  %v293_v17 = vld [vmem:[%s5766_s3 + $0x4d8] sm:$0xff]  ;;  %v366_v49 = vld [vmem:[%s5766_s3 + $0x720] sm:$0xff] }
  0xbc   :  { %913 = vmatpush.msra.mxu0 %v221_v52  ;;  %933 = vmatpush.msra.mxu1 %v349_v53  ;;  %v445_v18 = vld [vmem:[%s5766_s3 + $0x998] sm:$0xff]  ;;  %v518_v50 = vld [vmem:[%s5766_s3 + $0xbe0] sm:$0xff] }
  0xbd   :  { %950 = vmatpush.msra.mxu2 %v501_v54  ;;  %970 = vmatpush.msra.mxu3 %v629_v55  ;;  %v573_v19 = vld [vmem:[%s5766_s3 + $0xd98] sm:$0xff]  ;;  %v646_v51 = vld [vmem:[%s5766_s3 + $0xfe0] sm:$0xff] }
  0xbe   :  { %914 = vmatpush.msra.mxu0 %v213_v56  ;;  %934 = vmatpush.msra.mxu1 %v341_v57  ;;  %v157_v20 = vld [vmem:[%s5766_s3 + $0x98] sm:$0xff]  ;;  %v230_v52 = vld [vmem:[%s5766_s3 + $0x2e0] sm:$0xff] }
  0xbf   :  { %951 = vmatpush.msra.mxu2 %v493_v58  ;;  %971 = vmatpush.msra.mxu3 %v621_v59  ;;  %v285_v21 = vld [vmem:[%s5766_s3 + $0x498] sm:$0xff]  ;;  %v358_v53 = vld [vmem:[%s5766_s3 + $0x6e0] sm:$0xff] }
  0xc0   :  { %915 = vmatpush.msra.mxu0 %v205_v60  ;;  %935 = vmatpush.msra.mxu1 %v333_v61  ;;  %v437_v22 = vld [vmem:[%s5766_s3 + $0x958] sm:$0xff]  ;;  %v510_v54 = vld [vmem:[%s5766_s3 + $0xba0] sm:$0xff] }
  0xc1   :  { %952 = vmatpush.msra.mxu2 %v485_v62  ;;  %972 = vmatpush.msra.mxu3 %v613_v63  ;;  %v565_v23 = vld [vmem:[%s5766_s3 + $0xd58] sm:$0xff]  ;;  %v638_v55 = vld [vmem:[%s5766_s3 + $0xfa0] sm:$0xff] }
  0xc2   :  { %916 = vmatpush.msra.mxu0 %v197_v0  ;;  %936 = vmatpush.msra.mxu1 %v325_v1  ;;  %v149_v26 = vld [vmem:[%s5766_s3 + $0x58] sm:$0xff]  ;;  %v222_v56 = vld [vmem:[%s5766_s3 + $0x2a0] sm:$0xff] }
  0xc3   :  { %953 = vmatpush.msra.mxu2 %v477_v2  ;;  %973 = vmatpush.msra.mxu3 %v605_v3  ;;  %v277_v27 = vld [vmem:[%s5766_s3 + $0x458] sm:$0xff]  ;;  %v350_v57 = vld [vmem:[%s5766_s3 + $0x6a0] sm:$0xff] }
  0xc4   :  { %917 = vmatpush.msra.mxu0 %v189_v4  ;;  %937 = vmatpush.msra.mxu1 %v317_v5  ;;  %v429_v28 = vld [vmem:[%s5766_s3 + $0x918] sm:$0xff]  ;;  %v502_v58 = vld [vmem:[%s5766_s3 + $0xb60] sm:$0xff] }
  0xc5   :  { %954 = vmatpush.msra.mxu2 %v469_v6  ;;  %974 = vmatpush.msra.mxu3 %v597_v7  ;;  %v557_v29 = vld [vmem:[%s5766_s3 + $0xd18] sm:$0xff]  ;;  %v630_v59 = vld [vmem:[%s5766_s3 + $0xf60] sm:$0xff] }
  0xc6   :  { %918 = vmatpush.msra.mxu0 %v181_v8  ;;  %938 = vmatpush.msra.mxu1 %v309_v9  ;;  %v141_v30 = vld [vmem:[%s5766_s3 + $0x18] sm:$0xff]  ;;  %v214_v60 = vld [vmem:[%s5766_s3 + $0x260] sm:$0xff] }
  0xc7   :  { %955 = vmatpush.msra.mxu2 %v461_v10  ;;  %975 = vmatpush.msra.mxu3 %v589_v11  ;;  %v269_v31 = vld [vmem:[%s5766_s3 + $0x418] sm:$0xff]  ;;  %v342_v61 = vld [vmem:[%s5766_s3 + $0x660] sm:$0xff] }
  0xc8   :  { %919 = vmatpush.msra.mxu0 %v173_v12  ;;  %939 = vmatpush.msra.mxu1 %v301_v13  ;;  %v421_v32 = vld [vmem:[%s5766_s3 + $0x8d8] sm:$0xff]  ;;  %v494_v62 = vld [vmem:[%s5766_s3 + $0xb20] sm:$0xff] }
  0xc9   :  { %956 = vmatpush.msra.mxu2 %v453_v14  ;;  %976 = vmatpush.msra.mxu3 %v581_v15  ;;  %v549_v33 = vld [vmem:[%s5766_s3 + $0xcd8] sm:$0xff]  ;;  %v622_v63 = vld [vmem:[%s5766_s3 + $0xf20] sm:$0xff] }
  0xca   :  { %920 = vmatpush.msra.mxu0 %v165_v16  ;;  %940 = vmatpush.msra.mxu1 %v293_v17  ;;  %v413_v36 = vld [vmem:[%s5766_s3 + $0x898] sm:$0xff]  ;;  %v206_v0 = vld [vmem:[%s5766_s3 + $0x220] sm:$0xff] }
  0xcb   :  { %957 = vmatpush.msra.mxu2 %v445_v18  ;;  %977 = vmatpush.msra.mxu3 %v573_v19  ;;  %v541_v37 = vld [vmem:[%s5766_s3 + $0xc98] sm:$0xff]  ;;  %v334_v1 = vld [vmem:[%s5766_s3 + $0x620] sm:$0xff] }
  0xcc   :  { %921 = vmatpush.msra.mxu0 %v157_v20  ;;  %941 = vmatpush.msra.mxu1 %v285_v21  ;;  %v405_v42 = vld [vmem:[%s5766_s3 + $0x858] sm:$0xff]  ;;  %v486_v2 = vld [vmem:[%s5766_s3 + $0xae0] sm:$0xff] }
  0xcd   :  { %958 = vmatpush.msra.mxu2 %v437_v22  ;;  %978 = vmatpush.msra.mxu3 %v565_v23  ;;  %v533_v43 = vld [vmem:[%s5766_s3 + $0xc58] sm:$0xff]  ;;  %v614_v3 = vld [vmem:[%s5766_s3 + $0xee0] sm:$0xff] }
  0xce   :  { %922 = vmatpush.msra.mxu0 %v149_v26  ;;  %942 = vmatpush.msra.mxu1 %v277_v27  ;;  %v397_v46 = vld [vmem:[%s5766_s3 + $0x818] sm:$0xff]  ;;  %v198_v4 = vld [vmem:[%s5766_s3 + $0x1e0] sm:$0xff] }
  0xcf   :  { %959 = vmatpush.msra.mxu2 %v429_v28  ;;  %979 = vmatpush.msra.mxu3 %v557_v29  ;;  %v525_v47 = vld [vmem:[%s5766_s3 + $0xc18] sm:$0xff]  ;;  %v326_v5 = vld [vmem:[%s5766_s3 + $0x5e0] sm:$0xff] }
  0xd0   :  { %923 = vmatpush.msra.mxu0 %v141_v30  ;;  %943 = vmatpush.msra.mxu1 %v269_v31  ;;  %v478_v6 = vld [vmem:[%s5766_s3 + $0xaa0] sm:$0xff] }
  0xd1   :  { %960 = vmatpush.msra.mxu2 %v421_v32  ;;  %980 = vmatpush.msra.mxu3 %v549_v33  ;;  %v606_v7 = vld [vmem:[%s5766_s3 + $0xea0] sm:$0xff] }
  0xd2   :  { %924 = vmatmul.f32.vlgmr.msra.gmra.mxu0 %v2960_v24  ;;  %944 = vmatmul.f32.vlgmr.msra.gmra.mxu1 %v2962_v25  ;;  %v190_v8 = vld [vmem:[%s5766_s3 + $0x1a0] sm:$0xff] }
  0xd3   :  { %988 = vmatpush.msrb.mxu0 %v262_v34  ;;  %1008 = vmatpush.msrb.mxu1 %v390_v35  ;;  %v318_v9 = vld [vmem:[%s5766_s3 + $0x5a0] sm:$0xff] }
  0xd4   :  { %961 = vmatpush.msra.mxu2 %v413_v36  ;;  %981 = vmatpush.msra.mxu3 %v541_v37  ;;  %v470_v10 = vld [vmem:[%s5766_s3 + $0xa60] sm:$0xff] }
  0xd5   :  { %989 = vmatpush.msrb.mxu0 %v254_v40  ;;  %1009 = vmatpush.msrb.mxu1 %v382_v41  ;;  %v598_v11 = vld [vmem:[%s5766_s3 + $0xe60] sm:$0xff]  ;;  %v263_v40 = vld [vmem:[%s5766_s3 + $0x3e8] sm:$0xff] }
  0xd6   :  { %962 = vmatpush.msra.mxu2 %v405_v42  ;;  %982 = vmatpush.msra.mxu3 %v533_v43  ;;  %v182_v12 = vld [vmem:[%s5766_s3 + $0x160] sm:$0xff]  ;;  %v391_v41 = vld [vmem:[%s5766_s3 + $0x7e8] sm:$0xff] }
  0xd7   :  { %990 = vmatpush.msrb.mxu0 %v246_v44  ;;  %1010 = vmatpush.msrb.mxu1 %v374_v45  ;;  %v310_v13 = vld [vmem:[%s5766_s3 + $0x560] sm:$0xff]  ;;  %v255_v44 = vld [vmem:[%s5766_s3 + $0x3a8] sm:$0xff] }
  0xd8   :  { %963 = vmatpush.msra.mxu2 %v397_v46  ;;  %983 = vmatpush.msra.mxu3 %v525_v47  ;;  %v462_v14 = vld [vmem:[%s5766_s3 + $0xa20] sm:$0xff]  ;;  %v383_v45 = vld [vmem:[%s5766_s3 + $0x7a8] sm:$0xff] }
  0xd9   :  { %964 = vmatmul.f32.vlgmr.msra.gmra.mxu2 %v2984_v38  ;;  %984 = vmatmul.f32.vlgmr.msra.gmra.mxu3 %v2986_v39  ;;  %v590_v15 = vld [vmem:[%s5766_s3 + $0xe20] sm:$0xff] }
  0xda   :  { %991 = vmatpush.msrb.mxu0 %v238_v48  ;;  %1011 = vmatpush.msrb.mxu1 %v366_v49  ;;  %v174_v16 = vld [vmem:[%s5766_s3 + $0x120] sm:$0xff]  ;;  %v247_v48 = vld [vmem:[%s5766_s3 + $0x368] sm:$0xff] }
  0xdb   :  { %1028 = vmatpush.msrb.mxu2 %v518_v50  ;;  %1048 = vmatpush.msrb.mxu3 %v646_v51  ;;  %v302_v17 = vld [vmem:[%s5766_s3 + $0x520] sm:$0xff]  ;;  %v375_v49 = vld [vmem:[%s5766_s3 + $0x768] sm:$0xff] }
  0xdc   :  { %992 = vmatpush.msrb.mxu0 %v230_v52  ;;  %1012 = vmatpush.msrb.mxu1 %v358_v53  ;;  %v454_v18 = vld [vmem:[%s5766_s3 + $0x9e0] sm:$0xff]  ;;  %v239_v52 = vld [vmem:[%s5766_s3 + $0x328] sm:$0xff] }
  0xdd   :  { %1029 = vmatpush.msrb.mxu2 %v510_v54  ;;  %1049 = vmatpush.msrb.mxu3 %v638_v55  ;;  %v582_v19 = vld [vmem:[%s5766_s3 + $0xde0] sm:$0xff]  ;;  %v367_v53 = vld [vmem:[%s5766_s3 + $0x728] sm:$0xff] }
  0xde   :  { %993 = vmatpush.msrb.mxu0 %v222_v56  ;;  %1013 = vmatpush.msrb.mxu1 %v350_v57  ;;  %v166_v20 = vld [vmem:[%s5766_s3 + $0xe0] sm:$0xff]  ;;  %v519_v54 = vld [vmem:[%s5766_s3 + $0xbe8] sm:$0xff] }
  0xdf   :  { %1030 = vmatpush.msrb.mxu2 %v502_v58  ;;  %1050 = vmatpush.msrb.mxu3 %v630_v59  ;;  %v294_v21 = vld [vmem:[%s5766_s3 + $0x4e0] sm:$0xff]  ;;  %v647_v55 = vld [vmem:[%s5766_s3 + $0xfe8] sm:$0xff] }
  0xe0   :  { %994 = vmatpush.msrb.mxu0 %v214_v60  ;;  %1014 = vmatpush.msrb.mxu1 %v342_v61  ;;  %v446_v22 = vld [vmem:[%s5766_s3 + $0x9a0] sm:$0xff]  ;;  %v231_v56 = vld [vmem:[%s5766_s3 + $0x2e8] sm:$0xff] }
  0xe1   :  { %1031 = vmatpush.msrb.mxu2 %v494_v62  ;;  %1051 = vmatpush.msrb.mxu3 %v622_v63  ;;  %v574_v23 = vld [vmem:[%s5766_s3 + $0xda0] sm:$0xff]  ;;  %v359_v57 = vld [vmem:[%s5766_s3 + $0x6e8] sm:$0xff] }
  0xe2   :  { %995 = vmatpush.msrb.mxu0 %v206_v0  ;;  %1015 = vmatpush.msrb.mxu1 %v334_v1  ;;  %v158_v26 = vld [vmem:[%s5766_s3 + $0xa0] sm:$0xff]  ;;  %v511_v58 = vld [vmem:[%s5766_s3 + $0xba8] sm:$0xff] }
  0xe3   :  { %1032 = vmatpush.msrb.mxu2 %v486_v2  ;;  %1052 = vmatpush.msrb.mxu3 %v614_v3  ;;  %v286_v27 = vld [vmem:[%s5766_s3 + $0x4a0] sm:$0xff]  ;;  %v639_v59 = vld [vmem:[%s5766_s3 + $0xfa8] sm:$0xff] }
  0xe4   :  { %996 = vmatpush.msrb.mxu0 %v198_v4  ;;  %1016 = vmatpush.msrb.mxu1 %v326_v5  ;;  %v438_v28 = vld [vmem:[%s5766_s3 + $0x960] sm:$0xff]  ;;  %v223_v60 = vld [vmem:[%s5766_s3 + $0x2a8] sm:$0xff] }
  0xe5   :  { %1033 = vmatpush.msrb.mxu2 %v478_v6  ;;  %1053 = vmatpush.msrb.mxu3 %v606_v7  ;;  %v566_v29 = vld [vmem:[%s5766_s3 + $0xd60] sm:$0xff]  ;;  %v351_v61 = vld [vmem:[%s5766_s3 + $0x6a8] sm:$0xff] }
  0xe6   :  { %997 = vmatpush.msrb.mxu0 %v190_v8  ;;  %1017 = vmatpush.msrb.mxu1 %v318_v9  ;;  %v150_v30 = vld [vmem:[%s5766_s3 + $0x60] sm:$0xff]  ;;  %v503_v62 = vld [vmem:[%s5766_s3 + $0xb68] sm:$0xff] }
  0xe7   :  { %1034 = vmatpush.msrb.mxu2 %v470_v10  ;;  %1054 = vmatpush.msrb.mxu3 %v598_v11  ;;  %v278_v31 = vld [vmem:[%s5766_s3 + $0x460] sm:$0xff]  ;;  %v631_v63 = vld [vmem:[%s5766_s3 + $0xf68] sm:$0xff] }
  0xe8   :  { %998 = vmatpush.msrb.mxu0 %v182_v12  ;;  %1018 = vmatpush.msrb.mxu1 %v310_v13  ;;  %v430_v32 = vld [vmem:[%s5766_s3 + $0x920] sm:$0xff]  ;;  %v215_v0 = vld [vmem:[%s5766_s3 + $0x268] sm:$0xff] }
  0xe9   :  { %1035 = vmatpush.msrb.mxu2 %v462_v14  ;;  %1055 = vmatpush.msrb.mxu3 %v590_v15  ;;  %v558_v33 = vld [vmem:[%s5766_s3 + $0xd20] sm:$0xff]  ;;  %v343_v1 = vld [vmem:[%s5766_s3 + $0x668] sm:$0xff] }
  0xea   :  { %999 = vmatpush.msrb.mxu0 %v174_v16  ;;  %1019 = vmatpush.msrb.mxu1 %v302_v17  ;;  %v142_v34 = vld [vmem:[%s5766_s3 + $0x20] sm:$0xff]  ;;  %v495_v2 = vld [vmem:[%s5766_s3 + $0xb28] sm:$0xff] }
  0xeb   :  { %1036 = vmatpush.msrb.mxu2 %v454_v18  ;;  %1056 = vmatpush.msrb.mxu3 %v582_v19  ;;  %v270_v35 = vld [vmem:[%s5766_s3 + $0x420] sm:$0xff]  ;;  %v623_v3 = vld [vmem:[%s5766_s3 + $0xf28] sm:$0xff] }
  0xec   :  { %1000 = vmatpush.msrb.mxu0 %v166_v20  ;;  %1020 = vmatpush.msrb.mxu1 %v294_v21  ;;  %v422_v36 = vld [vmem:[%s5766_s3 + $0x8e0] sm:$0xff]  ;;  %v207_v4 = vld [vmem:[%s5766_s3 + $0x228] sm:$0xff] }
  0xed   :  { %1037 = vmatpush.msrb.mxu2 %v446_v22  ;;  %1057 = vmatpush.msrb.mxu3 %v574_v23  ;;  %v550_v37 = vld [vmem:[%s5766_s3 + $0xce0] sm:$0xff]  ;;  %v335_v5 = vld [vmem:[%s5766_s3 + $0x628] sm:$0xff] }
  0xee   :  { %1001 = vmatpush.msrb.mxu0 %v158_v26  ;;  %1021 = vmatpush.msrb.mxu1 %v286_v27  ;;  %v414_v42 = vld [vmem:[%s5766_s3 + $0x8a0] sm:$0xff]  ;;  %v487_v6 = vld [vmem:[%s5766_s3 + $0xae8] sm:$0xff] }
  0xef   :  { %1038 = vmatpush.msrb.mxu2 %v438_v28  ;;  %1058 = vmatpush.msrb.mxu3 %v566_v29  ;;  %v542_v43 = vld [vmem:[%s5766_s3 + $0xca0] sm:$0xff]  ;;  %v615_v7 = vld [vmem:[%s5766_s3 + $0xee8] sm:$0xff] }
  0xf0   :  { %1002 = vmatpush.msrb.mxu0 %v150_v30  ;;  %1022 = vmatpush.msrb.mxu1 %v278_v31  ;;  %v406_v46 = vld [vmem:[%s5766_s3 + $0x860] sm:$0xff]  ;;  %v199_v8 = vld [vmem:[%s5766_s3 + $0x1e8] sm:$0xff] }
  0xf1   :  { %1039 = vmatpush.msrb.mxu2 %v430_v32  ;;  %1059 = vmatpush.msrb.mxu3 %v558_v33  ;;  %v534_v47 = vld [vmem:[%s5766_s3 + $0xc60] sm:$0xff]  ;;  %v327_v9 = vld [vmem:[%s5766_s3 + $0x5e8] sm:$0xff] }
  0xf2   :  { %1003 = vmatpush.msrb.mxu0 %v142_v34  ;;  %1023 = vmatpush.msrb.mxu1 %v270_v35  ;;  %v398_v50 = vld [vmem:[%s5766_s3 + $0x820] sm:$0xff]  ;;  %v479_v10 = vld [vmem:[%s5766_s3 + $0xaa8] sm:$0xff] }
  0xf3   :  { %1040 = vmatpush.msrb.mxu2 %v422_v36  ;;  %1060 = vmatpush.msrb.mxu3 %v550_v37  ;;  %v526_v51 = vld [vmem:[%s5766_s3 + $0xc20] sm:$0xff]  ;;  %v607_v11 = vld [vmem:[%s5766_s3 + $0xea8] sm:$0xff] }
  0xf4   :  { %1004 = vmatmul.f32.vlgmr.msrb.gmra.mxu0 %v2960_v24  ;;  %1024 = vmatmul.f32.vlgmr.msrb.gmra.mxu1 %v2962_v25  ;;  %v191_v12 = vld [vmem:[%s5766_s3 + $0x1a8] sm:$0xff] }
  0xf5   :  { %1068 = vmatpush.msra.mxu0 %v263_v40  ;;  %1088 = vmatpush.msra.mxu1 %v391_v41  ;;  %v319_v13 = vld [vmem:[%s5766_s3 + $0x5a8] sm:$0xff] }
  0xf6   :  { %1041 = vmatpush.msrb.mxu2 %v414_v42  ;;  %1061 = vmatpush.msrb.mxu3 %v542_v43  ;;  %v471_v14 = vld [vmem:[%s5766_s3 + $0xa68] sm:$0xff] }
  0xf7   :  { %1069 = vmatpush.msra.mxu0 %v255_v44  ;;  %1089 = vmatpush.msra.mxu1 %v383_v45  ;;  %v599_v15 = vld [vmem:[%s5766_s3 + $0xe68] sm:$0xff]  ;;  %v264_v44 = vld [vmem:[%s5766_s3 + $0x3f0] sm:$0xff] }
  0xf8   :  { %1042 = vmatpush.msrb.mxu2 %v406_v46  ;;  %1062 = vmatpush.msrb.mxu3 %v534_v47  ;;  %v183_v16 = vld [vmem:[%s5766_s3 + $0x168] sm:$0xff]  ;;  %v392_v45 = vld [vmem:[%s5766_s3 + $0x7f0] sm:$0xff] }
  0xf9   :  { %1070 = vmatpush.msra.mxu0 %v247_v48  ;;  %1090 = vmatpush.msra.mxu1 %v375_v49  ;;  %v311_v17 = vld [vmem:[%s5766_s3 + $0x568] sm:$0xff]  ;;  %v256_v48 = vld [vmem:[%s5766_s3 + $0x3b0] sm:$0xff] }
  0xfa   :  { %1043 = vmatpush.msrb.mxu2 %v398_v50  ;;  %1063 = vmatpush.msrb.mxu3 %v526_v51  ;;  %v463_v18 = vld [vmem:[%s5766_s3 + $0xa28] sm:$0xff]  ;;  %v384_v49 = vld [vmem:[%s5766_s3 + $0x7b0] sm:$0xff] }
  0xfb   :  { %1044 = vmatmul.f32.vlgmr.msrb.gmra.mxu2 %v2984_v38  ;;  %1064 = vmatmul.f32.vlgmr.msrb.gmra.mxu3 %v2986_v39  ;;  %v591_v19 = vld [vmem:[%s5766_s3 + $0xe28] sm:$0xff] }
  0xfc   :  { %1071 = vmatpush.msra.mxu0 %v239_v52  ;;  %1091 = vmatpush.msra.mxu1 %v367_v53  ;;  %v175_v20 = vld [vmem:[%s5766_s3 + $0x128] sm:$0xff]  ;;  %v248_v52 = vld [vmem:[%s5766_s3 + $0x370] sm:$0xff] }
  0xfd   :  { %1108 = vmatpush.msra.mxu2 %v519_v54  ;;  %1128 = vmatpush.msra.mxu3 %v647_v55  ;;  %v303_v21 = vld [vmem:[%s5766_s3 + $0x528] sm:$0xff]  ;;  %v376_v53 = vld [vmem:[%s5766_s3 + $0x770] sm:$0xff] }
  0xfe   :  { %1072 = vmatpush.msra.mxu0 %v231_v56  ;;  %1092 = vmatpush.msra.mxu1 %v359_v57  ;;  %v455_v22 = vld [vmem:[%s5766_s3 + $0x9e8] sm:$0xff]  ;;  %v240_v56 = vld [vmem:[%s5766_s3 + $0x330] sm:$0xff] }
  0xff   :  { %1109 = vmatpush.msra.mxu2 %v511_v58  ;;  %1129 = vmatpush.msra.mxu3 %v639_v59  ;;  %v583_v23 = vld [vmem:[%s5766_s3 + $0xde8] sm:$0xff]  ;;  %v368_v57 = vld [vmem:[%s5766_s3 + $0x730] sm:$0xff] }
 0x100   :  { %1073 = vmatpush.msra.mxu0 %v223_v60  ;;  %1093 = vmatpush.msra.mxu1 %v351_v61  ;;  %v167_v26 = vld [vmem:[%s5766_s3 + $0xe8] sm:$0xff]  ;;  %v520_v58 = vld [vmem:[%s5766_s3 + $0xbf0] sm:$0xff] }
 0x101   :  { %1110 = vmatpush.msra.mxu2 %v503_v62  ;;  %1130 = vmatpush.msra.mxu3 %v631_v63  ;;  %v295_v27 = vld [vmem:[%s5766_s3 + $0x4e8] sm:$0xff]  ;;  %v648_v59 = vld [vmem:[%s5766_s3 + $0xff0] sm:$0xff] }
 0x102   :  { %1074 = vmatpush.msra.mxu0 %v215_v0  ;;  %1094 = vmatpush.msra.mxu1 %v343_v1  ;;  %v447_v28 = vld [vmem:[%s5766_s3 + $0x9a8] sm:$0xff]  ;;  %v232_v60 = vld [vmem:[%s5766_s3 + $0x2f0] sm:$0xff] }
 0x103   :  { %1111 = vmatpush.msra.mxu2 %v495_v2  ;;  %1131 = vmatpush.msra.mxu3 %v623_v3  ;;  %v575_v29 = vld [vmem:[%s5766_s3 + $0xda8] sm:$0xff]  ;;  %v360_v61 = vld [vmem:[%s5766_s3 + $0x6f0] sm:$0xff] }
 0x104   :  { %1075 = vmatpush.msra.mxu0 %v207_v4  ;;  %1095 = vmatpush.msra.mxu1 %v335_v5  ;;  %v159_v30 = vld [vmem:[%s5766_s3 + $0xa8] sm:$0xff]  ;;  %v512_v62 = vld [vmem:[%s5766_s3 + $0xbb0] sm:$0xff] }
 0x105   :  { %1112 = vmatpush.msra.mxu2 %v487_v6  ;;  %1132 = vmatpush.msra.mxu3 %v615_v7  ;;  %v287_v31 = vld [vmem:[%s5766_s3 + $0x4a8] sm:$0xff]  ;;  %v640_v63 = vld [vmem:[%s5766_s3 + $0xfb0] sm:$0xff] }
 0x106   :  { %1076 = vmatpush.msra.mxu0 %v199_v8  ;;  %1096 = vmatpush.msra.mxu1 %v327_v9  ;;  %v439_v32 = vld [vmem:[%s5766_s3 + $0x968] sm:$0xff]  ;;  %v224_v0 = vld [vmem:[%s5766_s3 + $0x2b0] sm:$0xff] }
 0x107   :  { %1113 = vmatpush.msra.mxu2 %v479_v10  ;;  %1133 = vmatpush.msra.mxu3 %v607_v11  ;;  %v567_v33 = vld [vmem:[%s5766_s3 + $0xd68] sm:$0xff]  ;;  %v352_v1 = vld [vmem:[%s5766_s3 + $0x6b0] sm:$0xff] }
 0x108   :  { %1077 = vmatpush.msra.mxu0 %v191_v12  ;;  %1097 = vmatpush.msra.mxu1 %v319_v13  ;;  %v151_v34 = vld [vmem:[%s5766_s3 + $0x68] sm:$0xff]  ;;  %v504_v2 = vld [vmem:[%s5766_s3 + $0xb70] sm:$0xff] }
 0x109   :  { %1114 = vmatpush.msra.mxu2 %v471_v14  ;;  %1134 = vmatpush.msra.mxu3 %v599_v15  ;;  %v279_v35 = vld [vmem:[%s5766_s3 + $0x468] sm:$0xff]  ;;  %v632_v3 = vld [vmem:[%s5766_s3 + $0xf70] sm:$0xff] }
 0x10a   :  { %1078 = vmatpush.msra.mxu0 %v183_v16  ;;  %1098 = vmatpush.msra.mxu1 %v311_v17  ;;  %v431_v36 = vld [vmem:[%s5766_s3 + $0x928] sm:$0xff]  ;;  %v216_v4 = vld [vmem:[%s5766_s3 + $0x270] sm:$0xff] }
 0x10b   :  { %1115 = vmatpush.msra.mxu2 %v463_v18  ;;  %1135 = vmatpush.msra.mxu3 %v591_v19  ;;  %v559_v37 = vld [vmem:[%s5766_s3 + $0xd28] sm:$0xff]  ;;  %v344_v5 = vld [vmem:[%s5766_s3 + $0x670] sm:$0xff] }
 0x10c   :  { %1079 = vmatpush.msra.mxu0 %v175_v20  ;;  %1099 = vmatpush.msra.mxu1 %v303_v21  ;;  %v143_v40 = vld [vmem:[%s5766_s3 + $0x28] sm:$0xff]  ;;  %v496_v6 = vld [vmem:[%s5766_s3 + $0xb30] sm:$0xff] }
 0x10d   :  { %1116 = vmatpush.msra.mxu2 %v455_v22  ;;  %1136 = vmatpush.msra.mxu3 %v583_v23  ;;  %v271_v41 = vld [vmem:[%s5766_s3 + $0x428] sm:$0xff]  ;;  %v624_v7 = vld [vmem:[%s5766_s3 + $0xf30] sm:$0xff] }
 0x10e   :  { %1080 = vmatpush.msra.mxu0 %v167_v26  ;;  %1100 = vmatpush.msra.mxu1 %v295_v27  ;;  %v423_v42 = vld [vmem:[%s5766_s3 + $0x8e8] sm:$0xff]  ;;  %v208_v8 = vld [vmem:[%s5766_s3 + $0x230] sm:$0xff] }
 0x10f   :  { %1117 = vmatpush.msra.mxu2 %v447_v28  ;;  %1137 = vmatpush.msra.mxu3 %v575_v29  ;;  %v551_v43 = vld [vmem:[%s5766_s3 + $0xce8] sm:$0xff]  ;;  %v336_v9 = vld [vmem:[%s5766_s3 + $0x630] sm:$0xff] }
 0x110   :  { %1081 = vmatpush.msra.mxu0 %v159_v30  ;;  %1101 = vmatpush.msra.mxu1 %v287_v31  ;;  %v415_v46 = vld [vmem:[%s5766_s3 + $0x8a8] sm:$0xff]  ;;  %v488_v10 = vld [vmem:[%s5766_s3 + $0xaf0] sm:$0xff] }
 0x111   :  { %1118 = vmatpush.msra.mxu2 %v439_v32  ;;  %1138 = vmatpush.msra.mxu3 %v567_v33  ;;  %v543_v47 = vld [vmem:[%s5766_s3 + $0xca8] sm:$0xff]  ;;  %v616_v11 = vld [vmem:[%s5766_s3 + $0xef0] sm:$0xff] }
 0x112   :  { %1082 = vmatpush.msra.mxu0 %v151_v34  ;;  %1102 = vmatpush.msra.mxu1 %v279_v35  ;;  %v407_v50 = vld [vmem:[%s5766_s3 + $0x868] sm:$0xff]  ;;  %v200_v12 = vld [vmem:[%s5766_s3 + $0x1f0] sm:$0xff] }
 0x113   :  { %1119 = vmatpush.msra.mxu2 %v431_v36  ;;  %1139 = vmatpush.msra.mxu3 %v559_v37  ;;  %v535_v51 = vld [vmem:[%s5766_s3 + $0xc68] sm:$0xff]  ;;  %v328_v13 = vld [vmem:[%s5766_s3 + $0x5f0] sm:$0xff] }
 0x114   :  { %1083 = vmatpush.msra.mxu0 %v143_v40  ;;  %1103 = vmatpush.msra.mxu1 %v271_v41  ;;  %v399_v54 = vld [vmem:[%s5766_s3 + $0x828] sm:$0xff]  ;;  %v480_v14 = vld [vmem:[%s5766_s3 + $0xab0] sm:$0xff] }
 0x115   :  { %1120 = vmatpush.msra.mxu2 %v423_v42  ;;  %1140 = vmatpush.msra.mxu3 %v551_v43  ;;  %v527_v55 = vld [vmem:[%s5766_s3 + $0xc28] sm:$0xff]  ;;  %v608_v15 = vld [vmem:[%s5766_s3 + $0xeb0] sm:$0xff] }
 0x116   :  { %1084 = vmatmul.f32.vlgmr.msra.gmra.mxu0 %v2960_v24  ;;  %1104 = vmatmul.f32.vlgmr.msra.gmra.mxu1 %v2962_v25  ;;  %v192_v16 = vld [vmem:[%s5766_s3 + $0x1b0] sm:$0xff] }
 0x117   :  { %1148 = vmatpush.msrb.mxu0 %v264_v44  ;;  %1168 = vmatpush.msrb.mxu1 %v392_v45  ;;  %v320_v17 = vld [vmem:[%s5766_s3 + $0x5b0] sm:$0xff] }
 0x118   :  { %1121 = vmatpush.msra.mxu2 %v415_v46  ;;  %1141 = vmatpush.msra.mxu3 %v543_v47  ;;  %v472_v18 = vld [vmem:[%s5766_s3 + $0xa70] sm:$0xff] }
 0x119   :  { %1149 = vmatpush.msrb.mxu0 %v256_v48  ;;  %1169 = vmatpush.msrb.mxu1 %v384_v49  ;;  %v600_v19 = vld [vmem:[%s5766_s3 + $0xe70] sm:$0xff]  ;;  %v265_v48 = vld [vmem:[%s5766_s3 + $0x3f8] sm:$0xff] }
 0x11a   :  { %1122 = vmatpush.msra.mxu2 %v407_v50  ;;  %1142 = vmatpush.msra.mxu3 %v535_v51  ;;  %v184_v20 = vld [vmem:[%s5766_s3 + $0x170] sm:$0xff]  ;;  %v393_v49 = vld [vmem:[%s5766_s3 + $0x7f8] sm:$0xff] }
 0x11b   :  { %1150 = vmatpush.msrb.mxu0 %v248_v52  ;;  %1170 = vmatpush.msrb.mxu1 %v376_v53  ;;  %v312_v21 = vld [vmem:[%s5766_s3 + $0x570] sm:$0xff]  ;;  %v257_v52 = vld [vmem:[%s5766_s3 + $0x3b8] sm:$0xff] }
 0x11c   :  { %1123 = vmatpush.msra.mxu2 %v399_v54  ;;  %1143 = vmatpush.msra.mxu3 %v527_v55  ;;  %v464_v22 = vld [vmem:[%s5766_s3 + $0xa30] sm:$0xff]  ;;  %v385_v53 = vld [vmem:[%s5766_s3 + $0x7b8] sm:$0xff] }
 0x11d   :  { %1124 = vmatmul.f32.vlgmr.msra.gmra.mxu2 %v2984_v38  ;;  %1144 = vmatmul.f32.vlgmr.msra.gmra.mxu3 %v2986_v39  ;;  %v592_v23 = vld [vmem:[%s5766_s3 + $0xe30] sm:$0xff] }
 0x11e   :  { %1151 = vmatpush.msrb.mxu0 %v240_v56  ;;  %1171 = vmatpush.msrb.mxu1 %v368_v57  ;;  %v176_v26 = vld [vmem:[%s5766_s3 + $0x130] sm:$0xff]  ;;  %v249_v56 = vld [vmem:[%s5766_s3 + $0x378] sm:$0xff] }
 0x11f   :  { %1188 = vmatpush.msrb.mxu2 %v520_v58  ;;  %1208 = vmatpush.msrb.mxu3 %v648_v59  ;;  %v304_v27 = vld [vmem:[%s5766_s3 + $0x530] sm:$0xff]  ;;  %v377_v57 = vld [vmem:[%s5766_s3 + $0x778] sm:$0xff] }
 0x120   :  { %1152 = vmatpush.msrb.mxu0 %v232_v60  ;;  %1172 = vmatpush.msrb.mxu1 %v360_v61  ;;  %v456_v28 = vld [vmem:[%s5766_s3 + $0x9f0] sm:$0xff]  ;;  %v241_v60 = vld [vmem:[%s5766_s3 + $0x338] sm:$0xff] }
 0x121   :  { %1189 = vmatpush.msrb.mxu2 %v512_v62  ;;  %1209 = vmatpush.msrb.mxu3 %v640_v63  ;;  %v584_v29 = vld [vmem:[%s5766_s3 + $0xdf0] sm:$0xff]  ;;  %v369_v61 = vld [vmem:[%s5766_s3 + $0x738] sm:$0xff] }
 0x122   :  { %1153 = vmatpush.msrb.mxu0 %v224_v0  ;;  %1173 = vmatpush.msrb.mxu1 %v352_v1  ;;  %v168_v30 = vld [vmem:[%s5766_s3 + $0xf0] sm:$0xff]  ;;  %v521_v62 = vld [vmem:[%s5766_s3 + $0xbf8] sm:$0xff] }
 0x123   :  { %1190 = vmatpush.msrb.mxu2 %v504_v2  ;;  %1210 = vmatpush.msrb.mxu3 %v632_v3  ;;  %v296_v31 = vld [vmem:[%s5766_s3 + $0x4f0] sm:$0xff]  ;;  %v649_v63 = vld [vmem:[%s5766_s3 + $0xff8] sm:$0xff] }
 0x124   :  { %1154 = vmatpush.msrb.mxu0 %v216_v4  ;;  %1174 = vmatpush.msrb.mxu1 %v344_v5  ;;  %v448_v32 = vld [vmem:[%s5766_s3 + $0x9b0] sm:$0xff]  ;;  %v233_v0 = vld [vmem:[%s5766_s3 + $0x2f8] sm:$0xff] }
 0x125   :  { %1191 = vmatpush.msrb.mxu2 %v496_v6  ;;  %1211 = vmatpush.msrb.mxu3 %v624_v7  ;;  %v576_v33 = vld [vmem:[%s5766_s3 + $0xdb0] sm:$0xff]  ;;  %v361_v1 = vld [vmem:[%s5766_s3 + $0x6f8] sm:$0xff] }
 0x126   :  { %1155 = vmatpush.msrb.mxu0 %v208_v8  ;;  %1175 = vmatpush.msrb.mxu1 %v336_v9  ;;  %v160_v34 = vld [vmem:[%s5766_s3 + $0xb0] sm:$0xff]  ;;  %v513_v2 = vld [vmem:[%s5766_s3 + $0xbb8] sm:$0xff] }
 0x127   :  { %1192 = vmatpush.msrb.mxu2 %v488_v10  ;;  %1212 = vmatpush.msrb.mxu3 %v616_v11  ;;  %v288_v35 = vld [vmem:[%s5766_s3 + $0x4b0] sm:$0xff]  ;;  %v641_v3 = vld [vmem:[%s5766_s3 + $0xfb8] sm:$0xff] }
 0x128   :  { %1156 = vmatpush.msrb.mxu0 %v200_v12  ;;  %1176 = vmatpush.msrb.mxu1 %v328_v13  ;;  %v440_v36 = vld [vmem:[%s5766_s3 + $0x970] sm:$0xff]  ;;  %v225_v4 = vld [vmem:[%s5766_s3 + $0x2b8] sm:$0xff] }
 0x129   :  { %1193 = vmatpush.msrb.mxu2 %v480_v14  ;;  %1213 = vmatpush.msrb.mxu3 %v608_v15  ;;  %v568_v37 = vld [vmem:[%s5766_s3 + $0xd70] sm:$0xff]  ;;  %v353_v5 = vld [vmem:[%s5766_s3 + $0x6b8] sm:$0xff] }
 0x12a   :  { %1157 = vmatpush.msrb.mxu0 %v192_v16  ;;  %1177 = vmatpush.msrb.mxu1 %v320_v17  ;;  %v152_v40 = vld [vmem:[%s5766_s3 + $0x70] sm:$0xff]  ;;  %v505_v6 = vld [vmem:[%s5766_s3 + $0xb78] sm:$0xff] }
 0x12b   :  { %1194 = vmatpush.msrb.mxu2 %v472_v18  ;;  %1214 = vmatpush.msrb.mxu3 %v600_v19  ;;  %v280_v41 = vld [vmem:[%s5766_s3 + $0x470] sm:$0xff]  ;;  %v633_v7 = vld [vmem:[%s5766_s3 + $0xf78] sm:$0xff] }
 0x12c   :  { %1158 = vmatpush.msrb.mxu0 %v184_v20  ;;  %1178 = vmatpush.msrb.mxu1 %v312_v21  ;;  %v432_v42 = vld [vmem:[%s5766_s3 + $0x930] sm:$0xff]  ;;  %v217_v8 = vld [vmem:[%s5766_s3 + $0x278] sm:$0xff] }
 0x12d   :  { %1195 = vmatpush.msrb.mxu2 %v464_v22  ;;  %1215 = vmatpush.msrb.mxu3 %v592_v23  ;;  %v560_v43 = vld [vmem:[%s5766_s3 + $0xd30] sm:$0xff]  ;;  %v345_v9 = vld [vmem:[%s5766_s3 + $0x678] sm:$0xff] }
 0x12e   :  { %1159 = vmatpush.msrb.mxu0 %v176_v26  ;;  %1179 = vmatpush.msrb.mxu1 %v304_v27  ;;  %v144_v44 = vld [vmem:[%s5766_s3 + $0x30] sm:$0xff]  ;;  %v497_v10 = vld [vmem:[%s5766_s3 + $0xb38] sm:$0xff] }
 0x12f   :  { %1196 = vmatpush.msrb.mxu2 %v456_v28  ;;  %1216 = vmatpush.msrb.mxu3 %v584_v29  ;;  %v272_v45 = vld [vmem:[%s5766_s3 + $0x430] sm:$0xff]  ;;  %v625_v11 = vld [vmem:[%s5766_s3 + $0xf38] sm:$0xff] }
 0x130   :  { %1160 = vmatpush.msrb.mxu0 %v168_v30  ;;  %1180 = vmatpush.msrb.mxu1 %v296_v31  ;;  %v424_v46 = vld [vmem:[%s5766_s3 + $0x8f0] sm:$0xff]  ;;  %v209_v12 = vld [vmem:[%s5766_s3 + $0x238] sm:$0xff] }
 0x131   :  { %1197 = vmatpush.msrb.mxu2 %v448_v32  ;;  %1217 = vmatpush.msrb.mxu3 %v576_v33  ;;  %v552_v47 = vld [vmem:[%s5766_s3 + $0xcf0] sm:$0xff]  ;;  %v337_v13 = vld [vmem:[%s5766_s3 + $0x638] sm:$0xff] }
 0x132   :  { %1161 = vmatpush.msrb.mxu0 %v160_v34  ;;  %1181 = vmatpush.msrb.mxu1 %v288_v35  ;;  %v416_v50 = vld [vmem:[%s5766_s3 + $0x8b0] sm:$0xff]  ;;  %v489_v14 = vld [vmem:[%s5766_s3 + $0xaf8] sm:$0xff] }
 0x133   :  { %1198 = vmatpush.msrb.mxu2 %v440_v36  ;;  %1218 = vmatpush.msrb.mxu3 %v568_v37  ;;  %v544_v51 = vld [vmem:[%s5766_s3 + $0xcb0] sm:$0xff]  ;;  %v617_v15 = vld [vmem:[%s5766_s3 + $0xef8] sm:$0xff] }
 0x134   :  { %1162 = vmatpush.msrb.mxu0 %v152_v40  ;;  %1182 = vmatpush.msrb.mxu1 %v280_v41  ;;  %v408_v54 = vld [vmem:[%s5766_s3 + $0x870] sm:$0xff]  ;;  %v201_v16 = vld [vmem:[%s5766_s3 + $0x1f8] sm:$0xff] }
 0x135   :  { %1199 = vmatpush.msrb.mxu2 %v432_v42  ;;  %1219 = vmatpush.msrb.mxu3 %v560_v43  ;;  %v536_v55 = vld [vmem:[%s5766_s3 + $0xc70] sm:$0xff]  ;;  %v329_v17 = vld [vmem:[%s5766_s3 + $0x5f8] sm:$0xff] }
 0x136   :  { %1163 = vmatpush.msrb.mxu0 %v144_v44  ;;  %1183 = vmatpush.msrb.mxu1 %v272_v45  ;;  %v400_v58 = vld [vmem:[%s5766_s3 + $0x830] sm:$0xff]  ;;  %v481_v18 = vld [vmem:[%s5766_s3 + $0xab8] sm:$0xff] }
 0x137   :  { %1200 = vmatpush.msrb.mxu2 %v424_v46  ;;  %1220 = vmatpush.msrb.mxu3 %v552_v47  ;;  %v528_v59 = vld [vmem:[%s5766_s3 + $0xc30] sm:$0xff]  ;;  %v609_v19 = vld [vmem:[%s5766_s3 + $0xeb8] sm:$0xff] }
 0x138   :  { %1164 = vmatmul.f32.vlgmr.msrb.gmra.mxu0 %v2960_v24  ;;  %1184 = vmatmul.f32.vlgmr.msrb.gmra.mxu1 %v2962_v25  ;;  %v193_v20 = vld [vmem:[%s5766_s3 + $0x1b8] sm:$0xff] }
 0x139   :  { %1228 = vmatpush.msra.mxu0 %v265_v48  ;;  %1248 = vmatpush.msra.mxu1 %v393_v49  ;;  %v321_v21 = vld [vmem:[%s5766_s3 + $0x5b8] sm:$0xff] }
 0x13a   :  { %1201 = vmatpush.msrb.mxu2 %v416_v50  ;;  %1221 = vmatpush.msrb.mxu3 %v544_v51  ;;  %v473_v22 = vld [vmem:[%s5766_s3 + $0xa78] sm:$0xff] }
 0x13b   :  { %1229 = vmatpush.msra.mxu0 %v257_v52  ;;  %1249 = vmatpush.msra.mxu1 %v385_v53  ;;  %v601_v23 = vld [vmem:[%s5766_s3 + $0xe78] sm:$0xff]  ;;  %v1368_v52 = vld [vmem:[%s5768_s5 + $0x1e0] sm:$0xff] }
 0x13c   :  { %1202 = vmatpush.msrb.mxu2 %v408_v54  ;;  %1222 = vmatpush.msrb.mxu3 %v536_v55  ;;  %v185_v26 = vld [vmem:[%s5766_s3 + $0x178] sm:$0xff]  ;;  %v1432_v53 = vld [vmem:[%s5768_s5 + $0x3e0] sm:$0xff] }
 0x13d   :  { %1230 = vmatpush.msra.mxu0 %v249_v56  ;;  %1250 = vmatpush.msra.mxu1 %v377_v57  ;;  %v313_v27 = vld [vmem:[%s5766_s3 + $0x578] sm:$0xff]  ;;  %v4142_v56 = vpop.f32.mrf.mxu0  ;;  %v1364_v57 = vld [vmem:[%s5768_s5 + $0x1c0] sm:$0xff] }
 0x13e   :  { %1203 = vmatpush.msrb.mxu2 %v400_v58  ;;  %1223 = vmatpush.msrb.mxu3 %v528_v59  ;;  %v465_v28 = vld [vmem:[%s5766_s3 + $0xa38] sm:$0xff]  ;;  %v1428_v58 = vld [vmem:[%s5768_s5 + $0x3c0] sm:$0xff] }
 0x13f   :  { %1204 = vmatmul.f32.vlgmr.msrb.gmra.mxu2 %v2984_v38  ;;  %1224 = vmatmul.f32.vlgmr.msrb.gmra.mxu3 %v2986_v39  ;;  %v593_v29 = vld [vmem:[%s5766_s3 + $0xe38] sm:$0xff] }
 0x140   :  { %1231 = vmatpush.msra.mxu0 %v241_v60  ;;  %1251 = vmatpush.msra.mxu1 %v369_v61  ;;  %v177_v30 = vld [vmem:[%s5766_s3 + $0x138] sm:$0xff]  ;;  %v1424_v60 = vld [vmem:[%s5768_s5 + $0x3a0] sm:$0xff] }
 0x141   :  { %1268 = vmatpush.msra.mxu2 %v521_v62  ;;  %1288 = vmatpush.msra.mxu3 %v649_v63  ;;  %v305_v31 = vld [vmem:[%s5766_s3 + $0x538] sm:$0xff]  ;;  %v1356_v63 = vld [vmem:[%s5768_s5 + $0x180] sm:$0xff] }
 0x142   :  { %1232 = vmatpush.msra.mxu0 %v233_v0  ;;  %1252 = vmatpush.msra.mxu1 %v361_v1  ;;  %v457_v32 = vld [vmem:[%s5766_s3 + $0x9f8] sm:$0xff]  ;;  %v1420_v0 = vld [vmem:[%s5768_s5 + $0x380] sm:$0xff]  ;;  %v4176_v1 = vpop.f32.mrf.mxu1 }
 0x143   :  { %1269 = vmatpush.msra.mxu2 %v513_v2  ;;  %1289 = vmatpush.msra.mxu3 %v641_v3  ;;  %v585_v33 = vld [vmem:[%s5766_s3 + $0xdf8] sm:$0xff]  ;;  %v4178_v2 = vpop.f32.mrf.mxu2  ;;  %v1496_v3 = vld [vmem:[%s5768_s5 + $0x5e0] sm:$0xff] }
 0x144   :  { %1233 = vmatpush.msra.mxu0 %v225_v4  ;;  %1253 = vmatpush.msra.mxu1 %v353_v5  ;;  %v169_v34 = vld [vmem:[%s5766_s3 + $0xf8] sm:$0xff]  ;;  %v1560_v4 = vld [vmem:[%s5768_s5 + $0x7e0] sm:$0xff] }
 0x145   :  { %1270 = vmatpush.msra.mxu2 %v505_v6  ;;  %1290 = vmatpush.msra.mxu3 %v633_v7  ;;  %v297_v35 = vld [vmem:[%s5766_s3 + $0x4f8] sm:$0xff]  ;;  %v1352_v5 = vld [vmem:[%s5768_s5 + $0x160] sm:$0xff] }
 0x146   :  { %1234 = vmatpush.msra.mxu0 %v217_v8  ;;  %1254 = vmatpush.msra.mxu1 %v345_v9  ;;  %v449_v36 = vld [vmem:[%s5766_s3 + $0x9b8] sm:$0xff]  ;;  %v1416_v6 = vld [vmem:[%s5768_s5 + $0x360] sm:$0xff]  ;;  %v765_v9 = vpop.f32.mrf.mxu0 }
 0x147   :  { %1271 = vmatpush.msra.mxu2 %v497_v10  ;;  %1291 = vmatpush.msra.mxu3 %v625_v11  ;;  %v577_v37 = vld [vmem:[%s5766_s3 + $0xdb8] sm:$0xff]  ;;  %v1492_v7 = vld [vmem:[%s5768_s5 + $0x5c0] sm:$0xff] }
 0x148   :  { %1235 = vmatpush.msra.mxu0 %v209_v12  ;;  %1255 = vmatpush.msra.mxu1 %v337_v13  ;;  %v161_v40 = vld [vmem:[%s5766_s3 + $0xb8] sm:$0xff]  ;;  %v1412_v8 = vld [vmem:[%s5768_s5 + $0x340] sm:$0xff] }
 0x149   :  { %1272 = vmatpush.msra.mxu2 %v489_v14  ;;  %1292 = vmatpush.msra.mxu3 %v617_v15  ;;  %v289_v41 = vld [vmem:[%s5766_s3 + $0x4b8] sm:$0xff]  ;;  %v1488_v10 = vld [vmem:[%s5768_s5 + $0x5a0] sm:$0xff]  ;;  %v4218_v14 = vpop.f32.mrf.mxu3 }
 0x14a   :  { %1236 = vmatpush.msra.mxu0 %v201_v16  ;;  %1256 = vmatpush.msra.mxu1 %v329_v17  ;;  %v441_v42 = vld [vmem:[%s5766_s3 + $0x978] sm:$0xff]  ;;  %v1552_v11 = vld [vmem:[%s5768_s5 + $0x7a0] sm:$0xff] }
 0x14b   :  { %1273 = vmatpush.msra.mxu2 %v481_v18  ;;  %1293 = vmatpush.msra.mxu3 %v609_v19  ;;  %v569_v43 = vld [vmem:[%s5766_s3 + $0xd78] sm:$0xff]  ;;  %v1344_v12 = vld [vmem:[%s5768_s5 + $0x120] sm:$0xff] }
 0x14c   :  { %1237 = vmatpush.msra.mxu0 %v193_v20  ;;  %1257 = vmatpush.msra.mxu1 %v321_v21  ;;  %v153_v44 = vld [vmem:[%s5766_s3 + $0x78] sm:$0xff]  ;;  %v1408_v13 = vld [vmem:[%s5768_s5 + $0x320] sm:$0xff] }
 0x14d   :  { %1274 = vmatpush.msra.mxu2 %v473_v22  ;;  %1294 = vmatpush.msra.mxu3 %v601_v23  ;;  %v281_v45 = vld [vmem:[%s5766_s3 + $0x478] sm:$0xff]  ;;  %v1484_v15 = vld [vmem:[%s5768_s5 + $0x580] sm:$0xff] }
 0x14e   :  { %1238 = vmatpush.msra.mxu0 %v185_v26  ;;  %1258 = vmatpush.msra.mxu1 %v313_v27  ;;  %v433_v46 = vld [vmem:[%s5766_s3 + $0x938] sm:$0xff]  ;;  %v1548_v16 = vld [vmem:[%s5768_s5 + $0x780] sm:$0xff]  ;;  %v785_v27 = vpop.f32.mrf.mxu1 }
 0x14f   :  { %1275 = vmatpush.msra.mxu2 %v465_v28  ;;  %1295 = vmatpush.msra.mxu3 %v593_v29  ;;  %v561_v47 = vld [vmem:[%s5766_s3 + $0xd38] sm:$0xff]  ;;  %v4229_v17 = vld [vmem:[%s5769_s4] sm:$0xff]  ;;  %v805_v28 = vpop.f32.mrf.mxu2 }
 0x150   :  { %1239 = vmatpush.msra.mxu0 %v177_v30  ;;  %1259 = vmatpush.msra.mxu1 %v305_v31  ;;  %v145_v48 = vld [vmem:[%s5766_s3 + $0x38] sm:$0xff]  ;;  %v1340_v18 = vld [vmem:[%s5768_s5 + $0x100] sm:$0xff]  ;;  %v652_v26 = vperm.slane %v4229_v17, 0 }
 0x151   :  { %1276 = vmatpush.msra.mxu2 %v457_v32  ;;  %1296 = vmatpush.msra.mxu3 %v585_v33  ;;  %v273_v49 = vld [vmem:[%s5766_s3 + $0x438] sm:$0xff]  ;;  %v1404_v19 = vld [vmem:[%s5768_s5 + $0x300] sm:$0xff]  ;;  %v653_v33 = vperm.slane %v4229_v17, 1 }
 0x152   :  { %1240 = vmatpush.msra.mxu0 %v169_v34  ;;  %1260 = vmatpush.msra.mxu1 %v297_v35  ;;  %v425_v50 = vld [vmem:[%s5766_s3 + $0x8f8] sm:$0xff]  ;;  %v1480_v20 = vld [vmem:[%s5768_s5 + $0x560] sm:$0xff]  ;;  %v845_v34 = vpop.f32.mrf.mxu0 }
 0x153   :  { %1277 = vmatpush.msra.mxu2 %v449_v36  ;;  %1297 = vmatpush.msra.mxu3 %v577_v37  ;;  %v553_v51 = vld [vmem:[%s5766_s3 + $0xcf8] sm:$0xff]  ;;  %v1544_v21 = vld [vmem:[%s5768_s5 + $0x760] sm:$0xff] }
 0x154   :  { %1241 = vmatpush.msra.mxu0 %v161_v40  ;;  %1261 = vmatpush.msra.mxu1 %v289_v41  ;;  %v417_v54 = vld [vmem:[%s5766_s3 + $0x8b8] sm:$0xff]  ;;  %v1336_v22 = vld [vmem:[%s5768_s5 + $0xe0] sm:$0xff]  ;;  %v686_v41 = vadd.f32 %v4142_v56, %v652_v26 }
 0x155   :  { %1278 = vmatpush.msra.mxu2 %v441_v42  ;;  %1298 = vmatpush.msra.mxu3 %v569_v43  ;;  %v545_v55 = vld [vmem:[%s5766_s3 + $0xcb8] sm:$0xff]  ;;  %v1400_v23 = vld [vmem:[%s5768_s5 + $0x2e0] sm:$0xff] }
 0x156   :  { %1242 = vmatpush.msra.mxu0 %v153_v44  ;;  %1262 = vmatpush.msra.mxu1 %v281_v45  ;;  %v409_v59 = vld [vmem:[%s5766_s3 + $0x878] sm:$0xff]  ;;  %v1476_v29 = vld [vmem:[%s5768_s5 + $0x540] sm:$0xff] }
 0x157   :  { %1279 = vmatpush.msra.mxu2 %v433_v46  ;;  %1299 = vmatpush.msra.mxu3 %v561_v47  ;;  %v401_v61 = vld [vmem:[%s5766_s3 + $0x838] sm:$0xff]  ;;  %v1540_v30 = vld [vmem:[%s5768_s5 + $0x740] sm:$0xff]  ;;  %v766_v46 = vadd.f32 %v765_v9, %v653_v33  ;;  %v825_v47 = vpop.f32.mrf.mxu3 }
 0x158   :  { %1243 = vmatpush.msra.mxu0 %v145_v48  ;;  %1263 = vmatpush.msra.mxu1 %v273_v49  ;;  %v529_v62 = vld [vmem:[%s5766_s3 + $0xc38] sm:$0xff]  ;;  %v1332_v31 = vld [vmem:[%s5768_s5 + $0xc0] sm:$0xff] }
 0x159   :  { %1280 = vmatpush.msra.mxu2 %v425_v50  ;;  %1300 = vmatpush.msra.mxu3 %v553_v51  ;;  %v1396_v32 = vld [vmem:[%s5768_s5 + $0x2c0] sm:$0xff] }
 0x15a   :  { %1244 = vmatmul.f32.vlgmr.msra.gmra.mxu0 %v2960_v24  ;;  %1264 = vmatmul.f32.vlgmr.msra.gmra.mxu1 %v2962_v25  ;;  %v537_v24 = vld [vmem:[%s5766_s3 + $0xc78] sm:$0xff]  ;;  %v1360_v25 = vld [vmem:[%s5768_s5 + $0x1a0] sm:$0xff] }
 0x15b   :  { %1820 = vmatpush.msrb.mxu0 %v1368_v52  ;;  %1840 = vmatpush.msrb.mxu1 %v1432_v53  ;;  %v1472_v35 = vld [vmem:[%s5768_s5 + $0x520] sm:$0xff]  ;;  %v706_v52 = vadd.f32 %v4176_v1, %v686_v41  ;;  %v865_v53 = vpop.f32.mrf.mxu1 }
 0x15c   :  { %1281 = vmatpush.msra.mxu2 %v417_v54  ;;  %1301 = vmatpush.msra.mxu3 %v545_v55  ;;  %v1536_v36 = vld [vmem:[%s5768_s5 + $0x720] sm:$0xff]  ;;  %v885_v54 = vpop.f32.mrf.mxu2 }
 0x15d   :  { %1821 = vmatpush.msrb.mxu0 %v1364_v57  ;;  %1841 = vmatpush.msrb.mxu1 %v1428_v58  ;;  %v1328_v37 = vld [vmem:[%s5768_s5 + $0xa0] sm:$0xff]  ;;  %v654_v57 = vperm.slane %v4229_v17, 2  ;;  %v655_v58 = vperm.slane %v4229_v17, 3  ;;  %v726_v1 = vadd.f32 %v4178_v2, %v706_v52 }
 0x15e   :  { %1282 = vmatpush.msra.mxu2 %v409_v59  ;;  %1302 = vmatpush.msra.mxu3 %v537_v24  ;;  %v1392_v40 = vld [vmem:[%s5768_s5 + $0x2a0] sm:$0xff] }
 0x15f   :  { %1822 = vmatpush.msrb.mxu0 %v1360_v25  ;;  %1842 = vmatpush.msrb.mxu1 %v1424_v60  ;;  %v1468_v42 = vld [vmem:[%s5768_s5 + $0x500] sm:$0xff]  ;;  %v786_v25 = vadd.f32 %v785_v27, %v766_v46  ;;  %v925_v60 = vpop.f32.mrf.mxu0 }
 0x160   :  { %1283 = vmatpush.msra.mxu2 %v401_v61  ;;  %1303 = vmatpush.msra.mxu3 %v529_v62  ;;  %v1532_v43 = vld [vmem:[%s5768_s5 + $0x700] sm:$0xff] }
 0x161   :  { %1284 = vmatmul.f32.vlgmr.msra.gmra.mxu2 %v2984_v38  ;;  %1304 = vmatmul.f32.vlgmr.msra.gmra.mxu3 %v2986_v39  ;;  %v1556_v38 = vld [vmem:[%s5768_s5 + $0x7c0] sm:$0xff] }
 0x162   :  { %1823 = vmatpush.msrb.mxu0 %v1356_v63  ;;  %1843 = vmatpush.msrb.mxu1 %v1420_v0  ;;  %v1348_v39 = vld [vmem:[%s5768_s5 + $0x140] sm:$0xff] }
 0x163   :  { %1860 = vmatpush.msrb.mxu2 %v1496_v3  ;;  %1880 = vmatpush.msrb.mxu3 %v1560_v4  ;;  %v1324_v44 = vld [vmem:[%s5768_s5 + $0x80] sm:$0xff]  ;;  %v806_v3 = vadd.f32 %v805_v28, %v786_v25 }
 0x164   :  { %1824 = vmatpush.msrb.mxu0 %v1352_v5  ;;  %1844 = vmatpush.msrb.mxu1 %v1416_v6  ;;  %v1388_v45 = vld [vmem:[%s5768_s5 + $0x280] sm:$0xff]  ;;  %v846_v6 = vadd.f32 %v845_v34, %v654_v57 }
 0x165   :  { %1861 = vmatpush.msrb.mxu2 %v1492_v7  ;;  %1881 = vmatpush.msrb.mxu3 %v1556_v38  ;;  %v1464_v48 = vld [vmem:[%s5768_s5 + $0x4e0] sm:$0xff]  ;;  %v926_v7 = vadd.f32 %v925_v60, %v655_v58 }
 0x166   :  { %1825 = vmatpush.msrb.mxu0 %v1348_v39  ;;  %1845 = vmatpush.msrb.mxu1 %v1412_v8  ;;  %v1528_v49 = vld [vmem:[%s5768_s5 + $0x6e0] sm:$0xff]  ;;  %v905_v39 = vpop.f32.mrf.mxu3 }
 0x167   :  { %1862 = vmatpush.msrb.mxu2 %v1488_v10  ;;  %1882 = vmatpush.msrb.mxu3 %v1552_v11  ;;  %v1320_v50 = vld [vmem:[%s5768_s5 + $0x60] sm:$0xff]  ;;  %v4347_v10 = vadd.f32 %v4218_v14, %v726_v1  ;;  %v4349_v11 = vadd.f32 %v825_v47, %v806_v3 }
 0x168   :  { %1826 = vmatpush.msrb.mxu0 %v1344_v12  ;;  %1846 = vmatpush.msrb.mxu1 %v1408_v13  ;;  %v1384_v51 = vld [vmem:[%s5768_s5 + $0x260] sm:$0xff]  ;;  %v945_v12 = vpop.f32.mrf.mxu1  ;;  %v965_v13 = vpop.f32.mrf.mxu2 }
 0x169   :  { %1863 = vmatpush.msrb.mxu2 %v1484_v15  ;;  %1883 = vmatpush.msrb.mxu3 %v1548_v16  ;;  %v1460_v55 = vld [vmem:[%s5768_s5 + $0x4c0] sm:$0xff] }
 0x16a   :  { %1827 = vmatpush.msrb.mxu0 %v1340_v18  ;;  %1847 = vmatpush.msrb.mxu1 %v1404_v19  ;;  %v1524_v56 = vld [vmem:[%s5768_s5 + $0x6c0] sm:$0xff]  ;;  %v866_v18 = vadd.f32 %v865_v53, %v846_v6  ;;  %v946_v19 = vadd.f32 %v945_v12, %v926_v7 }
 0x16b   :  { %1864 = vmatpush.msrb.mxu2 %v1480_v20  ;;  %1884 = vmatpush.msrb.mxu3 %v1544_v21  ;;  %v1316_v59 = vld [vmem:[%s5768_s5 + $0x40] sm:$0xff] }
 0x16c   :  { %1828 = vmatpush.msrb.mxu0 %v1336_v22  ;;  %1848 = vmatpush.msrb.mxu1 %v1400_v23  ;;  %v1380_v24 = vld [vmem:[%s5768_s5 + $0x240] sm:$0xff]  ;;  %v886_v23 = vadd.f32 %v885_v54, %v866_v18  ;;  %v966_v26 = vadd.f32 %v965_v13, %v946_v19 }
 0x16d   :  { %1865 = vmatpush.msrb.mxu2 %v1476_v29  ;;  %1885 = vmatpush.msrb.mxu3 %v1540_v30  ;;  %v1456_v61 = vld [vmem:[%s5768_s5 + $0x4a0] sm:$0xff] }
 0x16e   :  { %1829 = vmatpush.msrb.mxu0 %v1332_v31  ;;  %1849 = vmatpush.msrb.mxu1 %v1396_v32  ;;  %v1520_v62 = vld [vmem:[%s5768_s5 + $0x6a0] sm:$0xff]  ;;  %v985_v33 = vpop.f32.mrf.mxu3  ;;  %v4389_v34 = vadd.f32 %v905_v39, %v886_v23 }
 0x16f   :  { %1866 = vmatpush.msrb.mxu2 %v1472_v35  ;;  %1886 = vmatpush.msrb.mxu3 %v1536_v36  ;;  %v1312_v63 = vld [vmem:[%s5768_s5 + $0x20] sm:$0xff]  ;;  %v4391_v35 = vadd.f32 %v985_v33, %v966_v26 }
 0x170   :  { %1830 = vmatpush.msrb.mxu0 %v1328_v37  ;;  %1850 = vmatpush.msrb.mxu1 %v1392_v40  ;;  %v1376_v0 = vld [vmem:[%s5768_s5 + $0x220] sm:$0xff] }
 0x171   :  { %1867 = vmatpush.msrb.mxu2 %v1468_v42  ;;  %1887 = vmatpush.msrb.mxu3 %v1532_v43  ;;  %v1452_v4 = vld [vmem:[%s5768_s5 + $0x480] sm:$0xff] }
 0x172   :  { %1831 = vmatpush.msrb.mxu0 %v1324_v44  ;;  %1851 = vmatpush.msrb.mxu1 %v1388_v45  ;;  %v1516_v5 = vld [vmem:[%s5768_s5 + $0x680] sm:$0xff] }
 0x173   :  { %1868 = vmatpush.msrb.mxu2 %v1464_v48  ;;  %1888 = vmatpush.msrb.mxu3 %v1528_v49  ;;  %v1308_v38 = vld [vmem:[%s5768_s5] sm:$0xff] }
 0x174   :  { %1832 = vmatpush.msrb.mxu0 %v1320_v50  ;;  %1852 = vmatpush.msrb.mxu1 %v1384_v51  ;;  %v1372_v2 = vld [vmem:[%s5768_s5 + $0x200] sm:$0xff] }
 0x175   :  { %1869 = vmatpush.msrb.mxu2 %v1460_v55  ;;  %1889 = vmatpush.msrb.mxu3 %v1524_v56  ;;  %v1448_v8 = vld [vmem:[%s5768_s5 + $0x460] sm:$0xff]  ;;  %v656_v56 = vperm.slane %v4229_v17, 4 }
 0x176   :  { %1833 = vmatpush.msrb.mxu0 %v1316_v59  ;;  %1853 = vmatpush.msrb.mxu1 %v1380_v24  ;;  %v1512_v9 = vld [vmem:[%s5768_s5 + $0x660] sm:$0xff]  ;;  %v1005_v59 = vpop.f32.mrf.mxu0 }
 0x177   :  { %1870 = vmatpush.msrb.mxu2 %v1456_v61  ;;  %1890 = vmatpush.msrb.mxu3 %v1520_v62  ;;  %v1624_v15 = vld [vmem:[%s5768_s5 + $0x9e0] sm:$0xff] }
 0x178   :  { %1834 = vmatpush.msrb.mxu0 %v1312_v63  ;;  %1854 = vmatpush.msrb.mxu1 %v1376_v0  ;;  %v1688_v16 = vld [vmem:[%s5768_s5 + $0xbe0] sm:$0xff]  ;;  %v1006_v0 = vadd.f32 %v1005_v59, %v656_v56  ;;  %v1497_v56 = vld [vmem:[%s5768_s5 + $0x5e8] sm:$0xff] }
 0x179   :  { %1871 = vmatpush.msrb.mxu2 %v1452_v4  ;;  %1891 = vmatpush.msrb.mxu3 %v1516_v5  ;;  %v1444_v14 = vld [vmem:[%s5768_s5 + $0x440] sm:$0xff] }
 0x17a   :  { %1835 = vmatpush.msrb.mxu0 %v1308_v38  ;;  %1855 = vmatpush.msrb.mxu1 %v1372_v2  ;;  %v1508_v20 = vld [vmem:[%s5768_s5 + $0x640] sm:$0xff]  ;;  %v1025_v38 = vpop.f32.mrf.mxu1 }
 0x17b   :  { %1872 = vmatpush.msrb.mxu2 %v1448_v8  ;;  %1892 = vmatpush.msrb.mxu3 %v1512_v9  ;;  %v1620_v21 = vld [vmem:[%s5768_s5 + $0x9c0] sm:$0xff]  ;;  %v1026_v9 = vadd.f32 %v1025_v38, %v1006_v0  ;;  %v1345_v0 = vld [vmem:[%s5768_s5 + $0x128] sm:$0xff] }
 0x17c   :  { %1836 = vmatmul.f32.vlgmr.msrb.gmra.mxu0 %v4347_v10  ;;  %1856 = vmatmul.f32.vlgmr.msrb.gmra.mxu1 %v4349_v11  ;;  %v1684_v22 = vld [vmem:[%s5768_s5 + $0xbc0] sm:$0xff]  ;;  %v1481_v38 = vld [vmem:[%s5768_s5 + $0x568] sm:$0xff] }
 0x17d   :  { %1900 = vmatpush.msra.mxu0 %v1624_v15  ;;  %1920 = vmatpush.msra.mxu1 %v1688_v16  ;;  %v1440_v27 = vld [vmem:[%s5768_s5 + $0x420] sm:$0xff] }
 0x17e   :  { %v1504_v28 = vld [vmem:[%s5768_s5 + $0x620] sm:$0xff]  ;;  %1873 = vmatpush.msrb.mxu2 %v1444_v14  ;;  %1893 = vmatpush.msrb.mxu3 %v1508_v20  ;;  %v1045_v2 = vpop.f32.mrf.mxu2  ;;  %v657_v20 = vperm.slane %v4229_v17, 5 }
 0x17f   :  { %v1616_v29 = vld [vmem:[%s5768_s5 + $0x9a0] sm:$0xff]  ;;  %1901 = vmatpush.msra.mxu0 %v1620_v21  ;;  %1921 = vmatpush.msra.mxu1 %v1684_v22  ;;  %v1046_v18 = vadd.f32 %v1045_v2, %v1026_v9  ;;  %v1337_v2 = vld [vmem:[%s5768_s5 + $0xe8] sm:$0xff] }
 0x180   :  { %v1680_v30 = vld [vmem:[%s5768_s5 + $0xba0] sm:$0xff]  ;;  %1874 = vmatpush.msrb.mxu2 %v1440_v27  ;;  %1894 = vmatpush.msrb.mxu3 %v1504_v28  ;;  %v1065_v28 = vpop.f32.mrf.mxu3  ;;  %v1477_v9 = vld [vmem:[%s5768_s5 + $0x548] sm:$0xff] }
 0x181   :  { %v1436_v31 = vld [vmem:[%s5768_s5 + $0x400] sm:$0xff]  ;;  %1902 = vmatpush.msra.mxu0 %v1616_v29  ;;  %1922 = vmatpush.msra.mxu1 %v1680_v30  ;;  %v1433_v29 = vld [vmem:[%s5768_s5 + $0x3e8] sm:$0xff] }
 0x182   :  { %v1500_v32 = vld [vmem:[%s5768_s5 + $0x600] sm:$0xff]  ;;  %1875 = vmatpush.msrb.mxu2 %v1436_v31  ;;  %v4535_v31 = vadd.f32 %v1065_v28, %v1046_v18  ;;  %v1329_v18 = vld [vmem:[%s5768_s5 + $0xa8] sm:$0xff] }
 0x183   :  { %v1612_v36 = vld [vmem:[%s5768_s5 + $0x980] sm:$0xff]  ;;  %1895 = vmatpush.msrb.mxu3 %v1500_v32  ;;  %1876 = vmatmul.f32.vlgmr.msrb.gmra.mxu2 %v4389_v34  ;;  %v1369_v32 = vld [vmem:[%s5768_s5 + $0x1e8] sm:$0xff] }
 0x184   :  { %v1676_v37 = vld [vmem:[%s5768_s5 + $0xb80] sm:$0xff]  ;;  %1896 = vmatmul.f32.vlgmr.msrb.gmra.mxu3 %v4391_v35  ;;  %1903 = vmatpush.msra.mxu0 %v1612_v36  ;;  %v1557_v28 = vld [vmem:[%s5768_s5 + $0x7c8] sm:$0xff] }
 0x185   :  { %v1752_v40 = vld [vmem:[%s5768_s5 + $0xde0] sm:$0xff]  ;;  %1923 = vmatpush.msra.mxu1 %v1676_v37  ;;  %v1429_v37 = vld [vmem:[%s5768_s5 + $0x3c8] sm:$0xff] }
 0x186   :  { %v1608_v41 = vld [vmem:[%s5768_s5 + $0x960] sm:$0xff]  ;;  %1940 = vmatpush.msra.mxu2 %v1752_v40  ;;  %v1365_v40 = vld [vmem:[%s5768_s5 + $0x1c8] sm:$0xff] }
 0x187   :  { %v1672_v42 = vld [vmem:[%s5768_s5 + $0xb60] sm:$0xff]  ;;  %1904 = vmatpush.msra.mxu0 %v1608_v41 }
 0x188   :  { %v1748_v43 = vld [vmem:[%s5768_s5 + $0xdc0] sm:$0xff]  ;;  %1924 = vmatpush.msra.mxu1 %v1672_v42 }
 0x189   :  { %v1604_v44 = vld [vmem:[%s5768_s5 + $0x940] sm:$0xff]  ;;  %1941 = vmatpush.msra.mxu2 %v1748_v43  ;;  %v1425_v43 = vld [vmem:[%s5768_s5 + $0x3a8] sm:$0xff] }
 0x18a   :  { %v1668_v45 = vld [vmem:[%s5768_s5 + $0xb40] sm:$0xff]  ;;  %1905 = vmatpush.msra.mxu0 %v1604_v44 }
 0x18b   :  { %v1744_v46 = vld [vmem:[%s5768_s5 + $0xda0] sm:$0xff]  ;;  %1925 = vmatpush.msra.mxu1 %v1668_v45 }
 0x18c   :  { %v1600_v47 = vld [vmem:[%s5768_s5 + $0x920] sm:$0xff]  ;;  %1942 = vmatpush.msra.mxu2 %v1744_v46  ;;  %v1361_v46 = vld [vmem:[%s5768_s5 + $0x1a8] sm:$0xff] }
 0x18d   :  { %v1664_v48 = vld [vmem:[%s5768_s5 + $0xb20] sm:$0xff]  ;;  %1906 = vmatpush.msra.mxu0 %v1600_v47 }
 0x18e   :  { %v1740_v49 = vld [vmem:[%s5768_s5 + $0xd80] sm:$0xff]  ;;  %1926 = vmatpush.msra.mxu1 %v1664_v48  ;;  %v1421_v48 = vld [vmem:[%s5768_s5 + $0x388] sm:$0xff] }
 0x18f   :  { %v1596_v50 = vld [vmem:[%s5768_s5 + $0x900] sm:$0xff]  ;;  %1943 = vmatpush.msra.mxu2 %v1740_v49 }
 0x190   :  { %v1660_v51 = vld [vmem:[%s5768_s5 + $0xb00] sm:$0xff]  ;;  %1907 = vmatpush.msra.mxu0 %v1596_v50 }
 0x191   :  { %v1736_v52 = vld [vmem:[%s5768_s5 + $0xd60] sm:$0xff]  ;;  %1927 = vmatpush.msra.mxu1 %v1660_v51  ;;  %v1357_v51 = vld [vmem:[%s5768_s5 + $0x188] sm:$0xff] }
 0x192   :  { %v1592_v53 = vld [vmem:[%s5768_s5 + $0x8e0] sm:$0xff]  ;;  %1944 = vmatpush.msra.mxu2 %v1736_v52 }
 0x193   :  { %v1656_v54 = vld [vmem:[%s5768_s5 + $0xae0] sm:$0xff]  ;;  %1908 = vmatpush.msra.mxu0 %v1592_v53  ;;  %v1085_v21 = vpop.f32.mrf.mxu0  ;;  %v1105_v42 = vpop.f32.mrf.mxu1 }
 0x194   :  { %v1732_v55 = vld [vmem:[%s5768_s5 + $0xd40] sm:$0xff]  ;;  %1928 = vmatpush.msra.mxu1 %v1656_v54  ;;  %v1086_v33 = vadd.f32 %v1085_v21, %v657_v20  ;;  %v1417_v54 = vld [vmem:[%s5768_s5 + $0x368] sm:$0xff] }
 0x195   :  { %v1588_v57 = vld [vmem:[%s5768_s5 + $0x8c0] sm:$0xff]  ;;  %1945 = vmatpush.msra.mxu2 %v1732_v55  ;;  %v1469_v20 = vld [vmem:[%s5768_s5 + $0x508] sm:$0xff] }
 0x196   :  { %v1652_v58 = vld [vmem:[%s5768_s5 + $0xac0] sm:$0xff]  ;;  %1909 = vmatpush.msra.mxu0 %v1588_v57  ;;  %v1106_v45 = vadd.f32 %v1105_v42, %v1086_v33  ;;  %v1325_v21 = vld [vmem:[%s5768_s5 + $0x88] sm:$0xff] }
 0x197   :  { %v1728_v24 = vld [vmem:[%s5768_s5 + $0xd20] sm:$0xff]  ;;  %1929 = vmatpush.msra.mxu1 %v1652_v58  ;;  %v1353_v58 = vld [vmem:[%s5768_s5 + $0x168] sm:$0xff] }
 0x198   :  { %v1816_v25 = vld [vmem:[%s5768_s5 + $0xfe0] sm:$0xff]  ;;  %1946 = vmatpush.msra.mxu2 %v1728_v24  ;;  %v1413_v24 = vld [vmem:[%s5768_s5 + $0x348] sm:$0xff] }
 0x199   :  { %v1584_v60 = vld [vmem:[%s5768_s5 + $0x8a0] sm:$0xff]  ;;  %1960 = vmatpush.msra.mxu3 %v1816_v25  ;;  %v1493_v25 = vld [vmem:[%s5768_s5 + $0x5c8] sm:$0xff] }
 0x19a   :  { %v1648_v61 = vld [vmem:[%s5768_s5 + $0xaa0] sm:$0xff]  ;;  %1910 = vmatpush.msra.mxu0 %v1584_v60  ;;  %v1349_v60 = vld [vmem:[%s5768_s5 + $0x148] sm:$0xff] }
 0x19b   :  { %v1724_v62 = vld [vmem:[%s5768_s5 + $0xd00] sm:$0xff]  ;;  %1930 = vmatpush.msra.mxu1 %v1648_v61  ;;  %v1553_v33 = vld [vmem:[%s5768_s5 + $0x7a8] sm:$0xff] }
 0x19c   :  { %v1812_v63 = vld [vmem:[%s5768_s5 + $0xfc0] sm:$0xff]  ;;  %1947 = vmatpush.msra.mxu2 %v1724_v62  ;;  %v1409_v62 = vld [vmem:[%s5768_s5 + $0x328] sm:$0xff] }
 0x19d   :  { %v1580_v1 = vld [vmem:[%s5768_s5 + $0x880] sm:$0xff]  ;;  %1961 = vmatpush.msra.mxu3 %v1812_v63  ;;  %v1489_v63 = vld [vmem:[%s5768_s5 + $0x5a8] sm:$0xff] }
 0x19e   :  { %v1644_v3 = vld [vmem:[%s5768_s5 + $0xa80] sm:$0xff]  ;;  %1911 = vmatpush.msra.mxu0 %v1580_v1  ;;  %v1373_v42 = vld [vmem:[%s5768_s5 + $0x208] sm:$0xff] }
 0x19f   :  { %v1720_v4 = vld [vmem:[%s5768_s5 + $0xce0] sm:$0xff]  ;;  %1931 = vmatpush.msra.mxu1 %v1644_v3  ;;  %v1405_v3 = vld [vmem:[%s5768_s5 + $0x308] sm:$0xff] }
 0x1a0   :  { %v1808_v5 = vld [vmem:[%s5768_s5 + $0xfa0] sm:$0xff]  ;;  %1948 = vmatpush.msra.mxu2 %v1720_v4  ;;  %v1125_v49 = vpop.f32.mrf.mxu2  ;;  %v1145_v55 = vpop.f32.mrf.mxu3  ;;  %v1485_v4 = vld [vmem:[%s5768_s5 + $0x588] sm:$0xff] }
 0x1a1   :  { %v1576_v6 = vld [vmem:[%s5768_s5 + $0x860] sm:$0xff]  ;;  %1962 = vmatpush.msra.mxu3 %v1808_v5  ;;  %v1126_v52 = vadd.f32 %v1125_v49, %v1106_v45  ;;  %v1341_v5 = vld [vmem:[%s5768_s5 + $0x108] sm:$0xff]  ;;  %v658_v45 = vperm.slane %v4229_v17, 6 }
 0x1a2   :  { %v1640_v7 = vld [vmem:[%s5768_s5 + $0xa60] sm:$0xff]  ;;  %1912 = vmatpush.msra.mxu0 %v1576_v6  ;;  %v1449_v49 = vld [vmem:[%s5768_s5 + $0x468] sm:$0xff] }
 0x1a3   :  { %v1716_v39 = vld [vmem:[%s5768_s5 + $0xcc0] sm:$0xff]  ;;  %1932 = vmatpush.msra.mxu1 %v1640_v7  ;;  %v4589_v59 = vadd.f32 %v1145_v55, %v1126_v52  ;;  %v1401_v7 = vld [vmem:[%s5768_s5 + $0x2e8] sm:$0xff] }
 0x1a4   :  { %v1804_v8 = vld [vmem:[%s5768_s5 + $0xf80] sm:$0xff]  ;;  %1949 = vmatpush.msra.mxu2 %v1716_v39  ;;  %v1681_v55 = vld [vmem:[%s5768_s5 + $0xba8] sm:$0xff] }
 0x1a5   :  { %v1572_v12 = vld [vmem:[%s5768_s5 + $0x840] sm:$0xff]  ;;  %1963 = vmatpush.msra.mxu3 %v1804_v8  ;;  %v1397_v8 = vld [vmem:[%s5768_s5 + $0x2c8] sm:$0xff] }
 0x1a6   :  { %v1636_v13 = vld [vmem:[%s5768_s5 + $0xa40] sm:$0xff]  ;;  %1913 = vmatpush.msra.mxu0 %v1572_v12  ;;  %v1333_v12 = vld [vmem:[%s5768_s5 + $0xc8] sm:$0xff] }
 0x1a7   :  { %v1712_v15 = vld [vmem:[%s5768_s5 + $0xca0] sm:$0xff]  ;;  %1933 = vmatpush.msra.mxu1 %v1636_v13 }
 0x1a8   :  { %v1800_v16 = vld [vmem:[%s5768_s5 + $0xf60] sm:$0xff]  ;;  %1950 = vmatpush.msra.mxu2 %v1712_v15  ;;  %v1393_v15 = vld [vmem:[%s5768_s5 + $0x2a8] sm:$0xff] }
 0x1a9   :  { %v1568_v19 = vld [vmem:[%s5768_s5 + $0x820] sm:$0xff]  ;;  %1964 = vmatpush.msra.mxu3 %v1800_v16  ;;  %v1473_v16 = vld [vmem:[%s5768_s5 + $0x528] sm:$0xff] }
 0x1aa   :  { %v1632_v14 = vld [vmem:[%s5768_s5 + $0xa20] sm:$0xff]  ;;  %1914 = vmatpush.msra.mxu0 %v1568_v19 }
 0x1ab   :  { %v1708_v22 = vld [vmem:[%s5768_s5 + $0xc80] sm:$0xff]  ;;  %1934 = vmatpush.msra.mxu1 %v1632_v14  ;;  %v1389_v14 = vld [vmem:[%s5768_s5 + $0x288] sm:$0xff] }
 0x1ac   :  { %v1796_v23 = vld [vmem:[%s5768_s5 + $0xf40] sm:$0xff]  ;;  %1951 = vmatpush.msra.mxu2 %v1708_v22  ;;  %v1561_v22 = vld [vmem:[%s5768_s5 + $0x7e8] sm:$0xff] }
 0x1ad   :  { %v1564_v26 = vld [vmem:[%s5768_s5 + $0x800] sm:$0xff]  ;;  %1965 = vmatpush.msra.mxu3 %v1796_v23  ;;  %v1385_v23 = vld [vmem:[%s5768_s5 + $0x268] sm:$0xff] }
 0x1ae   :  { %v1628_v27 = vld [vmem:[%s5768_s5 + $0xa00] sm:$0xff]  ;;  %1915 = vmatpush.msra.mxu0 %v1564_v26  ;;  %v1465_v26 = vld [vmem:[%s5768_s5 + $0x4e8] sm:$0xff] }
 0x1af   :  { %v1792_v30 = vld [vmem:[%s5768_s5 + $0xf20] sm:$0xff]  ;;  %1935 = vmatpush.msra.mxu1 %v1628_v27  ;;  %1916 = vmatmul.f32.vlgmr.msra.gmra.mxu0 %v4535_v31  ;;  %v1321_v27 = vld [vmem:[%s5768_s5 + $0x68] sm:$0xff] }
 0x1b0   :  { %v1704_v36 = vld [vmem:[%s5768_s5 + $0xc60] sm:$0xff]  ;;  %1966 = vmatpush.msra.mxu3 %v1792_v30  ;;  %1980 = vmatpush.msrb.mxu0 %v1369_v32  ;;  %v1461_v30 = vld [vmem:[%s5768_s5 + $0x4c8] sm:$0xff] }
 0x1b1   :  { %2000 = vmatpush.msrb.mxu1 %v1433_v29  ;;  %v1700_v41 = vld [vmem:[%s5768_s5 + $0xc40] sm:$0xff]  ;;  %1952 = vmatpush.msra.mxu2 %v1704_v36  ;;  %v1381_v29 = vld [vmem:[%s5768_s5 + $0x248] sm:$0xff] }
 0x1b2   :  { %v1788_v44 = vld [vmem:[%s5768_s5 + $0xf00] sm:$0xff]  ;;  %1981 = vmatpush.msrb.mxu0 %v1365_v40  ;;  %1936 = vmatmul.f32.vlgmr.msra.gmra.mxu1 %v4589_v59  ;;  %v1317_v32 = vld [vmem:[%s5768_s5 + $0x48] sm:$0xff] }
 0x1b3   :  { %2001 = vmatpush.msrb.mxu1 %v1429_v37  ;;  %v1696_v47 = vld [vmem:[%s5768_s5 + $0xc20] sm:$0xff]  ;;  %1967 = vmatpush.msra.mxu3 %v1788_v44  ;;  %v1377_v36 = vld [vmem:[%s5768_s5 + $0x228] sm:$0xff] }
 0x1b4   :  { %1953 = vmatpush.msra.mxu2 %v1700_v41  ;;  %v1784_v50 = vld [vmem:[%s5768_s5 + $0xee0] sm:$0xff]  ;;  %1982 = vmatpush.msrb.mxu0 %v1361_v46  ;;  %v1457_v37 = vld [vmem:[%s5768_s5 + $0x4a8] sm:$0xff] }
 0x1b5   :  { %2002 = vmatpush.msrb.mxu1 %v1425_v43  ;;  %v1692_v53 = vld [vmem:[%s5768_s5 + $0xc00] sm:$0xff]  ;;  %1968 = vmatpush.msra.mxu3 %v1784_v50  ;;  %v1313_v40 = vld [vmem:[%s5768_s5 + $0x28] sm:$0xff] }
 0x1b6   :  { %1954 = vmatpush.msra.mxu2 %v1696_v47  ;;  %v1780_v57 = vld [vmem:[%s5768_s5 + $0xec0] sm:$0xff]  ;;  %1983 = vmatpush.msrb.mxu0 %v1357_v51  ;;  %v1549_v41 = vld [vmem:[%s5768_s5 + $0x788] sm:$0xff]  ;;  %v1165_v47 = vpop.f32.mrf.mxu0 }
 0x1b7   :  { %2003 = vmatpush.msrb.mxu1 %v1421_v48  ;;  %1969 = vmatpush.msra.mxu3 %v1780_v57  ;;  %v1776_v61 = vld [vmem:[%s5768_s5 + $0xea0] sm:$0xff]  ;;  %v1453_v43 = vld [vmem:[%s5768_s5 + $0x488] sm:$0xff]  ;;  %v1166_v52 = vadd.f32 %v1165_v47, %v658_v45 }
 0x1b8   :  { %1955 = vmatpush.msra.mxu2 %v1692_v53  ;;  %1984 = vmatpush.msrb.mxu0 %v1353_v58  ;;  %v1772_v1 = vld [vmem:[%s5768_s5 + $0xe80] sm:$0xff]  ;;  %v1309_v44 = vld [vmem:[%s5768_s5 + $0x8] sm:$0xff] }
 0x1b9   :  { %2004 = vmatpush.msrb.mxu1 %v1417_v54  ;;  %1970 = vmatpush.msra.mxu3 %v1776_v61  ;;  %v1768_v6 = vld [vmem:[%s5768_s5 + $0xe60] sm:$0xff]  ;;  %v1689_v46 = vld [vmem:[%s5768_s5 + $0xbe8] sm:$0xff] }
 0x1ba   :  { %2020 = vmatpush.msrb.mxu2 %v1497_v56  ;;  %1985 = vmatpush.msrb.mxu0 %v1349_v60  ;;  %v1764_v39 = vld [vmem:[%s5768_s5 + $0xe40] sm:$0xff]  ;;  %v1625_v48 = vld [vmem:[%s5768_s5 + $0x9e8] sm:$0xff] }
 0x1bb   :  { %2005 = vmatpush.msrb.mxu1 %v1413_v24  ;;  %1971 = vmatpush.msra.mxu3 %v1772_v1  ;;  %v1760_v13 = vld [vmem:[%s5768_s5 + $0xe20] sm:$0xff]  ;;  %v1685_v50 = vld [vmem:[%s5768_s5 + $0xbc8] sm:$0xff]  ;;  %v1185_v24 = vpop.f32.mrf.mxu1 }
 0x1bc   :  { %2021 = vmatpush.msrb.mxu2 %v1493_v25  ;;  %1986 = vmatpush.msrb.mxu0 %v1345_v0  ;;  %v1756_v19 = vld [vmem:[%s5768_s5 + $0xe00] sm:$0xff]  ;;  %v1545_v51 = vld [vmem:[%s5768_s5 + $0x768] sm:$0xff]  ;;  %v1186_v61 = vadd.f32 %v1185_v24, %v1166_v52 }
 0x1bd   :  { %2006 = vmatpush.msrb.mxu1 %v1409_v62  ;;  %1972 = vmatpush.msra.mxu3 %v1768_v6  ;;  %v1621_v53 = vld [vmem:[%s5768_s5 + $0x9c8] sm:$0xff] }
 0x1be   :  { %2022 = vmatpush.msrb.mxu2 %v1489_v63  ;;  %1987 = vmatpush.msrb.mxu0 %v1341_v5  ;;  %v1445_v54 = vld [vmem:[%s5768_s5 + $0x448] sm:$0xff] }
 0x1bf   :  { %2007 = vmatpush.msrb.mxu1 %v1405_v3  ;;  %1973 = vmatpush.msra.mxu3 %v1764_v39  ;;  %v1541_v56 = vld [vmem:[%s5768_s5 + $0x748] sm:$0xff] }
 0x1c0   :  { %2023 = vmatpush.msrb.mxu2 %v1485_v4  ;;  %1988 = vmatpush.msrb.mxu0 %v1337_v2  ;;  %v1617_v57 = vld [vmem:[%s5768_s5 + $0x9a8] sm:$0xff] }
 0x1c1   :  { %2008 = vmatpush.msrb.mxu1 %v1401_v7  ;;  %1974 = vmatpush.msra.mxu3 %v1760_v13  ;;  %v1441_v58 = vld [vmem:[%s5768_s5 + $0x428] sm:$0xff] }
 0x1c2   :  { %2024 = vmatpush.msrb.mxu2 %v1481_v38  ;;  %1989 = vmatpush.msrb.mxu0 %v1333_v12  ;;  %v1677_v25 = vld [vmem:[%s5768_s5 + $0xb88] sm:$0xff]  ;;  %v1205_v1 = vpop.f32.mrf.mxu2  ;;  %v1225_v7 = vpop.f32.mrf.mxu3 }
 0x1c3   :  { %2009 = vmatpush.msrb.mxu1 %v1397_v8  ;;  %1975 = vmatpush.msra.mxu3 %v1756_v19  ;;  %v1537_v60 = vld [vmem:[%s5768_s5 + $0x728] sm:$0xff]  ;;  %v1206_v5 = vadd.f32 %v1205_v1, %v1186_v61  ;;  %v1426_v61 = vld [vmem:[%s5768_s5 + $0x3b0] sm:$0xff] }
 0x1c4   :  { %2025 = vmatpush.msrb.mxu2 %v1477_v9  ;;  %1990 = vmatpush.msrb.mxu0 %v1329_v18  ;;  %v1613_v62 = vld [vmem:[%s5768_s5 + $0x988] sm:$0xff]  ;;  %v1422_v1 = vld [vmem:[%s5768_s5 + $0x390] sm:$0xff] }
 0x1c5   :  { %2010 = vmatpush.msrb.mxu1 %v1393_v15  ;;  %2040 = vmatpush.msrb.mxu3 %v1561_v22  ;;  %v1437_v63 = vld [vmem:[%s5768_s5 + $0x408] sm:$0xff]  ;;  %v4784_v2 = vadd.f32 %v1225_v7, %v1206_v5 }
 0x1c6   :  { %2026 = vmatpush.msrb.mxu2 %v1473_v16  ;;  %1991 = vmatpush.msrb.mxu0 %v1325_v21  ;;  %v1673_v0 = vld [vmem:[%s5768_s5 + $0xb68] sm:$0xff] }
 0x1c7   :  { %2011 = vmatpush.msrb.mxu1 %v1389_v14  ;;  %2041 = vmatpush.msrb.mxu3 %v1557_v28  ;;  %v1533_v3 = vld [vmem:[%s5768_s5 + $0x708] sm:$0xff] }
 0x1c8   :  { %2027 = vmatpush.msrb.mxu2 %v1469_v20  ;;  %1992 = vmatpush.msrb.mxu0 %v1321_v27  ;;  %v1609_v4 = vld [vmem:[%s5768_s5 + $0x968] sm:$0xff] }
 0x1c9   :  { %2012 = vmatpush.msrb.mxu1 %v1385_v23  ;;  %2042 = vmatpush.msrb.mxu3 %v1553_v33  ;;  %v1669_v6 = vld [vmem:[%s5768_s5 + $0xb48] sm:$0xff] }
 0x1ca   :  { %2028 = vmatpush.msrb.mxu2 %v1465_v26  ;;  %1993 = vmatpush.msrb.mxu0 %v1317_v32  ;;  %v1605_v38 = vld [vmem:[%s5768_s5 + $0x948] sm:$0xff] }
 0x1cb   :  { %2013 = vmatpush.msrb.mxu1 %v1381_v29  ;;  %2043 = vmatpush.msrb.mxu3 %v1549_v41  ;;  %v1753_v39 = vld [vmem:[%s5768_s5 + $0xde8] sm:$0xff] }
 0x1cc   :  { %2029 = vmatpush.msrb.mxu2 %v1461_v30  ;;  %1994 = vmatpush.msrb.mxu0 %v1313_v40  ;;  %v1665_v8 = vld [vmem:[%s5768_s5 + $0xb28] sm:$0xff] }
 0x1cd   :  { %2014 = vmatpush.msrb.mxu1 %v1377_v36  ;;  %2044 = vmatpush.msrb.mxu3 %v1545_v51  ;;  %v1529_v9 = vld [vmem:[%s5768_s5 + $0x6e8] sm:$0xff] }
 0x1ce   :  { %2030 = vmatpush.msrb.mxu2 %v1457_v37  ;;  %1995 = vmatpush.msrb.mxu0 %v1309_v44  ;;  %v1601_v12 = vld [vmem:[%s5768_s5 + $0x928] sm:$0xff] }
 0x1cf   :  { %2015 = vmatpush.msrb.mxu1 %v1373_v42  ;;  %1996 = vmatmul.f32.vlgmr.msrb.gmra.mxu0 %v4347_v10  ;;  %v1749_v13 = vld [vmem:[%s5768_s5 + $0xdc8] sm:$0xff] }
 0x1d0   :  { %2031 = vmatpush.msrb.mxu2 %v1453_v43  ;;  %2016 = vmatmul.f32.vlgmr.msrb.gmra.mxu1 %v4349_v11  ;;  %v1661_v15 = vld [vmem:[%s5768_s5 + $0xb08] sm:$0xff] }
 0x1d1   :  { %2080 = vmatpush.msra.mxu1 %v1689_v46  ;;  %2060 = vmatpush.msra.mxu0 %v1625_v48  ;;  %v1525_v16 = vld [vmem:[%s5768_s5 + $0x6c8] sm:$0xff] }
 0x1d2   :  { %2032 = vmatpush.msrb.mxu2 %v1449_v49  ;;  %2045 = vmatpush.msrb.mxu3 %v1541_v56  ;;  %v1597_v18 = vld [vmem:[%s5768_s5 + $0x908] sm:$0xff]  ;;  %v1370_v56 = vld [vmem:[%s5768_s5 + $0x1f0] sm:$0xff] }
 0x1d3   :  { %2081 = vmatpush.msra.mxu1 %v1685_v50  ;;  %2061 = vmatpush.msra.mxu0 %v1621_v53  ;;  %v1745_v19 = vld [vmem:[%s5768_s5 + $0xda8] sm:$0xff] }
 0x1d4   :  { %2033 = vmatpush.msrb.mxu2 %v1445_v54  ;;  %2046 = vmatpush.msrb.mxu3 %v1537_v60  ;;  %v1657_v14 = vld [vmem:[%s5768_s5 + $0xae8] sm:$0xff]  ;;  %v1366_v60 = vld [vmem:[%s5768_s5 + $0x1d0] sm:$0xff] }
 0x1d5   :  { %2082 = vmatpush.msra.mxu1 %v1681_v55  ;;  %2062 = vmatpush.msra.mxu0 %v1617_v57  ;;  %v1521_v20 = vld [vmem:[%s5768_s5 + $0x6a8] sm:$0xff]  ;;  %v1434_v55 = vld [vmem:[%s5768_s5 + $0x3f0] sm:$0xff]  ;;  %v659_v57 = vperm.slane %v4229_v17, 7 }
 0x1d6   :  { %2034 = vmatpush.msrb.mxu2 %v1441_v58  ;;  %2047 = vmatpush.msrb.mxu3 %v1533_v3  ;;  %v1593_v21 = vld [vmem:[%s5768_s5 + $0x8e8] sm:$0xff]  ;;  %v1358_v3 = vld [vmem:[%s5768_s5 + $0x190] sm:$0xff] }
 0x1d7   :  { %2083 = vmatpush.msra.mxu1 %v1677_v25  ;;  %2063 = vmatpush.msra.mxu0 %v1613_v62  ;;  %v1741_v22 = vld [vmem:[%s5768_s5 + $0xd88] sm:$0xff]  ;;  %v1245_v24 = vpop.f32.mrf.mxu0  ;;  %v1430_v25 = vld [vmem:[%s5768_s5 + $0x3d0] sm:$0xff]  ;;  %v1265_v5 = vpop.f32.mrf.mxu1 }
 0x1d8   :  { %2035 = vmatpush.msrb.mxu2 %v1437_v63  ;;  %2048 = vmatpush.msrb.mxu3 %v1529_v9  ;;  %v1653_v23 = vld [vmem:[%s5768_s5 + $0xac8] sm:$0xff]  ;;  %v1246_v62 = vadd.f32 %v1245_v24, %v659_v57  ;;  %v1362_v63 = vld [vmem:[%s5768_s5 + $0x1b0] sm:$0xff] }
 0x1d9   :  { %2084 = vmatpush.msra.mxu1 %v1673_v0  ;;  %2064 = vmatpush.msra.mxu0 %v1609_v4  ;;  %v1589_v26 = vld [vmem:[%s5768_s5 + $0x8c8] sm:$0xff]  ;;  %v1470_v24 = vld [vmem:[%s5768_s5 + $0x510] sm:$0xff] }
 0x1da   :  { %1956 = vmatmul.f32.vlgmr.msra.gmra.mxu2 %v4784_v2  ;;  %2049 = vmatpush.msrb.mxu3 %v1525_v16  ;;  %v1737_v27 = vld [vmem:[%s5768_s5 + $0xd68] sm:$0xff]  ;;  %v1266_v7 = vadd.f32 %v1265_v5, %v1246_v62  ;;  %v1410_v16 = vld [vmem:[%s5768_s5 + $0x330] sm:$0xff] }
 0x1db   :  { %2085 = vmatpush.msra.mxu1 %v1669_v6  ;;  %2065 = vmatpush.msra.mxu0 %v1605_v38  ;;  %v1649_v28 = vld [vmem:[%s5768_s5 + $0xaa8] sm:$0xff]  ;;  %v1418_v6 = vld [vmem:[%s5768_s5 + $0x370] sm:$0xff] }
 0x1dc   :  { %2100 = vmatpush.msra.mxu2 %v1753_v39  ;;  %2050 = vmatpush.msrb.mxu3 %v1521_v20  ;;  %v1517_v29 = vld [vmem:[%s5768_s5 + $0x688] sm:$0xff]  ;;  %v1354_v38 = vld [vmem:[%s5768_s5 + $0x170] sm:$0xff] }
 0x1dd   :  { %2086 = vmatpush.msra.mxu1 %v1665_v8  ;;  %2066 = vmatpush.msra.mxu0 %v1601_v12  ;;  %v1585_v30 = vld [vmem:[%s5768_s5 + $0x8a8] sm:$0xff]  ;;  %v1414_v8 = vld [vmem:[%s5768_s5 + $0x350] sm:$0xff] }
 0x1de   :  { %2101 = vmatpush.msra.mxu2 %v1749_v13  ;;  %v1733_v32 = vld [vmem:[%s5768_s5 + $0xd48] sm:$0xff]  ;;  %2051 = vmatpush.msrb.mxu3 %v1517_v29  ;;  %v1350_v12 = vld [vmem:[%s5768_s5 + $0x150] sm:$0xff] }
 0x1df   :  { %2087 = vmatpush.msra.mxu1 %v1661_v15  ;;  %2067 = vmatpush.msra.mxu0 %v1597_v18  ;;  %v1645_v33 = vld [vmem:[%s5768_s5 + $0xa88] sm:$0xff]  ;;  %v1406_v20 = vld [vmem:[%s5768_s5 + $0x310] sm:$0xff] }
 0x1e0   :  { %2102 = vmatpush.msra.mxu2 %v1745_v19  ;;  %v1513_v36 = vld [vmem:[%s5768_s5 + $0x668] sm:$0xff]  ;;  %v1346_v19 = vld [vmem:[%s5768_s5 + $0x130] sm:$0xff] }
 0x1e1   :  { %2088 = vmatpush.msra.mxu1 %v1657_v14  ;;  %2068 = vmatpush.msra.mxu0 %v1593_v21  ;;  %v1581_v37 = vld [vmem:[%s5768_s5 + $0x888] sm:$0xff]  ;;  %v1494_v29 = vld [vmem:[%s5768_s5 + $0x5d0] sm:$0xff] }
 0x1e2   :  { %2103 = vmatpush.msra.mxu2 %v1741_v22  ;;  %v1729_v40 = vld [vmem:[%s5768_s5 + $0xd28] sm:$0xff]  ;;  %2052 = vmatpush.msrb.mxu3 %v1513_v36  ;;  %v1342_v22 = vld [vmem:[%s5768_s5 + $0x110] sm:$0xff] }
 0x1e3   :  { %2089 = vmatpush.msra.mxu1 %v1653_v23  ;;  %2036 = vmatmul.f32.vlgmr.msrb.gmra.mxu2 %v4389_v34  ;;  %v1641_v41 = vld [vmem:[%s5768_s5 + $0xa68] sm:$0xff]  ;;  %v1498_v23 = vld [vmem:[%s5768_s5 + $0x5f0] sm:$0xff] }
 0x1e4   :  { %2069 = vmatpush.msra.mxu0 %v1589_v26  ;;  %2104 = vmatpush.msra.mxu2 %v1737_v27  ;;  %v1509_v42 = vld [vmem:[%s5768_s5 + $0x648] sm:$0xff]  ;;  %v1285_v9 = vpop.f32.mrf.mxu2  ;;  %v1305_v18 = vpop.f32.mrf.mxu3  ;;  %v1402_v26 = vld [vmem:[%s5768_s5 + $0x2f0] sm:$0xff] }
 0x1e5   :  { %2090 = vmatpush.msra.mxu1 %v1649_v28  ;;  %v1577_v43 = vld [vmem:[%s5768_s5 + $0x868] sm:$0xff]  ;;  %2053 = vmatpush.msrb.mxu3 %v1509_v42  ;;  %v1286_v13 = vadd.f32 %v1285_v9, %v1266_v7  ;;  %v1338_v28 = vld [vmem:[%s5768_s5 + $0xf0] sm:$0xff] }
 0x1e6   :  { %2070 = vmatpush.msra.mxu0 %v1585_v30  ;;  %2105 = vmatpush.msra.mxu2 %v1733_v32  ;;  %v1725_v44 = vld [vmem:[%s5768_s5 + $0xd08] sm:$0xff]  ;;  %v1398_v30 = vld [vmem:[%s5768_s5 + $0x2d0] sm:$0xff] }
 0x1e7   :  { %2091 = vmatpush.msra.mxu1 %v1645_v33  ;;  %v1637_v45 = vld [vmem:[%s5768_s5 + $0xa48] sm:$0xff]  ;;  %v4965_v14 = vadd.f32 %v1305_v18, %v1286_v13  ;;  %v1334_v33 = vld [vmem:[%s5768_s5 + $0xd0] sm:$0xff] }
 0x1e8   :  { %2071 = vmatpush.msra.mxu0 %v1581_v37  ;;  %2106 = vmatpush.msra.mxu2 %v1729_v40  ;;  %v1505_v46 = vld [vmem:[%s5768_s5 + $0x628] sm:$0xff]  ;;  %v1490_v36 = vld [vmem:[%s5768_s5 + $0x5b0] sm:$0xff] }
 0x1e9   :  { %2092 = vmatpush.msra.mxu1 %v1641_v41  ;;  %v1573_v47 = vld [vmem:[%s5768_s5 + $0x848] sm:$0xff]  ;;  %2054 = vmatpush.msrb.mxu3 %v1505_v46  ;;  %v1394_v37 = vld [vmem:[%s5768_s5 + $0x2b0] sm:$0xff] }
 0x1ea   :  { %v1721_v48 = vld [vmem:[%s5768_s5 + $0xce8] sm:$0xff]  ;;  %2072 = vmatpush.msra.mxu0 %v1577_v43  ;;  %2107 = vmatpush.msra.mxu2 %v1725_v44  ;;  %v1330_v41 = vld [vmem:[%s5768_s5 + $0xb0] sm:$0xff] }
 0x1eb   :  { %v1633_v49 = vld [vmem:[%s5768_s5 + $0xa28] sm:$0xff]  ;;  %2093 = vmatpush.msra.mxu1 %v1637_v45  ;;  %1976 = vmatmul.f32.vlgmr.msra.gmra.mxu3 %v4965_v14  ;;  %v1486_v42 = vld [vmem:[%s5768_s5 + $0x590] sm:$0xff] }
 0x1ec   :  { %v1501_v50 = vld [vmem:[%s5768_s5 + $0x608] sm:$0xff]  ;;  %2073 = vmatpush.msra.mxu0 %v1573_v47  ;;  %2108 = vmatpush.msra.mxu2 %v1721_v48  ;;  %v1390_v43 = vld [vmem:[%s5768_s5 + $0x290] sm:$0xff] }
 0x1ed   :  { %v1569_v51 = vld [vmem:[%s5768_s5 + $0x828] sm:$0xff]  ;;  %2094 = vmatpush.msra.mxu1 %v1633_v49  ;;  %2055 = vmatpush.msrb.mxu3 %v1501_v50  ;;  %v1326_v44 = vld [vmem:[%s5768_s5 + $0x90] sm:$0xff] }
 0x1ee   :  { %v1717_v52 = vld [vmem:[%s5768_s5 + $0xcc8] sm:$0xff]  ;;  %2074 = vmatpush.msra.mxu0 %v1569_v51  ;;  %v1386_v46 = vld [vmem:[%s5768_s5 + $0x270] sm:$0xff] }
 0x1ef   :  { %v1629_v53 = vld [vmem:[%s5768_s5 + $0xa08] sm:$0xff]  ;;  %2109 = vmatpush.msra.mxu2 %v1717_v52  ;;  %v1482_v47 = vld [vmem:[%s5768_s5 + $0x570] sm:$0xff] }
 0x1f0   :  { %v1565_v54 = vld [vmem:[%s5768_s5 + $0x808] sm:$0xff]  ;;  %2095 = vmatpush.msra.mxu1 %v1629_v53  ;;  %v1322_v48 = vld [vmem:[%s5768_s5 + $0x70] sm:$0xff] }
 0x1f1   :  { %v1713_v58 = vld [vmem:[%s5768_s5 + $0xca8] sm:$0xff]  ;;  %2075 = vmatpush.msra.mxu0 %v1565_v54  ;;  %2096 = vmatmul.f32.vlgmr.msra.gmra.mxu1 %v4589_v59  ;;  %v1382_v50 = vld [vmem:[%s5768_s5 + $0x250] sm:$0xff] }
 0x1f2   :  { %2076 = vmatmul.f32.vlgmr.msra.gmra.mxu0 %v4535_v31  ;;  %2160 = vmatpush.msrb.mxu1 %v1434_v55  ;;  %v1709_v17 = vld [vmem:[%s5768_s5 + $0xc88] sm:$0xff]  ;;  %v1478_v51 = vld [vmem:[%s5768_s5 + $0x550] sm:$0xff] }
 0x1f3   :  { %2140 = vmatpush.msrb.mxu0 %v1370_v56  ;;  %2110 = vmatpush.msra.mxu2 %v1713_v58  ;;  %v1705_v0 = vld [vmem:[%s5768_s5 + $0xc68] sm:$0xff]  ;;  %v1318_v52 = vld [vmem:[%s5768_s5 + $0x50] sm:$0xff] }
 0x1f4   :  { %2161 = vmatpush.msrb.mxu1 %v1430_v25  ;;  %v1701_v4 = vld [vmem:[%s5768_s5 + $0xc48] sm:$0xff]  ;;  %2056 = vmatmul.f32.vlgmr.msrb.gmra.mxu3 %v4391_v35  ;;  %v1378_v54 = vld [vmem:[%s5768_s5 + $0x230] sm:$0xff] }
 0x1f5   :  { %2141 = vmatpush.msrb.mxu0 %v1366_v60  ;;  %2111 = vmatpush.msra.mxu2 %v1709_v17  ;;  %v1697_v39 = vld [vmem:[%s5768_s5 + $0xc28] sm:$0xff]  ;;  %v1474_v55 = vld [vmem:[%s5768_s5 + $0x530] sm:$0xff] }
 0x1f6   :  { %2162 = vmatpush.msrb.mxu1 %v1426_v61  ;;  %v1693_v15 = vld [vmem:[%s5768_s5 + $0xc08] sm:$0xff]  ;;  %v1314_v56 = vld [vmem:[%s5768_s5 + $0x30] sm:$0xff] }
 0x1f7   :  { %2142 = vmatpush.msrb.mxu0 %v1362_v63  ;;  %2112 = vmatpush.msra.mxu2 %v1705_v0  ;;  %v1817_v21 = vld [vmem:[%s5768_s5 + $0xfe8] sm:$0xff]  ;;  %v1374_v58 = vld [vmem:[%s5768_s5 + $0x210] sm:$0xff] }
 0x1f8   :  { %2163 = vmatpush.msrb.mxu1 %v1422_v1  ;;  %v1813_v27 = vld [vmem:[%s5768_s5 + $0xfc8] sm:$0xff]  ;;  %2120 = vmatpush.msra.mxu3 %v1817_v21  ;;  %v1310_v25 = vld [vmem:[%s5768_s5 + $0x10] sm:$0xff] }
 0x1f9   :  { %2143 = vmatpush.msrb.mxu0 %v1358_v3  ;;  %2113 = vmatpush.msra.mxu2 %v1701_v4  ;;  %v1809_v32 = vld [vmem:[%s5768_s5 + $0xfa8] sm:$0xff]  ;;  %v1690_v60 = vld [vmem:[%s5768_s5 + $0xbf0] sm:$0xff] }
 0x1fa   :  { %2164 = vmatpush.msrb.mxu1 %v1418_v6  ;;  %2121 = vmatpush.msra.mxu3 %v1813_v27  ;;  %v1805_v40 = vld [vmem:[%s5768_s5 + $0xf88] sm:$0xff]  ;;  %v1626_v17 = vld [vmem:[%s5768_s5 + $0x9f0] sm:$0xff] }
 0x1fb   :  { %2144 = vmatpush.msrb.mxu0 %v1354_v38  ;;  %2114 = vmatpush.msra.mxu2 %v1697_v39  ;;  %v1801_v45 = vld [vmem:[%s5768_s5 + $0xf68] sm:$0xff]  ;;  %v1686_v62 = vld [vmem:[%s5768_s5 + $0xbd0] sm:$0xff] }
 0x1fc   :  { %2165 = vmatpush.msrb.mxu1 %v1414_v8  ;;  %2122 = vmatpush.msra.mxu3 %v1809_v32  ;;  %v1797_v49 = vld [vmem:[%s5768_s5 + $0xf48] sm:$0xff]  ;;  %v1466_v63 = vld [vmem:[%s5768_s5 + $0x4f0] sm:$0xff] }
 0x1fd   :  { %2145 = vmatpush.msrb.mxu0 %v1350_v12  ;;  %2115 = vmatpush.msra.mxu2 %v1693_v15  ;;  %v1793_v53 = vld [vmem:[%s5768_s5 + $0xf28] sm:$0xff]  ;;  %v1622_v0 = vld [vmem:[%s5768_s5 + $0x9d0] sm:$0xff] }
 0x1fe   :  { %2166 = vmatpush.msrb.mxu1 %v1410_v16  ;;  %2116 = vmatmul.f32.vlgmr.msra.gmra.mxu2 %v4784_v2  ;;  %v1789_v57 = vld [vmem:[%s5768_s5 + $0xf08] sm:$0xff]  ;;  %v1682_v3 = vld [vmem:[%s5768_s5 + $0xbb0] sm:$0xff] }
 0x1ff   :  { %2146 = vmatpush.msrb.mxu0 %v1346_v19  ;;  %2180 = vmatpush.msrb.mxu2 %v1498_v23  ;;  %v1785_v61 = vld [vmem:[%s5768_s5 + $0xee8] sm:$0xff]  ;;  %v1462_v4 = vld [vmem:[%s5768_s5 + $0x4d0] sm:$0xff] }
 0x200   :  { %2167 = vmatpush.msrb.mxu1 %v1406_v20  ;;  %2123 = vmatpush.msra.mxu3 %v1805_v40  ;;  %v1781_v1 = vld [vmem:[%s5768_s5 + $0xec8] sm:$0xff]  ;;  %v1618_v5 = vld [vmem:[%s5768_s5 + $0x9b0] sm:$0xff] }
 0x201   :  { %2147 = vmatpush.msrb.mxu0 %v1342_v22  ;;  %2181 = vmatpush.msrb.mxu2 %v1494_v29  ;;  %v1777_v6 = vld [vmem:[%s5768_s5 + $0xea8] sm:$0xff]  ;;  %v1678_v7 = vld [vmem:[%s5768_s5 + $0xb90] sm:$0xff] }
 0x202   :  { %2168 = vmatpush.msrb.mxu1 %v1402_v26  ;;  %2124 = vmatpush.msra.mxu3 %v1801_v45  ;;  %v1458_v38 = vld [vmem:[%s5768_s5 + $0x4b0] sm:$0xff]  ;;  %v1773_v8 = vld [vmem:[%s5768_s5 + $0xe88] sm:$0xff] }
 0x203   :  { %2148 = vmatpush.msrb.mxu0 %v1338_v28  ;;  %2182 = vmatpush.msrb.mxu2 %v1490_v36  ;;  %v1614_v39 = vld [vmem:[%s5768_s5 + $0x990] sm:$0xff]  ;;  %v1769_v15 = vld [vmem:[%s5768_s5 + $0xe68] sm:$0xff] }
 0x204   :  { %2169 = vmatpush.msrb.mxu1 %v1398_v30  ;;  %2125 = vmatpush.msra.mxu3 %v1797_v49  ;;  %v1674_v9 = vld [vmem:[%s5768_s5 + $0xb70] sm:$0xff]  ;;  %v1765_v20 = vld [vmem:[%s5768_s5 + $0xe48] sm:$0xff] }
 0x205   :  { %2149 = vmatpush.msrb.mxu0 %v1334_v33  ;;  %2183 = vmatpush.msrb.mxu2 %v1486_v42  ;;  %v1454_v12 = vld [vmem:[%s5768_s5 + $0x490] sm:$0xff]  ;;  %v1761_v26 = vld [vmem:[%s5768_s5 + $0xe28] sm:$0xff] }
 0x206   :  { %2170 = vmatpush.msrb.mxu1 %v1394_v37  ;;  %2126 = vmatpush.msra.mxu3 %v1793_v53  ;;  %v1610_v13 = vld [vmem:[%s5768_s5 + $0x970] sm:$0xff]  ;;  %v1757_v30 = vld [vmem:[%s5768_s5 + $0xe08] sm:$0xff] }
 0x207   :  { %2150 = vmatpush.msrb.mxu0 %v1330_v41  ;;  %2184 = vmatpush.msrb.mxu2 %v1482_v47  ;;  %v1670_v16 = vld [vmem:[%s5768_s5 + $0xb50] sm:$0xff] }
 0x208   :  { %2171 = vmatpush.msrb.mxu1 %v1390_v43  ;;  %2127 = vmatpush.msra.mxu3 %v1789_v57  ;;  %v1450_v18 = vld [vmem:[%s5768_s5 + $0x470] sm:$0xff] }
 0x209   :  { %2151 = vmatpush.msrb.mxu0 %v1326_v44  ;;  %2185 = vmatpush.msrb.mxu2 %v1478_v51  ;;  %v1606_v19 = vld [vmem:[%s5768_s5 + $0x950] sm:$0xff] }
 0x20a   :  { %2172 = vmatpush.msrb.mxu1 %v1386_v46  ;;  %2128 = vmatpush.msra.mxu3 %v1785_v61  ;;  %v1666_v21 = vld [vmem:[%s5768_s5 + $0xb30] sm:$0xff] }
 0x20b   :  { %2152 = vmatpush.msrb.mxu0 %v1322_v48  ;;  %2186 = vmatpush.msrb.mxu2 %v1474_v55  ;;  %v1446_v22 = vld [vmem:[%s5768_s5 + $0x450] sm:$0xff] }
 0x20c   :  { %2173 = vmatpush.msrb.mxu1 %v1382_v50  ;;  %2129 = vmatpush.msra.mxu3 %v1781_v1  ;;  %v1602_v23 = vld [vmem:[%s5768_s5 + $0x930] sm:$0xff]  ;;  %v1371_v1 = vld [vmem:[%s5768_s5 + $0x1f8] sm:$0xff] }
 0x20d   :  { %2153 = vmatpush.msrb.mxu0 %v1318_v52  ;;  %2187 = vmatpush.msrb.mxu2 %v1470_v24  ;;  %v1662_v27 = vld [vmem:[%s5768_s5 + $0xb10] sm:$0xff] }
 0x20e   :  { %2174 = vmatpush.msrb.mxu1 %v1378_v54  ;;  %2130 = vmatpush.msra.mxu3 %v1777_v6  ;;  %v1442_v28 = vld [vmem:[%s5768_s5 + $0x430] sm:$0xff]  ;;  %v1367_v6 = vld [vmem:[%s5768_s5 + $0x1d8] sm:$0xff] }
 0x20f   :  { %2154 = vmatpush.msrb.mxu0 %v1314_v56  ;;  %2188 = vmatpush.msrb.mxu2 %v1466_v63  ;;  %v1598_v29 = vld [vmem:[%s5768_s5 + $0x910] sm:$0xff] }
 0x210   :  { %2175 = vmatpush.msrb.mxu1 %v1374_v58  ;;  %2131 = vmatpush.msra.mxu3 %v1773_v8  ;;  %v1658_v32 = vld [vmem:[%s5768_s5 + $0xaf0] sm:$0xff]  ;;  %v1363_v8 = vld [vmem:[%s5768_s5 + $0x1b8] sm:$0xff] }
 0x211   :  { %2155 = vmatpush.msrb.mxu0 %v1310_v25  ;;  %2176 = vmatmul.f32.vlgmr.msrb.gmra.mxu1 %v4349_v11  ;;  %v1438_v33 = vld [vmem:[%s5768_s5 + $0x410] sm:$0xff] }
 0x212   :  { %2156 = vmatmul.f32.vlgmr.msrb.gmra.mxu0 %v4347_v10  ;;  %2240 = vmatpush.msra.mxu1 %v1690_v60  ;;  %v1594_v36 = vld [vmem:[%s5768_s5 + $0x8f0] sm:$0xff] }
 0x213   :  { %2220 = vmatpush.msra.mxu0 %v1626_v17  ;;  %2189 = vmatpush.msrb.mxu2 %v1462_v4  ;;  %v1562_v37 = vld [vmem:[%s5768_s5 + $0x7f0] sm:$0xff] }
 0x214   :  { %2241 = vmatpush.msra.mxu1 %v1686_v62  ;;  %2132 = vmatpush.msra.mxu3 %v1769_v15  ;;  %v1590_v40 = vld [vmem:[%s5768_s5 + $0x8d0] sm:$0xff]  ;;  %v1359_v15 = vld [vmem:[%s5768_s5 + $0x198] sm:$0xff] }
 0x215   :  { %2221 = vmatpush.msra.mxu0 %v1622_v0  ;;  %2190 = vmatpush.msrb.mxu2 %v1458_v38  ;;  %v1654_v41 = vld [vmem:[%s5768_s5 + $0xad0] sm:$0xff] }
 0x216   :  { %2242 = vmatpush.msra.mxu1 %v1682_v3  ;;  %2133 = vmatpush.msra.mxu3 %v1765_v20  ;;  %v1754_v42 = vld [vmem:[%s5768_s5 + $0xdf0] sm:$0xff]  ;;  %v1435_v3 = vld [vmem:[%s5768_s5 + $0x3f8] sm:$0xff] }
 0x217   :  { %2222 = vmatpush.msra.mxu0 %v1618_v5  ;;  %2191 = vmatpush.msrb.mxu2 %v1454_v12  ;;  %v1558_v43 = vld [vmem:[%s5768_s5 + $0x7d0] sm:$0xff]  ;;  %v1355_v20 = vld [vmem:[%s5768_s5 + $0x178] sm:$0xff] }
 0x218   :  { %2243 = vmatpush.msra.mxu1 %v1678_v7  ;;  %2134 = vmatpush.msra.mxu3 %v1761_v26  ;;  %v1586_v44 = vld [vmem:[%s5768_s5 + $0x8b0] sm:$0xff]  ;;  %v1431_v7 = vld [vmem:[%s5768_s5 + $0x3d8] sm:$0xff] }
 0x219   :  { %2223 = vmatpush.msra.mxu0 %v1614_v39  ;;  %2192 = vmatpush.msrb.mxu2 %v1450_v18  ;;  %v1650_v45 = vld [vmem:[%s5768_s5 + $0xab0] sm:$0xff]  ;;  %v1351_v26 = vld [vmem:[%s5768_s5 + $0x158] sm:$0xff] }
 0x21a   :  { %2244 = vmatpush.msra.mxu1 %v1674_v9  ;;  %2135 = vmatpush.msra.mxu3 %v1757_v30  ;;  %v1750_v46 = vld [vmem:[%s5768_s5 + $0xdd0] sm:$0xff]  ;;  %v1427_v9 = vld [vmem:[%s5768_s5 + $0x3b8] sm:$0xff] }
 0x21b   :  { %2224 = vmatpush.msra.mxu0 %v1610_v13  ;;  %2193 = vmatpush.msrb.mxu2 %v1446_v22  ;;  %v1554_v47 = vld [vmem:[%s5768_s5 + $0x7b0] sm:$0xff]  ;;  %v1347_v30 = vld [vmem:[%s5768_s5 + $0x138] sm:$0xff] }
 0x21c   :  { %2245 = vmatpush.msra.mxu1 %v1670_v16  ;;  %2136 = vmatmul.f32.vlgmr.msra.gmra.mxu3 %v4965_v14  ;;  %v1582_v48 = vld [vmem:[%s5768_s5 + $0x890] sm:$0xff]  ;;  %v1423_v16 = vld [vmem:[%s5768_s5 + $0x398] sm:$0xff] }
 0x21d   :  { %2225 = vmatpush.msra.mxu0 %v1606_v19  ;;  %2194 = vmatpush.msrb.mxu2 %v1442_v28  ;;  %v1646_v49 = vld [vmem:[%s5768_s5 + $0xa90] sm:$0xff] }
 0x21e   :  { %2246 = vmatpush.msra.mxu1 %v1666_v21  ;;  %2200 = vmatpush.msrb.mxu3 %v1562_v37  ;;  %v1746_v50 = vld [vmem:[%s5768_s5 + $0xdb0] sm:$0xff]  ;;  %v1419_v21 = vld [vmem:[%s5768_s5 + $0x378] sm:$0xff] }
 0x21f   :  { %2226 = vmatpush.msra.mxu0 %v1602_v23  ;;  %2195 = vmatpush.msrb.mxu2 %v1438_v33  ;;  %v1550_v51 = vld [vmem:[%s5768_s5 + $0x790] sm:$0xff]  ;;  %v1343_v37 = vld [vmem:[%s5768_s5 + $0x118] sm:$0xff] }
 0x220   :  { %2247 = vmatpush.msra.mxu1 %v1662_v27  ;;  %2196 = vmatmul.f32.vlgmr.msrb.gmra.mxu2 %v4389_v34  ;;  %v1578_v52 = vld [vmem:[%s5768_s5 + $0x870] sm:$0xff]  ;;  %v1415_v27 = vld [vmem:[%s5768_s5 + $0x358] sm:$0xff] }
 0x221   :  { %2227 = vmatpush.msra.mxu0 %v1598_v29  ;;  %2260 = vmatpush.msra.mxu2 %v1754_v42  ;;  %v1642_v53 = vld [vmem:[%s5768_s5 + $0xa70] sm:$0xff] }
 0x222   :  { %2248 = vmatpush.msra.mxu1 %v1658_v32  ;;  %2201 = vmatpush.msrb.mxu3 %v1558_v43  ;;  %v1742_v54 = vld [vmem:[%s5768_s5 + $0xd90] sm:$0xff]  ;;  %v1411_v32 = vld [vmem:[%s5768_s5 + $0x338] sm:$0xff] }
 0x223   :  { %2228 = vmatpush.msra.mxu0 %v1594_v36  ;;  %2261 = vmatpush.msra.mxu2 %v1750_v46  ;;  %v1546_v55 = vld [vmem:[%s5768_s5 + $0x770] sm:$0xff]  ;;  %v1339_v43 = vld [vmem:[%s5768_s5 + $0xf8] sm:$0xff] }
 0x224   :  { %2249 = vmatpush.msra.mxu1 %v1654_v41  ;;  %2202 = vmatpush.msrb.mxu3 %v1554_v47  ;;  %v1574_v56 = vld [vmem:[%s5768_s5 + $0x850] sm:$0xff] }
 0x225   :  { %2229 = vmatpush.msra.mxu0 %v1590_v40  ;;  %2262 = vmatpush.msra.mxu2 %v1746_v50  ;;  %v1638_v57 = vld [vmem:[%s5768_s5 + $0xa50] sm:$0xff]  ;;  %v1407_v40 = vld [vmem:[%s5768_s5 + $0x318] sm:$0xff] }
 0x226   :  { %2250 = vmatpush.msra.mxu1 %v1650_v45  ;;  %2203 = vmatpush.msrb.mxu3 %v1550_v51  ;;  %v1738_v58 = vld [vmem:[%s5768_s5 + $0xd70] sm:$0xff]  ;;  %v1499_v50 = vld [vmem:[%s5768_s5 + $0x5f8] sm:$0xff] }
 0x227   :  { %2230 = vmatpush.msra.mxu0 %v1586_v44  ;;  %v1542_v24 = vld [vmem:[%s5768_s5 + $0x750] sm:$0xff]  ;;  %2263 = vmatpush.msra.mxu2 %v1742_v54  ;;  %v1403_v44 = vld [vmem:[%s5768_s5 + $0x2f8] sm:$0xff] }
 0x228   :  { %2251 = vmatpush.msra.mxu1 %v1646_v49  ;;  %2204 = vmatpush.msrb.mxu3 %v1546_v55  ;;  %v1570_v25 = vld [vmem:[%s5768_s5 + $0x830] sm:$0xff]  ;;  %v1399_v49 = vld [vmem:[%s5768_s5 + $0x2d8] sm:$0xff] }
 0x229   :  { %2231 = vmatpush.msra.mxu0 %v1582_v48  ;;  %v1634_v60 = vld [vmem:[%s5768_s5 + $0xa30] sm:$0xff]  ;;  %2264 = vmatpush.msra.mxu2 %v1738_v58  ;;  %v1335_v48 = vld [vmem:[%s5768_s5 + $0xd8] sm:$0xff] }
 0x22a   :  { %2252 = vmatpush.msra.mxu1 %v1642_v53  ;;  %v1734_v17 = vld [vmem:[%s5768_s5 + $0xd50] sm:$0xff]  ;;  %2205 = vmatpush.msrb.mxu3 %v1542_v24  ;;  %v1395_v53 = vld [vmem:[%s5768_s5 + $0x2b8] sm:$0xff] }
 0x22b   :  { %2232 = vmatpush.msra.mxu0 %v1578_v52  ;;  %v1538_v61 = vld [vmem:[%s5768_s5 + $0x730] sm:$0xff]  ;;  %2265 = vmatpush.msra.mxu2 %v1734_v17  ;;  %v1331_v52 = vld [vmem:[%s5768_s5 + $0xb8] sm:$0xff] }
 0x22c   :  { %2253 = vmatpush.msra.mxu1 %v1638_v57  ;;  %v1566_v62 = vld [vmem:[%s5768_s5 + $0x810] sm:$0xff]  ;;  %2206 = vmatpush.msrb.mxu3 %v1538_v61  ;;  %v1495_v54 = vld [vmem:[%s5768_s5 + $0x5d8] sm:$0xff] }
 0x22d   :  { %2233 = vmatpush.msra.mxu0 %v1574_v56  ;;  %v1630_v63 = vld [vmem:[%s5768_s5 + $0xa10] sm:$0xff]  ;;  %v1327_v56 = vld [vmem:[%s5768_s5 + $0x98] sm:$0xff] }
 0x22e   :  { %2254 = vmatpush.msra.mxu1 %v1634_v60  ;;  %v1730_v0 = vld [vmem:[%s5768_s5 + $0xd30] sm:$0xff]  ;;  %v1391_v57 = vld [vmem:[%s5768_s5 + $0x298] sm:$0xff] }
 0x22f   :  { %2234 = vmatpush.msra.mxu0 %v1570_v25  ;;  %v1534_v4 = vld [vmem:[%s5768_s5 + $0x710] sm:$0xff]  ;;  %2266 = vmatpush.msra.mxu2 %v1730_v0  ;;  %v1491_v58 = vld [vmem:[%s5768_s5 + $0x5b8] sm:$0xff] }
 0x230   :  { %2255 = vmatpush.msra.mxu1 %v1630_v63  ;;  %v1726_v5 = vld [vmem:[%s5768_s5 + $0xd10] sm:$0xff]  ;;  %2207 = vmatpush.msrb.mxu3 %v1534_v4  ;;  %v1323_v25 = vld [vmem:[%s5768_s5 + $0x78] sm:$0xff] }
 0x231   :  { %2235 = vmatpush.msra.mxu0 %v1566_v62  ;;  %2256 = vmatmul.f32.vlgmr.msra.gmra.mxu1 %v4589_v59  ;;  %v1530_v38 = vld [vmem:[%s5768_s5 + $0x6f0] sm:$0xff]  ;;  %v1387_v60 = vld [vmem:[%s5768_s5 + $0x278] sm:$0xff] }
 0x232   :  { %2236 = vmatmul.f32.vlgmr.msra.gmra.mxu0 %v4535_v31  ;;  %2320 = vmatpush.msrb.mxu1 %v1435_v3  ;;  %v1722_v39 = vld [vmem:[%s5768_s5 + $0xcf0] sm:$0xff]  ;;  %v1487_v17 = vld [vmem:[%s5768_s5 + $0x598] sm:$0xff] }
 0x233   :  { %2300 = vmatpush.msrb.mxu0 %v1371_v1  ;;  %2267 = vmatpush.msra.mxu2 %v1726_v5  ;;  %v1526_v12 = vld [vmem:[%s5768_s5 + $0x6d0] sm:$0xff]  ;;  %v1319_v62 = vld [vmem:[%s5768_s5 + $0x58] sm:$0xff] }
 0x234   :  { %2321 = vmatpush.msrb.mxu1 %v1431_v7  ;;  %2208 = vmatpush.msrb.mxu3 %v1530_v38  ;;  %v1718_v13 = vld [vmem:[%s5768_s5 + $0xcd0] sm:$0xff]  ;;  %v1383_v63 = vld [vmem:[%s5768_s5 + $0x258] sm:$0xff] }
 0x235   :  { %2301 = vmatpush.msrb.mxu0 %v1367_v6  ;;  %2268 = vmatpush.msra.mxu2 %v1722_v39  ;;  %v1522_v18 = vld [vmem:[%s5768_s5 + $0x6b0] sm:$0xff]  ;;  %v1483_v0 = vld [vmem:[%s5768_s5 + $0x578] sm:$0xff] }
 0x236   :  { %2322 = vmatpush.msrb.mxu1 %v1427_v9  ;;  %2209 = vmatpush.msrb.mxu3 %v1526_v12  ;;  %v1714_v19 = vld [vmem:[%s5768_s5 + $0xcb0] sm:$0xff]  ;;  %v1315_v3 = vld [vmem:[%s5768_s5 + $0x38] sm:$0xff] }
 0x237   :  { %2302 = vmatpush.msrb.mxu0 %v1363_v8  ;;  %2269 = vmatpush.msra.mxu2 %v1718_v13  ;;  %v1518_v22 = vld [vmem:[%s5768_s5 + $0x690] sm:$0xff]  ;;  %v1379_v4 = vld [vmem:[%s5768_s5 + $0x238] sm:$0xff] }
 0x238   :  { %2323 = vmatpush.msrb.mxu1 %v1423_v16  ;;  %2210 = vmatpush.msrb.mxu3 %v1522_v18  ;;  %v1710_v23 = vld [vmem:[%s5768_s5 + $0xc90] sm:$0xff]  ;;  %v1479_v5 = vld [vmem:[%s5768_s5 + $0x558] sm:$0xff] }
 0x239   :  { %2303 = vmatpush.msrb.mxu0 %v1359_v15  ;;  %2270 = vmatpush.msra.mxu2 %v1714_v19  ;;  %v1514_v28 = vld [vmem:[%s5768_s5 + $0x670] sm:$0xff]  ;;  %v1311_v7 = vld [vmem:[%s5768_s5 + $0x18] sm:$0xff] }
 0x23a   :  { %2324 = vmatpush.msrb.mxu1 %v1419_v21  ;;  %2211 = vmatpush.msrb.mxu3 %v1518_v22  ;;  %v1706_v29 = vld [vmem:[%s5768_s5 + $0xc70] sm:$0xff]  ;;  %v1375_v38 = vld [vmem:[%s5768_s5 + $0x218] sm:$0xff] }
 0x23b   :  { %2304 = vmatpush.msrb.mxu0 %v1355_v20  ;;  %2271 = vmatpush.msra.mxu2 %v1710_v23  ;;  %v1510_v33 = vld [vmem:[%s5768_s5 + $0x650] sm:$0xff]  ;;  %v1475_v39 = vld [vmem:[%s5768_s5 + $0x538] sm:$0xff] }
 0x23c   :  { %2325 = vmatpush.msrb.mxu1 %v1415_v27  ;;  %2212 = vmatpush.msrb.mxu3 %v1514_v28  ;;  %v1702_v36 = vld [vmem:[%s5768_s5 + $0xc50] sm:$0xff]  ;;  %v1627_v8 = vld [vmem:[%s5768_s5 + $0x9f8] sm:$0xff] }
 0x23d   :  { %2305 = vmatpush.msrb.mxu0 %v1351_v26  ;;  %2272 = vmatpush.msra.mxu2 %v1706_v29  ;;  %v1506_v41 = vld [vmem:[%s5768_s5 + $0x630] sm:$0xff]  ;;  %v1691_v9 = vld [vmem:[%s5768_s5 + $0xbf8] sm:$0xff] }
 0x23e   :  { %2326 = vmatpush.msrb.mxu1 %v1411_v32  ;;  %2213 = vmatpush.msrb.mxu3 %v1510_v33  ;;  %v1698_v42 = vld [vmem:[%s5768_s5 + $0xc30] sm:$0xff]  ;;  %v1471_v13 = vld [vmem:[%s5768_s5 + $0x518] sm:$0xff] }
 0x23f   :  { %2306 = vmatpush.msrb.mxu0 %v1347_v30  ;;  %2273 = vmatpush.msra.mxu2 %v1702_v36  ;;  %v1502_v45 = vld [vmem:[%s5768_s5 + $0x610] sm:$0xff]  ;;  %v1623_v15 = vld [vmem:[%s5768_s5 + $0x9d8] sm:$0xff] }
 0x240   :  { %2327 = vmatpush.msrb.mxu1 %v1407_v40  ;;  %2214 = vmatpush.msrb.mxu3 %v1506_v41  ;;  %v1694_v46 = vld [vmem:[%s5768_s5 + $0xc10] sm:$0xff]  ;;  %v1687_v16 = vld [vmem:[%s5768_s5 + $0xbd8] sm:$0xff] }
 0x241   :  { %2307 = vmatpush.msrb.mxu0 %v1343_v37  ;;  %2274 = vmatpush.msra.mxu2 %v1698_v42  ;;  %v1818_v47 = vld [vmem:[%s5768_s5 + $0xff0] sm:$0xff]  ;;  %v1619_v19 = vld [vmem:[%s5768_s5 + $0x9b8] sm:$0xff] }
 0x242   :  { %2328 = vmatpush.msrb.mxu1 %v1403_v44  ;;  %2215 = vmatpush.msrb.mxu3 %v1502_v45  ;;  %v1814_v51 = vld [vmem:[%s5768_s5 + $0xfd0] sm:$0xff]  ;;  %v1463_v21 = vld [vmem:[%s5768_s5 + $0x4d8] sm:$0xff] }
 0x243   :  { %2308 = vmatpush.msrb.mxu0 %v1339_v43  ;;  %2275 = vmatpush.msra.mxu2 %v1694_v46  ;;  %v1810_v55 = vld [vmem:[%s5768_s5 + $0xfb0] sm:$0xff]  ;;  %v1615_v22 = vld [vmem:[%s5768_s5 + $0x998] sm:$0xff] }
 0x244   :  { %2216 = vmatmul.f32.vlgmr.msrb.gmra.mxu3 %v4391_v35  ;;  %2276 = vmatmul.f32.vlgmr.msra.gmra.mxu2 %v4784_v2  ;;  %v1806_v24 = vld [vmem:[%s5768_s5 + $0xf90] sm:$0xff]  ;;  %v1679_v23 = vld [vmem:[%s5768_s5 + $0xb98] sm:$0xff] }
 0x245   :  { %2280 = vmatpush.msra.mxu3 %v1818_v47  ;;  %2309 = vmatpush.msrb.mxu0 %v1335_v48  ;;  %v1802_v61 = vld [vmem:[%s5768_s5 + $0xf70] sm:$0xff]  ;;  %v1459_v27 = vld [vmem:[%s5768_s5 + $0x4b8] sm:$0xff] }
 0x246   :  { %2329 = vmatpush.msrb.mxu1 %v1399_v49  ;;  %2340 = vmatpush.msrb.mxu2 %v1499_v50  ;;  %v1798_v1 = vld [vmem:[%s5768_s5 + $0xf50] sm:$0xff]  ;;  %v1611_v28 = vld [vmem:[%s5768_s5 + $0x978] sm:$0xff] }
 0x247   :  { %2281 = vmatpush.msra.mxu3 %v1814_v51  ;;  %2310 = vmatpush.msrb.mxu0 %v1331_v52  ;;  %v1794_v6 = vld [vmem:[%s5768_s5 + $0xf30] sm:$0xff]  ;;  %v1675_v29 = vld [vmem:[%s5768_s5 + $0xb78] sm:$0xff] }
 0x248   :  { %2330 = vmatpush.msrb.mxu1 %v1395_v53  ;;  %2341 = vmatpush.msrb.mxu2 %v1495_v54  ;;  %v1790_v12 = vld [vmem:[%s5768_s5 + $0xf10] sm:$0xff]  ;;  %v1455_v32 = vld [vmem:[%s5768_s5 + $0x498] sm:$0xff] }
 0x249   :  { %2282 = vmatpush.msra.mxu3 %v1810_v55  ;;  %2311 = vmatpush.msrb.mxu0 %v1327_v56  ;;  %v1786_v18 = vld [vmem:[%s5768_s5 + $0xef0] sm:$0xff]  ;;  %v1607_v33 = vld [vmem:[%s5768_s5 + $0x958] sm:$0xff] }
 0x24a   :  { %2331 = vmatpush.msrb.mxu1 %v1391_v57  ;;  %2342 = vmatpush.msrb.mxu2 %v1491_v58  ;;  %v1782_v20 = vld [vmem:[%s5768_s5 + $0xed0] sm:$0xff]  ;;  %v1671_v36 = vld [vmem:[%s5768_s5 + $0xb58] sm:$0xff] }
 0x24b   :  { %2283 = vmatpush.msra.mxu3 %v1806_v24  ;;  %2312 = vmatpush.msrb.mxu0 %v1323_v25  ;;  %v1778_v26 = vld [vmem:[%s5768_s5 + $0xeb0] sm:$0xff]  ;;  %v1451_v40 = vld [vmem:[%s5768_s5 + $0x478] sm:$0xff] }
 0x24c   :  { %2332 = vmatpush.msrb.mxu1 %v1387_v60  ;;  %2343 = vmatpush.msrb.mxu2 %v1487_v17  ;;  %v1774_v30 = vld [vmem:[%s5768_s5 + $0xe90] sm:$0xff]  ;;  %v1603_v41 = vld [vmem:[%s5768_s5 + $0x938] sm:$0xff] }
 0x24d   :  { %2284 = vmatpush.msra.mxu3 %v1802_v61  ;;  %2313 = vmatpush.msrb.mxu0 %v1319_v62  ;;  %v1770_v37 = vld [vmem:[%s5768_s5 + $0xe70] sm:$0xff]  ;;  %v1667_v42 = vld [vmem:[%s5768_s5 + $0xb38] sm:$0xff] }
 0x24e   :  { %2333 = vmatpush.msrb.mxu1 %v1383_v63  ;;  %2344 = vmatpush.msrb.mxu2 %v1483_v0  ;;  %v1766_v43 = vld [vmem:[%s5768_s5 + $0xe50] sm:$0xff]  ;;  %v1447_v44 = vld [vmem:[%s5768_s5 + $0x458] sm:$0xff] }
 0x24f   :  { %2285 = vmatpush.msra.mxu3 %v1798_v1  ;;  %2314 = vmatpush.msrb.mxu0 %v1315_v3  ;;  %v1599_v45 = vld [vmem:[%s5768_s5 + $0x918] sm:$0xff]  ;;  %v1762_v47 = vld [vmem:[%s5768_s5 + $0xe30] sm:$0xff] }
 0x250   :  { %2334 = vmatpush.msrb.mxu1 %v1379_v4  ;;  %2345 = vmatpush.msrb.mxu2 %v1479_v5  ;;  %v1663_v46 = vld [vmem:[%s5768_s5 + $0xb18] sm:$0xff]  ;;  %v1758_v51 = vld [vmem:[%s5768_s5 + $0xe10] sm:$0xff] }
 0x251   :  { %2286 = vmatpush.msra.mxu3 %v1794_v6  ;;  %2315 = vmatpush.msrb.mxu0 %v1311_v7  ;;  %v1443_v48 = vld [vmem:[%s5768_s5 + $0x438] sm:$0xff] }
 0x252   :  { %2335 = vmatpush.msrb.mxu1 %v1375_v38  ;;  %2346 = vmatpush.msrb.mxu2 %v1475_v39  ;;  %v1595_v49 = vld [vmem:[%s5768_s5 + $0x8f8] sm:$0xff] }
 0x253   :  { %2316 = vmatmul.f32.vlgmr.msrb.gmra.mxu0 %v4347_v10  ;;  %2336 = vmatmul.f32.vlgmr.msrb.gmra.mxu1 %v4349_v11  ;;  %v1467_v10 = vld [vmem:[%s5768_s5 + $0x4f8] sm:$0xff] }
 0x254   :  { %2380 = vmatpush.msra.mxu0 %v1627_v8  ;;  %2400 = vmatpush.msra.mxu1 %v1691_v9  ;;  %v1683_v11 = vld [vmem:[%s5768_s5 + $0xbb8] sm:$0xff] }
 0x255   :  { %2287 = vmatpush.msra.mxu3 %v1790_v12  ;;  %2347 = vmatpush.msrb.mxu2 %v1471_v13  ;;  %v1659_v50 = vld [vmem:[%s5768_s5 + $0xaf8] sm:$0xff] }
 0x256   :  { %2381 = vmatpush.msra.mxu0 %v1623_v15  ;;  %2401 = vmatpush.msra.mxu1 %v1687_v16  ;;  %v1439_v52 = vld [vmem:[%s5768_s5 + $0x418] sm:$0xff] }
 0x257   :  { %2288 = vmatpush.msra.mxu3 %v1786_v18  ;;  %2348 = vmatpush.msrb.mxu2 %v1467_v10  ;;  %v1563_v53 = vld [vmem:[%s5768_s5 + $0x7f8] sm:$0xff] }
 0x258   :  { %2382 = vmatpush.msra.mxu0 %v1619_v19  ;;  %2402 = vmatpush.msra.mxu1 %v1683_v11  ;;  %v1591_v54 = vld [vmem:[%s5768_s5 + $0x8d8] sm:$0xff] }
 0x259   :  { %2289 = vmatpush.msra.mxu3 %v1782_v20  ;;  %2349 = vmatpush.msrb.mxu2 %v1463_v21  ;;  %v1655_v55 = vld [vmem:[%s5768_s5 + $0xad8] sm:$0xff] }
 0x25a   :  { %2383 = vmatpush.msra.mxu0 %v1615_v22  ;;  %2403 = vmatpush.msra.mxu1 %v1679_v23  ;;  %v1755_v56 = vld [vmem:[%s5768_s5 + $0xdf8] sm:$0xff] }
 0x25b   :  { %2290 = vmatpush.msra.mxu3 %v1778_v26  ;;  %2350 = vmatpush.msrb.mxu2 %v1459_v27  ;;  %v1559_v57 = vld [vmem:[%s5768_s5 + $0x7d8] sm:$0xff] }
 0x25c   :  { %2384 = vmatpush.msra.mxu0 %v1611_v28  ;;  %2404 = vmatpush.msra.mxu1 %v1675_v29  ;;  %v1587_v58 = vld [vmem:[%s5768_s5 + $0x8b8] sm:$0xff] }
 0x25d   :  { %2291 = vmatpush.msra.mxu3 %v1774_v30  ;;  %2351 = vmatpush.msrb.mxu2 %v1455_v32  ;;  %v1651_v24 = vld [vmem:[%s5768_s5 + $0xab8] sm:$0xff] }
 0x25e   :  { %2385 = vmatpush.msra.mxu0 %v1607_v33  ;;  %2405 = vmatpush.msra.mxu1 %v1671_v36  ;;  %v1751_v25 = vld [vmem:[%s5768_s5 + $0xdd8] sm:$0xff] }
 0x25f   :  { %2292 = vmatpush.msra.mxu3 %v1770_v37  ;;  %2352 = vmatpush.msrb.mxu2 %v1451_v40  ;;  %v1555_v60 = vld [vmem:[%s5768_s5 + $0x7b8] sm:$0xff] }
 0x260   :  { %2386 = vmatpush.msra.mxu0 %v1603_v41  ;;  %2406 = vmatpush.msra.mxu1 %v1667_v42  ;;  %v1647_v17 = vld [vmem:[%s5768_s5 + $0xa98] sm:$0xff] }
 0x261   :  { %2293 = vmatpush.msra.mxu3 %v1766_v43  ;;  %2353 = vmatpush.msrb.mxu2 %v1447_v44  ;;  %v1747_v61 = vld [vmem:[%s5768_s5 + $0xdb8] sm:$0xff] }
 0x262   :  { %2387 = vmatpush.msra.mxu0 %v1599_v45  ;;  %2407 = vmatpush.msra.mxu1 %v1663_v46  ;;  %v1551_v62 = vld [vmem:[%s5768_s5 + $0x798] sm:$0xff] }
 0x263   :  { %2294 = vmatpush.msra.mxu3 %v1762_v47  ;;  %2354 = vmatpush.msrb.mxu2 %v1443_v48  ;;  %v1579_v63 = vld [vmem:[%s5768_s5 + $0x878] sm:$0xff] }
 0x264   :  { %2388 = vmatpush.msra.mxu0 %v1595_v49  ;;  %2408 = vmatpush.msra.mxu1 %v1659_v50  ;;  %v1643_v0 = vld [vmem:[%s5768_s5 + $0xa78] sm:$0xff] }
 0x265   :  { %2295 = vmatpush.msra.mxu3 %v1758_v51  ;;  %2355 = vmatpush.msrb.mxu2 %v1439_v52  ;;  %v1743_v1 = vld [vmem:[%s5768_s5 + $0xd98] sm:$0xff]  ;;  %v1837_v52 = vpop.f32.mrf.mxu0 }
 0x266   :  { %2296 = vmatmul.f32.vlgmr.msra.gmra.mxu3 %v4965_v14  ;;  %2356 = vmatmul.f32.vlgmr.msrb.gmra.mxu2 %v4389_v34  ;;  %v1583_v34 = vld [vmem:[%s5768_s5 + $0x898] sm:$0xff] }
 0x267   :  { %2360 = vmatpush.msrb.mxu3 %v1563_v53  ;;  %2389 = vmatpush.msra.mxu0 %v1591_v54  ;;  %v1547_v3 = vld [vmem:[%s5768_s5 + $0x778] sm:$0xff]  ;;  %v1857_v53 = vpop.f32.mrf.mxu1  ;;  %v1877_v54 = vpop.f32.mrf.mxu2 }
 0x268   :  { %2409 = vmatpush.msra.mxu1 %v1655_v55  ;;  %2420 = vmatpush.msra.mxu2 %v1755_v56  ;;  %v1575_v4 = vld [vmem:[%s5768_s5 + $0x858] sm:$0xff]  ;;  %v1897_v55 = vpop.f32.mrf.mxu3 }
 0x269   :  { %2361 = vmatpush.msrb.mxu3 %v1559_v57  ;;  %2390 = vmatpush.msra.mxu0 %v1587_v58  ;;  %v1639_v5 = vld [vmem:[%s5768_s5 + $0xa58] sm:$0xff] }
 0x26a   :  { %2410 = vmatpush.msra.mxu1 %v1651_v24  ;;  %2421 = vmatpush.msra.mxu2 %v1751_v25  ;;  %v1739_v6 = vld [vmem:[%s5768_s5 + $0xd78] sm:$0xff] }
 0x26b   :  { %2362 = vmatpush.msrb.mxu3 %v1555_v60  ;;  %2391 = vmatpush.msra.mxu0 %v1583_v34  ;;  %v1543_v7 = vld [vmem:[%s5768_s5 + $0x758] sm:$0xff] }
 0x26c   :  { %2411 = vmatpush.msra.mxu1 %v1647_v17  ;;  %2422 = vmatpush.msra.mxu2 %v1747_v61  ;;  %v1571_v38 = vld [vmem:[%s5768_s5 + $0x838] sm:$0xff] }
 0x26d   :  { %2363 = vmatpush.msrb.mxu3 %v1551_v62  ;;  %2392 = vmatpush.msra.mxu0 %v1579_v63  ;;  %v1635_v39 = vld [vmem:[%s5768_s5 + $0xa38] sm:$0xff]  ;;  %v1917_v56 = vpop.f32.mrf.mxu0 }
 0x26e   :  { %2412 = vmatpush.msra.mxu1 %v1643_v0  ;;  %2423 = vmatpush.msra.mxu2 %v1743_v1  ;;  %v1735_v8 = vld [vmem:[%s5768_s5 + $0xd58] sm:$0xff] }
 0x26f   :  { %2364 = vmatpush.msrb.mxu3 %v1547_v3  ;;  %2393 = vmatpush.msra.mxu0 %v1575_v4  ;;  %v1539_v9 = vld [vmem:[%s5768_s5 + $0x738] sm:$0xff]  ;;  %v1937_v57 = vpop.f32.mrf.mxu1  ;;  %v1957_v58 = vpop.f32.mrf.mxu2 }
 0x270   :  { %2413 = vmatpush.msra.mxu1 %v1639_v5  ;;  %2424 = vmatpush.msra.mxu2 %v1739_v6  ;;  %v1567_v12 = vld [vmem:[%s5768_s5 + $0x818] sm:$0xff]  ;;  %v1977_v24 = vpop.f32.mrf.mxu3 }
 0x271   :  { %2365 = vmatpush.msrb.mxu3 %v1543_v7  ;;  %v1631_v13 = vld [vmem:[%s5768_s5 + $0xa18] sm:$0xff]  ;;  %2394 = vmatpush.msra.mxu0 %v1571_v38 }
 0x272   :  { %2414 = vmatpush.msra.mxu1 %v1635_v39  ;;  %v1731_v15 = vld [vmem:[%s5768_s5 + $0xd38] sm:$0xff]  ;;  %2425 = vmatpush.msra.mxu2 %v1735_v8 }
 0x273   :  { %2366 = vmatpush.msrb.mxu3 %v1539_v9  ;;  %v1535_v16 = vld [vmem:[%s5768_s5 + $0x718] sm:$0xff]  ;;  %2395 = vmatpush.msra.mxu0 %v1567_v12 }
 0x274   :  { %2415 = vmatpush.msra.mxu1 %v1631_v13  ;;  %v1727_v18 = vld [vmem:[%s5768_s5 + $0xd18] sm:$0xff]  ;;  %2426 = vmatpush.msra.mxu2 %v1731_v15 }
 0x275   :  { %2396 = vmatmul.f32.vlgmr.msra.gmra.mxu0 %v4535_v31  ;;  %v1531_v10 = vld [vmem:[%s5768_s5 + $0x6f8] sm:$0xff]  ;;  %2416 = vmatmul.f32.vlgmr.msra.gmra.mxu1 %v4589_v59  ;;  %v1997_v25 = vpop.f32.mrf.mxu0 }
 0x276   :  { %2367 = vmatpush.msrb.mxu3 %v1535_v16  ;;  %v1723_v19 = vld [vmem:[%s5768_s5 + $0xcf8] sm:$0xff]  ;;  %2427 = vmatpush.msra.mxu2 %v1727_v18 }
 0x277   :  { %v1527_v11 = vld [vmem:[%s5768_s5 + $0x6d8] sm:$0xff]  ;;  %v2017_v60 = vpop.f32.mrf.mxu1  ;;  %v2037_v34 = vpop.f32.mrf.mxu2 }
 0x278   :  { %2368 = vmatpush.msrb.mxu3 %v1531_v10  ;;  %v1719_v31 = vld [vmem:[%s5768_s5 + $0xcd8] sm:$0xff]  ;;  %2428 = vmatpush.msra.mxu2 %v1723_v19  ;;  %v2057_v17 = vpop.f32.mrf.mxu3  ;;  %v2018_v39 = vadd.f32 %v2017_v60, %v1997_v25 }
 0x279   :  { %v1523_v59 = vld [vmem:[%s5768_s5 + $0x6b8] sm:$0xff] }
 0x27a   :  { %2369 = vmatpush.msrb.mxu3 %v1527_v11  ;;  %v1715_v20 = vld [vmem:[%s5768_s5 + $0xcb8] sm:$0xff]  ;;  %2429 = vmatpush.msra.mxu2 %v1719_v31  ;;  %v2038_v8 = vadd.f32 %v2037_v34, %v2018_v39 }
 0x27b   :  { %v1519_v21 = vld [vmem:[%s5768_s5 + $0x698] sm:$0xff] }
 0x27c   :  { %2370 = vmatpush.msrb.mxu3 %v1523_v59  ;;  %v1711_v22 = vld [vmem:[%s5768_s5 + $0xc98] sm:$0xff]  ;;  %2430 = vmatpush.msra.mxu2 %v1715_v20  ;;  %v2058_v15 = vadd.f32 %v2057_v17, %v2038_v8  ;;  %v1858_v20 = vadd.f32 %v1857_v53, %v1837_v52 }
 0x27d   :  { %v1515_v23 = vld [vmem:[%s5768_s5 + $0x678] sm:$0xff]  ;;  %v2077_v61 = vpop.f32.mrf.mxu0 }
 0x27e   :  { %2371 = vmatpush.msrb.mxu3 %v1519_v21  ;;  %v1707_v26 = vld [vmem:[%s5768_s5 + $0xc78] sm:$0xff]  ;;  %2431 = vmatpush.msra.mxu2 %v1711_v22  ;;  %v2078_v31 = vadd.f32 %v2077_v61, %v2058_v15 }
 0x27f   :  { %v1511_v27 = vld [vmem:[%s5768_s5 + $0x658] sm:$0xff]  ;;  %v2097_v62 = vpop.f32.mrf.mxu1 }
 0x280   :  { %2372 = vmatpush.msrb.mxu3 %v1515_v23  ;;  %v1703_v28 = vld [vmem:[%s5768_s5 + $0xc58] sm:$0xff]  ;;  %2432 = vmatpush.msra.mxu2 %v1707_v26  ;;  %v1878_v23 = vadd.f32 %v1877_v54, %v1858_v20  ;;  %v2098_v26 = vadd.f32 %v2097_v62, %v2078_v31 }
 0x281   :  { %v1507_v29 = vld [vmem:[%s5768_s5 + $0x638] sm:$0xff]  ;;  %v2117_v63 = vpop.f32.mrf.mxu2 }
 0x282   :  { %2373 = vmatpush.msrb.mxu3 %v1511_v27  ;;  %v1699_v30 = vld [vmem:[%s5768_s5 + $0xc38] sm:$0xff]  ;;  %2433 = vmatpush.msra.mxu2 %v1703_v28 }
 0x283   :  { %v1503_v32 = vld [vmem:[%s5768_s5 + $0x618] sm:$0xff] }
 0x284   :  { %2374 = vmatpush.msrb.mxu3 %v1507_v29  ;;  %v1695_v33 = vld [vmem:[%s5768_s5 + $0xc18] sm:$0xff]  ;;  %2434 = vmatpush.msra.mxu2 %v1699_v30  ;;  %v1898_v30 = vadd.f32 %v1897_v55, %v1878_v23 }
 0x285   :  { %v1819_v36 = vld [vmem:[%s5768_s5 + $0xff8] sm:$0xff] }
 0x286   :  { %2375 = vmatpush.msrb.mxu3 %v1503_v32  ;;  %2435 = vmatpush.msra.mxu2 %v1695_v33  ;;  %v1815_v37 = vld [vmem:[%s5768_s5 + $0xfd8] sm:$0xff]  ;;  %v2118_v32 = vadd.f32 %v2117_v63, %v2098_v26 }
 0x287   :  { %2376 = vmatmul.f32.vlgmr.msrb.gmra.mxu3 %v4391_v35  ;;  %2436 = vmatmul.f32.vlgmr.msra.gmra.mxu2 %v4784_v2  ;;  %v1811_v40 = vld [vmem:[%s5768_s5 + $0xfb8] sm:$0xff] }
 0x288   :  { %2440 = vmatpush.msra.mxu3 %v1819_v36  ;;  %v1807_v41 = vld [vmem:[%s5768_s5 + $0xf98] sm:$0xff]  ;;  %v1918_v36 = vadd.f32 %v1917_v56, %v1898_v30 }
 0x289   :  { %v1803_v35 = vld [vmem:[%s5768_s5 + $0xf78] sm:$0xff] }
 0x28a   :  { %2441 = vmatpush.msra.mxu3 %v1815_v37  ;;  %v1799_v2 = vld [vmem:[%s5768_s5 + $0xf58] sm:$0xff] }
 0x28b   :  { %v1795_v42 = vld [vmem:[%s5768_s5 + $0xf38] sm:$0xff] }
 0x28c   :  { %2442 = vmatpush.msra.mxu3 %v1811_v40  ;;  %v1791_v43 = vld [vmem:[%s5768_s5 + $0xf18] sm:$0xff] }
 0x28d   :  { %v1787_v44 = vld [vmem:[%s5768_s5 + $0xef8] sm:$0xff] }
 0x28e   :  { %2443 = vmatpush.msra.mxu3 %v1807_v41  ;;  %v1783_v45 = vld [vmem:[%s5768_s5 + $0xed8] sm:$0xff]  ;;  %v2177_v3 = vpop.f32.mrf.mxu1 }
 0x28f   :  { %v1779_v46 = vld [vmem:[%s5768_s5 + $0xeb8] sm:$0xff]  ;;  %v2157_v1 = vpop.f32.mrf.mxu0 }
 0x290   :  { %2444 = vmatpush.msra.mxu3 %v1803_v35  ;;  %v1775_v47 = vld [vmem:[%s5768_s5 + $0xe98] sm:$0xff]  ;;  %v2178_v9 = vadd.f32 %v2177_v3, %v2157_v1  ;;  %v1938_v35 = vadd.f32 %v1937_v57, %v1918_v36 }
 0x291   :  { %v1771_v48 = vld [vmem:[%s5768_s5 + $0xe78] sm:$0xff] }
 0x292   :  { %2445 = vmatpush.msra.mxu3 %v1799_v2  ;;  %v1767_v49 = vld [vmem:[%s5768_s5 + $0xe58] sm:$0xff] }
 0x293   :  { %v1763_v50 = vld [vmem:[%s5768_s5 + $0xe38] sm:$0xff] }
 0x294   :  { %2446 = vmatpush.msra.mxu3 %v1795_v42  ;;  %v1759_v51 = vld [vmem:[%s5768_s5 + $0xe18] sm:$0xff] }
 0x296   :  { %2447 = vmatpush.msra.mxu3 %v1791_v43  ;;  %v1958_v43 = vadd.f32 %v1957_v58, %v1938_v35 }
 0x298   :  { %2448 = vmatpush.msra.mxu3 %v1787_v44 }
 0x29a   :  { %2449 = vmatpush.msra.mxu3 %v1783_v45 }
 0x29c   :  { %2450 = vmatpush.msra.mxu3 %v1779_v46 }
 0x29e   :  { %2451 = vmatpush.msra.mxu3 %v1775_v47  ;;  %v1978_v47 = vadd.f32 %v1977_v24, %v1958_v43 }
 0x29f   :  { %v2137_v0 = vpop.f32.mrf.mxu3 }
 0x2a0   :  { %2452 = vmatpush.msra.mxu3 %v1771_v48  ;;  %v2138_v37 = vadd.f32 %v2137_v0, %v2118_v32  ;;  %v2460_v52 = vmax.f32 %v1978_v47, 0.0 }
 0x2a2   :  { %2453 = vmatpush.msra.mxu3 %v1767_v49  ;;  %v2461_v44 = vmax.f32 %v2138_v37, 0.0 }
 0x2a3   :  { %v2197_v4 = vpop.f32.mrf.mxu2 }
 0x2a4   :  { %2454 = vmatpush.msra.mxu3 %v1763_v50  ;;  %v2198_v16 = vadd.f32 %v2197_v4, %v2178_v9  ;;  %v2468_v50 = vrot.slane %v2461_v44, 6 }
 0x2a6   :  { %2455 = vmatpush.msra.mxu3 %v1759_v51  ;;  %v2472_v55 = vsel %vm2471_vm1, %v2460_v52, %v2468_v50 }
 0x2a7   :  { %2456 = vmatmul.f32.vlgmr.msra.gmra.mxu3 %v4965_v14 }
 0x2ae   :  { %v2257_v6 = vpop.f32.mrf.mxu1 }
 0x2af   :  { %v2237_v5 = vpop.f32.mrf.mxu0 }
 0x2c7   :  { %v2217_v14 = vpop.f32.mrf.mxu3  ;;  %v2277_v7 = vpop.f32.mrf.mxu2 }
 0x2c8   :  { %v2218_v10 = vadd.f32 %v2217_v14, %v2198_v16 }
 0x2ca   :  { %v2238_v21 = vadd.f32 %v2237_v5, %v2218_v10 }
 0x2cc   :  { %v2258_v28 = vadd.f32 %v2257_v6, %v2238_v21 }
 0x2ce   :  { %v2278_v40 = vadd.f32 %v2277_v7, %v2258_v28 }
 0x2d0   :  { %v2317_v12 = vpop.f32.mrf.mxu0  ;;  %v2337_v13 = vpop.f32.mrf.mxu1 }
 0x2d1   :  { %v2338_v19 = vadd.f32 %v2337_v13, %v2317_v12 }
 0x2e9   :  { %v2297_v38 = vpop.f32.mrf.mxu3  ;;  %v2357_v18 = vpop.f32.mrf.mxu2 }
 0x2ea   :  { %v2358_v59 = vadd.f32 %v2357_v18, %v2338_v19  ;;  %v2298_v2 = vadd.f32 %v2297_v38, %v2278_v40 }
 0x2ec   :  { %v2462_v48 = vmax.f32 %v2298_v2, 0.0 }
 0x2ee   :  { %v2469_v53 = vrot.slane %v2462_v48, 4 }
 0x2f2   :  { %v2397_v27 = vpop.f32.mrf.mxu0  ;;  %v2417_v33 = vpop.f32.mrf.mxu1 }
 0x30a   :  { %v2377_v11 = vpop.f32.mrf.mxu3  ;;  %v2437_v42 = vpop.f32.mrf.mxu2 }
 0x30b   :  { %v2378_v22 = vadd.f32 %v2377_v11, %v2358_v59 }
 0x30d   :  { %v2398_v29 = vadd.f32 %v2397_v27, %v2378_v22 }
 0x30f   :  { %v2418_v41 = vadd.f32 %v2417_v33, %v2398_v29 }
 0x311   :  { %v2438_v45 = vadd.f32 %v2437_v42, %v2418_v41 }
 0x32a   :  { %v2457_v46 = vpop.f32.mrf.mxu3 }
 0x32b   :  { %v2458_v49 = vadd.f32 %v2457_v46, %v2438_v45 }
 0x32d   :  { %v2463_v51 = vmax.f32 %v2458_v49, 0.0 }
 0x32f   :  { %v2470_v54 = vrot.slane %v2463_v51, 2 }
 0x331   :  { %v2474_v56 = vsel %vm2473_vm2, %v2469_v53, %v2470_v54 }
 0x332   :  { %v2476_v57 = vsel %vm2475_vm3, %v2472_v55, %v2474_v56 }
 0x333   :  { %2478 = vst [vmem:[%s5770_s6] sm:$0xff] %v2476_v57 }

// kernel: decoder_forward.6
= control target key start
LH: loop header
LB: loop body
LE: loop exit
PB: predicated region body
PF: predicated region fallthrough
CT: control target
= control target key end

     0   :  { %vm518_vm0 = vcmask 64512   ;;  %s1208_s1 = inlined_call_operand.vmem [shape: f32[256,8], index: 1, kind: input, shape index: {}]   ;;  %s1209_s0 = inlined_call_operand.vmem [shape: f32[392,256], index: 0, kind: input, shape index: {}]   ;;  %s1210_s2 = inlined_call_operand.vmem [shape: f32[392,8], index: 2, kind: output, shape index: {}]  }
   0x1   :  { %v124_v0 = vld [vmem:[%s1208_s1 + $0x78] sm:$0xff]  ;;  %v123_v2 = vld [vmem:[%s1208_s1 + $0x70] sm:$0xff]  ;;  %v122_v4 = vld [vmem:[%s1208_s1 + $0x68] sm:$0xff] }
   0x2   :  { %v140_v1 = vld [vmem:[%s1208_s1 + $0xf8] sm:$0xff]  ;;  %572 = vmatpush.msra.mxu2 %v124_v0  ;;  %v139_v3 = vld [vmem:[%s1208_s1 + $0xf0] sm:$0xff]  ;;  %v138_v5 = vld [vmem:[%s1208_s1 + $0xe8] sm:$0xff]  ;;  %141 = vmatpush.msra.mxu0 %v124_v0 }
   0x3   :  { %305 = vmatpush.msra.mxu1 %v140_v1  ;;  %588 = vmatpush.msra.mxu3 %v140_v1  ;;  %v121_v6 = vld [vmem:[%s1208_s1 + $0x60] sm:$0xff]  ;;  %v120_v8 = vld [vmem:[%s1208_s1 + $0x58] sm:$0xff]  ;;  %v119_v10 = vld [vmem:[%s1208_s1 + $0x50] sm:$0xff] }
   0x4   :  { %573 = vmatpush.msra.mxu2 %v123_v2  ;;  %v137_v7 = vld [vmem:[%s1208_s1 + $0xe0] sm:$0xff]  ;;  %142 = vmatpush.msra.mxu0 %v123_v2  ;;  %v136_v9 = vld [vmem:[%s1208_s1 + $0xd8] sm:$0xff]  ;;  %v135_v11 = vld [vmem:[%s1208_s1 + $0xd0] sm:$0xff] }
   0x5   :  { %306 = vmatpush.msra.mxu1 %v139_v3  ;;  %589 = vmatpush.msra.mxu3 %v139_v3  ;;  %v118_v12 = vld [vmem:[%s1208_s1 + $0x48] sm:$0xff]  ;;  %v117_v14 = vld [vmem:[%s1208_s1 + $0x40] sm:$0xff]  ;;  %v116_v16 = vld [vmem:[%s1208_s1 + $0x38] sm:$0xff] }
   0x6   :  { %574 = vmatpush.msra.mxu2 %v122_v4  ;;  %143 = vmatpush.msra.mxu0 %v122_v4  ;;  %v134_v13 = vld [vmem:[%s1208_s1 + $0xc8] sm:$0xff]  ;;  %v133_v15 = vld [vmem:[%s1208_s1 + $0xc0] sm:$0xff]  ;;  %v132_v17 = vld [vmem:[%s1208_s1 + $0xb8] sm:$0xff] }
   0x7   :  { %307 = vmatpush.msra.mxu1 %v138_v5  ;;  %590 = vmatpush.msra.mxu3 %v138_v5  ;;  %v115_v18 = vld [vmem:[%s1208_s1 + $0x30] sm:$0xff]  ;;  %v114_v20 = vld [vmem:[%s1208_s1 + $0x28] sm:$0xff]  ;;  %v113_v22 = vld [vmem:[%s1208_s1 + $0x20] sm:$0xff] }
   0x8   :  { %575 = vmatpush.msra.mxu2 %v121_v6  ;;  %144 = vmatpush.msra.mxu0 %v121_v6  ;;  %v131_v19 = vld [vmem:[%s1208_s1 + $0xb0] sm:$0xff]  ;;  %v130_v21 = vld [vmem:[%s1208_s1 + $0xa8] sm:$0xff]  ;;  %v129_v23 = vld [vmem:[%s1208_s1 + $0xa0] sm:$0xff] }
   0x9   :  { %308 = vmatpush.msra.mxu1 %v137_v7  ;;  %591 = vmatpush.msra.mxu3 %v137_v7  ;;  %v112_v24 = vld [vmem:[%s1208_s1 + $0x18] sm:$0xff]  ;;  %v111_v26 = vld [vmem:[%s1208_s1 + $0x10] sm:$0xff]  ;;  %v110_v28 = vld [vmem:[%s1208_s1 + $0x8] sm:$0xff] }
   0xa   :  { %576 = vmatpush.msra.mxu2 %v120_v8  ;;  %145 = vmatpush.msra.mxu0 %v120_v8  ;;  %v128_v25 = vld [vmem:[%s1208_s1 + $0x98] sm:$0xff]  ;;  %v127_v27 = vld [vmem:[%s1208_s1 + $0x90] sm:$0xff]  ;;  %v126_v29 = vld [vmem:[%s1208_s1 + $0x88] sm:$0xff] }
   0xb   :  { %309 = vmatpush.msra.mxu1 %v136_v9  ;;  %592 = vmatpush.msra.mxu3 %v136_v9  ;;  %v109_v30 = vld [vmem:[%s1208_s1] sm:$0xff]  ;;  %v12_v33 = vld [vmem:[%s1209_s0 + $0x8] sm:$0xff]  ;;  %v62_v35 = vld [vmem:[%s1209_s0 + $0x198] sm:$0xff] }
   0xc   :  { %577 = vmatpush.msra.mxu2 %v119_v10  ;;  %146 = vmatpush.msra.mxu0 %v119_v10  ;;  %v125_v31 = vld [vmem:[%s1208_s1 + $0x80] sm:$0xff]  ;;  %v61_v36 = vld [vmem:[%s1209_s0 + $0x190] sm:$0xff]  ;;  %v14_v37 = vld [vmem:[%s1209_s0 + $0x18] sm:$0xff] }
   0xd   :  { %310 = vmatpush.msra.mxu1 %v135_v11  ;;  %593 = vmatpush.msra.mxu3 %v135_v11  ;;  %v59_v32 = vld [vmem:[%s1209_s0 + $0x180] sm:$0xff]  ;;  %v13_v38 = vld [vmem:[%s1209_s0 + $0x10] sm:$0xff]  ;;  %v64_v39 = vld [vmem:[%s1209_s0 + $0x1a8] sm:$0xff] }
   0xe   :  { %578 = vmatpush.msra.mxu2 %v118_v12  ;;  %147 = vmatpush.msra.mxu0 %v118_v12  ;;  %v11_v34 = vld [vmem:[%s1209_s0] sm:$0xff]  ;;  %v16_v41 = vld [vmem:[%s1209_s0 + $0x28] sm:$0xff]  ;;  %v66_v43 = vld [vmem:[%s1209_s0 + $0x1b8] sm:$0xff] }
   0xf   :  { %311 = vmatpush.msra.mxu1 %v134_v13  ;;  %594 = vmatpush.msra.mxu3 %v134_v13  ;;  %v63_v40 = vld [vmem:[%s1209_s0 + $0x1a0] sm:$0xff]  ;;  %v65_v44 = vld [vmem:[%s1209_s0 + $0x1b0] sm:$0xff]  ;;  %v18_v45 = vld [vmem:[%s1209_s0 + $0x38] sm:$0xff] }
  0x10   :  { %579 = vmatpush.msra.mxu2 %v117_v14  ;;  %148 = vmatpush.msra.mxu0 %v117_v14  ;;  %v15_v42 = vld [vmem:[%s1209_s0 + $0x20] sm:$0xff]  ;;  %v17_v46 = vld [vmem:[%s1209_s0 + $0x30] sm:$0xff]  ;;  %v68_v47 = vld [vmem:[%s1209_s0 + $0x1c8] sm:$0xff] }
  0x11   :  { %312 = vmatpush.msra.mxu1 %v133_v15  ;;  %595 = vmatpush.msra.mxu3 %v133_v15  ;;  %v67_v48 = vld [vmem:[%s1209_s0 + $0x1c0] sm:$0xff]  ;;  %v20_v49 = vld [vmem:[%s1209_s0 + $0x48] sm:$0xff]  ;;  %v70_v51 = vld [vmem:[%s1209_s0 + $0x1d8] sm:$0xff] }
  0x12   :  { %580 = vmatpush.msra.mxu2 %v116_v16  ;;  %149 = vmatpush.msra.mxu0 %v116_v16  ;;  %v19_v50 = vld [vmem:[%s1209_s0 + $0x40] sm:$0xff]  ;;  %v69_v52 = vld [vmem:[%s1209_s0 + $0x1d0] sm:$0xff]  ;;  %v22_v53 = vld [vmem:[%s1209_s0 + $0x58] sm:$0xff] }
  0x13   :  { %313 = vmatpush.msra.mxu1 %v132_v17  ;;  %596 = vmatpush.msra.mxu3 %v132_v17  ;;  %v21_v54 = vld [vmem:[%s1209_s0 + $0x50] sm:$0xff]  ;;  %v72_v55 = vld [vmem:[%s1209_s0 + $0x1e8] sm:$0xff]  ;;  %v71_v56 = vld [vmem:[%s1209_s0 + $0x1e0] sm:$0xff] }
  0x14   :  { %581 = vmatpush.msra.mxu2 %v115_v18  ;;  %150 = vmatpush.msra.mxu0 %v115_v18  ;;  %v24_v57 = vld [vmem:[%s1209_s0 + $0x68] sm:$0xff]  ;;  %v23_v58 = vld [vmem:[%s1209_s0 + $0x60] sm:$0xff]  ;;  %v74_v59 = vld [vmem:[%s1209_s0 + $0x1f8] sm:$0xff] }
  0x15   :  { %314 = vmatpush.msra.mxu1 %v131_v19  ;;  %597 = vmatpush.msra.mxu3 %v131_v19  ;;  %v73_v60 = vld [vmem:[%s1209_s0 + $0x1f0] sm:$0xff]  ;;  %v26_v61 = vld [vmem:[%s1209_s0 + $0x78] sm:$0xff]  ;;  %v76_v63 = vld [vmem:[%s1209_s0 + $0x208] sm:$0xff] }
  0x16   :  { %582 = vmatpush.msra.mxu2 %v114_v20  ;;  %151 = vmatpush.msra.mxu0 %v114_v20  ;;  %v25_v62 = vld [vmem:[%s1209_s0 + $0x70] sm:$0xff]  ;;  %v75_v0 = vld [vmem:[%s1209_s0 + $0x200] sm:$0xff]  ;;  %v28_v1 = vld [vmem:[%s1209_s0 + $0x88] sm:$0xff] }
  0x17   :  { %315 = vmatpush.msra.mxu1 %v130_v21  ;;  %598 = vmatpush.msra.mxu3 %v130_v21  ;;  %v27_v2 = vld [vmem:[%s1209_s0 + $0x80] sm:$0xff]  ;;  %v78_v3 = vld [vmem:[%s1209_s0 + $0x218] sm:$0xff]  ;;  %v77_v4 = vld [vmem:[%s1209_s0 + $0x210] sm:$0xff] }
  0x18   :  { %583 = vmatpush.msra.mxu2 %v113_v22  ;;  %152 = vmatpush.msra.mxu0 %v113_v22  ;;  %v30_v5 = vld [vmem:[%s1209_s0 + $0x98] sm:$0xff]  ;;  %v29_v6 = vld [vmem:[%s1209_s0 + $0x90] sm:$0xff]  ;;  %v80_v7 = vld [vmem:[%s1209_s0 + $0x228] sm:$0xff] }
  0x19   :  { %316 = vmatpush.msra.mxu1 %v129_v23  ;;  %599 = vmatpush.msra.mxu3 %v129_v23  ;;  %v79_v8 = vld [vmem:[%s1209_s0 + $0x220] sm:$0xff]  ;;  %v32_v9 = vld [vmem:[%s1209_s0 + $0xa8] sm:$0xff]  ;;  %v82_v11 = vld [vmem:[%s1209_s0 + $0x238] sm:$0xff] }
  0x1a   :  { %584 = vmatpush.msra.mxu2 %v112_v24  ;;  %153 = vmatpush.msra.mxu0 %v112_v24  ;;  %v31_v10 = vld [vmem:[%s1209_s0 + $0xa0] sm:$0xff]  ;;  %v81_v12 = vld [vmem:[%s1209_s0 + $0x230] sm:$0xff]  ;;  %v34_v13 = vld [vmem:[%s1209_s0 + $0xb8] sm:$0xff] }
  0x1b   :  { %317 = vmatpush.msra.mxu1 %v128_v25  ;;  %600 = vmatpush.msra.mxu3 %v128_v25  ;;  %v33_v14 = vld [vmem:[%s1209_s0 + $0xb0] sm:$0xff]  ;;  %v84_v15 = vld [vmem:[%s1209_s0 + $0x248] sm:$0xff]  ;;  %v83_v16 = vld [vmem:[%s1209_s0 + $0x240] sm:$0xff] }
  0x1c   :  { %585 = vmatpush.msra.mxu2 %v111_v26  ;;  %154 = vmatpush.msra.mxu0 %v111_v26  ;;  %v36_v17 = vld [vmem:[%s1209_s0 + $0xc8] sm:$0xff]  ;;  %v35_v18 = vld [vmem:[%s1209_s0 + $0xc0] sm:$0xff]  ;;  %v86_v19 = vld [vmem:[%s1209_s0 + $0x258] sm:$0xff] }
  0x1d   :  { %318 = vmatpush.msra.mxu1 %v127_v27  ;;  %601 = vmatpush.msra.mxu3 %v127_v27  ;;  %v85_v20 = vld [vmem:[%s1209_s0 + $0x250] sm:$0xff]  ;;  %v38_v21 = vld [vmem:[%s1209_s0 + $0xd8] sm:$0xff]  ;;  %v88_v23 = vld [vmem:[%s1209_s0 + $0x268] sm:$0xff] }
  0x1e   :  { %586 = vmatpush.msra.mxu2 %v110_v28  ;;  %155 = vmatpush.msra.mxu0 %v110_v28  ;;  %v37_v22 = vld [vmem:[%s1209_s0 + $0xd0] sm:$0xff]  ;;  %v87_v24 = vld [vmem:[%s1209_s0 + $0x260] sm:$0xff]  ;;  %v40_v25 = vld [vmem:[%s1209_s0 + $0xe8] sm:$0xff] }
  0x1f   :  { %319 = vmatpush.msra.mxu1 %v126_v29  ;;  %602 = vmatpush.msra.mxu3 %v126_v29  ;;  %v39_v26 = vld [vmem:[%s1209_s0 + $0xe0] sm:$0xff]  ;;  %v90_v27 = vld [vmem:[%s1209_s0 + $0x278] sm:$0xff]  ;;  %v89_v28 = vld [vmem:[%s1209_s0 + $0x270] sm:$0xff] }
  0x20   :  { %587 = vmatpush.msra.mxu2 %v109_v30  ;;  %156 = vmatpush.msra.mxu0 %v109_v30  ;;  %v42_v29 = vld [vmem:[%s1209_s0 + $0xf8] sm:$0xff]  ;;  %v41_v30 = vld [vmem:[%s1209_s0 + $0xf0] sm:$0xff] }
  0x21   :  { %320 = vmatpush.msra.mxu1 %v125_v31  ;;  %229 = vmatmul.f32.vlgmr.msra.gmra.mxu2 %v59_v32 }
  0x22   :  { %321 = vmatmul.f32.vlgmr.msra.gmra.mxu1 %v12_v33  ;;  %603 = vmatpush.msra.mxu3 %v125_v31  ;;  %v92_v31 = vld [vmem:[%s1209_s0 + $0x288] sm:$0xff]  ;;  %v91_v33 = vld [vmem:[%s1209_s0 + $0x280] sm:$0xff] }
  0x23   :  { %157 = vmatmul.f32.vlgmr.msra.gmra.mxu0 %v11_v34  ;;  %396 = vmatmul.f32.vlgmr.msra.gmra.mxu3 %v62_v35  ;;  %v44_v34 = vld [vmem:[%s1209_s0 + $0x108] sm:$0xff] }
  0x29   :  { %232 = vmatmul.f32.gmra.mxu2 %v61_v36  ;;  %v43_v36 = vld [vmem:[%s1209_s0 + $0x100] sm:$0xff] }
  0x2a   :  { %324 = vmatmul.f32.gmra.mxu1 %v14_v37  ;;  %v94_v37 = vld [vmem:[%s1209_s0 + $0x298] sm:$0xff] }
  0x2b   :  { %160 = vmatmul.f32.gmra.mxu0 %v13_v38  ;;  %399 = vmatmul.f32.gmra.mxu3 %v64_v39 }
  0x31   :  { %235 = vmatmul.f32.gmra.mxu2 %v63_v40 }
  0x32   :  { %327 = vmatmul.f32.gmra.mxu1 %v16_v41 }
  0x33   :  { %163 = vmatmul.f32.gmra.mxu0 %v15_v42  ;;  %402 = vmatmul.f32.gmra.mxu3 %v66_v43  ;;  %v93_v42 = vld [vmem:[%s1209_s0 + $0x290] sm:$0xff]  ;;  %v46_v43 = vld [vmem:[%s1209_s0 + $0x118] sm:$0xff] }
  0x39   :  { %238 = vmatmul.f32.gmra.mxu2 %v65_v44 }
  0x3a   :  { %330 = vmatmul.f32.gmra.mxu1 %v18_v45 }
  0x3b   :  { %166 = vmatmul.f32.gmra.mxu0 %v17_v46  ;;  %405 = vmatmul.f32.gmra.mxu3 %v68_v47  ;;  %v45_v46 = vld [vmem:[%s1209_s0 + $0x110] sm:$0xff]  ;;  %v96_v47 = vld [vmem:[%s1209_s0 + $0x2a8] sm:$0xff] }
  0x41   :  { %241 = vmatmul.f32.gmra.mxu2 %v67_v48 }
  0x42   :  { %333 = vmatmul.f32.gmra.mxu1 %v20_v49 }
  0x43   :  { %169 = vmatmul.f32.gmra.mxu0 %v19_v50  ;;  %408 = vmatmul.f32.gmra.mxu3 %v70_v51 }
  0x49   :  { %244 = vmatmul.f32.gmra.mxu2 %v69_v52 }
  0x4a   :  { %336 = vmatmul.f32.gmra.mxu1 %v22_v53  ;;  %v95_v53 = vld [vmem:[%s1209_s0 + $0x2a0] sm:$0xff] }
  0x4b   :  { %172 = vmatmul.f32.gmra.mxu0 %v21_v54  ;;  %411 = vmatmul.f32.gmra.mxu3 %v72_v55  ;;  %v48_v54 = vld [vmem:[%s1209_s0 + $0x128] sm:$0xff] }
  0x51   :  { %247 = vmatmul.f32.gmra.mxu2 %v71_v56 }
  0x52   :  { %339 = vmatmul.f32.gmra.mxu1 %v24_v57 }
  0x53   :  { %175 = vmatmul.f32.gmra.mxu0 %v23_v58  ;;  %414 = vmatmul.f32.gmra.mxu3 %v74_v59  ;;  %v47_v58 = vld [vmem:[%s1209_s0 + $0x120] sm:$0xff]  ;;  %v98_v59 = vld [vmem:[%s1209_s0 + $0x2b8] sm:$0xff] }
  0x59   :  { %250 = vmatmul.f32.gmra.mxu2 %v73_v60 }
  0x5a   :  { %342 = vmatmul.f32.gmra.mxu1 %v26_v61 }
  0x5b   :  { %178 = vmatmul.f32.gmra.mxu0 %v25_v62  ;;  %417 = vmatmul.f32.gmra.mxu3 %v76_v63 }
  0x61   :  { %253 = vmatmul.f32.gmra.mxu2 %v75_v0 }
  0x62   :  { %345 = vmatmul.f32.gmra.mxu1 %v28_v1  ;;  %v97_v1 = vld [vmem:[%s1209_s0 + $0x2b0] sm:$0xff] }
  0x63   :  { %181 = vmatmul.f32.gmra.mxu0 %v27_v2  ;;  %420 = vmatmul.f32.gmra.mxu3 %v78_v3  ;;  %v50_v2 = vld [vmem:[%s1209_s0 + $0x138] sm:$0xff] }
  0x69   :  { %256 = vmatmul.f32.gmra.mxu2 %v77_v4 }
  0x6a   :  { %348 = vmatmul.f32.gmra.mxu1 %v30_v5 }
  0x6b   :  { %184 = vmatmul.f32.gmra.mxu0 %v29_v6  ;;  %423 = vmatmul.f32.gmra.mxu3 %v80_v7  ;;  %v49_v6 = vld [vmem:[%s1209_s0 + $0x130] sm:$0xff]  ;;  %v100_v7 = vld [vmem:[%s1209_s0 + $0x2c8] sm:$0xff] }
  0x71   :  { %259 = vmatmul.f32.gmra.mxu2 %v79_v8 }
  0x72   :  { %351 = vmatmul.f32.gmra.mxu1 %v32_v9 }
  0x73   :  { %187 = vmatmul.f32.gmra.mxu0 %v31_v10  ;;  %426 = vmatmul.f32.gmra.mxu3 %v82_v11 }
  0x79   :  { %262 = vmatmul.f32.gmra.mxu2 %v81_v12 }
  0x7a   :  { %354 = vmatmul.f32.gmra.mxu1 %v34_v13  ;;  %v99_v13 = vld [vmem:[%s1209_s0 + $0x2c0] sm:$0xff] }
  0x7b   :  { %190 = vmatmul.f32.gmra.mxu0 %v33_v14  ;;  %429 = vmatmul.f32.gmra.mxu3 %v84_v15  ;;  %v52_v14 = vld [vmem:[%s1209_s0 + $0x148] sm:$0xff] }
  0x81   :  { %265 = vmatmul.f32.gmra.mxu2 %v83_v16 }
  0x82   :  { %357 = vmatmul.f32.gmra.mxu1 %v36_v17 }
  0x83   :  { %193 = vmatmul.f32.gmra.mxu0 %v35_v18  ;;  %432 = vmatmul.f32.gmra.mxu3 %v86_v19  ;;  %v51_v18 = vld [vmem:[%s1209_s0 + $0x140] sm:$0xff]  ;;  %v102_v19 = vld [vmem:[%s1209_s0 + $0x2d8] sm:$0xff] }
  0x89   :  { %268 = vmatmul.f32.gmra.mxu2 %v85_v20 }
  0x8a   :  { %360 = vmatmul.f32.gmra.mxu1 %v38_v21 }
  0x8b   :  { %196 = vmatmul.f32.gmra.mxu0 %v37_v22  ;;  %435 = vmatmul.f32.gmra.mxu3 %v88_v23 }
  0x91   :  { %271 = vmatmul.f32.gmra.mxu2 %v87_v24 }
  0x92   :  { %363 = vmatmul.f32.gmra.mxu1 %v40_v25  ;;  %v101_v25 = vld [vmem:[%s1209_s0 + $0x2d0] sm:$0xff] }
  0x93   :  { %199 = vmatmul.f32.gmra.mxu0 %v39_v26  ;;  %438 = vmatmul.f32.gmra.mxu3 %v90_v27  ;;  %v54_v26 = vld [vmem:[%s1209_s0 + $0x158] sm:$0xff] }
  0x99   :  { %274 = vmatmul.f32.gmra.mxu2 %v89_v28 }
  0x9a   :  { %366 = vmatmul.f32.gmra.mxu1 %v42_v29 }
  0x9b   :  { %202 = vmatmul.f32.gmra.mxu0 %v41_v30  ;;  %441 = vmatmul.f32.gmra.mxu3 %v92_v31  ;;  %v53_v30 = vld [vmem:[%s1209_s0 + $0x150] sm:$0xff]  ;;  %v104_v31 = vld [vmem:[%s1209_s0 + $0x2e8] sm:$0xff] }
  0x9f   :  { %v322_v32 = vpop.f32.mrf.mxu1 }
  0xa0   :  { %v158_v35 = vpop.f32.mrf.mxu0 }
  0xa1   :  { %277 = vmatmul.f32.gmra.mxu2 %v91_v33  ;;  %v323_v38 = vadd.f32 %v322_v32, %v158_v35 }
  0xa2   :  { %369 = vmatmul.f32.gmra.mxu1 %v44_v34 }
  0xa3   :  { %v469_v39 = vmax.f32 %v323_v38, 0.0  ;;  %205 = vmatmul.f32.gmra.mxu0 %v43_v36  ;;  %444 = vmatmul.f32.gmra.mxu3 %v94_v37  ;;  %v103_v37 = vld [vmem:[%s1209_s0 + $0x2e0] sm:$0xff]  ;;  %v56_v38 = vld [vmem:[%s1209_s0 + $0x168] sm:$0xff] }
  0xa4   :  { %v919_v40 = vpop.f32.mrf.mxu2 }
  0xa5   :  { %519 = vst.msk [vmem:[%s1210_s2] sm:$0xff] %vm518_vm0, %v469_v39 }
  0xa6   :  { %v397_v44 = vpop.f32.mrf.mxu3 }
  0xa7   :  { %v325_v41 = vpop.f32.mrf.mxu1 }
  0xa8   :  { %v161_v45 = vpop.f32.mrf.mxu0 }
  0xa9   :  { %280 = vmatmul.f32.gmra.mxu2 %v93_v42  ;;  %v326_v48 = vadd.f32 %v325_v41, %v161_v45 }
  0xaa   :  { %372 = vmatmul.f32.gmra.mxu1 %v46_v43  ;;  %v55_v43 = vld [vmem:[%s1209_s0 + $0x160] sm:$0xff] }
  0xab   :  { %v470_v49 = vmax.f32 %v326_v48, 0.0  ;;  %208 = vmatmul.f32.gmra.mxu0 %v45_v46  ;;  %447 = vmatmul.f32.gmra.mxu3 %v96_v47 }
  0xac   :  { %v233_v50 = vpop.f32.mrf.mxu2 }
  0xad   :  { %520 = vst.msk [vmem:[%s1210_s2 + $0x8] sm:$0xff] %vm518_vm0, %v470_v49  ;;  %v398_v51 = vadd.f32 %v397_v44, %v233_v50  ;;  %v106_v44 = vld [vmem:[%s1209_s0 + $0x2f8] sm:$0xff]  ;;  %v105_v50 = vld [vmem:[%s1209_s0 + $0x2f0] sm:$0xff] }
  0xae   :  { %v400_v55 = vpop.f32.mrf.mxu3 }
  0xaf   :  { %v328_v52 = vpop.f32.mrf.mxu1  ;;  %v494_v56 = vmax.f32 %v398_v51, 0.0  ;;  %v58_v51 = vld [vmem:[%s1209_s0 + $0x178] sm:$0xff] }
  0xb0   :  { %v164_v57 = vpop.f32.mrf.mxu0 }
  0xb1   :  { %544 = vst.msk [vmem:[%s1210_s2 + $0xc8] sm:$0xff] %vm518_vm0, %v494_v56  ;;  %283 = vmatmul.f32.gmra.mxu2 %v95_v53  ;;  %v329_v60 = vadd.f32 %v328_v52, %v164_v57  ;;  %v108_v56 = vld [vmem:[%s1209_s0 + $0x308] sm:$0xff] }
  0xb2   :  { %375 = vmatmul.f32.gmra.mxu1 %v48_v54 }
  0xb3   :  { %v471_v61 = vmax.f32 %v329_v60, 0.0  ;;  %211 = vmatmul.f32.gmra.mxu0 %v47_v58  ;;  %450 = vmatmul.f32.gmra.mxu3 %v98_v59 }
  0xb4   :  { %v236_v62 = vpop.f32.mrf.mxu2 }
  0xb5   :  { %521 = vst.msk [vmem:[%s1210_s2 + $0x10] sm:$0xff] %vm518_vm0, %v471_v61  ;;  %v401_v63 = vadd.f32 %v400_v55, %v236_v62  ;;  %v57_v55 = vld [vmem:[%s1209_s0 + $0x170] sm:$0xff]  ;;  %v107_v62 = vld [vmem:[%s1209_s0 + $0x300] sm:$0xff] }
  0xb6   :  { %v403_v3 = vpop.f32.mrf.mxu3 }
  0xb7   :  { %v331_v0 = vpop.f32.mrf.mxu1  ;;  %v495_v4 = vmax.f32 %v401_v63, 0.0  ;;  %v60_v63 = vld [vmem:[%s1209_s0 + $0x188] sm:$0xff] }
  0xb8   :  { %v167_v5 = vpop.f32.mrf.mxu0 }
  0xb9   :  { %545 = vst.msk [vmem:[%s1210_s2 + $0xd0] sm:$0xff] %vm518_vm0, %v495_v4  ;;  %286 = vmatmul.f32.gmra.mxu2 %v97_v1  ;;  %v332_v8 = vadd.f32 %v331_v0, %v167_v5 }
  0xba   :  { %378 = vmatmul.f32.gmra.mxu1 %v50_v2 }
  0xbb   :  { %v472_v9 = vmax.f32 %v332_v8, 0.0  ;;  %214 = vmatmul.f32.gmra.mxu0 %v49_v6  ;;  %453 = vmatmul.f32.gmra.mxu3 %v100_v7 }
  0xbc   :  { %v239_v10 = vpop.f32.mrf.mxu2 }
  0xbd   :  { %522 = vst.msk [vmem:[%s1210_s2 + $0x18] sm:$0xff] %vm518_vm0, %v472_v9  ;;  %v404_v11 = vadd.f32 %v403_v3, %v239_v10 }
  0xbe   :  { %v406_v15 = vpop.f32.mrf.mxu3 }
  0xbf   :  { %v334_v12 = vpop.f32.mrf.mxu1  ;;  %v496_v16 = vmax.f32 %v404_v11, 0.0 }
  0xc0   :  { %v170_v17 = vpop.f32.mrf.mxu0 }
  0xc1   :  { %546 = vst.msk [vmem:[%s1210_s2 + $0xd8] sm:$0xff] %vm518_vm0, %v496_v16  ;;  %289 = vmatmul.f32.gmra.mxu2 %v99_v13  ;;  %v335_v20 = vadd.f32 %v334_v12, %v170_v17 }
  0xc2   :  { %381 = vmatmul.f32.gmra.mxu1 %v52_v14 }
  0xc3   :  { %v473_v21 = vmax.f32 %v335_v20, 0.0  ;;  %217 = vmatmul.f32.gmra.mxu0 %v51_v18  ;;  %456 = vmatmul.f32.gmra.mxu3 %v102_v19 }
  0xc4   :  { %v242_v22 = vpop.f32.mrf.mxu2 }
  0xc5   :  { %523 = vst.msk [vmem:[%s1210_s2 + $0x20] sm:$0xff] %vm518_vm0, %v473_v21  ;;  %v407_v23 = vadd.f32 %v406_v15, %v242_v22 }
  0xc6   :  { %v409_v27 = vpop.f32.mrf.mxu3 }
  0xc7   :  { %v337_v24 = vpop.f32.mrf.mxu1  ;;  %v497_v28 = vmax.f32 %v407_v23, 0.0 }
  0xc8   :  { %v173_v29 = vpop.f32.mrf.mxu0 }
  0xc9   :  { %547 = vst.msk [vmem:[%s1210_s2 + $0xe0] sm:$0xff] %vm518_vm0, %v497_v28  ;;  %292 = vmatmul.f32.gmra.mxu2 %v101_v25  ;;  %v338_v32 = vadd.f32 %v337_v24, %v173_v29 }
  0xca   :  { %384 = vmatmul.f32.gmra.mxu1 %v54_v26 }
  0xcb   :  { %v474_v33 = vmax.f32 %v338_v32, 0.0  ;;  %220 = vmatmul.f32.gmra.mxu0 %v53_v30  ;;  %459 = vmatmul.f32.gmra.mxu3 %v104_v31 }
  0xcc   :  { %v245_v34 = vpop.f32.mrf.mxu2 }
  0xcd   :  { %524 = vst.msk [vmem:[%s1210_s2 + $0x28] sm:$0xff] %vm518_vm0, %v474_v33  ;;  %v410_v35 = vadd.f32 %v409_v27, %v245_v34 }
  0xce   :  { %v412_v39 = vpop.f32.mrf.mxu3 }
  0xcf   :  { %v340_v36 = vpop.f32.mrf.mxu1  ;;  %v498_v41 = vmax.f32 %v410_v35, 0.0 }
  0xd0   :  { %v176_v42 = vpop.f32.mrf.mxu0 }
  0xd1   :  { %548 = vst.msk [vmem:[%s1210_s2 + $0xe8] sm:$0xff] %vm518_vm0, %v498_v41  ;;  %295 = vmatmul.f32.gmra.mxu2 %v103_v37  ;;  %v341_v45 = vadd.f32 %v340_v36, %v176_v42 }
  0xd2   :  { %387 = vmatmul.f32.gmra.mxu1 %v56_v38 }
  0xd3   :  { %v475_v46 = vmax.f32 %v341_v45, 0.0  ;;  %223 = vmatmul.f32.gmra.mxu0 %v55_v43  ;;  %462 = vmatmul.f32.gmra.mxu3 %v106_v44 }
  0xd4   :  { %v248_v47 = vpop.f32.mrf.mxu2 }
  0xd5   :  { %525 = vst.msk [vmem:[%s1210_s2 + $0x30] sm:$0xff] %vm518_vm0, %v475_v46  ;;  %v413_v48 = vadd.f32 %v412_v39, %v248_v47 }
  0xd6   :  { %v415_v52 = vpop.f32.mrf.mxu3 }
  0xd7   :  { %v343_v49 = vpop.f32.mrf.mxu1  ;;  %v499_v53 = vmax.f32 %v413_v48, 0.0 }
  0xd8   :  { %v179_v54 = vpop.f32.mrf.mxu0 }
  0xd9   :  { %549 = vst.msk [vmem:[%s1210_s2 + $0xf0] sm:$0xff] %vm518_vm0, %v499_v53  ;;  %298 = vmatmul.f32.gmra.mxu2 %v105_v50  ;;  %v344_v57 = vadd.f32 %v343_v49, %v179_v54 }
  0xda   :  { %390 = vmatmul.f32.gmra.mxu1 %v58_v51 }
  0xdb   :  { %v476_v58 = vmax.f32 %v344_v57, 0.0  ;;  %226 = vmatmul.f32.gmra.mxu0 %v57_v55  ;;  %465 = vmatmul.f32.gmra.mxu3 %v108_v56 }
  0xdc   :  { %v251_v59 = vpop.f32.mrf.mxu2 }
  0xdd   :  { %526 = vst.msk [vmem:[%s1210_s2 + $0x38] sm:$0xff] %vm518_vm0, %v476_v58  ;;  %v416_v60 = vadd.f32 %v415_v52, %v251_v59 }
  0xde   :  { %v418_v0 = vpop.f32.mrf.mxu3 }
  0xdf   :  { %v346_v61 = vpop.f32.mrf.mxu1  ;;  %v500_v1 = vmax.f32 %v416_v60, 0.0 }
  0xe0   :  { %v182_v2 = vpop.f32.mrf.mxu0 }
  0xe1   :  { %550 = vst.msk [vmem:[%s1210_s2 + $0xf8] sm:$0xff] %vm518_vm0, %v500_v1  ;;  %301 = vmatmul.f32.gmra.mxu2 %v107_v62  ;;  %v347_v3 = vadd.f32 %v346_v61, %v182_v2 }
  0xe2   :  { %393 = vmatmul.f32.gmra.mxu1 %v60_v63 }
  0xe3   :  { %v477_v4 = vmax.f32 %v347_v3, 0.0 }
  0xe4   :  { %v254_v5 = vpop.f32.mrf.mxu2 }
  0xe5   :  { %527 = vst.msk [vmem:[%s1210_s2 + $0x40] sm:$0xff] %vm518_vm0, %v477_v4  ;;  %v419_v6 = vadd.f32 %v418_v0, %v254_v5 }
  0xe6   :  { %v421_v8 = vpop.f32.mrf.mxu3 }
  0xe7   :  { %v349_v7 = vpop.f32.mrf.mxu1  ;;  %v501_v9 = vmax.f32 %v419_v6, 0.0 }
  0xe8   :  { %v185_v10 = vpop.f32.mrf.mxu0 }
  0xe9   :  { %551 = vst.msk [vmem:[%s1210_s2 + $0x100] sm:$0xff] %vm518_vm0, %v501_v9  ;;  %v350_v11 = vadd.f32 %v349_v7, %v185_v10 }
  0xeb   :  { %v478_v12 = vmax.f32 %v350_v11, 0.0 }
  0xec   :  { %v257_v13 = vpop.f32.mrf.mxu2 }
  0xed   :  { %528 = vst.msk [vmem:[%s1210_s2 + $0x48] sm:$0xff] %vm518_vm0, %v478_v12  ;;  %v422_v14 = vadd.f32 %v421_v8, %v257_v13 }
  0xee   :  { %v424_v16 = vpop.f32.mrf.mxu3 }
  0xef   :  { %v352_v15 = vpop.f32.mrf.mxu1  ;;  %v502_v17 = vmax.f32 %v422_v14, 0.0 }
  0xf0   :  { %v188_v18 = vpop.f32.mrf.mxu0 }
  0xf1   :  { %552 = vst.msk [vmem:[%s1210_s2 + $0x108] sm:$0xff] %vm518_vm0, %v502_v17  ;;  %v353_v19 = vadd.f32 %v352_v15, %v188_v18 }
  0xf3   :  { %v479_v20 = vmax.f32 %v353_v19, 0.0 }
  0xf4   :  { %v260_v21 = vpop.f32.mrf.mxu2 }
  0xf5   :  { %529 = vst.msk [vmem:[%s1210_s2 + $0x50] sm:$0xff] %vm518_vm0, %v479_v20  ;;  %v425_v22 = vadd.f32 %v424_v16, %v260_v21 }
  0xf6   :  { %v427_v24 = vpop.f32.mrf.mxu3 }
  0xf7   :  { %v355_v23 = vpop.f32.mrf.mxu1  ;;  %v503_v25 = vmax.f32 %v425_v22, 0.0 }
  0xf8   :  { %v191_v26 = vpop.f32.mrf.mxu0 }
  0xf9   :  { %553 = vst.msk [vmem:[%s1210_s2 + $0x110] sm:$0xff] %vm518_vm0, %v503_v25  ;;  %v356_v27 = vadd.f32 %v355_v23, %v191_v26 }
  0xfb   :  { %v480_v28 = vmax.f32 %v356_v27, 0.0 }
  0xfc   :  { %v263_v29 = vpop.f32.mrf.mxu2 }
  0xfd   :  { %530 = vst.msk [vmem:[%s1210_s2 + $0x58] sm:$0xff] %vm518_vm0, %v480_v28  ;;  %v428_v30 = vadd.f32 %v427_v24, %v263_v29 }
  0xfe   :  { %v430_v32 = vpop.f32.mrf.mxu3 }
  0xff   :  { %v358_v31 = vpop.f32.mrf.mxu1  ;;  %v504_v33 = vmax.f32 %v428_v30, 0.0 }
 0x100   :  { %v194_v34 = vpop.f32.mrf.mxu0 }
 0x101   :  { %554 = vst.msk [vmem:[%s1210_s2 + $0x118] sm:$0xff] %vm518_vm0, %v504_v33  ;;  %v359_v35 = vadd.f32 %v358_v31, %v194_v34 }
 0x103   :  { %v481_v36 = vmax.f32 %v359_v35, 0.0 }
 0x104   :  { %v266_v37 = vpop.f32.mrf.mxu2 }
 0x105   :  { %531 = vst.msk [vmem:[%s1210_s2 + $0x60] sm:$0xff] %vm518_vm0, %v481_v36  ;;  %v431_v38 = vadd.f32 %v430_v32, %v266_v37 }
 0x106   :  { %v433_v41 = vpop.f32.mrf.mxu3 }
 0x107   :  { %v361_v39 = vpop.f32.mrf.mxu1  ;;  %v505_v42 = vmax.f32 %v431_v38, 0.0 }
 0x108   :  { %v197_v43 = vpop.f32.mrf.mxu0 }
 0x109   :  { %555 = vst.msk [vmem:[%s1210_s2 + $0x120] sm:$0xff] %vm518_vm0, %v505_v42  ;;  %v362_v44 = vadd.f32 %v361_v39, %v197_v43 }
 0x10b   :  { %v482_v45 = vmax.f32 %v362_v44, 0.0 }
 0x10c   :  { %v269_v46 = vpop.f32.mrf.mxu2 }
 0x10d   :  { %532 = vst.msk [vmem:[%s1210_s2 + $0x68] sm:$0xff] %vm518_vm0, %v482_v45  ;;  %v434_v47 = vadd.f32 %v433_v41, %v269_v46 }
 0x10e   :  { %v436_v49 = vpop.f32.mrf.mxu3 }
 0x10f   :  { %v364_v48 = vpop.f32.mrf.mxu1  ;;  %v506_v50 = vmax.f32 %v434_v47, 0.0 }
 0x110   :  { %v200_v51 = vpop.f32.mrf.mxu0 }
 0x111   :  { %556 = vst.msk [vmem:[%s1210_s2 + $0x128] sm:$0xff] %vm518_vm0, %v506_v50  ;;  %v365_v52 = vadd.f32 %v364_v48, %v200_v51 }
 0x113   :  { %v483_v53 = vmax.f32 %v365_v52, 0.0 }
 0x114   :  { %v272_v54 = vpop.f32.mrf.mxu2 }
 0x115   :  { %533 = vst.msk [vmem:[%s1210_s2 + $0x70] sm:$0xff] %vm518_vm0, %v483_v53  ;;  %v437_v55 = vadd.f32 %v436_v49, %v272_v54 }
 0x116   :  { %v439_v57 = vpop.f32.mrf.mxu3 }
 0x117   :  { %v367_v56 = vpop.f32.mrf.mxu1  ;;  %v507_v58 = vmax.f32 %v437_v55, 0.0 }
 0x118   :  { %v203_v59 = vpop.f32.mrf.mxu0 }
 0x119   :  { %557 = vst.msk [vmem:[%s1210_s2 + $0x130] sm:$0xff] %vm518_vm0, %v507_v58  ;;  %v368_v60 = vadd.f32 %v367_v56, %v203_v59 }
 0x11b   :  { %v484_v61 = vmax.f32 %v368_v60, 0.0 }
 0x11c   :  { %v275_v62 = vpop.f32.mrf.mxu2 }
 0x11d   :  { %534 = vst.msk [vmem:[%s1210_s2 + $0x78] sm:$0xff] %vm518_vm0, %v484_v61  ;;  %v440_v63 = vadd.f32 %v439_v57, %v275_v62 }
 0x11e   :  { %v442_v1 = vpop.f32.mrf.mxu3 }
 0x11f   :  { %v370_v0 = vpop.f32.mrf.mxu1  ;;  %v508_v2 = vmax.f32 %v440_v63, 0.0 }
 0x120   :  { %v206_v3 = vpop.f32.mrf.mxu0 }
 0x121   :  { %558 = vst.msk [vmem:[%s1210_s2 + $0x138] sm:$0xff] %vm518_vm0, %v508_v2  ;;  %v371_v4 = vadd.f32 %v370_v0, %v206_v3 }
 0x123   :  { %v485_v5 = vmax.f32 %v371_v4, 0.0 }
 0x124   :  { %v278_v6 = vpop.f32.mrf.mxu2 }
 0x125   :  { %535 = vst.msk [vmem:[%s1210_s2 + $0x80] sm:$0xff] %vm518_vm0, %v485_v5  ;;  %v443_v7 = vadd.f32 %v442_v1, %v278_v6 }
 0x126   :  { %v445_v9 = vpop.f32.mrf.mxu3 }
 0x127   :  { %v373_v8 = vpop.f32.mrf.mxu1  ;;  %v509_v10 = vmax.f32 %v443_v7, 0.0 }
 0x128   :  { %v209_v11 = vpop.f32.mrf.mxu0 }
 0x129   :  { %559 = vst.msk [vmem:[%s1210_s2 + $0x140] sm:$0xff] %vm518_vm0, %v509_v10  ;;  %v374_v12 = vadd.f32 %v373_v8, %v209_v11 }
 0x12b   :  { %v486_v13 = vmax.f32 %v374_v12, 0.0 }
 0x12c   :  { %v281_v14 = vpop.f32.mrf.mxu2 }
 0x12d   :  { %536 = vst.msk [vmem:[%s1210_s2 + $0x88] sm:$0xff] %vm518_vm0, %v486_v13  ;;  %v446_v15 = vadd.f32 %v445_v9, %v281_v14 }
 0x12e   :  { %v448_v17 = vpop.f32.mrf.mxu3 }
 0x12f   :  { %v376_v16 = vpop.f32.mrf.mxu1  ;;  %v510_v18 = vmax.f32 %v446_v15, 0.0 }
 0x130   :  { %v212_v19 = vpop.f32.mrf.mxu0 }
 0x131   :  { %560 = vst.msk [vmem:[%s1210_s2 + $0x148] sm:$0xff] %vm518_vm0, %v510_v18  ;;  %v377_v20 = vadd.f32 %v376_v16, %v212_v19 }
 0x133   :  { %v487_v21 = vmax.f32 %v377_v20, 0.0 }
 0x134   :  { %v284_v22 = vpop.f32.mrf.mxu2 }
 0x135   :  { %537 = vst.msk [vmem:[%s1210_s2 + $0x90] sm:$0xff] %vm518_vm0, %v487_v21  ;;  %v449_v23 = vadd.f32 %v448_v17, %v284_v22 }
 0x136   :  { %v451_v25 = vpop.f32.mrf.mxu3 }
 0x137   :  { %v379_v24 = vpop.f32.mrf.mxu1  ;;  %v511_v26 = vmax.f32 %v449_v23, 0.0 }
 0x138   :  { %v215_v27 = vpop.f32.mrf.mxu0 }
 0x139   :  { %561 = vst.msk [vmem:[%s1210_s2 + $0x150] sm:$0xff] %vm518_vm0, %v511_v26  ;;  %v380_v28 = vadd.f32 %v379_v24, %v215_v27 }
 0x13b   :  { %v488_v29 = vmax.f32 %v380_v28, 0.0 }
 0x13c   :  { %v287_v30 = vpop.f32.mrf.mxu2 }
 0x13d   :  { %538 = vst.msk [vmem:[%s1210_s2 + $0x98] sm:$0xff] %vm518_vm0, %v488_v29  ;;  %v452_v31 = vadd.f32 %v451_v25, %v287_v30 }
 0x13e   :  { %v454_v33 = vpop.f32.mrf.mxu3 }
 0x13f   :  { %v382_v32 = vpop.f32.mrf.mxu1  ;;  %v512_v34 = vmax.f32 %v452_v31, 0.0 }
 0x140   :  { %v218_v35 = vpop.f32.mrf.mxu0 }
 0x141   :  { %562 = vst.msk [vmem:[%s1210_s2 + $0x158] sm:$0xff] %vm518_vm0, %v512_v34  ;;  %v383_v36 = vadd.f32 %v382_v32, %v218_v35 }
 0x143   :  { %v489_v37 = vmax.f32 %v383_v36, 0.0 }
 0x144   :  { %v290_v38 = vpop.f32.mrf.mxu2 }
 0x145   :  { %539 = vst.msk [vmem:[%s1210_s2 + $0xa0] sm:$0xff] %vm518_vm0, %v489_v37  ;;  %v455_v39 = vadd.f32 %v454_v33, %v290_v38 }
 0x146   :  { %v457_v42 = vpop.f32.mrf.mxu3 }
 0x147   :  { %v385_v41 = vpop.f32.mrf.mxu1  ;;  %v513_v43 = vmax.f32 %v455_v39, 0.0 }
 0x148   :  { %v221_v44 = vpop.f32.mrf.mxu0 }
 0x149   :  { %563 = vst.msk [vmem:[%s1210_s2 + $0x160] sm:$0xff] %vm518_vm0, %v513_v43  ;;  %v386_v45 = vadd.f32 %v385_v41, %v221_v44 }
 0x14b   :  { %v490_v46 = vmax.f32 %v386_v45, 0.0 }
 0x14c   :  { %v293_v47 = vpop.f32.mrf.mxu2 }
 0x14d   :  { %540 = vst.msk [vmem:[%s1210_s2 + $0xa8] sm:$0xff] %vm518_vm0, %v490_v46  ;;  %v458_v48 = vadd.f32 %v457_v42, %v293_v47 }
 0x14e   :  { %v460_v50 = vpop.f32.mrf.mxu3 }
 0x14f   :  { %v388_v49 = vpop.f32.mrf.mxu1  ;;  %v514_v51 = vmax.f32 %v458_v48, 0.0 }
 0x150   :  { %v224_v52 = vpop.f32.mrf.mxu0 }
 0x151   :  { %564 = vst.msk [vmem:[%s1210_s2 + $0x168] sm:$0xff] %vm518_vm0, %v514_v51  ;;  %v389_v53 = vadd.f32 %v388_v49, %v224_v52 }
 0x153   :  { %v491_v54 = vmax.f32 %v389_v53, 0.0 }
 0x154   :  { %v296_v55 = vpop.f32.mrf.mxu2 }
 0x155   :  { %541 = vst.msk [vmem:[%s1210_s2 + $0xb0] sm:$0xff] %vm518_vm0, %v491_v54  ;;  %v461_v56 = vadd.f32 %v460_v50, %v296_v55 }
 0x156   :  { %v463_v60 = vpop.f32.mrf.mxu3 }
 0x157   :  { %v391_v57 = vpop.f32.mrf.mxu1  ;;  %v515_v58 = vmax.f32 %v461_v56, 0.0 }
 0x158   :  { %v227_v59 = vpop.f32.mrf.mxu0 }
 0x159   :  { %565 = vst.msk [vmem:[%s1210_s2 + $0x170] sm:$0xff] %vm518_vm0, %v515_v58  ;;  %v392_v61 = vadd.f32 %v391_v57, %v227_v59 }
 0x15b   :  { %v492_v62 = vmax.f32 %v392_v61, 0.0 }
 0x15c   :  { %v299_v63 = vpop.f32.mrf.mxu2 }
 0x15d   :  { %542 = vst.msk [vmem:[%s1210_s2 + $0xb8] sm:$0xff] %vm518_vm0, %v492_v62  ;;  %v464_v0 = vadd.f32 %v463_v60, %v299_v63 }
 0x15e   :  { %v466_v5 = vpop.f32.mrf.mxu3 }
 0x15f   :  { %v394_v1 = vpop.f32.mrf.mxu1  ;;  %v516_v2 = vmax.f32 %v464_v0, 0.0 }
 0x160   :  { %v395_v3 = vadd.f32 %v394_v1, %v919_v40 }
 0x161   :  { %566 = vst.msk [vmem:[%s1210_s2 + $0x178] sm:$0xff] %vm518_vm0, %v516_v2 }
 0x162   :  { %v493_v4 = vmax.f32 %v395_v3, 0.0 }
 0x164   :  { %543 = vst.msk [vmem:[%s1210_s2 + $0xc0] sm:$0xff] %vm518_vm0, %v493_v4  ;;  %v302_v6 = vpop.f32.mrf.mxu2 }
 0x165   :  { %v467_v7 = vadd.f32 %v466_v5, %v302_v6 }
 0x167   :  { %v517_v8 = vmax.f32 %v467_v7, 0.0 }
 0x169   :  { %567 = vst.msk [vmem:[%s1210_s2 + $0x180] sm:$0xff] %vm518_vm0, %v517_v8 }

// kernel: decoder_forward.7
= control target key start
LH: loop header
LB: loop body
LE: loop exit
PB: predicated region body
PF: predicated region fallthrough
CT: control target
= control target key end

     0   :  { %vm1808_vm0 = vcmask 7168   ;;  %s4276_s1 = inlined_call_operand.vmem [shape: f32[128,1], index: 1, kind: input, shape index: {}]   ;;  %s4277_s0 = inlined_call_operand.vmem [shape: f32[1568,128], index: 0, kind: input, shape index: {}]   ;;  %s4278_s2 = inlined_call_operand.vmem [shape: f32[1568,1], index: 2, kind: output, shape index: {}]  }
   0x1   :  { %v222_v0 = vld [vmem:[%s4276_s1 + $0x78] sm:$0xff]  ;;  %v221_v1 = vld [vmem:[%s4276_s1 + $0x70] sm:$0xff]  ;;  %v220_v2 = vld [vmem:[%s4276_s1 + $0x68] sm:$0xff] }
   0x2   :  { %2010 = vmatpush.msra.mxu2 %v222_v0  ;;  %2011 = vmatpush.msra.mxu3 %v222_v0  ;;  %v219_v3 = vld [vmem:[%s4276_s1 + $0x60] sm:$0xff]  ;;  %v218_v4 = vld [vmem:[%s4276_s1 + $0x58] sm:$0xff]  ;;  %v217_v5 = vld [vmem:[%s4276_s1 + $0x50] sm:$0xff] }
   0x3   :  { %223 = vmatpush.msra.mxu0 %v222_v0  ;;  %2009 = vmatpush.msra.mxu1 %v222_v0  ;;  %v216_v6 = vld [vmem:[%s4276_s1 + $0x48] sm:$0xff]  ;;  %v215_v7 = vld [vmem:[%s4276_s1 + $0x40] sm:$0xff]  ;;  %v214_v8 = vld [vmem:[%s4276_s1 + $0x38] sm:$0xff] }
   0x4   :  { %2013 = vmatpush.msra.mxu2 %v221_v1  ;;  %2014 = vmatpush.msra.mxu3 %v221_v1  ;;  %v213_v9 = vld [vmem:[%s4276_s1 + $0x30] sm:$0xff]  ;;  %v212_v10 = vld [vmem:[%s4276_s1 + $0x28] sm:$0xff]  ;;  %v211_v11 = vld [vmem:[%s4276_s1 + $0x20] sm:$0xff] }
   0x5   :  { %224 = vmatpush.msra.mxu0 %v221_v1  ;;  %2012 = vmatpush.msra.mxu1 %v221_v1  ;;  %v210_v12 = vld [vmem:[%s4276_s1 + $0x18] sm:$0xff]  ;;  %v209_v13 = vld [vmem:[%s4276_s1 + $0x10] sm:$0xff]  ;;  %v208_v14 = vld [vmem:[%s4276_s1 + $0x8] sm:$0xff] }
   0x6   :  { %2016 = vmatpush.msra.mxu2 %v220_v2  ;;  %2017 = vmatpush.msra.mxu3 %v220_v2  ;;  %v207_v15 = vld [vmem:[%s4276_s1] sm:$0xff]  ;;  %v109_v16 = vld [vmem:[%s4277_s0 + $0x310] sm:$0xff]  ;;  %v158_v17 = vld [vmem:[%s4277_s0 + $0x498] sm:$0xff] }
   0x7   :  { %225 = vmatpush.msra.mxu0 %v220_v2  ;;  %2015 = vmatpush.msra.mxu1 %v220_v2  ;;  %v11_v18 = vld [vmem:[%s4277_s0] sm:$0xff]  ;;  %v60_v19 = vld [vmem:[%s4277_s0 + $0x188] sm:$0xff]  ;;  %v110_v20 = vld [vmem:[%s4277_s0 + $0x318] sm:$0xff] }
   0x8   :  { %2019 = vmatpush.msra.mxu2 %v219_v3  ;;  %2020 = vmatpush.msra.mxu3 %v219_v3  ;;  %v159_v21 = vld [vmem:[%s4277_s0 + $0x4a0] sm:$0xff]  ;;  %v12_v22 = vld [vmem:[%s4277_s0 + $0x8] sm:$0xff]  ;;  %v61_v23 = vld [vmem:[%s4277_s0 + $0x190] sm:$0xff] }
   0x9   :  { %226 = vmatpush.msra.mxu0 %v219_v3  ;;  %2018 = vmatpush.msra.mxu1 %v219_v3  ;;  %v111_v24 = vld [vmem:[%s4277_s0 + $0x320] sm:$0xff]  ;;  %v160_v25 = vld [vmem:[%s4277_s0 + $0x4a8] sm:$0xff]  ;;  %v13_v26 = vld [vmem:[%s4277_s0 + $0x10] sm:$0xff] }
   0xa   :  { %2022 = vmatpush.msra.mxu2 %v218_v4  ;;  %2023 = vmatpush.msra.mxu3 %v218_v4  ;;  %v62_v27 = vld [vmem:[%s4277_s0 + $0x198] sm:$0xff]  ;;  %v112_v28 = vld [vmem:[%s4277_s0 + $0x328] sm:$0xff]  ;;  %v161_v29 = vld [vmem:[%s4277_s0 + $0x4b0] sm:$0xff] }
   0xb   :  { %227 = vmatpush.msra.mxu0 %v218_v4  ;;  %2021 = vmatpush.msra.mxu1 %v218_v4  ;;  %v14_v30 = vld [vmem:[%s4277_s0 + $0x18] sm:$0xff]  ;;  %v63_v31 = vld [vmem:[%s4277_s0 + $0x1a0] sm:$0xff]  ;;  %v113_v32 = vld [vmem:[%s4277_s0 + $0x330] sm:$0xff] }
   0xc   :  { %2025 = vmatpush.msra.mxu2 %v217_v5  ;;  %2026 = vmatpush.msra.mxu3 %v217_v5  ;;  %v162_v33 = vld [vmem:[%s4277_s0 + $0x4b8] sm:$0xff]  ;;  %v15_v34 = vld [vmem:[%s4277_s0 + $0x20] sm:$0xff]  ;;  %v64_v35 = vld [vmem:[%s4277_s0 + $0x1a8] sm:$0xff] }
   0xd   :  { %228 = vmatpush.msra.mxu0 %v217_v5  ;;  %2024 = vmatpush.msra.mxu1 %v217_v5  ;;  %v114_v36 = vld [vmem:[%s4277_s0 + $0x338] sm:$0xff]  ;;  %v163_v37 = vld [vmem:[%s4277_s0 + $0x4c0] sm:$0xff]  ;;  %v16_v38 = vld [vmem:[%s4277_s0 + $0x28] sm:$0xff] }
   0xe   :  { %2028 = vmatpush.msra.mxu2 %v216_v6  ;;  %2029 = vmatpush.msra.mxu3 %v216_v6  ;;  %v65_v39 = vld [vmem:[%s4277_s0 + $0x1b0] sm:$0xff]  ;;  %v115_v40 = vld [vmem:[%s4277_s0 + $0x340] sm:$0xff]  ;;  %v164_v41 = vld [vmem:[%s4277_s0 + $0x4c8] sm:$0xff] }
   0xf   :  { %229 = vmatpush.msra.mxu0 %v216_v6  ;;  %2027 = vmatpush.msra.mxu1 %v216_v6  ;;  %v17_v42 = vld [vmem:[%s4277_s0 + $0x30] sm:$0xff]  ;;  %v66_v43 = vld [vmem:[%s4277_s0 + $0x1b8] sm:$0xff]  ;;  %v116_v44 = vld [vmem:[%s4277_s0 + $0x348] sm:$0xff] }
  0x10   :  { %2031 = vmatpush.msra.mxu2 %v215_v7  ;;  %2032 = vmatpush.msra.mxu3 %v215_v7  ;;  %v165_v45 = vld [vmem:[%s4277_s0 + $0x4d0] sm:$0xff]  ;;  %v18_v46 = vld [vmem:[%s4277_s0 + $0x38] sm:$0xff]  ;;  %v67_v47 = vld [vmem:[%s4277_s0 + $0x1c0] sm:$0xff] }
  0x11   :  { %230 = vmatpush.msra.mxu0 %v215_v7  ;;  %2030 = vmatpush.msra.mxu1 %v215_v7  ;;  %v117_v48 = vld [vmem:[%s4277_s0 + $0x350] sm:$0xff]  ;;  %v166_v49 = vld [vmem:[%s4277_s0 + $0x4d8] sm:$0xff]  ;;  %v19_v50 = vld [vmem:[%s4277_s0 + $0x40] sm:$0xff] }
  0x12   :  { %2034 = vmatpush.msra.mxu2 %v214_v8  ;;  %2035 = vmatpush.msra.mxu3 %v214_v8  ;;  %v68_v51 = vld [vmem:[%s4277_s0 + $0x1c8] sm:$0xff]  ;;  %v118_v52 = vld [vmem:[%s4277_s0 + $0x358] sm:$0xff]  ;;  %v167_v53 = vld [vmem:[%s4277_s0 + $0x4e0] sm:$0xff] }
  0x13   :  { %231 = vmatpush.msra.mxu0 %v214_v8  ;;  %2033 = vmatpush.msra.mxu1 %v214_v8  ;;  %v20_v54 = vld [vmem:[%s4277_s0 + $0x48] sm:$0xff]  ;;  %v69_v55 = vld [vmem:[%s4277_s0 + $0x1d0] sm:$0xff]  ;;  %v119_v56 = vld [vmem:[%s4277_s0 + $0x360] sm:$0xff] }
  0x14   :  { %2037 = vmatpush.msra.mxu2 %v213_v9  ;;  %2038 = vmatpush.msra.mxu3 %v213_v9  ;;  %v168_v57 = vld [vmem:[%s4277_s0 + $0x4e8] sm:$0xff]  ;;  %v21_v58 = vld [vmem:[%s4277_s0 + $0x50] sm:$0xff]  ;;  %v70_v59 = vld [vmem:[%s4277_s0 + $0x1d8] sm:$0xff] }
  0x15   :  { %232 = vmatpush.msra.mxu0 %v213_v9  ;;  %2036 = vmatpush.msra.mxu1 %v213_v9  ;;  %v120_v60 = vld [vmem:[%s4277_s0 + $0x368] sm:$0xff]  ;;  %v169_v61 = vld [vmem:[%s4277_s0 + $0x4f0] sm:$0xff]  ;;  %v22_v62 = vld [vmem:[%s4277_s0 + $0x58] sm:$0xff] }
  0x16   :  { %2040 = vmatpush.msra.mxu2 %v212_v10  ;;  %2041 = vmatpush.msra.mxu3 %v212_v10  ;;  %v71_v63 = vld [vmem:[%s4277_s0 + $0x1e0] sm:$0xff]  ;;  %v121_v0 = vld [vmem:[%s4277_s0 + $0x370] sm:$0xff]  ;;  %v170_v1 = vld [vmem:[%s4277_s0 + $0x4f8] sm:$0xff] }
  0x17   :  { %233 = vmatpush.msra.mxu0 %v212_v10  ;;  %2039 = vmatpush.msra.mxu1 %v212_v10  ;;  %v23_v2 = vld [vmem:[%s4277_s0 + $0x60] sm:$0xff]  ;;  %v72_v3 = vld [vmem:[%s4277_s0 + $0x1e8] sm:$0xff]  ;;  %v122_v4 = vld [vmem:[%s4277_s0 + $0x378] sm:$0xff] }
  0x18   :  { %2043 = vmatpush.msra.mxu2 %v211_v11  ;;  %2044 = vmatpush.msra.mxu3 %v211_v11  ;;  %v171_v5 = vld [vmem:[%s4277_s0 + $0x500] sm:$0xff]  ;;  %v24_v6 = vld [vmem:[%s4277_s0 + $0x68] sm:$0xff]  ;;  %v73_v7 = vld [vmem:[%s4277_s0 + $0x1f0] sm:$0xff] }
  0x19   :  { %234 = vmatpush.msra.mxu0 %v211_v11  ;;  %2042 = vmatpush.msra.mxu1 %v211_v11  ;;  %v123_v8 = vld [vmem:[%s4277_s0 + $0x380] sm:$0xff]  ;;  %v172_v9 = vld [vmem:[%s4277_s0 + $0x508] sm:$0xff]  ;;  %v25_v10 = vld [vmem:[%s4277_s0 + $0x70] sm:$0xff] }
  0x1a   :  { %2046 = vmatpush.msra.mxu2 %v210_v12  ;;  %2047 = vmatpush.msra.mxu3 %v210_v12  ;;  %v74_v11 = vld [vmem:[%s4277_s0 + $0x1f8] sm:$0xff] }
  0x1b   :  { %235 = vmatpush.msra.mxu0 %v210_v12  ;;  %2045 = vmatpush.msra.mxu1 %v210_v12  ;;  %v124_v12 = vld [vmem:[%s4277_s0 + $0x388] sm:$0xff] }
  0x1c   :  { %2049 = vmatpush.msra.mxu2 %v209_v13  ;;  %2050 = vmatpush.msra.mxu3 %v209_v13 }
  0x1d   :  { %236 = vmatpush.msra.mxu0 %v209_v13  ;;  %2048 = vmatpush.msra.mxu1 %v209_v13  ;;  %v173_v13 = vld [vmem:[%s4277_s0 + $0x510] sm:$0xff] }
  0x1e   :  { %2052 = vmatpush.msra.mxu2 %v208_v14  ;;  %2053 = vmatpush.msra.mxu3 %v208_v14 }
  0x1f   :  { %237 = vmatpush.msra.mxu0 %v208_v14  ;;  %2051 = vmatpush.msra.mxu1 %v208_v14  ;;  %v26_v14 = vld [vmem:[%s4277_s0 + $0x78] sm:$0xff] }
  0x20   :  { %2055 = vmatpush.msra.mxu2 %v207_v15  ;;  %2056 = vmatpush.msra.mxu3 %v207_v15 }
  0x21   :  { %533 = vmatmul.f32.vlgmr.msra.gmra.mxu2 %v109_v16  ;;  %680 = vmatmul.f32.vlgmr.msra.gmra.mxu3 %v158_v17  ;;  %v125_v16 = vld [vmem:[%s4277_s0 + $0x390] sm:$0xff]  ;;  %v174_v17 = vld [vmem:[%s4277_s0 + $0x518] sm:$0xff] }
  0x22   :  { %238 = vmatpush.msra.mxu0 %v207_v15  ;;  %2054 = vmatpush.msra.mxu1 %v207_v15  ;;  %v75_v15 = vld [vmem:[%s4277_s0 + $0x200] sm:$0xff] }
  0x23   :  { %239 = vmatmul.f32.vlgmr.msra.gmra.mxu0 %v11_v18  ;;  %386 = vmatmul.f32.vlgmr.msra.gmra.mxu1 %v60_v19 }
  0x29   :  { %536 = vmatmul.f32.gmra.mxu2 %v110_v20  ;;  %683 = vmatmul.f32.gmra.mxu3 %v159_v21  ;;  %v27_v20 = vld [vmem:[%s4277_s0 + $0x80] sm:$0xff]  ;;  %v76_v21 = vld [vmem:[%s4277_s0 + $0x208] sm:$0xff] }
  0x2b   :  { %242 = vmatmul.f32.gmra.mxu0 %v12_v22  ;;  %389 = vmatmul.f32.gmra.mxu1 %v61_v23 }
  0x31   :  { %539 = vmatmul.f32.gmra.mxu2 %v111_v24  ;;  %686 = vmatmul.f32.gmra.mxu3 %v160_v25 }
  0x33   :  { %245 = vmatmul.f32.gmra.mxu0 %v13_v26  ;;  %392 = vmatmul.f32.gmra.mxu1 %v62_v27 }
  0x39   :  { %542 = vmatmul.f32.gmra.mxu2 %v112_v28  ;;  %689 = vmatmul.f32.gmra.mxu3 %v161_v29 }
  0x3b   :  { %248 = vmatmul.f32.gmra.mxu0 %v14_v30  ;;  %395 = vmatmul.f32.gmra.mxu1 %v63_v31  ;;  %v126_v30 = vld [vmem:[%s4277_s0 + $0x398] sm:$0xff]  ;;  %v175_v31 = vld [vmem:[%s4277_s0 + $0x520] sm:$0xff] }
  0x41   :  { %545 = vmatmul.f32.gmra.mxu2 %v113_v32  ;;  %692 = vmatmul.f32.gmra.mxu3 %v162_v33 }
  0x43   :  { %251 = vmatmul.f32.gmra.mxu0 %v15_v34  ;;  %398 = vmatmul.f32.gmra.mxu1 %v64_v35 }
  0x49   :  { %548 = vmatmul.f32.gmra.mxu2 %v114_v36  ;;  %695 = vmatmul.f32.gmra.mxu3 %v163_v37  ;;  %v28_v36 = vld [vmem:[%s4277_s0 + $0x88] sm:$0xff]  ;;  %v77_v37 = vld [vmem:[%s4277_s0 + $0x210] sm:$0xff] }
  0x4b   :  { %254 = vmatmul.f32.gmra.mxu0 %v16_v38  ;;  %401 = vmatmul.f32.gmra.mxu1 %v65_v39 }
  0x51   :  { %551 = vmatmul.f32.gmra.mxu2 %v115_v40  ;;  %698 = vmatmul.f32.gmra.mxu3 %v164_v41 }
  0x53   :  { %257 = vmatmul.f32.gmra.mxu0 %v17_v42  ;;  %404 = vmatmul.f32.gmra.mxu1 %v66_v43 }
  0x59   :  { %554 = vmatmul.f32.gmra.mxu2 %v116_v44  ;;  %701 = vmatmul.f32.gmra.mxu3 %v165_v45 }
  0x5b   :  { %260 = vmatmul.f32.gmra.mxu0 %v18_v46  ;;  %407 = vmatmul.f32.gmra.mxu1 %v67_v47 }
  0x61   :  { %557 = vmatmul.f32.gmra.mxu2 %v117_v48  ;;  %704 = vmatmul.f32.gmra.mxu3 %v166_v49 }
  0x63   :  { %263 = vmatmul.f32.gmra.mxu0 %v19_v50  ;;  %410 = vmatmul.f32.gmra.mxu1 %v68_v51  ;;  %v127_v50 = vld [vmem:[%s4277_s0 + $0x3a0] sm:$0xff]  ;;  %v176_v51 = vld [vmem:[%s4277_s0 + $0x528] sm:$0xff] }
  0x69   :  { %560 = vmatmul.f32.gmra.mxu2 %v118_v52  ;;  %707 = vmatmul.f32.gmra.mxu3 %v167_v53 }
  0x6b   :  { %266 = vmatmul.f32.gmra.mxu0 %v20_v54  ;;  %413 = vmatmul.f32.gmra.mxu1 %v69_v55 }
  0x71   :  { %563 = vmatmul.f32.gmra.mxu2 %v119_v56  ;;  %710 = vmatmul.f32.gmra.mxu3 %v168_v57 }
  0x73   :  { %269 = vmatmul.f32.gmra.mxu0 %v21_v58  ;;  %416 = vmatmul.f32.gmra.mxu1 %v70_v59  ;;  %v29_v59 = vld [vmem:[%s4277_s0 + $0x90] sm:$0xff] }
  0x79   :  { %566 = vmatmul.f32.gmra.mxu2 %v120_v60  ;;  %713 = vmatmul.f32.gmra.mxu3 %v169_v61  ;;  %v78_v60 = vld [vmem:[%s4277_s0 + $0x218] sm:$0xff] }
  0x7b   :  { %272 = vmatmul.f32.gmra.mxu0 %v22_v62  ;;  %419 = vmatmul.f32.gmra.mxu1 %v71_v63 }
  0x81   :  { %569 = vmatmul.f32.gmra.mxu2 %v121_v0  ;;  %716 = vmatmul.f32.gmra.mxu3 %v170_v1 }
  0x83   :  { %275 = vmatmul.f32.gmra.mxu0 %v23_v2  ;;  %422 = vmatmul.f32.gmra.mxu1 %v72_v3 }
  0x89   :  { %572 = vmatmul.f32.gmra.mxu2 %v122_v4  ;;  %719 = vmatmul.f32.gmra.mxu3 %v171_v5 }
  0x8b   :  { %278 = vmatmul.f32.gmra.mxu0 %v24_v6  ;;  %425 = vmatmul.f32.gmra.mxu1 %v73_v7 }
  0x91   :  { %575 = vmatmul.f32.gmra.mxu2 %v123_v8  ;;  %722 = vmatmul.f32.gmra.mxu3 %v172_v9 }
  0x93   :  { %281 = vmatmul.f32.gmra.mxu0 %v25_v10  ;;  %428 = vmatmul.f32.gmra.mxu1 %v74_v11  ;;  %v128_v11 = vld [vmem:[%s4277_s0 + $0x3a8] sm:$0xff] }
  0x99   :  { %578 = vmatmul.f32.gmra.mxu2 %v124_v12  ;;  %725 = vmatmul.f32.gmra.mxu3 %v173_v13  ;;  %v177_v12 = vld [vmem:[%s4277_s0 + $0x530] sm:$0xff] }
  0x9b   :  { %284 = vmatmul.f32.gmra.mxu0 %v26_v14  ;;  %431 = vmatmul.f32.gmra.mxu1 %v75_v15 }
  0xa0   :  { %v240_v18 = vpop.f32.mrf.mxu0  ;;  %v387_v19 = vpop.f32.mrf.mxu1 }
  0xa1   :  { %581 = vmatmul.f32.gmra.mxu2 %v125_v16  ;;  %728 = vmatmul.f32.gmra.mxu3 %v174_v17  ;;  %v828_v22 = vsub.f32 0.0, %v240_v18  ;;  %v877_v23 = vsub.f32 0.0, %v387_v19 }
  0xa3   :  { %v1024_v24 = vmul.f32 1.442695, %v828_v22  ;;  %v1122_v25 = vmul.f32 1.442695, %v877_v23  ;;  %287 = vmatmul.f32.gmra.mxu0 %v27_v20  ;;  %434 = vmatmul.f32.gmra.mxu1 %v76_v21  ;;  %v30_v21 = vld [vmem:[%s4277_s0 + $0x98] sm:$0xff]  ;;  %v79_v22 = vld [vmem:[%s4277_s0 + $0x220] sm:$0xff] }
  0xa4   :  { %v534_v26 = vpop.f32.mrf.mxu2  ;;  %v681_v27 = vpop.f32.mrf.mxu3 }
  0xa5   :  { %2057 = vpow2.f32 %v1024_v24  ;;  %v926_v28 = vsub.f32 0.0, %v534_v26  ;;  %v975_v29 = vsub.f32 0.0, %v681_v27 }
  0xa6   :  { %2059 = vpow2.f32 %v1122_v25 }
  0xa7   :  { %v1220_v32 = vmul.f32 1.442695, %v926_v28  ;;  %v1318_v33 = vmul.f32 1.442695, %v975_v29 }
  0xa8   :  { %v243_v34 = vpop.f32.mrf.mxu0  ;;  %v390_v35 = vpop.f32.mrf.mxu1 }
  0xa9   :  { %2061 = vpow2.f32 %v1220_v32  ;;  %584 = vmatmul.f32.gmra.mxu2 %v126_v30  ;;  %731 = vmatmul.f32.gmra.mxu3 %v175_v31  ;;  %v829_v38 = vsub.f32 0.0, %v243_v34  ;;  %v878_v39 = vsub.f32 0.0, %v390_v35 }
  0xaa   :  { %2063 = vpow2.f32 %v1318_v33 }
  0xab   :  { %v2058_v40 = vpop.eup %2057  ;;  %v1026_v41 = vmul.f32 1.442695, %v829_v38  ;;  %290 = vmatmul.f32.gmra.mxu0 %v28_v36  ;;  %437 = vmatmul.f32.gmra.mxu1 %v77_v37  ;;  %v1124_v44 = vmul.f32 1.442695, %v878_v39  ;;  %v129_v39 = vld [vmem:[%s4277_s0 + $0x3b0] sm:$0xff] }
  0xac   :  { %v2060_v42 = vpop.eup %2059  ;;  %v1416_v43 = vadd.f32 1.0, %v2058_v40  ;;  %v537_v45 = vpop.f32.mrf.mxu2  ;;  %v178_v40 = vld [vmem:[%s4277_s0 + $0x538] sm:$0xff] }
  0xad   :  { %v684_v46 = vpop.f32.mrf.mxu3  ;;  %v1465_v47 = vadd.f32 1.0, %v2060_v42  ;;  %2065 = vpow2.f32 %v1026_v41  ;;  %v927_v48 = vsub.f32 0.0, %v537_v45 }
  0xae   :  { %v976_v49 = vsub.f32 0.0, %v684_v46  ;;  %2067 = vrcp.f32 %v1416_v43 }
  0xaf   :  { %v2062_v52 = vpop.eup %2061  ;;  %2069 = vrcp.f32 %v1465_v47  ;;  %v1222_v53 = vmul.f32 1.442695, %v927_v48  ;;  %v31_v47 = vld [vmem:[%s4277_s0 + $0xa0] sm:$0xff]  ;;  %v80_v48 = vld [vmem:[%s4277_s0 + $0x228] sm:$0xff] }
  0xb0   :  { %v2064_v54 = vpop.eup %2063  ;;  %v1514_v55 = vadd.f32 1.0, %v2062_v52  ;;  %2071 = vpow2.f32 %v1124_v44  ;;  %v1320_v56 = vmul.f32 1.442695, %v976_v49  ;;  %v246_v57 = vpop.f32.mrf.mxu0 }
  0xb1   :  { %v393_v58 = vpop.f32.mrf.mxu1  ;;  %v1563_v61 = vadd.f32 1.0, %v2064_v54  ;;  %2073 = vpow2.f32 %v1222_v53  ;;  %587 = vmatmul.f32.gmra.mxu2 %v127_v50  ;;  %734 = vmatmul.f32.gmra.mxu3 %v176_v51  ;;  %v830_v62 = vsub.f32 0.0, %v246_v57 }
  0xb2   :  { %v879_v63 = vsub.f32 0.0, %v393_v58  ;;  %2075 = vrcp.f32 %v1514_v55 }
  0xb3   :  { %v2066_v0 = vpop.eup %2065  ;;  %2077 = vrcp.f32 %v1563_v61  ;;  %v1028_v1 = vmul.f32 1.442695, %v830_v62  ;;  %293 = vmatmul.f32.gmra.mxu0 %v29_v59  ;;  %440 = vmatmul.f32.gmra.mxu1 %v78_v60 }
  0xb4   :  { %v1126_v2 = vmul.f32 1.442695, %v879_v63  ;;  %v2068_v3 = vpop.eup %2067  ;;  %v1417_v4 = vadd.f32 1.0, %v2066_v0  ;;  %2079 = vpow2.f32 %v1320_v56  ;;  %v540_v5 = vpop.f32.mrf.mxu2 }
  0xb5   :  { %v687_v6 = vpop.f32.mrf.mxu3  ;;  %v2070_v7 = vpop.eup %2069  ;;  %1809 = vst.msk [vmem:[%s4278_s2] sm:$0xff] %vm1808_vm0, %v2068_v3  ;;  %2081 = vpow2.f32 %v1028_v1  ;;  %v928_v8 = vsub.f32 0.0, %v540_v5  ;;  %v179_v3 = vld [vmem:[%s4277_s0 + $0x540] sm:$0xff] }
  0xb6   :  { %v977_v9 = vsub.f32 0.0, %v687_v6  ;;  %v2072_v10 = vpop.eup %2071  ;;  %1858 = vst.msk [vmem:[%s4278_s2 + $0x188] sm:$0xff] %vm1808_vm0, %v2070_v7  ;;  %2083 = vrcp.f32 %v1417_v4 }
  0xb7   :  { %v2074_v13 = vpop.eup %2073  ;;  %v1466_v14 = vadd.f32 1.0, %v2072_v10  ;;  %2085 = vpow2.f32 %v1126_v2  ;;  %v1224_v15 = vmul.f32 1.442695, %v928_v8  ;;  %v130_v2 = vld [vmem:[%s4277_s0 + $0x3b8] sm:$0xff] }
  0xb8   :  { %v2076_v16 = vpop.eup %2075  ;;  %v1515_v17 = vadd.f32 1.0, %v2074_v13  ;;  %v1322_v18 = vmul.f32 1.442695, %v977_v9  ;;  %v249_v19 = vpop.f32.mrf.mxu0 }
  0xb9   :  { %v396_v20 = vpop.f32.mrf.mxu1  ;;  %v2078_v23 = vpop.eup %2077  ;;  %1907 = vst.msk [vmem:[%s4278_s2 + $0x310] sm:$0xff] %vm1808_vm0, %v2076_v16  ;;  %2087 = vrcp.f32 %v1466_v14  ;;  %590 = vmatmul.f32.gmra.mxu2 %v128_v11  ;;  %737 = vmatmul.f32.gmra.mxu3 %v177_v12  ;;  %v831_v24 = vsub.f32 0.0, %v249_v19  ;;  %v32_v11 = vld [vmem:[%s4277_s0 + $0xa8] sm:$0xff]  ;;  %v81_v12 = vld [vmem:[%s4277_s0 + $0x230] sm:$0xff] }
  0xba   :  { %v880_v25 = vsub.f32 0.0, %v396_v20  ;;  %v2080_v26 = vpop.eup %2079  ;;  %1956 = vst.msk [vmem:[%s4278_s2 + $0x498] sm:$0xff] %vm1808_vm0, %v2078_v23  ;;  %2089 = vrcp.f32 %v1515_v17 }
  0xbb   :  { %v2082_v27 = vpop.eup %2081  ;;  %v1564_v28 = vadd.f32 1.0, %v2080_v26  ;;  %2091 = vpow2.f32 %v1224_v15  ;;  %v1030_v29 = vmul.f32 1.442695, %v831_v24  ;;  %296 = vmatmul.f32.gmra.mxu0 %v30_v21  ;;  %443 = vmatmul.f32.gmra.mxu1 %v79_v22 }
  0xbc   :  { %v2084_v30 = vpop.eup %2083  ;;  %v1418_v31 = vadd.f32 1.0, %v2082_v27  ;;  %2093 = vpow2.f32 %v1322_v18  ;;  %v543_v32 = vpop.f32.mrf.mxu2  ;;  %v1128_v35 = vmul.f32 1.442695, %v880_v25 }
  0xbd   :  { %v690_v33 = vpop.f32.mrf.mxu3  ;;  %v2086_v34 = vpop.eup %2085  ;;  %1810 = vst.msk [vmem:[%s4278_s2 + $0x8] sm:$0xff] %vm1808_vm0, %v2084_v30  ;;  %2095 = vrcp.f32 %v1564_v28  ;;  %v929_v36 = vsub.f32 0.0, %v543_v32  ;;  %v180_v32 = vld [vmem:[%s4277_s0 + $0x548] sm:$0xff] }
  0xbe   :  { %v978_v37 = vsub.f32 0.0, %v690_v33  ;;  %2097 = vrcp.f32 %v1418_v31  ;;  %v1467_v38 = vadd.f32 1.0, %v2086_v34  ;;  %v131_v31 = vld [vmem:[%s4277_s0 + $0x3c0] sm:$0xff] }
  0xbf   :  { %v2088_v41 = vpop.eup %2087  ;;  %2099 = vpow2.f32 %v1030_v29  ;;  %v1226_v42 = vmul.f32 1.442695, %v929_v36 }
  0xc0   :  { %v1324_v43 = vmul.f32 1.442695, %v978_v37  ;;  %v2090_v44 = vpop.eup %2089  ;;  %1859 = vst.msk [vmem:[%s4278_s2 + $0x190] sm:$0xff] %vm1808_vm0, %v2088_v41  ;;  %2101 = vrcp.f32 %v1467_v38  ;;  %v252_v45 = vpop.f32.mrf.mxu0  ;;  %v82_v41 = vld [vmem:[%s4277_s0 + $0x238] sm:$0xff] }
  0xc1   :  { %v399_v46 = vpop.f32.mrf.mxu1  ;;  %v2092_v49 = vpop.eup %2091  ;;  %1908 = vst.msk [vmem:[%s4278_s2 + $0x318] sm:$0xff] %vm1808_vm0, %v2090_v44  ;;  %2103 = vpow2.f32 %v1128_v35  ;;  %593 = vmatmul.f32.gmra.mxu2 %v129_v39  ;;  %740 = vmatmul.f32.gmra.mxu3 %v178_v40  ;;  %v832_v50 = vsub.f32 0.0, %v252_v45  ;;  %v33_v40 = vld [vmem:[%s4277_s0 + $0xb0] sm:$0xff] }
  0xc2   :  { %v881_v51 = vsub.f32 0.0, %v399_v46  ;;  %v2094_v52 = vpop.eup %2093  ;;  %v1516_v53 = vadd.f32 1.0, %v2092_v49  ;;  %2105 = vpow2.f32 %v1226_v42 }
  0xc3   :  { %v2096_v54 = vpop.eup %2095  ;;  %v1565_v55 = vadd.f32 1.0, %v2094_v52  ;;  %2107 = vpow2.f32 %v1324_v43  ;;  %v1032_v56 = vmul.f32 1.442695, %v832_v50  ;;  %299 = vmatmul.f32.gmra.mxu0 %v31_v47  ;;  %446 = vmatmul.f32.gmra.mxu1 %v80_v48 }
  0xc4   :  { %v1130_v57 = vmul.f32 1.442695, %v881_v51  ;;  %v2098_v58 = vpop.eup %2097  ;;  %1957 = vst.msk [vmem:[%s4278_s2 + $0x4a0] sm:$0xff] %vm1808_vm0, %v2096_v54  ;;  %2109 = vrcp.f32 %v1516_v53  ;;  %v546_v59 = vpop.f32.mrf.mxu2 }
  0xc5   :  { %v693_v60 = vpop.f32.mrf.mxu3  ;;  %v2100_v61 = vpop.eup %2099  ;;  %1811 = vst.msk [vmem:[%s4278_s2 + $0x10] sm:$0xff] %vm1808_vm0, %v2098_v58  ;;  %2111 = vrcp.f32 %v1565_v55  ;;  %v930_v62 = vsub.f32 0.0, %v546_v59  ;;  %v132_v58 = vld [vmem:[%s4277_s0 + $0x3c8] sm:$0xff]  ;;  %v181_v59 = vld [vmem:[%s4277_s0 + $0x550] sm:$0xff] }
  0xc6   :  { %v979_v63 = vsub.f32 0.0, %v693_v60  ;;  %v2102_v0 = vpop.eup %2101  ;;  %v1419_v1 = vadd.f32 1.0, %v2100_v61  ;;  %2113 = vpow2.f32 %v1032_v56 }
  0xc7   :  { %v2104_v4 = vpop.eup %2103  ;;  %1860 = vst.msk [vmem:[%s4278_s2 + $0x198] sm:$0xff] %vm1808_vm0, %v2102_v0  ;;  %2115 = vpow2.f32 %v1130_v57  ;;  %v1228_v5 = vmul.f32 1.442695, %v930_v62 }
  0xc8   :  { %v2106_v6 = vpop.eup %2105  ;;  %2117 = vrcp.f32 %v1419_v1  ;;  %v1468_v7 = vadd.f32 1.0, %v2104_v4  ;;  %v1326_v8 = vmul.f32 1.442695, %v979_v63  ;;  %v255_v9 = vpop.f32.mrf.mxu0  ;;  %v83_v4 = vld [vmem:[%s4277_s0 + $0x240] sm:$0xff] }
  0xc9   :  { %v402_v10 = vpop.f32.mrf.mxu1  ;;  %v2108_v13 = vpop.eup %2107  ;;  %v1517_v14 = vadd.f32 1.0, %v2106_v6  ;;  %2119 = vpow2.f32 %v1228_v5  ;;  %596 = vmatmul.f32.gmra.mxu2 %v130_v2  ;;  %743 = vmatmul.f32.gmra.mxu3 %v179_v3  ;;  %v833_v15 = vsub.f32 0.0, %v255_v9  ;;  %v34_v3 = vld [vmem:[%s4277_s0 + $0xb8] sm:$0xff] }
  0xca   :  { %v882_v16 = vsub.f32 0.0, %v402_v10  ;;  %v2110_v17 = vpop.eup %2109  ;;  %2121 = vrcp.f32 %v1468_v7  ;;  %v1566_v18 = vadd.f32 1.0, %v2108_v13 }
  0xcb   :  { %v2112_v19 = vpop.eup %2111  ;;  %1909 = vst.msk [vmem:[%s4278_s2 + $0x320] sm:$0xff] %vm1808_vm0, %v2110_v17  ;;  %2123 = vrcp.f32 %v1517_v14  ;;  %v1034_v20 = vmul.f32 1.442695, %v833_v15  ;;  %302 = vmatmul.f32.gmra.mxu0 %v32_v11  ;;  %449 = vmatmul.f32.gmra.mxu1 %v81_v12 }
  0xcc   :  { %v2114_v21 = vpop.eup %2113  ;;  %1958 = vst.msk [vmem:[%s4278_s2 + $0x4a8] sm:$0xff] %vm1808_vm0, %v2112_v19  ;;  %2125 = vrcp.f32 %v1566_v18  ;;  %v1132_v22 = vmul.f32 1.442695, %v882_v16  ;;  %v549_v23 = vpop.f32.mrf.mxu2 }
  0xcd   :  { %v696_v24 = vpop.f32.mrf.mxu3  ;;  %v2116_v25 = vpop.eup %2115  ;;  %v1420_v26 = vadd.f32 1.0, %v2114_v21  ;;  %2127 = vpow2.f32 %v1326_v8  ;;  %v931_v27 = vsub.f32 0.0, %v549_v23  ;;  %v182_v23 = vld [vmem:[%s4277_s0 + $0x558] sm:$0xff] }
  0xce   :  { %v980_v28 = vsub.f32 0.0, %v696_v24  ;;  %v2118_v29 = vpop.eup %2117  ;;  %v1469_v30 = vadd.f32 1.0, %v2116_v25  ;;  %2129 = vpow2.f32 %v1034_v20 }
  0xcf   :  { %v2120_v33 = vpop.eup %2119  ;;  %1812 = vst.msk [vmem:[%s4278_s2 + $0x18] sm:$0xff] %vm1808_vm0, %v2118_v29  ;;  %2131 = vrcp.f32 %v1420_v26  ;;  %v1230_v34 = vmul.f32 1.442695, %v931_v27 }
  0xd0   :  { %v2122_v35 = vpop.eup %2121  ;;  %2133 = vrcp.f32 %v1469_v30  ;;  %v1518_v36 = vadd.f32 1.0, %v2120_v33  ;;  %v1328_v37 = vmul.f32 1.442695, %v980_v28  ;;  %v258_v38 = vpop.f32.mrf.mxu0 }
  0xd1   :  { %v405_v39 = vpop.f32.mrf.mxu1  ;;  %v2124_v42 = vpop.eup %2123  ;;  %1861 = vst.msk [vmem:[%s4278_s2 + $0x1a0] sm:$0xff] %vm1808_vm0, %v2122_v35  ;;  %2135 = vpow2.f32 %v1132_v22  ;;  %599 = vmatmul.f32.gmra.mxu2 %v131_v31  ;;  %746 = vmatmul.f32.gmra.mxu3 %v180_v32  ;;  %v834_v43 = vsub.f32 0.0, %v258_v38  ;;  %v133_v22 = vld [vmem:[%s4277_s0 + $0x3d0] sm:$0xff]  ;;  %v35_v31 = vld [vmem:[%s4277_s0 + $0xc0] sm:$0xff]  ;;  %v84_v32 = vld [vmem:[%s4277_s0 + $0x248] sm:$0xff] }
  0xd2   :  { %v883_v44 = vsub.f32 0.0, %v405_v39  ;;  %v2126_v45 = vpop.eup %2125  ;;  %1910 = vst.msk [vmem:[%s4278_s2 + $0x328] sm:$0xff] %vm1808_vm0, %v2124_v42  ;;  %2137 = vrcp.f32 %v1518_v36 }
  0xd3   :  { %v2128_v46 = vpop.eup %2127  ;;  %1959 = vst.msk [vmem:[%s4278_s2 + $0x4b0] sm:$0xff] %vm1808_vm0, %v2126_v45  ;;  %2139 = vpow2.f32 %v1230_v34  ;;  %v1036_v47 = vmul.f32 1.442695, %v834_v43  ;;  %305 = vmatmul.f32.gmra.mxu0 %v33_v40  ;;  %452 = vmatmul.f32.gmra.mxu1 %v82_v41 }
  0xd4   :  { %v2130_v48 = vpop.eup %2129  ;;  %v1567_v49 = vadd.f32 1.0, %v2128_v46  ;;  %2141 = vpow2.f32 %v1328_v37  ;;  %v1134_v50 = vmul.f32 1.442695, %v883_v44  ;;  %v552_v51 = vpop.f32.mrf.mxu2 }
  0xd5   :  { %v699_v52 = vpop.f32.mrf.mxu3  ;;  %v2132_v53 = vpop.eup %2131  ;;  %v1421_v54 = vadd.f32 1.0, %v2130_v48  ;;  %2143 = vpow2.f32 %v1036_v47  ;;  %v932_v55 = vsub.f32 0.0, %v552_v51  ;;  %v183_v51 = vld [vmem:[%s4277_s0 + $0x560] sm:$0xff] }
  0xd6   :  { %v981_v56 = vsub.f32 0.0, %v699_v52  ;;  %v2134_v57 = vpop.eup %2133  ;;  %1813 = vst.msk [vmem:[%s4278_s2 + $0x20] sm:$0xff] %vm1808_vm0, %v2132_v53  ;;  %2145 = vrcp.f32 %v1567_v49 }
  0xd7   :  { %v2136_v60 = vpop.eup %2135  ;;  %1862 = vst.msk [vmem:[%s4278_s2 + $0x1a8] sm:$0xff] %vm1808_vm0, %v2134_v57  ;;  %2147 = vrcp.f32 %v1421_v54  ;;  %v1232_v61 = vmul.f32 1.442695, %v932_v55 }
  0xd8   :  { %v1330_v62 = vmul.f32 1.442695, %v981_v56  ;;  %v2138_v63 = vpop.eup %2137  ;;  %v1470_v0 = vadd.f32 1.0, %v2136_v60  ;;  %2149 = vpow2.f32 %v1134_v50  ;;  %v261_v1 = vpop.f32.mrf.mxu0  ;;  %v134_v50 = vld [vmem:[%s4277_s0 + $0x3d8] sm:$0xff]  ;;  %v85_v60 = vld [vmem:[%s4277_s0 + $0x250] sm:$0xff] }
  0xd9   :  { %v408_v2 = vpop.f32.mrf.mxu1  ;;  %v2140_v5 = vpop.eup %2139  ;;  %1911 = vst.msk [vmem:[%s4278_s2 + $0x330] sm:$0xff] %vm1808_vm0, %v2138_v63  ;;  %2151 = vpow2.f32 %v1232_v61  ;;  %602 = vmatmul.f32.gmra.mxu2 %v132_v58  ;;  %749 = vmatmul.f32.gmra.mxu3 %v181_v59  ;;  %v835_v6 = vsub.f32 0.0, %v261_v1  ;;  %v36_v59 = vld [vmem:[%s4277_s0 + $0xc8] sm:$0xff] }
  0xda   :  { %v884_v7 = vsub.f32 0.0, %v408_v2  ;;  %v2142_v8 = vpop.eup %2141  ;;  %2153 = vrcp.f32 %v1470_v0  ;;  %v1519_v9 = vadd.f32 1.0, %v2140_v5 }
  0xdb   :  { %v2144_v10 = vpop.eup %2143  ;;  %v1568_v11 = vadd.f32 1.0, %v2142_v8  ;;  %2155 = vpow2.f32 %v1330_v62  ;;  %v1038_v12 = vmul.f32 1.442695, %v835_v6  ;;  %308 = vmatmul.f32.gmra.mxu0 %v34_v3  ;;  %455 = vmatmul.f32.gmra.mxu1 %v83_v4 }
  0xdc   :  { %v2146_v13 = vpop.eup %2145  ;;  %2157 = vrcp.f32 %v1519_v9  ;;  %v1422_v14 = vadd.f32 1.0, %v2144_v10  ;;  %v1136_v15 = vmul.f32 1.442695, %v884_v7  ;;  %v555_v16 = vpop.f32.mrf.mxu2 }
  0xdd   :  { %v702_v17 = vpop.f32.mrf.mxu3  ;;  %v2148_v18 = vpop.eup %2147  ;;  %1960 = vst.msk [vmem:[%s4278_s2 + $0x4b8] sm:$0xff] %vm1808_vm0, %v2146_v13  ;;  %2159 = vrcp.f32 %v1568_v11  ;;  %v933_v19 = vsub.f32 0.0, %v555_v16  ;;  %v184_v16 = vld [vmem:[%s4277_s0 + $0x568] sm:$0xff] }
  0xde   :  { %v982_v20 = vsub.f32 0.0, %v702_v17  ;;  %v2150_v21 = vpop.eup %2149  ;;  %1814 = vst.msk [vmem:[%s4278_s2 + $0x28] sm:$0xff] %vm1808_vm0, %v2148_v18  ;;  %2161 = vrcp.f32 %v1422_v14 }
  0xdf   :  { %v2152_v24 = vpop.eup %2151  ;;  %v1471_v25 = vadd.f32 1.0, %v2150_v21  ;;  %2163 = vpow2.f32 %v1038_v12  ;;  %v1234_v26 = vmul.f32 1.442695, %v933_v19 }
  0xe0   :  { %v2154_v27 = vpop.eup %2153  ;;  %v1520_v28 = vadd.f32 1.0, %v2152_v24  ;;  %2165 = vpow2.f32 %v1136_v15  ;;  %v264_v29 = vpop.f32.mrf.mxu0  ;;  %v1332_v34 = vmul.f32 1.442695, %v982_v20  ;;  %v135_v15 = vld [vmem:[%s4277_s0 + $0x3e0] sm:$0xff]  ;;  %v86_v24 = vld [vmem:[%s4277_s0 + $0x258] sm:$0xff] }
  0xe1   :  { %v411_v30 = vpop.f32.mrf.mxu1  ;;  %v2156_v33 = vpop.eup %2155  ;;  %1863 = vst.msk [vmem:[%s4278_s2 + $0x1b0] sm:$0xff] %vm1808_vm0, %v2154_v27  ;;  %2167 = vrcp.f32 %v1471_v25  ;;  %605 = vmatmul.f32.gmra.mxu2 %v133_v22  ;;  %752 = vmatmul.f32.gmra.mxu3 %v182_v23  ;;  %v836_v35 = vsub.f32 0.0, %v264_v29  ;;  %v37_v23 = vld [vmem:[%s4277_s0 + $0xd0] sm:$0xff] }
  0xe2   :  { %v885_v36 = vsub.f32 0.0, %v411_v30  ;;  %v2158_v37 = vpop.eup %2157  ;;  %2169 = vrcp.f32 %v1520_v28  ;;  %v1569_v38 = vadd.f32 1.0, %v2156_v33 }
  0xe3   :  { %v2160_v39 = vpop.eup %2159  ;;  %1912 = vst.msk [vmem:[%s4278_s2 + $0x338] sm:$0xff] %vm1808_vm0, %v2158_v37  ;;  %2171 = vpow2.f32 %v1234_v26  ;;  %v1040_v40 = vmul.f32 1.442695, %v836_v35  ;;  %311 = vmatmul.f32.gmra.mxu0 %v35_v31  ;;  %458 = vmatmul.f32.gmra.mxu1 %v84_v32 }
  0xe4   :  { %v1138_v41 = vmul.f32 1.442695, %v885_v36  ;;  %v2162_v42 = vpop.eup %2161  ;;  %1961 = vst.msk [vmem:[%s4278_s2 + $0x4c0] sm:$0xff] %vm1808_vm0, %v2160_v39  ;;  %2173 = vrcp.f32 %v1569_v38  ;;  %v558_v43 = vpop.f32.mrf.mxu2 }
  0xe5   :  { %v705_v44 = vpop.f32.mrf.mxu3  ;;  %v2164_v45 = vpop.eup %2163  ;;  %1815 = vst.msk [vmem:[%s4278_s2 + $0x30] sm:$0xff] %vm1808_vm0, %v2162_v42  ;;  %2175 = vpow2.f32 %v1332_v34  ;;  %v934_v46 = vsub.f32 0.0, %v558_v43  ;;  %v136_v42 = vld [vmem:[%s4277_s0 + $0x3e8] sm:$0xff]  ;;  %v185_v43 = vld [vmem:[%s4277_s0 + $0x570] sm:$0xff] }
  0xe6   :  { %v983_v47 = vsub.f32 0.0, %v705_v44  ;;  %v2166_v48 = vpop.eup %2165  ;;  %v1423_v49 = vadd.f32 1.0, %v2164_v45  ;;  %2177 = vpow2.f32 %v1040_v40 }
  0xe7   :  { %v2168_v52 = vpop.eup %2167  ;;  %v1472_v53 = vadd.f32 1.0, %v2166_v48  ;;  %2179 = vpow2.f32 %v1138_v41  ;;  %v1236_v54 = vmul.f32 1.442695, %v934_v46 }
  0xe8   :  { %v1334_v55 = vmul.f32 1.442695, %v983_v47  ;;  %v2170_v56 = vpop.eup %2169  ;;  %1864 = vst.msk [vmem:[%s4278_s2 + $0x1b8] sm:$0xff] %vm1808_vm0, %v2168_v52  ;;  %2181 = vrcp.f32 %v1423_v49  ;;  %v267_v57 = vpop.f32.mrf.mxu0  ;;  %v87_v52 = vld [vmem:[%s4277_s0 + $0x260] sm:$0xff] }
  0xe9   :  { %v414_v58 = vpop.f32.mrf.mxu1  ;;  %v2172_v61 = vpop.eup %2171  ;;  %1913 = vst.msk [vmem:[%s4278_s2 + $0x340] sm:$0xff] %vm1808_vm0, %v2170_v56  ;;  %2183 = vrcp.f32 %v1472_v53  ;;  %608 = vmatmul.f32.gmra.mxu2 %v134_v50  ;;  %755 = vmatmul.f32.gmra.mxu3 %v183_v51  ;;  %v837_v62 = vsub.f32 0.0, %v267_v57  ;;  %v38_v51 = vld [vmem:[%s4277_s0 + $0xd8] sm:$0xff] }
  0xea   :  { %v886_v63 = vsub.f32 0.0, %v414_v58  ;;  %v2174_v0 = vpop.eup %2173  ;;  %v1521_v1 = vadd.f32 1.0, %v2172_v61  ;;  %2185 = vpow2.f32 %v1236_v54 }
  0xeb   :  { %v2176_v2 = vpop.eup %2175  ;;  %1962 = vst.msk [vmem:[%s4278_s2 + $0x4c8] sm:$0xff] %vm1808_vm0, %v2174_v0  ;;  %2187 = vpow2.f32 %v1334_v55  ;;  %v1042_v3 = vmul.f32 1.442695, %v837_v62  ;;  %314 = vmatmul.f32.gmra.mxu0 %v36_v59  ;;  %461 = vmatmul.f32.gmra.mxu1 %v85_v60 }
  0xec   :  { %v2178_v4 = vpop.eup %2177  ;;  %2189 = vrcp.f32 %v1521_v1  ;;  %v1570_v5 = vadd.f32 1.0, %v2176_v2  ;;  %v1140_v6 = vmul.f32 1.442695, %v886_v63  ;;  %v561_v7 = vpop.f32.mrf.mxu2 }
  0xed   :  { %v708_v8 = vpop.f32.mrf.mxu3  ;;  %v2180_v9 = vpop.eup %2179  ;;  %v1424_v10 = vadd.f32 1.0, %v2178_v4  ;;  %2191 = vpow2.f32 %v1042_v3  ;;  %v935_v11 = vsub.f32 0.0, %v561_v7  ;;  %v186_v7 = vld [vmem:[%s4277_s0 + $0x578] sm:$0xff] }
  0xee   :  { %v984_v12 = vsub.f32 0.0, %v708_v8  ;;  %v2182_v13 = vpop.eup %2181  ;;  %2193 = vrcp.f32 %v1570_v5  ;;  %v1473_v14 = vadd.f32 1.0, %v2180_v9 }
  0xef   :  { %v2184_v17 = vpop.eup %2183  ;;  %1816 = vst.msk [vmem:[%s4278_s2 + $0x38] sm:$0xff] %vm1808_vm0, %v2182_v13  ;;  %2195 = vrcp.f32 %v1424_v10  ;;  %v1238_v18 = vmul.f32 1.442695, %v935_v11 }
  0xf0   :  { %v2186_v19 = vpop.eup %2185  ;;  %1865 = vst.msk [vmem:[%s4278_s2 + $0x1c0] sm:$0xff] %vm1808_vm0, %v2184_v17  ;;  %2197 = vrcp.f32 %v1473_v14  ;;  %v1336_v20 = vmul.f32 1.442695, %v984_v12  ;;  %v270_v21 = vpop.f32.mrf.mxu0  ;;  %v88_v17 = vld [vmem:[%s4277_s0 + $0x268] sm:$0xff] }
  0xf1   :  { %v417_v22 = vpop.f32.mrf.mxu1  ;;  %v2188_v25 = vpop.eup %2187  ;;  %v1522_v26 = vadd.f32 1.0, %v2186_v19  ;;  %2199 = vpow2.f32 %v1140_v6  ;;  %611 = vmatmul.f32.gmra.mxu2 %v135_v15  ;;  %758 = vmatmul.f32.gmra.mxu3 %v184_v16  ;;  %v838_v27 = vsub.f32 0.0, %v270_v21  ;;  %v137_v6 = vld [vmem:[%s4277_s0 + $0x3f0] sm:$0xff]  ;;  %v39_v16 = vld [vmem:[%s4277_s0 + $0xe0] sm:$0xff] }
  0xf2   :  { %v887_v28 = vsub.f32 0.0, %v417_v22  ;;  %v2190_v29 = vpop.eup %2189  ;;  %v1571_v30 = vadd.f32 1.0, %v2188_v25  ;;  %2201 = vpow2.f32 %v1238_v18 }
  0xf3   :  { %v2192_v31 = vpop.eup %2191  ;;  %1914 = vst.msk [vmem:[%s4278_s2 + $0x348] sm:$0xff] %vm1808_vm0, %v2190_v29  ;;  %2203 = vrcp.f32 %v1522_v26  ;;  %v1044_v32 = vmul.f32 1.442695, %v838_v27  ;;  %317 = vmatmul.f32.gmra.mxu0 %v37_v23  ;;  %464 = vmatmul.f32.gmra.mxu1 %v86_v24 }
  0xf4   :  { %v2194_v33 = vpop.eup %2193  ;;  %2205 = vrcp.f32 %v1571_v30  ;;  %v1425_v34 = vadd.f32 1.0, %v2192_v31  ;;  %v1142_v35 = vmul.f32 1.442695, %v887_v28  ;;  %v564_v36 = vpop.f32.mrf.mxu2 }
  0xf5   :  { %v711_v37 = vpop.f32.mrf.mxu3  ;;  %v2196_v38 = vpop.eup %2195  ;;  %1963 = vst.msk [vmem:[%s4278_s2 + $0x4d0] sm:$0xff] %vm1808_vm0, %v2194_v33  ;;  %2207 = vpow2.f32 %v1336_v20  ;;  %v936_v39 = vsub.f32 0.0, %v564_v36  ;;  %v187_v36 = vld [vmem:[%s4277_s0 + $0x580] sm:$0xff] }
  0xf6   :  { %v985_v40 = vsub.f32 0.0, %v711_v37  ;;  %v2198_v41 = vpop.eup %2197  ;;  %1817 = vst.msk [vmem:[%s4278_s2 + $0x40] sm:$0xff] %vm1808_vm0, %v2196_v38  ;;  %2209 = vrcp.f32 %v1425_v34 }
  0xf7   :  { %v2200_v44 = vpop.eup %2199  ;;  %1866 = vst.msk [vmem:[%s4278_s2 + $0x1c8] sm:$0xff] %vm1808_vm0, %v2198_v41  ;;  %2211 = vpow2.f32 %v1044_v32  ;;  %v1240_v45 = vmul.f32 1.442695, %v936_v39 }
  0xf8   :  { %v2202_v46 = vpop.eup %2201  ;;  %v1474_v47 = vadd.f32 1.0, %v2200_v44  ;;  %2213 = vpow2.f32 %v1142_v35  ;;  %v1338_v48 = vmul.f32 1.442695, %v985_v40  ;;  %v273_v49 = vpop.f32.mrf.mxu0  ;;  %v138_v35 = vld [vmem:[%s4277_s0 + $0x3f8] sm:$0xff]  ;;  %v89_v44 = vld [vmem:[%s4277_s0 + $0x270] sm:$0xff] }
  0xf9   :  { %v420_v50 = vpop.f32.mrf.mxu1  ;;  %v2204_v53 = vpop.eup %2203  ;;  %v1523_v54 = vadd.f32 1.0, %v2202_v46  ;;  %2215 = vpow2.f32 %v1240_v45  ;;  %614 = vmatmul.f32.gmra.mxu2 %v136_v42  ;;  %761 = vmatmul.f32.gmra.mxu3 %v185_v43  ;;  %v839_v55 = vsub.f32 0.0, %v273_v49  ;;  %v40_v43 = vld [vmem:[%s4277_s0 + $0xe8] sm:$0xff] }
  0xfa   :  { %v888_v56 = vsub.f32 0.0, %v420_v50  ;;  %v2206_v57 = vpop.eup %2205  ;;  %1915 = vst.msk [vmem:[%s4278_s2 + $0x350] sm:$0xff] %vm1808_vm0, %v2204_v53  ;;  %2217 = vrcp.f32 %v1474_v47 }
  0xfb   :  { %v2208_v58 = vpop.eup %2207  ;;  %1964 = vst.msk [vmem:[%s4278_s2 + $0x4d8] sm:$0xff] %vm1808_vm0, %v2206_v57  ;;  %2219 = vrcp.f32 %v1523_v54  ;;  %v1046_v59 = vmul.f32 1.442695, %v839_v55  ;;  %320 = vmatmul.f32.gmra.mxu0 %v38_v51  ;;  %467 = vmatmul.f32.gmra.mxu1 %v87_v52 }
  0xfc   :  { %v1144_v60 = vmul.f32 1.442695, %v888_v56  ;;  %v2210_v61 = vpop.eup %2209  ;;  %v1572_v62 = vadd.f32 1.0, %v2208_v58  ;;  %2221 = vpow2.f32 %v1338_v48  ;;  %v567_v63 = vpop.f32.mrf.mxu2 }
  0xfd   :  { %v714_v0 = vpop.f32.mrf.mxu3  ;;  %v2212_v1 = vpop.eup %2211  ;;  %1818 = vst.msk [vmem:[%s4278_s2 + $0x48] sm:$0xff] %vm1808_vm0, %v2210_v61  ;;  %2223 = vpow2.f32 %v1046_v59  ;;  %v937_v2 = vsub.f32 0.0, %v567_v63  ;;  %v188_v63 = vld [vmem:[%s4277_s0 + $0x588] sm:$0xff] }
  0xfe   :  { %v986_v3 = vsub.f32 0.0, %v714_v0  ;;  %v2214_v4 = vpop.eup %2213  ;;  %2225 = vrcp.f32 %v1572_v62  ;;  %v1426_v5 = vadd.f32 1.0, %v2212_v1  ;;  %v139_v62 = vld [vmem:[%s4277_s0 + $0x400] sm:$0xff] }
  0xff   :  { %v2216_v8 = vpop.eup %2215  ;;  %v1475_v9 = vadd.f32 1.0, %v2214_v4  ;;  %2227 = vpow2.f32 %v1144_v60  ;;  %v1242_v10 = vmul.f32 1.442695, %v937_v2 }
 0x100   :  { %v2218_v11 = vpop.eup %2217  ;;  %2229 = vrcp.f32 %v1426_v5  ;;  %v1524_v12 = vadd.f32 1.0, %v2216_v8  ;;  %v1340_v13 = vmul.f32 1.442695, %v986_v3  ;;  %v276_v14 = vpop.f32.mrf.mxu0  ;;  %v90_v8 = vld [vmem:[%s4277_s0 + $0x278] sm:$0xff] }
 0x101   :  { %v423_v15 = vpop.f32.mrf.mxu1  ;;  %v2220_v18 = vpop.eup %2219  ;;  %1867 = vst.msk [vmem:[%s4278_s2 + $0x1d0] sm:$0xff] %vm1808_vm0, %v2218_v11  ;;  %2231 = vrcp.f32 %v1475_v9  ;;  %617 = vmatmul.f32.gmra.mxu2 %v137_v6  ;;  %764 = vmatmul.f32.gmra.mxu3 %v186_v7  ;;  %v840_v19 = vsub.f32 0.0, %v276_v14  ;;  %v41_v7 = vld [vmem:[%s4277_s0 + $0xf0] sm:$0xff] }
 0x102   :  { %v889_v20 = vsub.f32 0.0, %v423_v15  ;;  %v2222_v21 = vpop.eup %2221  ;;  %1916 = vst.msk [vmem:[%s4278_s2 + $0x358] sm:$0xff] %vm1808_vm0, %v2220_v18  ;;  %2233 = vrcp.f32 %v1524_v12 }
 0x103   :  { %v2224_v22 = vpop.eup %2223  ;;  %v1573_v23 = vadd.f32 1.0, %v2222_v21  ;;  %2235 = vpow2.f32 %v1242_v10  ;;  %v1048_v24 = vmul.f32 1.442695, %v840_v19  ;;  %323 = vmatmul.f32.gmra.mxu0 %v39_v16  ;;  %470 = vmatmul.f32.gmra.mxu1 %v88_v17 }
 0x104   :  { %v2226_v25 = vpop.eup %2225  ;;  %v1427_v26 = vadd.f32 1.0, %v2224_v22  ;;  %2237 = vpow2.f32 %v1340_v13  ;;  %v570_v27 = vpop.f32.mrf.mxu2  ;;  %v1146_v30 = vmul.f32 1.442695, %v889_v20 }
 0x105   :  { %v717_v28 = vpop.f32.mrf.mxu3  ;;  %v2228_v29 = vpop.eup %2227  ;;  %1965 = vst.msk [vmem:[%s4278_s2 + $0x4e0] sm:$0xff] %vm1808_vm0, %v2226_v25  ;;  %2239 = vrcp.f32 %v1573_v23  ;;  %v938_v31 = vsub.f32 0.0, %v570_v27  ;;  %v140_v27 = vld [vmem:[%s4277_s0 + $0x408] sm:$0xff] }
 0x106   :  { %v987_v32 = vsub.f32 0.0, %v717_v28  ;;  %v2230_v33 = vpop.eup %2229  ;;  %2241 = vrcp.f32 %v1427_v26  ;;  %v1476_v34 = vadd.f32 1.0, %v2228_v29  ;;  %v189_v28 = vld [vmem:[%s4277_s0 + $0x590] sm:$0xff] }
 0x107   :  { %v2232_v37 = vpop.eup %2231  ;;  %1819 = vst.msk [vmem:[%s4278_s2 + $0x50] sm:$0xff] %vm1808_vm0, %v2230_v33  ;;  %2243 = vpow2.f32 %v1048_v24  ;;  %v1244_v38 = vmul.f32 1.442695, %v938_v31 }
 0x108   :  { %v1342_v39 = vmul.f32 1.442695, %v987_v32  ;;  %v2234_v40 = vpop.eup %2233  ;;  %1868 = vst.msk [vmem:[%s4278_s2 + $0x1d8] sm:$0xff] %vm1808_vm0, %v2232_v37  ;;  %2245 = vrcp.f32 %v1476_v34  ;;  %v279_v41 = vpop.f32.mrf.mxu0  ;;  %v91_v37 = vld [vmem:[%s4277_s0 + $0x280] sm:$0xff] }
 0x109   :  { %v426_v42 = vpop.f32.mrf.mxu1  ;;  %v2236_v45 = vpop.eup %2235  ;;  %1917 = vst.msk [vmem:[%s4278_s2 + $0x360] sm:$0xff] %vm1808_vm0, %v2234_v40  ;;  %2247 = vpow2.f32 %v1146_v30  ;;  %620 = vmatmul.f32.gmra.mxu2 %v138_v35  ;;  %767 = vmatmul.f32.gmra.mxu3 %v187_v36  ;;  %v841_v46 = vsub.f32 0.0, %v279_v41  ;;  %v42_v36 = vld [vmem:[%s4277_s0 + $0xf8] sm:$0xff] }
 0x10a   :  { %v890_v47 = vsub.f32 0.0, %v426_v42  ;;  %v2238_v48 = vpop.eup %2237  ;;  %v1525_v49 = vadd.f32 1.0, %v2236_v45  ;;  %2249 = vpow2.f32 %v1244_v38 }
 0x10b   :  { %v2240_v50 = vpop.eup %2239  ;;  %v1574_v51 = vadd.f32 1.0, %v2238_v48  ;;  %2251 = vpow2.f32 %v1342_v39  ;;  %v1050_v52 = vmul.f32 1.442695, %v841_v46  ;;  %326 = vmatmul.f32.gmra.mxu0 %v40_v43  ;;  %473 = vmatmul.f32.gmra.mxu1 %v89_v44 }
 0x10c   :  { %v1148_v53 = vmul.f32 1.442695, %v890_v47  ;;  %v2242_v54 = vpop.eup %2241  ;;  %1966 = vst.msk [vmem:[%s4278_s2 + $0x4e8] sm:$0xff] %vm1808_vm0, %v2240_v50  ;;  %2253 = vrcp.f32 %v1525_v49  ;;  %v573_v55 = vpop.f32.mrf.mxu2 }
 0x10d   :  { %v720_v56 = vpop.f32.mrf.mxu3  ;;  %v2244_v57 = vpop.eup %2243  ;;  %1820 = vst.msk [vmem:[%s4278_s2 + $0x58] sm:$0xff] %vm1808_vm0, %v2242_v54  ;;  %2255 = vrcp.f32 %v1574_v51  ;;  %v939_v58 = vsub.f32 0.0, %v573_v55  ;;  %v141_v54 = vld [vmem:[%s4277_s0 + $0x410] sm:$0xff]  ;;  %v190_v55 = vld [vmem:[%s4277_s0 + $0x598] sm:$0xff] }
 0x10e   :  { %v988_v59 = vsub.f32 0.0, %v720_v56  ;;  %v2246_v60 = vpop.eup %2245  ;;  %v1428_v61 = vadd.f32 1.0, %v2244_v57  ;;  %2257 = vpow2.f32 %v1050_v52 }
 0x10f   :  { %v2248_v0 = vpop.eup %2247  ;;  %1869 = vst.msk [vmem:[%s4278_s2 + $0x1e0] sm:$0xff] %vm1808_vm0, %v2246_v60  ;;  %2259 = vpow2.f32 %v1148_v53  ;;  %v1246_v1 = vmul.f32 1.442695, %v939_v58 }
 0x110   :  { %v2250_v2 = vpop.eup %2249  ;;  %2261 = vrcp.f32 %v1428_v61  ;;  %v1477_v3 = vadd.f32 1.0, %v2248_v0  ;;  %v1344_v4 = vmul.f32 1.442695, %v988_v59  ;;  %v282_v5 = vpop.f32.mrf.mxu0  ;;  %v92_v0 = vld [vmem:[%s4277_s0 + $0x288] sm:$0xff] }
 0x111   :  { %v429_v6 = vpop.f32.mrf.mxu1  ;;  %v2252_v9 = vpop.eup %2251  ;;  %v1526_v10 = vadd.f32 1.0, %v2250_v2  ;;  %2263 = vpow2.f32 %v1246_v1  ;;  %623 = vmatmul.f32.gmra.mxu2 %v139_v62  ;;  %770 = vmatmul.f32.gmra.mxu3 %v188_v63  ;;  %v842_v11 = vsub.f32 0.0, %v282_v5  ;;  %v43_v63 = vld [vmem:[%s4277_s0 + $0x100] sm:$0xff] }
 0x112   :  { %v891_v12 = vsub.f32 0.0, %v429_v6  ;;  %v2254_v13 = vpop.eup %2253  ;;  %2265 = vrcp.f32 %v1477_v3  ;;  %v1575_v14 = vadd.f32 1.0, %v2252_v9 }
 0x113   :  { %v2256_v15 = vpop.eup %2255  ;;  %1918 = vst.msk [vmem:[%s4278_s2 + $0x368] sm:$0xff] %vm1808_vm0, %v2254_v13  ;;  %2267 = vrcp.f32 %v1526_v10  ;;  %v1052_v16 = vmul.f32 1.442695, %v842_v11  ;;  %329 = vmatmul.f32.gmra.mxu0 %v41_v7  ;;  %476 = vmatmul.f32.gmra.mxu1 %v90_v8 }
 0x114   :  { %v2258_v17 = vpop.eup %2257  ;;  %1967 = vst.msk [vmem:[%s4278_s2 + $0x4f0] sm:$0xff] %vm1808_vm0, %v2256_v15  ;;  %2269 = vrcp.f32 %v1575_v14  ;;  %v1150_v18 = vmul.f32 1.442695, %v891_v12  ;;  %v576_v19 = vpop.f32.mrf.mxu2 }
 0x115   :  { %v723_v20 = vpop.f32.mrf.mxu3  ;;  %v2260_v21 = vpop.eup %2259  ;;  %v1429_v22 = vadd.f32 1.0, %v2258_v17  ;;  %2271 = vpow2.f32 %v1344_v4  ;;  %v940_v23 = vsub.f32 0.0, %v576_v19  ;;  %v191_v19 = vld [vmem:[%s4277_s0 + $0x5a0] sm:$0xff] }
 0x116   :  { %v989_v24 = vsub.f32 0.0, %v723_v20  ;;  %v2262_v25 = vpop.eup %2261  ;;  %v1478_v26 = vadd.f32 1.0, %v2260_v21  ;;  %2273 = vpow2.f32 %v1052_v16 }
 0x117   :  { %v2264_v29 = vpop.eup %2263  ;;  %1821 = vst.msk [vmem:[%s4278_s2 + $0x60] sm:$0xff] %vm1808_vm0, %v2262_v25  ;;  %2275 = vrcp.f32 %v1429_v22  ;;  %v1248_v30 = vmul.f32 1.442695, %v940_v23 }
 0x118   :  { %v2266_v31 = vpop.eup %2265  ;;  %2277 = vrcp.f32 %v1478_v26  ;;  %v1527_v32 = vadd.f32 1.0, %v2264_v29  ;;  %v1346_v33 = vmul.f32 1.442695, %v989_v24  ;;  %v285_v34 = vpop.f32.mrf.mxu0 }
 0x119   :  { %v432_v35 = vpop.f32.mrf.mxu1  ;;  %v2268_v38 = vpop.eup %2267  ;;  %1870 = vst.msk [vmem:[%s4278_s2 + $0x1e8] sm:$0xff] %vm1808_vm0, %v2266_v31  ;;  %2279 = vpow2.f32 %v1150_v18  ;;  %626 = vmatmul.f32.gmra.mxu2 %v140_v27  ;;  %773 = vmatmul.f32.gmra.mxu3 %v189_v28  ;;  %v843_v39 = vsub.f32 0.0, %v285_v34  ;;  %v142_v18 = vld [vmem:[%s4277_s0 + $0x418] sm:$0xff]  ;;  %v44_v27 = vld [vmem:[%s4277_s0 + $0x108] sm:$0xff]  ;;  %v93_v28 = vld [vmem:[%s4277_s0 + $0x290] sm:$0xff] }
 0x11a   :  { %v892_v40 = vsub.f32 0.0, %v432_v35  ;;  %v2270_v41 = vpop.eup %2269  ;;  %1919 = vst.msk [vmem:[%s4278_s2 + $0x370] sm:$0xff] %vm1808_vm0, %v2268_v38  ;;  %2281 = vrcp.f32 %v1527_v32 }
 0x11b   :  { %v2272_v42 = vpop.eup %2271  ;;  %1968 = vst.msk [vmem:[%s4278_s2 + $0x4f8] sm:$0xff] %vm1808_vm0, %v2270_v41  ;;  %2283 = vpow2.f32 %v1248_v30  ;;  %v1054_v43 = vmul.f32 1.442695, %v843_v39  ;;  %332 = vmatmul.f32.gmra.mxu0 %v42_v36  ;;  %479 = vmatmul.f32.gmra.mxu1 %v91_v37 }
 0x11c   :  { %v2274_v44 = vpop.eup %2273  ;;  %v1576_v45 = vadd.f32 1.0, %v2272_v42  ;;  %2285 = vpow2.f32 %v1346_v33  ;;  %v1152_v46 = vmul.f32 1.442695, %v892_v40  ;;  %v579_v47 = vpop.f32.mrf.mxu2 }
 0x11d   :  { %v726_v48 = vpop.f32.mrf.mxu3  ;;  %v2276_v49 = vpop.eup %2275  ;;  %v1430_v50 = vadd.f32 1.0, %v2274_v44  ;;  %2287 = vpow2.f32 %v1054_v43  ;;  %v941_v51 = vsub.f32 0.0, %v579_v47  ;;  %v192_v47 = vld [vmem:[%s4277_s0 + $0x5a8] sm:$0xff] }
 0x11e   :  { %v990_v52 = vsub.f32 0.0, %v726_v48  ;;  %v2278_v53 = vpop.eup %2277  ;;  %1822 = vst.msk [vmem:[%s4278_s2 + $0x68] sm:$0xff] %vm1808_vm0, %v2276_v49  ;;  %2289 = vrcp.f32 %v1576_v45 }
 0x11f   :  { %v2280_v56 = vpop.eup %2279  ;;  %1871 = vst.msk [vmem:[%s4278_s2 + $0x1f0] sm:$0xff] %vm1808_vm0, %v2278_v53  ;;  %2291 = vrcp.f32 %v1430_v50  ;;  %v1250_v57 = vmul.f32 1.442695, %v941_v51 }
 0x120   :  { %v1348_v58 = vmul.f32 1.442695, %v990_v52  ;;  %v2282_v59 = vpop.eup %2281  ;;  %v1479_v60 = vadd.f32 1.0, %v2280_v56  ;;  %2293 = vpow2.f32 %v1152_v46  ;;  %v288_v61 = vpop.f32.mrf.mxu0  ;;  %v143_v46 = vld [vmem:[%s4277_s0 + $0x420] sm:$0xff]  ;;  %v94_v56 = vld [vmem:[%s4277_s0 + $0x298] sm:$0xff] }
 0x121   :  { %v435_v62 = vpop.f32.mrf.mxu1  ;;  %v2284_v1 = vpop.eup %2283  ;;  %1920 = vst.msk [vmem:[%s4278_s2 + $0x378] sm:$0xff] %vm1808_vm0, %v2282_v59  ;;  %2295 = vpow2.f32 %v1250_v57  ;;  %629 = vmatmul.f32.gmra.mxu2 %v141_v54  ;;  %776 = vmatmul.f32.gmra.mxu3 %v190_v55  ;;  %v844_v2 = vsub.f32 0.0, %v288_v61  ;;  %v45_v55 = vld [vmem:[%s4277_s0 + $0x110] sm:$0xff] }
 0x122   :  { %v893_v3 = vsub.f32 0.0, %v435_v62  ;;  %v2286_v4 = vpop.eup %2285  ;;  %2297 = vrcp.f32 %v1479_v60  ;;  %v1528_v5 = vadd.f32 1.0, %v2284_v1 }
 0x123   :  { %v2288_v6 = vpop.eup %2287  ;;  %v1577_v7 = vadd.f32 1.0, %v2286_v4  ;;  %2299 = vpow2.f32 %v1348_v58  ;;  %v1056_v8 = vmul.f32 1.442695, %v844_v2  ;;  %335 = vmatmul.f32.gmra.mxu0 %v43_v63  ;;  %482 = vmatmul.f32.gmra.mxu1 %v92_v0 }
 0x124   :  { %v2290_v9 = vpop.eup %2289  ;;  %2301 = vrcp.f32 %v1528_v5  ;;  %v1431_v10 = vadd.f32 1.0, %v2288_v6  ;;  %v1154_v11 = vmul.f32 1.442695, %v893_v3  ;;  %v582_v12 = vpop.f32.mrf.mxu2 }
 0x125   :  { %v729_v13 = vpop.f32.mrf.mxu3  ;;  %v2292_v14 = vpop.eup %2291  ;;  %1969 = vst.msk [vmem:[%s4278_s2 + $0x500] sm:$0xff] %vm1808_vm0, %v2290_v9  ;;  %2303 = vrcp.f32 %v1577_v7  ;;  %v942_v15 = vsub.f32 0.0, %v582_v12  ;;  %v193_v12 = vld [vmem:[%s4277_s0 + $0x5b0] sm:$0xff] }
 0x126   :  { %v991_v16 = vsub.f32 0.0, %v729_v13  ;;  %v2294_v17 = vpop.eup %2293  ;;  %1823 = vst.msk [vmem:[%s4278_s2 + $0x70] sm:$0xff] %vm1808_vm0, %v2292_v14  ;;  %2305 = vrcp.f32 %v1431_v10 }
 0x127   :  { %v2296_v20 = vpop.eup %2295  ;;  %v1480_v21 = vadd.f32 1.0, %v2294_v17  ;;  %2307 = vpow2.f32 %v1056_v8  ;;  %v1252_v22 = vmul.f32 1.442695, %v942_v15 }
 0x128   :  { %v2298_v23 = vpop.eup %2297  ;;  %v1529_v24 = vadd.f32 1.0, %v2296_v20  ;;  %2309 = vpow2.f32 %v1154_v11  ;;  %v291_v25 = vpop.f32.mrf.mxu0  ;;  %v1350_v30 = vmul.f32 1.442695, %v991_v16  ;;  %v144_v11 = vld [vmem:[%s4277_s0 + $0x428] sm:$0xff]  ;;  %v95_v20 = vld [vmem:[%s4277_s0 + $0x2a0] sm:$0xff] }
 0x129   :  { %v438_v26 = vpop.f32.mrf.mxu1  ;;  %v2300_v29 = vpop.eup %2299  ;;  %1872 = vst.msk [vmem:[%s4278_s2 + $0x1f8] sm:$0xff] %vm1808_vm0, %v2298_v23  ;;  %2311 = vrcp.f32 %v1480_v21  ;;  %632 = vmatmul.f32.gmra.mxu2 %v142_v18  ;;  %779 = vmatmul.f32.gmra.mxu3 %v191_v19  ;;  %v845_v31 = vsub.f32 0.0, %v291_v25  ;;  %v46_v19 = vld [vmem:[%s4277_s0 + $0x118] sm:$0xff] }
 0x12a   :  { %v894_v32 = vsub.f32 0.0, %v438_v26  ;;  %v2302_v33 = vpop.eup %2301  ;;  %2313 = vrcp.f32 %v1529_v24  ;;  %v1578_v34 = vadd.f32 1.0, %v2300_v29 }
 0x12b   :  { %v2304_v35 = vpop.eup %2303  ;;  %1921 = vst.msk [vmem:[%s4278_s2 + $0x380] sm:$0xff] %vm1808_vm0, %v2302_v33  ;;  %2315 = vpow2.f32 %v1252_v22  ;;  %v1058_v36 = vmul.f32 1.442695, %v845_v31  ;;  %338 = vmatmul.f32.gmra.mxu0 %v44_v27  ;;  %485 = vmatmul.f32.gmra.mxu1 %v93_v28 }
 0x12c   :  { %v1156_v37 = vmul.f32 1.442695, %v894_v32  ;;  %v2306_v38 = vpop.eup %2305  ;;  %1970 = vst.msk [vmem:[%s4278_s2 + $0x508] sm:$0xff] %vm1808_vm0, %v2304_v35  ;;  %2317 = vrcp.f32 %v1578_v34  ;;  %v585_v39 = vpop.f32.mrf.mxu2 }
 0x12d   :  { %v732_v40 = vpop.f32.mrf.mxu3  ;;  %v2308_v41 = vpop.eup %2307  ;;  %1824 = vst.msk [vmem:[%s4278_s2 + $0x78] sm:$0xff] %vm1808_vm0, %v2306_v38  ;;  %2319 = vpow2.f32 %v1350_v30  ;;  %v943_v42 = vsub.f32 0.0, %v585_v39  ;;  %v145_v38 = vld [vmem:[%s4277_s0 + $0x430] sm:$0xff]  ;;  %v194_v39 = vld [vmem:[%s4277_s0 + $0x5b8] sm:$0xff] }
 0x12e   :  { %v992_v43 = vsub.f32 0.0, %v732_v40  ;;  %v2310_v44 = vpop.eup %2309  ;;  %v1432_v45 = vadd.f32 1.0, %v2308_v41  ;;  %2321 = vpow2.f32 %v1058_v36 }
 0x12f   :  { %v2312_v48 = vpop.eup %2311  ;;  %v1481_v49 = vadd.f32 1.0, %v2310_v44  ;;  %2323 = vpow2.f32 %v1156_v37  ;;  %v1254_v50 = vmul.f32 1.442695, %v943_v42 }
 0x130   :  { %v1352_v51 = vmul.f32 1.442695, %v992_v43  ;;  %v2314_v52 = vpop.eup %2313  ;;  %1873 = vst.msk [vmem:[%s4278_s2 + $0x200] sm:$0xff] %vm1808_vm0, %v2312_v48  ;;  %2325 = vrcp.f32 %v1432_v45  ;;  %v294_v53 = vpop.f32.mrf.mxu0  ;;  %v96_v48 = vld [vmem:[%s4277_s0 + $0x2a8] sm:$0xff] }
 0x131   :  { %v441_v54 = vpop.f32.mrf.mxu1  ;;  %v2316_v57 = vpop.eup %2315  ;;  %1922 = vst.msk [vmem:[%s4278_s2 + $0x388] sm:$0xff] %vm1808_vm0, %v2314_v52  ;;  %2327 = vrcp.f32 %v1481_v49  ;;  %635 = vmatmul.f32.gmra.mxu2 %v143_v46  ;;  %782 = vmatmul.f32.gmra.mxu3 %v192_v47  ;;  %v846_v58 = vsub.f32 0.0, %v294_v53  ;;  %v47_v47 = vld [vmem:[%s4277_s0 + $0x120] sm:$0xff] }
 0x132   :  { %v895_v59 = vsub.f32 0.0, %v441_v54  ;;  %v2318_v60 = vpop.eup %2317  ;;  %v1530_v61 = vadd.f32 1.0, %v2316_v57  ;;  %2329 = vpow2.f32 %v1254_v50 }
 0x133   :  { %v2320_v62 = vpop.eup %2319  ;;  %1971 = vst.msk [vmem:[%s4278_s2 + $0x510] sm:$0xff] %vm1808_vm0, %v2318_v60  ;;  %2331 = vpow2.f32 %v1352_v51  ;;  %v1060_v63 = vmul.f32 1.442695, %v846_v58  ;;  %341 = vmatmul.f32.gmra.mxu0 %v45_v55  ;;  %488 = vmatmul.f32.gmra.mxu1 %v94_v56 }
 0x134   :  { %v2322_v0 = vpop.eup %2321  ;;  %2333 = vrcp.f32 %v1530_v61  ;;  %v1579_v1 = vadd.f32 1.0, %v2320_v62  ;;  %v1158_v2 = vmul.f32 1.442695, %v895_v59  ;;  %v588_v3 = vpop.f32.mrf.mxu2 }
 0x135   :  { %v735_v4 = vpop.f32.mrf.mxu3  ;;  %v2324_v5 = vpop.eup %2323  ;;  %v1433_v6 = vadd.f32 1.0, %v2322_v0  ;;  %2335 = vpow2.f32 %v1060_v63  ;;  %v944_v7 = vsub.f32 0.0, %v588_v3  ;;  %v195_v3 = vld [vmem:[%s4277_s0 + $0x5c0] sm:$0xff] }
 0x136   :  { %v993_v8 = vsub.f32 0.0, %v735_v4  ;;  %v2326_v9 = vpop.eup %2325  ;;  %2337 = vrcp.f32 %v1579_v1  ;;  %v1482_v10 = vadd.f32 1.0, %v2324_v5 }
 0x137   :  { %v2328_v13 = vpop.eup %2327  ;;  %1825 = vst.msk [vmem:[%s4278_s2 + $0x80] sm:$0xff] %vm1808_vm0, %v2326_v9  ;;  %2339 = vrcp.f32 %v1433_v6  ;;  %v1256_v14 = vmul.f32 1.442695, %v944_v7 }
 0x138   :  { %v2330_v15 = vpop.eup %2329  ;;  %1874 = vst.msk [vmem:[%s4278_s2 + $0x208] sm:$0xff] %vm1808_vm0, %v2328_v13  ;;  %2341 = vrcp.f32 %v1482_v10  ;;  %v1354_v16 = vmul.f32 1.442695, %v993_v8  ;;  %v297_v17 = vpop.f32.mrf.mxu0  ;;  %v97_v13 = vld [vmem:[%s4277_s0 + $0x2b0] sm:$0xff] }
 0x139   :  { %v444_v18 = vpop.f32.mrf.mxu1  ;;  %v2332_v21 = vpop.eup %2331  ;;  %v1531_v22 = vadd.f32 1.0, %v2330_v15  ;;  %2343 = vpow2.f32 %v1158_v2  ;;  %638 = vmatmul.f32.gmra.mxu2 %v144_v11  ;;  %785 = vmatmul.f32.gmra.mxu3 %v193_v12  ;;  %v847_v23 = vsub.f32 0.0, %v297_v17  ;;  %v146_v2 = vld [vmem:[%s4277_s0 + $0x438] sm:$0xff]  ;;  %v48_v12 = vld [vmem:[%s4277_s0 + $0x128] sm:$0xff] }
 0x13a   :  { %v896_v24 = vsub.f32 0.0, %v444_v18  ;;  %v2334_v25 = vpop.eup %2333  ;;  %v1580_v26 = vadd.f32 1.0, %v2332_v21  ;;  %2345 = vpow2.f32 %v1256_v14 }
 0x13b   :  { %v2336_v27 = vpop.eup %2335  ;;  %1923 = vst.msk [vmem:[%s4278_s2 + $0x390] sm:$0xff] %vm1808_vm0, %v2334_v25  ;;  %2347 = vrcp.f32 %v1531_v22  ;;  %v1062_v28 = vmul.f32 1.442695, %v847_v23  ;;  %344 = vmatmul.f32.gmra.mxu0 %v46_v19  ;;  %491 = vmatmul.f32.gmra.mxu1 %v95_v20 }
 0x13c   :  { %v2338_v29 = vpop.eup %2337  ;;  %2349 = vrcp.f32 %v1580_v26  ;;  %v1434_v30 = vadd.f32 1.0, %v2336_v27  ;;  %v1160_v31 = vmul.f32 1.442695, %v896_v24  ;;  %v591_v32 = vpop.f32.mrf.mxu2 }
 0x13d   :  { %v738_v33 = vpop.f32.mrf.mxu3  ;;  %v2340_v34 = vpop.eup %2339  ;;  %1972 = vst.msk [vmem:[%s4278_s2 + $0x518] sm:$0xff] %vm1808_vm0, %v2338_v29  ;;  %2351 = vpow2.f32 %v1354_v16  ;;  %v945_v35 = vsub.f32 0.0, %v591_v32  ;;  %v196_v32 = vld [vmem:[%s4277_s0 + $0x5c8] sm:$0xff] }
 0x13e   :  { %v994_v36 = vsub.f32 0.0, %v738_v33  ;;  %v2342_v37 = vpop.eup %2341  ;;  %1826 = vst.msk [vmem:[%s4278_s2 + $0x88] sm:$0xff] %vm1808_vm0, %v2340_v34  ;;  %2353 = vrcp.f32 %v1434_v30 }
 0x13f   :  { %v2344_v40 = vpop.eup %2343  ;;  %1875 = vst.msk [vmem:[%s4278_s2 + $0x210] sm:$0xff] %vm1808_vm0, %v2342_v37  ;;  %2355 = vpow2.f32 %v1062_v28  ;;  %v1258_v41 = vmul.f32 1.442695, %v945_v35 }
 0x140   :  { %v2346_v42 = vpop.eup %2345  ;;  %v1483_v43 = vadd.f32 1.0, %v2344_v40  ;;  %2357 = vpow2.f32 %v1160_v31  ;;  %v1356_v44 = vmul.f32 1.442695, %v994_v36  ;;  %v300_v45 = vpop.f32.mrf.mxu0  ;;  %v147_v31 = vld [vmem:[%s4277_s0 + $0x440] sm:$0xff]  ;;  %v98_v40 = vld [vmem:[%s4277_s0 + $0x2b8] sm:$0xff] }
 0x141   :  { %v447_v46 = vpop.f32.mrf.mxu1  ;;  %v2348_v49 = vpop.eup %2347  ;;  %v1532_v50 = vadd.f32 1.0, %v2346_v42  ;;  %2359 = vpow2.f32 %v1258_v41  ;;  %641 = vmatmul.f32.gmra.mxu2 %v145_v38  ;;  %788 = vmatmul.f32.gmra.mxu3 %v194_v39  ;;  %v848_v51 = vsub.f32 0.0, %v300_v45  ;;  %v49_v39 = vld [vmem:[%s4277_s0 + $0x130] sm:$0xff] }
 0x142   :  { %v897_v52 = vsub.f32 0.0, %v447_v46  ;;  %v2350_v53 = vpop.eup %2349  ;;  %1924 = vst.msk [vmem:[%s4278_s2 + $0x398] sm:$0xff] %vm1808_vm0, %v2348_v49  ;;  %2361 = vrcp.f32 %v1483_v43 }
 0x143   :  { %v2352_v54 = vpop.eup %2351  ;;  %1973 = vst.msk [vmem:[%s4278_s2 + $0x520] sm:$0xff] %vm1808_vm0, %v2350_v53  ;;  %2363 = vrcp.f32 %v1532_v50  ;;  %v1064_v55 = vmul.f32 1.442695, %v848_v51  ;;  %347 = vmatmul.f32.gmra.mxu0 %v47_v47  ;;  %494 = vmatmul.f32.gmra.mxu1 %v96_v48 }
 0x144   :  { %v1162_v56 = vmul.f32 1.442695, %v897_v52  ;;  %v2354_v57 = vpop.eup %2353  ;;  %v1581_v58 = vadd.f32 1.0, %v2352_v54  ;;  %2365 = vpow2.f32 %v1356_v44  ;;  %v594_v59 = vpop.f32.mrf.mxu2 }
 0x145   :  { %v741_v60 = vpop.f32.mrf.mxu3  ;;  %v2356_v61 = vpop.eup %2355  ;;  %1827 = vst.msk [vmem:[%s4278_s2 + $0x90] sm:$0xff] %vm1808_vm0, %v2354_v57  ;;  %2367 = vpow2.f32 %v1064_v55  ;;  %v946_v62 = vsub.f32 0.0, %v594_v59  ;;  %v197_v59 = vld [vmem:[%s4277_s0 + $0x5d0] sm:$0xff] }
 0x146   :  { %v995_v63 = vsub.f32 0.0, %v741_v60  ;;  %v2358_v0 = vpop.eup %2357  ;;  %2369 = vrcp.f32 %v1581_v58  ;;  %v1435_v1 = vadd.f32 1.0, %v2356_v61  ;;  %v148_v58 = vld [vmem:[%s4277_s0 + $0x448] sm:$0xff] }
 0x147   :  { %v2360_v4 = vpop.eup %2359  ;;  %v1484_v5 = vadd.f32 1.0, %v2358_v0  ;;  %2371 = vpow2.f32 %v1162_v56  ;;  %v1260_v6 = vmul.f32 1.442695, %v946_v62 }
 0x148   :  { %v2362_v7 = vpop.eup %2361  ;;  %2373 = vrcp.f32 %v1435_v1  ;;  %v1533_v8 = vadd.f32 1.0, %v2360_v4  ;;  %v1358_v9 = vmul.f32 1.442695, %v995_v63  ;;  %v303_v10 = vpop.f32.mrf.mxu0  ;;  %v99_v4 = vld [vmem:[%s4277_s0 + $0x2c0] sm:$0xff] }
 0x149   :  { %v450_v11 = vpop.f32.mrf.mxu1  ;;  %v2364_v14 = vpop.eup %2363  ;;  %1876 = vst.msk [vmem:[%s4278_s2 + $0x218] sm:$0xff] %vm1808_vm0, %v2362_v7  ;;  %2375 = vrcp.f32 %v1484_v5  ;;  %644 = vmatmul.f32.gmra.mxu2 %v146_v2  ;;  %791 = vmatmul.f32.gmra.mxu3 %v195_v3  ;;  %v849_v15 = vsub.f32 0.0, %v303_v10  ;;  %v50_v3 = vld [vmem:[%s4277_s0 + $0x138] sm:$0xff] }
 0x14a   :  { %v898_v16 = vsub.f32 0.0, %v450_v11  ;;  %v2366_v17 = vpop.eup %2365  ;;  %1925 = vst.msk [vmem:[%s4278_s2 + $0x3a0] sm:$0xff] %vm1808_vm0, %v2364_v14  ;;  %2377 = vrcp.f32 %v1533_v8 }
 0x14b   :  { %v2368_v18 = vpop.eup %2367  ;;  %v1582_v19 = vadd.f32 1.0, %v2366_v17  ;;  %2379 = vpow2.f32 %v1260_v6  ;;  %v1066_v20 = vmul.f32 1.442695, %v849_v15  ;;  %350 = vmatmul.f32.gmra.mxu0 %v48_v12  ;;  %497 = vmatmul.f32.gmra.mxu1 %v97_v13 }
 0x14c   :  { %v2370_v21 = vpop.eup %2369  ;;  %v1436_v22 = vadd.f32 1.0, %v2368_v18  ;;  %2381 = vpow2.f32 %v1358_v9  ;;  %v597_v23 = vpop.f32.mrf.mxu2  ;;  %v1164_v26 = vmul.f32 1.442695, %v898_v16 }
 0x14d   :  { %v744_v24 = vpop.f32.mrf.mxu3  ;;  %v2372_v25 = vpop.eup %2371  ;;  %1974 = vst.msk [vmem:[%s4278_s2 + $0x528] sm:$0xff] %vm1808_vm0, %v2370_v21  ;;  %2383 = vrcp.f32 %v1582_v19  ;;  %v947_v27 = vsub.f32 0.0, %v597_v23  ;;  %v149_v23 = vld [vmem:[%s4277_s0 + $0x450] sm:$0xff] }
 0x14e   :  { %v996_v28 = vsub.f32 0.0, %v744_v24  ;;  %v2374_v29 = vpop.eup %2373  ;;  %2385 = vrcp.f32 %v1436_v22  ;;  %v1485_v30 = vadd.f32 1.0, %v2372_v25  ;;  %v198_v24 = vld [vmem:[%s4277_s0 + $0x5d8] sm:$0xff] }
 0x14f   :  { %v2376_v33 = vpop.eup %2375  ;;  %1828 = vst.msk [vmem:[%s4278_s2 + $0x98] sm:$0xff] %vm1808_vm0, %v2374_v29  ;;  %2387 = vpow2.f32 %v1066_v20  ;;  %v1262_v34 = vmul.f32 1.442695, %v947_v27 }
 0x150   :  { %v1360_v35 = vmul.f32 1.442695, %v996_v28  ;;  %v2378_v36 = vpop.eup %2377  ;;  %1877 = vst.msk [vmem:[%s4278_s2 + $0x220] sm:$0xff] %vm1808_vm0, %v2376_v33  ;;  %2389 = vrcp.f32 %v1485_v30  ;;  %v306_v37 = vpop.f32.mrf.mxu0  ;;  %v100_v33 = vld [vmem:[%s4277_s0 + $0x2c8] sm:$0xff] }
 0x151   :  { %v453_v38 = vpop.f32.mrf.mxu1  ;;  %v2380_v41 = vpop.eup %2379  ;;  %1926 = vst.msk [vmem:[%s4278_s2 + $0x3a8] sm:$0xff] %vm1808_vm0, %v2378_v36  ;;  %2391 = vpow2.f32 %v1164_v26  ;;  %647 = vmatmul.f32.gmra.mxu2 %v147_v31  ;;  %794 = vmatmul.f32.gmra.mxu3 %v196_v32  ;;  %v850_v42 = vsub.f32 0.0, %v306_v37  ;;  %v51_v32 = vld [vmem:[%s4277_s0 + $0x140] sm:$0xff] }
 0x152   :  { %v899_v43 = vsub.f32 0.0, %v453_v38  ;;  %v2382_v44 = vpop.eup %2381  ;;  %v1534_v45 = vadd.f32 1.0, %v2380_v41  ;;  %2393 = vpow2.f32 %v1262_v34 }
 0x153   :  { %v2384_v46 = vpop.eup %2383  ;;  %v1583_v47 = vadd.f32 1.0, %v2382_v44  ;;  %2395 = vpow2.f32 %v1360_v35  ;;  %v1068_v48 = vmul.f32 1.442695, %v850_v42  ;;  %353 = vmatmul.f32.gmra.mxu0 %v49_v39  ;;  %500 = vmatmul.f32.gmra.mxu1 %v98_v40 }
 0x154   :  { %v1166_v49 = vmul.f32 1.442695, %v899_v43  ;;  %v2386_v50 = vpop.eup %2385  ;;  %1975 = vst.msk [vmem:[%s4278_s2 + $0x530] sm:$0xff] %vm1808_vm0, %v2384_v46  ;;  %2397 = vrcp.f32 %v1534_v45  ;;  %v600_v51 = vpop.f32.mrf.mxu2 }
 0x155   :  { %v747_v52 = vpop.f32.mrf.mxu3  ;;  %v2388_v53 = vpop.eup %2387  ;;  %1829 = vst.msk [vmem:[%s4278_s2 + $0xa0] sm:$0xff] %vm1808_vm0, %v2386_v50  ;;  %2399 = vrcp.f32 %v1583_v47  ;;  %v948_v54 = vsub.f32 0.0, %v600_v51  ;;  %v150_v50 = vld [vmem:[%s4277_s0 + $0x458] sm:$0xff]  ;;  %v199_v51 = vld [vmem:[%s4277_s0 + $0x5e0] sm:$0xff] }
 0x156   :  { %v997_v55 = vsub.f32 0.0, %v747_v52  ;;  %v2390_v56 = vpop.eup %2389  ;;  %v1437_v57 = vadd.f32 1.0, %v2388_v53  ;;  %2401 = vpow2.f32 %v1068_v48 }
 0x157   :  { %v2392_v60 = vpop.eup %2391  ;;  %1878 = vst.msk [vmem:[%s4278_s2 + $0x228] sm:$0xff] %vm1808_vm0, %v2390_v56  ;;  %2403 = vpow2.f32 %v1166_v49  ;;  %v1264_v61 = vmul.f32 1.442695, %v948_v54 }
 0x158   :  { %v2394_v62 = vpop.eup %2393  ;;  %2405 = vrcp.f32 %v1437_v57  ;;  %v1486_v63 = vadd.f32 1.0, %v2392_v60  ;;  %v1362_v0 = vmul.f32 1.442695, %v997_v55  ;;  %v309_v1 = vpop.f32.mrf.mxu0  ;;  %v101_v60 = vld [vmem:[%s4277_s0 + $0x2d0] sm:$0xff] }
 0x159   :  { %v456_v2 = vpop.f32.mrf.mxu1  ;;  %v2396_v5 = vpop.eup %2395  ;;  %v1535_v6 = vadd.f32 1.0, %v2394_v62  ;;  %2407 = vpow2.f32 %v1264_v61  ;;  %650 = vmatmul.f32.gmra.mxu2 %v148_v58  ;;  %797 = vmatmul.f32.gmra.mxu3 %v197_v59  ;;  %v851_v7 = vsub.f32 0.0, %v309_v1  ;;  %v52_v59 = vld [vmem:[%s4277_s0 + $0x148] sm:$0xff] }
 0x15a   :  { %v900_v8 = vsub.f32 0.0, %v456_v2  ;;  %v2398_v9 = vpop.eup %2397  ;;  %2409 = vrcp.f32 %v1486_v63  ;;  %v1584_v10 = vadd.f32 1.0, %v2396_v5 }
 0x15b   :  { %v2400_v11 = vpop.eup %2399  ;;  %1927 = vst.msk [vmem:[%s4278_s2 + $0x3b0] sm:$0xff] %vm1808_vm0, %v2398_v9  ;;  %2411 = vrcp.f32 %v1535_v6  ;;  %v1070_v12 = vmul.f32 1.442695, %v851_v7  ;;  %356 = vmatmul.f32.gmra.mxu0 %v50_v3  ;;  %503 = vmatmul.f32.gmra.mxu1 %v99_v4 }
 0x15c   :  { %v2402_v13 = vpop.eup %2401  ;;  %1976 = vst.msk [vmem:[%s4278_s2 + $0x538] sm:$0xff] %vm1808_vm0, %v2400_v11  ;;  %2413 = vrcp.f32 %v1584_v10  ;;  %v1168_v14 = vmul.f32 1.442695, %v900_v8  ;;  %v603_v15 = vpop.f32.mrf.mxu2 }
 0x15d   :  { %v750_v16 = vpop.f32.mrf.mxu3  ;;  %v2404_v17 = vpop.eup %2403  ;;  %v1438_v18 = vadd.f32 1.0, %v2402_v13  ;;  %2415 = vpow2.f32 %v1362_v0  ;;  %v949_v19 = vsub.f32 0.0, %v603_v15  ;;  %v200_v15 = vld [vmem:[%s4277_s0 + $0x5e8] sm:$0xff] }
 0x15e   :  { %v998_v20 = vsub.f32 0.0, %v750_v16  ;;  %v2406_v21 = vpop.eup %2405  ;;  %v1487_v22 = vadd.f32 1.0, %v2404_v17  ;;  %2417 = vpow2.f32 %v1070_v12 }
 0x15f   :  { %v2408_v25 = vpop.eup %2407  ;;  %1830 = vst.msk [vmem:[%s4278_s2 + $0xa8] sm:$0xff] %vm1808_vm0, %v2406_v21  ;;  %2419 = vrcp.f32 %v1438_v18  ;;  %v1266_v26 = vmul.f32 1.442695, %v949_v19 }
 0x160   :  { %v2410_v27 = vpop.eup %2409  ;;  %2421 = vrcp.f32 %v1487_v22  ;;  %v1536_v28 = vadd.f32 1.0, %v2408_v25  ;;  %v1364_v29 = vmul.f32 1.442695, %v998_v20  ;;  %v312_v30 = vpop.f32.mrf.mxu0 }
 0x161   :  { %v459_v31 = vpop.f32.mrf.mxu1  ;;  %v2412_v34 = vpop.eup %2411  ;;  %1879 = vst.msk [vmem:[%s4278_s2 + $0x230] sm:$0xff] %vm1808_vm0, %v2410_v27  ;;  %2423 = vpow2.f32 %v1168_v14  ;;  %653 = vmatmul.f32.gmra.mxu2 %v149_v23  ;;  %800 = vmatmul.f32.gmra.mxu3 %v198_v24  ;;  %v852_v35 = vsub.f32 0.0, %v312_v30  ;;  %v151_v14 = vld [vmem:[%s4277_s0 + $0x460] sm:$0xff]  ;;  %v53_v23 = vld [vmem:[%s4277_s0 + $0x150] sm:$0xff]  ;;  %v102_v24 = vld [vmem:[%s4277_s0 + $0x2d8] sm:$0xff] }
 0x162   :  { %v901_v36 = vsub.f32 0.0, %v459_v31  ;;  %v2414_v37 = vpop.eup %2413  ;;  %1928 = vst.msk [vmem:[%s4278_s2 + $0x3b8] sm:$0xff] %vm1808_vm0, %v2412_v34  ;;  %2425 = vrcp.f32 %v1536_v28 }
 0x163   :  { %v2416_v38 = vpop.eup %2415  ;;  %1977 = vst.msk [vmem:[%s4278_s2 + $0x540] sm:$0xff] %vm1808_vm0, %v2414_v37  ;;  %2427 = vpow2.f32 %v1266_v26  ;;  %v1072_v39 = vmul.f32 1.442695, %v852_v35  ;;  %359 = vmatmul.f32.gmra.mxu0 %v51_v32  ;;  %506 = vmatmul.f32.gmra.mxu1 %v100_v33 }
 0x164   :  { %v2418_v40 = vpop.eup %2417  ;;  %v1585_v41 = vadd.f32 1.0, %v2416_v38  ;;  %2429 = vpow2.f32 %v1364_v29  ;;  %v1170_v42 = vmul.f32 1.442695, %v901_v36  ;;  %v606_v43 = vpop.f32.mrf.mxu2 }
 0x165   :  { %v753_v44 = vpop.f32.mrf.mxu3  ;;  %v2420_v45 = vpop.eup %2419  ;;  %v1439_v46 = vadd.f32 1.0, %v2418_v40  ;;  %2431 = vpow2.f32 %v1072_v39  ;;  %v950_v47 = vsub.f32 0.0, %v606_v43  ;;  %v201_v43 = vld [vmem:[%s4277_s0 + $0x5f0] sm:$0xff] }
 0x166   :  { %v999_v48 = vsub.f32 0.0, %v753_v44  ;;  %v2422_v49 = vpop.eup %2421  ;;  %1831 = vst.msk [vmem:[%s4278_s2 + $0xb0] sm:$0xff] %vm1808_vm0, %v2420_v45  ;;  %2433 = vrcp.f32 %v1585_v41 }
 0x167   :  { %v2424_v52 = vpop.eup %2423  ;;  %1880 = vst.msk [vmem:[%s4278_s2 + $0x238] sm:$0xff] %vm1808_vm0, %v2422_v49  ;;  %2435 = vrcp.f32 %v1439_v46  ;;  %v1268_v53 = vmul.f32 1.442695, %v950_v47 }
 0x168   :  { %v1366_v54 = vmul.f32 1.442695, %v999_v48  ;;  %v2426_v55 = vpop.eup %2425  ;;  %v1488_v56 = vadd.f32 1.0, %v2424_v52  ;;  %2437 = vpow2.f32 %v1170_v42  ;;  %v315_v57 = vpop.f32.mrf.mxu0  ;;  %v152_v42 = vld [vmem:[%s4277_s0 + $0x468] sm:$0xff]  ;;  %v103_v52 = vld [vmem:[%s4277_s0 + $0x2e0] sm:$0xff] }
 0x169   :  { %v462_v58 = vpop.f32.mrf.mxu1  ;;  %v2428_v61 = vpop.eup %2427  ;;  %1929 = vst.msk [vmem:[%s4278_s2 + $0x3c0] sm:$0xff] %vm1808_vm0, %v2426_v55  ;;  %2439 = vpow2.f32 %v1268_v53  ;;  %656 = vmatmul.f32.gmra.mxu2 %v150_v50  ;;  %803 = vmatmul.f32.gmra.mxu3 %v199_v51  ;;  %v853_v62 = vsub.f32 0.0, %v315_v57  ;;  %v54_v51 = vld [vmem:[%s4277_s0 + $0x158] sm:$0xff] }
 0x16a   :  { %v902_v63 = vsub.f32 0.0, %v462_v58  ;;  %v2430_v0 = vpop.eup %2429  ;;  %2441 = vrcp.f32 %v1488_v56  ;;  %v1537_v1 = vadd.f32 1.0, %v2428_v61 }
 0x16b   :  { %v2432_v2 = vpop.eup %2431  ;;  %v1586_v3 = vadd.f32 1.0, %v2430_v0  ;;  %2443 = vpow2.f32 %v1366_v54  ;;  %v1074_v4 = vmul.f32 1.442695, %v853_v62  ;;  %362 = vmatmul.f32.gmra.mxu0 %v52_v59  ;;  %509 = vmatmul.f32.gmra.mxu1 %v101_v60 }
 0x16c   :  { %v2434_v5 = vpop.eup %2433  ;;  %2445 = vrcp.f32 %v1537_v1  ;;  %v1440_v6 = vadd.f32 1.0, %v2432_v2  ;;  %v1172_v7 = vmul.f32 1.442695, %v902_v63  ;;  %v609_v8 = vpop.f32.mrf.mxu2 }
 0x16d   :  { %v756_v9 = vpop.f32.mrf.mxu3  ;;  %v2436_v10 = vpop.eup %2435  ;;  %1978 = vst.msk [vmem:[%s4278_s2 + $0x548] sm:$0xff] %vm1808_vm0, %v2434_v5  ;;  %2447 = vrcp.f32 %v1586_v3  ;;  %v951_v11 = vsub.f32 0.0, %v609_v8  ;;  %v202_v8 = vld [vmem:[%s4277_s0 + $0x5f8] sm:$0xff] }
 0x16e   :  { %v1000_v12 = vsub.f32 0.0, %v756_v9  ;;  %v2438_v13 = vpop.eup %2437  ;;  %1832 = vst.msk [vmem:[%s4278_s2 + $0xb8] sm:$0xff] %vm1808_vm0, %v2436_v10  ;;  %2449 = vrcp.f32 %v1440_v6 }
 0x16f   :  { %v2440_v16 = vpop.eup %2439  ;;  %v1489_v17 = vadd.f32 1.0, %v2438_v13  ;;  %2451 = vpow2.f32 %v1074_v4  ;;  %v1270_v18 = vmul.f32 1.442695, %v951_v11 }
 0x170   :  { %v2442_v19 = vpop.eup %2441  ;;  %v1538_v20 = vadd.f32 1.0, %v2440_v16  ;;  %2453 = vpow2.f32 %v1172_v7  ;;  %v318_v21 = vpop.f32.mrf.mxu0  ;;  %v1368_v26 = vmul.f32 1.442695, %v1000_v12  ;;  %v153_v7 = vld [vmem:[%s4277_s0 + $0x470] sm:$0xff]  ;;  %v104_v16 = vld [vmem:[%s4277_s0 + $0x2e8] sm:$0xff] }
 0x171   :  { %v465_v22 = vpop.f32.mrf.mxu1  ;;  %v2444_v25 = vpop.eup %2443  ;;  %1881 = vst.msk [vmem:[%s4278_s2 + $0x240] sm:$0xff] %vm1808_vm0, %v2442_v19  ;;  %2455 = vrcp.f32 %v1489_v17  ;;  %659 = vmatmul.f32.gmra.mxu2 %v151_v14  ;;  %806 = vmatmul.f32.gmra.mxu3 %v200_v15  ;;  %v854_v27 = vsub.f32 0.0, %v318_v21  ;;  %v55_v15 = vld [vmem:[%s4277_s0 + $0x160] sm:$0xff] }
 0x172   :  { %v903_v28 = vsub.f32 0.0, %v465_v22  ;;  %v2446_v29 = vpop.eup %2445  ;;  %2457 = vrcp.f32 %v1538_v20  ;;  %v1587_v30 = vadd.f32 1.0, %v2444_v25 }
 0x173   :  { %v2448_v31 = vpop.eup %2447  ;;  %1930 = vst.msk [vmem:[%s4278_s2 + $0x3c8] sm:$0xff] %vm1808_vm0, %v2446_v29  ;;  %2459 = vpow2.f32 %v1270_v18  ;;  %v1076_v32 = vmul.f32 1.442695, %v854_v27  ;;  %365 = vmatmul.f32.gmra.mxu0 %v53_v23  ;;  %512 = vmatmul.f32.gmra.mxu1 %v102_v24 }
 0x174   :  { %v1174_v33 = vmul.f32 1.442695, %v903_v28  ;;  %v2450_v34 = vpop.eup %2449  ;;  %1979 = vst.msk [vmem:[%s4278_s2 + $0x550] sm:$0xff] %vm1808_vm0, %v2448_v31  ;;  %2461 = vrcp.f32 %v1587_v30  ;;  %v612_v35 = vpop.f32.mrf.mxu2 }
 0x175   :  { %v759_v36 = vpop.f32.mrf.mxu3  ;;  %v2452_v37 = vpop.eup %2451  ;;  %1833 = vst.msk [vmem:[%s4278_s2 + $0xc0] sm:$0xff] %vm1808_vm0, %v2450_v34  ;;  %2463 = vpow2.f32 %v1368_v26  ;;  %v952_v38 = vsub.f32 0.0, %v612_v35  ;;  %v154_v34 = vld [vmem:[%s4277_s0 + $0x478] sm:$0xff]  ;;  %v203_v35 = vld [vmem:[%s4277_s0 + $0x600] sm:$0xff] }
 0x176   :  { %v1001_v39 = vsub.f32 0.0, %v759_v36  ;;  %v2454_v40 = vpop.eup %2453  ;;  %v1441_v41 = vadd.f32 1.0, %v2452_v37  ;;  %2465 = vpow2.f32 %v1076_v32 }
 0x177   :  { %v2456_v44 = vpop.eup %2455  ;;  %v1490_v45 = vadd.f32 1.0, %v2454_v40  ;;  %2467 = vpow2.f32 %v1174_v33  ;;  %v1272_v46 = vmul.f32 1.442695, %v952_v38 }
 0x178   :  { %v1370_v47 = vmul.f32 1.442695, %v1001_v39  ;;  %v2458_v48 = vpop.eup %2457  ;;  %1882 = vst.msk [vmem:[%s4278_s2 + $0x248] sm:$0xff] %vm1808_vm0, %v2456_v44  ;;  %2469 = vrcp.f32 %v1441_v41  ;;  %v321_v49 = vpop.f32.mrf.mxu0  ;;  %v105_v44 = vld [vmem:[%s4277_s0 + $0x2f0] sm:$0xff] }
 0x179   :  { %v468_v50 = vpop.f32.mrf.mxu1  ;;  %v2460_v53 = vpop.eup %2459  ;;  %1931 = vst.msk [vmem:[%s4278_s2 + $0x3d0] sm:$0xff] %vm1808_vm0, %v2458_v48  ;;  %2471 = vrcp.f32 %v1490_v45  ;;  %662 = vmatmul.f32.gmra.mxu2 %v152_v42  ;;  %809 = vmatmul.f32.gmra.mxu3 %v201_v43  ;;  %v855_v54 = vsub.f32 0.0, %v321_v49  ;;  %v56_v43 = vld [vmem:[%s4277_s0 + $0x168] sm:$0xff] }
 0x17a   :  { %v904_v55 = vsub.f32 0.0, %v468_v50  ;;  %v2462_v56 = vpop.eup %2461  ;;  %v1539_v57 = vadd.f32 1.0, %v2460_v53  ;;  %2473 = vpow2.f32 %v1272_v46 }
 0x17b   :  { %v2464_v58 = vpop.eup %2463  ;;  %1980 = vst.msk [vmem:[%s4278_s2 + $0x558] sm:$0xff] %vm1808_vm0, %v2462_v56  ;;  %2475 = vpow2.f32 %v1370_v47  ;;  %v1078_v59 = vmul.f32 1.442695, %v855_v54  ;;  %368 = vmatmul.f32.gmra.mxu0 %v54_v51  ;;  %515 = vmatmul.f32.gmra.mxu1 %v103_v52 }
 0x17c   :  { %v2466_v60 = vpop.eup %2465  ;;  %2477 = vrcp.f32 %v1539_v57  ;;  %v1588_v61 = vadd.f32 1.0, %v2464_v58  ;;  %v1176_v62 = vmul.f32 1.442695, %v904_v55  ;;  %v615_v63 = vpop.f32.mrf.mxu2 }
 0x17d   :  { %v762_v0 = vpop.f32.mrf.mxu3  ;;  %v2468_v1 = vpop.eup %2467  ;;  %v1442_v2 = vadd.f32 1.0, %v2466_v60  ;;  %2479 = vpow2.f32 %v1078_v59  ;;  %v953_v3 = vsub.f32 0.0, %v615_v63  ;;  %v204_v63 = vld [vmem:[%s4277_s0 + $0x608] sm:$0xff] }
 0x17e   :  { %v1002_v4 = vsub.f32 0.0, %v762_v0  ;;  %v2470_v5 = vpop.eup %2469  ;;  %2481 = vrcp.f32 %v1588_v61  ;;  %v1491_v6 = vadd.f32 1.0, %v2468_v1 }
 0x17f   :  { %v2472_v9 = vpop.eup %2471  ;;  %1834 = vst.msk [vmem:[%s4278_s2 + $0xc8] sm:$0xff] %vm1808_vm0, %v2470_v5  ;;  %2483 = vrcp.f32 %v1442_v2  ;;  %v1274_v10 = vmul.f32 1.442695, %v953_v3 }
 0x180   :  { %v2474_v11 = vpop.eup %2473  ;;  %1883 = vst.msk [vmem:[%s4278_s2 + $0x250] sm:$0xff] %vm1808_vm0, %v2472_v9  ;;  %2485 = vrcp.f32 %v1491_v6  ;;  %v1372_v12 = vmul.f32 1.442695, %v1002_v4  ;;  %v324_v13 = vpop.f32.mrf.mxu0  ;;  %v106_v9 = vld [vmem:[%s4277_s0 + $0x2f8] sm:$0xff] }
 0x181   :  { %v471_v14 = vpop.f32.mrf.mxu1  ;;  %v2476_v17 = vpop.eup %2475  ;;  %v1540_v18 = vadd.f32 1.0, %v2474_v11  ;;  %2487 = vpow2.f32 %v1176_v62  ;;  %665 = vmatmul.f32.gmra.mxu2 %v153_v7  ;;  %812 = vmatmul.f32.gmra.mxu3 %v202_v8  ;;  %v856_v19 = vsub.f32 0.0, %v324_v13  ;;  %v155_v62 = vld [vmem:[%s4277_s0 + $0x480] sm:$0xff]  ;;  %v57_v8 = vld [vmem:[%s4277_s0 + $0x170] sm:$0xff] }
 0x182   :  { %v905_v20 = vsub.f32 0.0, %v471_v14  ;;  %v2478_v21 = vpop.eup %2477  ;;  %v1589_v22 = vadd.f32 1.0, %v2476_v17  ;;  %2489 = vpow2.f32 %v1274_v10 }
 0x183   :  { %v2480_v23 = vpop.eup %2479  ;;  %1932 = vst.msk [vmem:[%s4278_s2 + $0x3d8] sm:$0xff] %vm1808_vm0, %v2478_v21  ;;  %2491 = vrcp.f32 %v1540_v18  ;;  %v1080_v24 = vmul.f32 1.442695, %v856_v19  ;;  %371 = vmatmul.f32.gmra.mxu0 %v55_v15  ;;  %518 = vmatmul.f32.gmra.mxu1 %v104_v16 }
 0x184   :  { %v2482_v25 = vpop.eup %2481  ;;  %2493 = vrcp.f32 %v1589_v22  ;;  %v1443_v26 = vadd.f32 1.0, %v2480_v23  ;;  %v1178_v27 = vmul.f32 1.442695, %v905_v20  ;;  %v618_v28 = vpop.f32.mrf.mxu2 }
 0x185   :  { %v765_v29 = vpop.f32.mrf.mxu3  ;;  %v2484_v30 = vpop.eup %2483  ;;  %1981 = vst.msk [vmem:[%s4278_s2 + $0x560] sm:$0xff] %vm1808_vm0, %v2482_v25  ;;  %2495 = vpow2.f32 %v1372_v12  ;;  %v954_v31 = vsub.f32 0.0, %v618_v28  ;;  %v205_v28 = vld [vmem:[%s4277_s0 + $0x610] sm:$0xff] }
 0x186   :  { %v1003_v32 = vsub.f32 0.0, %v765_v29  ;;  %v2486_v33 = vpop.eup %2485  ;;  %1835 = vst.msk [vmem:[%s4278_s2 + $0xd0] sm:$0xff] %vm1808_vm0, %v2484_v30  ;;  %2497 = vrcp.f32 %v1443_v26 }
 0x187   :  { %v2488_v36 = vpop.eup %2487  ;;  %1884 = vst.msk [vmem:[%s4278_s2 + $0x258] sm:$0xff] %vm1808_vm0, %v2486_v33  ;;  %2499 = vpow2.f32 %v1080_v24  ;;  %v1276_v37 = vmul.f32 1.442695, %v954_v31 }
 0x188   :  { %v2490_v38 = vpop.eup %2489  ;;  %v1492_v39 = vadd.f32 1.0, %v2488_v36  ;;  %2501 = vpow2.f32 %v1178_v27  ;;  %v1374_v40 = vmul.f32 1.442695, %v1003_v32  ;;  %v327_v41 = vpop.f32.mrf.mxu0  ;;  %v156_v27 = vld [vmem:[%s4277_s0 + $0x488] sm:$0xff]  ;;  %v107_v36 = vld [vmem:[%s4277_s0 + $0x300] sm:$0xff] }
 0x189   :  { %v474_v42 = vpop.f32.mrf.mxu1  ;;  %v2492_v45 = vpop.eup %2491  ;;  %v1541_v46 = vadd.f32 1.0, %v2490_v38  ;;  %2503 = vpow2.f32 %v1276_v37  ;;  %668 = vmatmul.f32.gmra.mxu2 %v154_v34  ;;  %815 = vmatmul.f32.gmra.mxu3 %v203_v35  ;;  %v857_v47 = vsub.f32 0.0, %v327_v41  ;;  %v58_v35 = vld [vmem:[%s4277_s0 + $0x178] sm:$0xff] }
 0x18a   :  { %v906_v48 = vsub.f32 0.0, %v474_v42  ;;  %v2494_v49 = vpop.eup %2493  ;;  %1933 = vst.msk [vmem:[%s4278_s2 + $0x3e0] sm:$0xff] %vm1808_vm0, %v2492_v45  ;;  %2505 = vrcp.f32 %v1492_v39 }
 0x18b   :  { %v2496_v50 = vpop.eup %2495  ;;  %1982 = vst.msk [vmem:[%s4278_s2 + $0x568] sm:$0xff] %vm1808_vm0, %v2494_v49  ;;  %2507 = vrcp.f32 %v1541_v46  ;;  %v1082_v51 = vmul.f32 1.442695, %v857_v47  ;;  %374 = vmatmul.f32.gmra.mxu0 %v56_v43  ;;  %521 = vmatmul.f32.gmra.mxu1 %v105_v44 }
 0x18c   :  { %v1180_v52 = vmul.f32 1.442695, %v906_v48  ;;  %v2498_v53 = vpop.eup %2497  ;;  %v1590_v54 = vadd.f32 1.0, %v2496_v50  ;;  %2509 = vpow2.f32 %v1374_v40  ;;  %v621_v55 = vpop.f32.mrf.mxu2 }
 0x18d   :  { %v768_v56 = vpop.f32.mrf.mxu3  ;;  %v2500_v57 = vpop.eup %2499  ;;  %1836 = vst.msk [vmem:[%s4278_s2 + $0xd8] sm:$0xff] %vm1808_vm0, %v2498_v53  ;;  %2511 = vpow2.f32 %v1082_v51  ;;  %v955_v58 = vsub.f32 0.0, %v621_v55  ;;  %v206_v55 = vld [vmem:[%s4277_s0 + $0x618] sm:$0xff] }
 0x18e   :  { %v1004_v59 = vsub.f32 0.0, %v768_v56  ;;  %v2502_v60 = vpop.eup %2501  ;;  %2513 = vrcp.f32 %v1590_v54  ;;  %v1444_v61 = vadd.f32 1.0, %v2500_v57  ;;  %v157_v54 = vld [vmem:[%s4277_s0 + $0x490] sm:$0xff] }
 0x18f   :  { %v2504_v0 = vpop.eup %2503  ;;  %v1493_v1 = vadd.f32 1.0, %v2502_v60  ;;  %2515 = vpow2.f32 %v1180_v52  ;;  %v1278_v2 = vmul.f32 1.442695, %v955_v58 }
 0x190   :  { %v2506_v3 = vpop.eup %2505  ;;  %2517 = vrcp.f32 %v1444_v61  ;;  %v1542_v4 = vadd.f32 1.0, %v2504_v0  ;;  %v1376_v5 = vmul.f32 1.442695, %v1004_v59  ;;  %v330_v6 = vpop.f32.mrf.mxu0  ;;  %v108_v0 = vld [vmem:[%s4277_s0 + $0x308] sm:$0xff] }
 0x191   :  { %v477_v7 = vpop.f32.mrf.mxu1  ;;  %v2508_v10 = vpop.eup %2507  ;;  %1885 = vst.msk [vmem:[%s4278_s2 + $0x260] sm:$0xff] %vm1808_vm0, %v2506_v3  ;;  %2519 = vrcp.f32 %v1493_v1  ;;  %671 = vmatmul.f32.gmra.mxu2 %v155_v62  ;;  %818 = vmatmul.f32.gmra.mxu3 %v204_v63  ;;  %v858_v11 = vsub.f32 0.0, %v330_v6  ;;  %v59_v63 = vld [vmem:[%s4277_s0 + $0x180] sm:$0xff] }
 0x192   :  { %v907_v12 = vsub.f32 0.0, %v477_v7  ;;  %v2510_v13 = vpop.eup %2509  ;;  %1934 = vst.msk [vmem:[%s4278_s2 + $0x3e8] sm:$0xff] %vm1808_vm0, %v2508_v10  ;;  %2521 = vrcp.f32 %v1542_v4 }
 0x193   :  { %v2512_v14 = vpop.eup %2511  ;;  %v1591_v15 = vadd.f32 1.0, %v2510_v13  ;;  %2523 = vpow2.f32 %v1278_v2  ;;  %v1084_v16 = vmul.f32 1.442695, %v858_v11  ;;  %377 = vmatmul.f32.gmra.mxu0 %v57_v8  ;;  %524 = vmatmul.f32.gmra.mxu1 %v106_v9 }
 0x194   :  { %v2514_v17 = vpop.eup %2513  ;;  %v1445_v18 = vadd.f32 1.0, %v2512_v14  ;;  %2525 = vpow2.f32 %v1376_v5  ;;  %v624_v19 = vpop.f32.mrf.mxu2  ;;  %v1182_v22 = vmul.f32 1.442695, %v907_v12 }
 0x195   :  { %v771_v20 = vpop.f32.mrf.mxu3  ;;  %v2516_v21 = vpop.eup %2515  ;;  %1983 = vst.msk [vmem:[%s4278_s2 + $0x570] sm:$0xff] %vm1808_vm0, %v2514_v17  ;;  %2527 = vrcp.f32 %v1591_v15  ;;  %v956_v23 = vsub.f32 0.0, %v624_v19 }
 0x196   :  { %v1005_v24 = vsub.f32 0.0, %v771_v20  ;;  %v2518_v25 = vpop.eup %2517  ;;  %2529 = vrcp.f32 %v1445_v18  ;;  %v1494_v26 = vadd.f32 1.0, %v2516_v21 }
 0x197   :  { %v2520_v29 = vpop.eup %2519  ;;  %1837 = vst.msk [vmem:[%s4278_s2 + $0xe0] sm:$0xff] %vm1808_vm0, %v2518_v25  ;;  %2531 = vpow2.f32 %v1084_v16  ;;  %v1280_v30 = vmul.f32 1.442695, %v956_v23 }
 0x198   :  { %v1378_v31 = vmul.f32 1.442695, %v1005_v24  ;;  %v2522_v32 = vpop.eup %2521  ;;  %1886 = vst.msk [vmem:[%s4278_s2 + $0x268] sm:$0xff] %vm1808_vm0, %v2520_v29  ;;  %2533 = vrcp.f32 %v1494_v26  ;;  %v333_v33 = vpop.f32.mrf.mxu0 }
 0x199   :  { %v480_v34 = vpop.f32.mrf.mxu1  ;;  %v2524_v37 = vpop.eup %2523  ;;  %1935 = vst.msk [vmem:[%s4278_s2 + $0x3f0] sm:$0xff] %vm1808_vm0, %v2522_v32  ;;  %2535 = vpow2.f32 %v1182_v22  ;;  %674 = vmatmul.f32.gmra.mxu2 %v156_v27  ;;  %821 = vmatmul.f32.gmra.mxu3 %v205_v28  ;;  %v859_v38 = vsub.f32 0.0, %v333_v33 }
 0x19a   :  { %v908_v39 = vsub.f32 0.0, %v480_v34  ;;  %v2526_v40 = vpop.eup %2525  ;;  %v1543_v41 = vadd.f32 1.0, %v2524_v37  ;;  %2537 = vpow2.f32 %v1280_v30 }
 0x19b   :  { %v2528_v42 = vpop.eup %2527  ;;  %v1592_v43 = vadd.f32 1.0, %v2526_v40  ;;  %2539 = vpow2.f32 %v1378_v31  ;;  %v1086_v44 = vmul.f32 1.442695, %v859_v38  ;;  %380 = vmatmul.f32.gmra.mxu0 %v58_v35  ;;  %527 = vmatmul.f32.gmra.mxu1 %v107_v36 }
 0x19c   :  { %v1184_v45 = vmul.f32 1.442695, %v908_v39  ;;  %v2530_v46 = vpop.eup %2529  ;;  %1984 = vst.msk [vmem:[%s4278_s2 + $0x578] sm:$0xff] %vm1808_vm0, %v2528_v42  ;;  %2541 = vrcp.f32 %v1543_v41  ;;  %v627_v47 = vpop.f32.mrf.mxu2 }
 0x19d   :  { %v774_v48 = vpop.f32.mrf.mxu3  ;;  %v2532_v49 = vpop.eup %2531  ;;  %1838 = vst.msk [vmem:[%s4278_s2 + $0xe8] sm:$0xff] %vm1808_vm0, %v2530_v46  ;;  %2543 = vrcp.f32 %v1592_v43  ;;  %v957_v50 = vsub.f32 0.0, %v627_v47 }
 0x19e   :  { %v1006_v51 = vsub.f32 0.0, %v774_v48  ;;  %v2534_v52 = vpop.eup %2533  ;;  %v1446_v53 = vadd.f32 1.0, %v2532_v49  ;;  %2545 = vpow2.f32 %v1086_v44 }
 0x19f   :  { %v2536_v56 = vpop.eup %2535  ;;  %1887 = vst.msk [vmem:[%s4278_s2 + $0x270] sm:$0xff] %vm1808_vm0, %v2534_v52  ;;  %2547 = vpow2.f32 %v1184_v45  ;;  %v1282_v57 = vmul.f32 1.442695, %v957_v50 }
 0x1a0   :  { %v2538_v58 = vpop.eup %2537  ;;  %2549 = vrcp.f32 %v1446_v53  ;;  %v1495_v59 = vadd.f32 1.0, %v2536_v56  ;;  %v1380_v60 = vmul.f32 1.442695, %v1006_v51  ;;  %v336_v61 = vpop.f32.mrf.mxu0 }
 0x1a1   :  { %v483_v62 = vpop.f32.mrf.mxu1  ;;  %v2540_v1 = vpop.eup %2539  ;;  %v1544_v2 = vadd.f32 1.0, %v2538_v58  ;;  %2551 = vpow2.f32 %v1282_v57  ;;  %677 = vmatmul.f32.gmra.mxu2 %v157_v54  ;;  %824 = vmatmul.f32.gmra.mxu3 %v206_v55  ;;  %v860_v3 = vsub.f32 0.0, %v336_v61 }
 0x1a2   :  { %v909_v4 = vsub.f32 0.0, %v483_v62  ;;  %v2542_v5 = vpop.eup %2541  ;;  %2553 = vrcp.f32 %v1495_v59  ;;  %v1593_v6 = vadd.f32 1.0, %v2540_v1 }
 0x1a3   :  { %v2544_v7 = vpop.eup %2543  ;;  %1936 = vst.msk [vmem:[%s4278_s2 + $0x3f8] sm:$0xff] %vm1808_vm0, %v2542_v5  ;;  %2555 = vrcp.f32 %v1544_v2  ;;  %v1088_v8 = vmul.f32 1.442695, %v860_v3  ;;  %383 = vmatmul.f32.gmra.mxu0 %v59_v63  ;;  %530 = vmatmul.f32.gmra.mxu1 %v108_v0 }
 0x1a4   :  { %v2546_v9 = vpop.eup %2545  ;;  %1985 = vst.msk [vmem:[%s4278_s2 + $0x580] sm:$0xff] %vm1808_vm0, %v2544_v7  ;;  %2557 = vrcp.f32 %v1593_v6  ;;  %v1186_v10 = vmul.f32 1.442695, %v909_v4  ;;  %v630_v11 = vpop.f32.mrf.mxu2 }
 0x1a5   :  { %v777_v12 = vpop.f32.mrf.mxu3  ;;  %v2548_v13 = vpop.eup %2547  ;;  %v1447_v14 = vadd.f32 1.0, %v2546_v9  ;;  %2559 = vpow2.f32 %v1380_v60  ;;  %v958_v15 = vsub.f32 0.0, %v630_v11 }
 0x1a6   :  { %v1007_v16 = vsub.f32 0.0, %v777_v12  ;;  %v2550_v17 = vpop.eup %2549  ;;  %v1496_v18 = vadd.f32 1.0, %v2548_v13  ;;  %2561 = vpow2.f32 %v1088_v8 }
 0x1a7   :  { %v2552_v19 = vpop.eup %2551  ;;  %1839 = vst.msk [vmem:[%s4278_s2 + $0xf0] sm:$0xff] %vm1808_vm0, %v2550_v17  ;;  %2563 = vrcp.f32 %v1447_v14  ;;  %v1284_v20 = vmul.f32 1.442695, %v958_v15 }
 0x1a8   :  { %v2554_v21 = vpop.eup %2553  ;;  %2565 = vrcp.f32 %v1496_v18  ;;  %v1545_v22 = vadd.f32 1.0, %v2552_v19  ;;  %v1382_v23 = vmul.f32 1.442695, %v1007_v16  ;;  %v339_v24 = vpop.f32.mrf.mxu0 }
 0x1a9   :  { %v486_v25 = vpop.f32.mrf.mxu1  ;;  %v2556_v26 = vpop.eup %2555  ;;  %1888 = vst.msk [vmem:[%s4278_s2 + $0x278] sm:$0xff] %vm1808_vm0, %v2554_v21  ;;  %2567 = vpow2.f32 %v1186_v10  ;;  %v861_v27 = vsub.f32 0.0, %v339_v24 }
 0x1aa   :  { %v910_v28 = vsub.f32 0.0, %v486_v25  ;;  %v2558_v29 = vpop.eup %2557  ;;  %1937 = vst.msk [vmem:[%s4278_s2 + $0x400] sm:$0xff] %vm1808_vm0, %v2556_v26  ;;  %2569 = vrcp.f32 %v1545_v22 }
 0x1ab   :  { %v2560_v30 = vpop.eup %2559  ;;  %1986 = vst.msk [vmem:[%s4278_s2 + $0x588] sm:$0xff] %vm1808_vm0, %v2558_v29  ;;  %2571 = vpow2.f32 %v1284_v20  ;;  %v1090_v31 = vmul.f32 1.442695, %v861_v27 }
 0x1ac   :  { %v2562_v32 = vpop.eup %2561  ;;  %v1594_v33 = vadd.f32 1.0, %v2560_v30  ;;  %2573 = vpow2.f32 %v1382_v23  ;;  %v1188_v34 = vmul.f32 1.442695, %v910_v28  ;;  %v633_v35 = vpop.f32.mrf.mxu2 }
 0x1ad   :  { %v780_v36 = vpop.f32.mrf.mxu3  ;;  %v2564_v37 = vpop.eup %2563  ;;  %v1448_v38 = vadd.f32 1.0, %v2562_v32  ;;  %2575 = vpow2.f32 %v1090_v31  ;;  %v959_v39 = vsub.f32 0.0, %v633_v35 }
 0x1ae   :  { %v1008_v40 = vsub.f32 0.0, %v780_v36  ;;  %v2566_v41 = vpop.eup %2565  ;;  %1840 = vst.msk [vmem:[%s4278_s2 + $0xf8] sm:$0xff] %vm1808_vm0, %v2564_v37  ;;  %2577 = vrcp.f32 %v1594_v33 }
 0x1af   :  { %v2568_v42 = vpop.eup %2567  ;;  %1889 = vst.msk [vmem:[%s4278_s2 + $0x280] sm:$0xff] %vm1808_vm0, %v2566_v41  ;;  %2579 = vrcp.f32 %v1448_v38  ;;  %v1286_v43 = vmul.f32 1.442695, %v959_v39 }
 0x1b0   :  { %v1384_v44 = vmul.f32 1.442695, %v1008_v40  ;;  %v2570_v45 = vpop.eup %2569  ;;  %v1497_v46 = vadd.f32 1.0, %v2568_v42  ;;  %2581 = vpow2.f32 %v1188_v34  ;;  %v342_v47 = vpop.f32.mrf.mxu0 }
 0x1b1   :  { %v489_v48 = vpop.f32.mrf.mxu1  ;;  %v2572_v49 = vpop.eup %2571  ;;  %1938 = vst.msk [vmem:[%s4278_s2 + $0x408] sm:$0xff] %vm1808_vm0, %v2570_v45  ;;  %2583 = vpow2.f32 %v1286_v43  ;;  %v862_v50 = vsub.f32 0.0, %v342_v47 }
 0x1b2   :  { %v911_v51 = vsub.f32 0.0, %v489_v48  ;;  %v2574_v52 = vpop.eup %2573  ;;  %2585 = vrcp.f32 %v1497_v46  ;;  %v1546_v53 = vadd.f32 1.0, %v2572_v49 }
 0x1b3   :  { %v2576_v54 = vpop.eup %2575  ;;  %v1595_v55 = vadd.f32 1.0, %v2574_v52  ;;  %2587 = vpow2.f32 %v1384_v44  ;;  %v1092_v56 = vmul.f32 1.442695, %v862_v50 }
 0x1b4   :  { %v2578_v57 = vpop.eup %2577  ;;  %2589 = vrcp.f32 %v1546_v53  ;;  %v1449_v58 = vadd.f32 1.0, %v2576_v54  ;;  %v1190_v59 = vmul.f32 1.442695, %v911_v51  ;;  %v636_v60 = vpop.f32.mrf.mxu2 }
 0x1b5   :  { %v783_v61 = vpop.f32.mrf.mxu3  ;;  %v2580_v62 = vpop.eup %2579  ;;  %1987 = vst.msk [vmem:[%s4278_s2 + $0x590] sm:$0xff] %vm1808_vm0, %v2578_v57  ;;  %2591 = vrcp.f32 %v1595_v55  ;;  %v960_v63 = vsub.f32 0.0, %v636_v60 }
 0x1b6   :  { %v1009_v0 = vsub.f32 0.0, %v783_v61  ;;  %v2582_v1 = vpop.eup %2581  ;;  %1841 = vst.msk [vmem:[%s4278_s2 + $0x100] sm:$0xff] %vm1808_vm0, %v2580_v62  ;;  %2593 = vrcp.f32 %v1449_v58 }
 0x1b7   :  { %v2584_v2 = vpop.eup %2583  ;;  %v1498_v3 = vadd.f32 1.0, %v2582_v1  ;;  %2595 = vpow2.f32 %v1092_v56  ;;  %v1288_v4 = vmul.f32 1.442695, %v960_v63 }
 0x1b8   :  { %v2586_v5 = vpop.eup %2585  ;;  %v1547_v6 = vadd.f32 1.0, %v2584_v2  ;;  %2597 = vpow2.f32 %v1190_v59  ;;  %v345_v7 = vpop.f32.mrf.mxu0  ;;  %v1386_v10 = vmul.f32 1.442695, %v1009_v0 }
 0x1b9   :  { %v492_v8 = vpop.f32.mrf.mxu1  ;;  %v2588_v9 = vpop.eup %2587  ;;  %1890 = vst.msk [vmem:[%s4278_s2 + $0x288] sm:$0xff] %vm1808_vm0, %v2586_v5  ;;  %2599 = vrcp.f32 %v1498_v3  ;;  %v863_v11 = vsub.f32 0.0, %v345_v7 }
 0x1ba   :  { %v912_v12 = vsub.f32 0.0, %v492_v8  ;;  %v2590_v13 = vpop.eup %2589  ;;  %2601 = vrcp.f32 %v1547_v6  ;;  %v1596_v14 = vadd.f32 1.0, %v2588_v9 }
 0x1bb   :  { %v2592_v15 = vpop.eup %2591  ;;  %1939 = vst.msk [vmem:[%s4278_s2 + $0x410] sm:$0xff] %vm1808_vm0, %v2590_v13  ;;  %2603 = vpow2.f32 %v1288_v4  ;;  %v1094_v16 = vmul.f32 1.442695, %v863_v11 }
 0x1bc   :  { %v1192_v17 = vmul.f32 1.442695, %v912_v12  ;;  %v2594_v18 = vpop.eup %2593  ;;  %1988 = vst.msk [vmem:[%s4278_s2 + $0x598] sm:$0xff] %vm1808_vm0, %v2592_v15  ;;  %2605 = vrcp.f32 %v1596_v14  ;;  %v639_v19 = vpop.f32.mrf.mxu2 }
 0x1bd   :  { %v786_v20 = vpop.f32.mrf.mxu3  ;;  %v2596_v21 = vpop.eup %2595  ;;  %1842 = vst.msk [vmem:[%s4278_s2 + $0x108] sm:$0xff] %vm1808_vm0, %v2594_v18  ;;  %2607 = vpow2.f32 %v1386_v10  ;;  %v961_v22 = vsub.f32 0.0, %v639_v19 }
 0x1be   :  { %v1010_v23 = vsub.f32 0.0, %v786_v20  ;;  %v2598_v24 = vpop.eup %2597  ;;  %v1450_v25 = vadd.f32 1.0, %v2596_v21  ;;  %2609 = vpow2.f32 %v1094_v16 }
 0x1bf   :  { %v2600_v26 = vpop.eup %2599  ;;  %v1499_v27 = vadd.f32 1.0, %v2598_v24  ;;  %2611 = vpow2.f32 %v1192_v17  ;;  %v1290_v28 = vmul.f32 1.442695, %v961_v22 }
 0x1c0   :  { %v1388_v29 = vmul.f32 1.442695, %v1010_v23  ;;  %v2602_v30 = vpop.eup %2601  ;;  %1891 = vst.msk [vmem:[%s4278_s2 + $0x290] sm:$0xff] %vm1808_vm0, %v2600_v26  ;;  %2613 = vrcp.f32 %v1450_v25  ;;  %v348_v31 = vpop.f32.mrf.mxu0 }
 0x1c1   :  { %v495_v32 = vpop.f32.mrf.mxu1  ;;  %v2604_v33 = vpop.eup %2603  ;;  %1940 = vst.msk [vmem:[%s4278_s2 + $0x418] sm:$0xff] %vm1808_vm0, %v2602_v30  ;;  %2615 = vrcp.f32 %v1499_v27  ;;  %v864_v34 = vsub.f32 0.0, %v348_v31 }
 0x1c2   :  { %v913_v35 = vsub.f32 0.0, %v495_v32  ;;  %v2606_v36 = vpop.eup %2605  ;;  %v1548_v37 = vadd.f32 1.0, %v2604_v33  ;;  %2617 = vpow2.f32 %v1290_v28 }
 0x1c3   :  { %v2608_v38 = vpop.eup %2607  ;;  %1989 = vst.msk [vmem:[%s4278_s2 + $0x5a0] sm:$0xff] %vm1808_vm0, %v2606_v36  ;;  %2619 = vpow2.f32 %v1388_v29  ;;  %v1096_v39 = vmul.f32 1.442695, %v864_v34 }
 0x1c4   :  { %v2610_v40 = vpop.eup %2609  ;;  %2621 = vrcp.f32 %v1548_v37  ;;  %v1597_v41 = vadd.f32 1.0, %v2608_v38  ;;  %v1194_v42 = vmul.f32 1.442695, %v913_v35  ;;  %v642_v43 = vpop.f32.mrf.mxu2 }
 0x1c5   :  { %v789_v44 = vpop.f32.mrf.mxu3  ;;  %v2612_v45 = vpop.eup %2611  ;;  %v1451_v46 = vadd.f32 1.0, %v2610_v40  ;;  %2623 = vpow2.f32 %v1096_v39  ;;  %v962_v47 = vsub.f32 0.0, %v642_v43 }
 0x1c6   :  { %v1011_v48 = vsub.f32 0.0, %v789_v44  ;;  %v2614_v49 = vpop.eup %2613  ;;  %2625 = vrcp.f32 %v1597_v41  ;;  %v1500_v50 = vadd.f32 1.0, %v2612_v45 }
 0x1c7   :  { %v2616_v51 = vpop.eup %2615  ;;  %1843 = vst.msk [vmem:[%s4278_s2 + $0x110] sm:$0xff] %vm1808_vm0, %v2614_v49  ;;  %2627 = vrcp.f32 %v1451_v46  ;;  %v1292_v52 = vmul.f32 1.442695, %v962_v47 }
 0x1c8   :  { %v2618_v53 = vpop.eup %2617  ;;  %1892 = vst.msk [vmem:[%s4278_s2 + $0x298] sm:$0xff] %vm1808_vm0, %v2616_v51  ;;  %2629 = vrcp.f32 %v1500_v50  ;;  %v1390_v54 = vmul.f32 1.442695, %v1011_v48  ;;  %v351_v55 = vpop.f32.mrf.mxu0 }
 0x1c9   :  { %v498_v56 = vpop.f32.mrf.mxu1  ;;  %v2620_v57 = vpop.eup %2619  ;;  %v1549_v58 = vadd.f32 1.0, %v2618_v53  ;;  %2631 = vpow2.f32 %v1194_v42  ;;  %v865_v59 = vsub.f32 0.0, %v351_v55 }
 0x1ca   :  { %v914_v60 = vsub.f32 0.0, %v498_v56  ;;  %v2622_v61 = vpop.eup %2621  ;;  %v1598_v62 = vadd.f32 1.0, %v2620_v57  ;;  %2633 = vpow2.f32 %v1292_v52 }
 0x1cb   :  { %v2624_v63 = vpop.eup %2623  ;;  %1941 = vst.msk [vmem:[%s4278_s2 + $0x420] sm:$0xff] %vm1808_vm0, %v2622_v61  ;;  %2635 = vrcp.f32 %v1549_v58  ;;  %v1098_v0 = vmul.f32 1.442695, %v865_v59 }
 0x1cc   :  { %v2626_v1 = vpop.eup %2625  ;;  %2637 = vrcp.f32 %v1598_v62  ;;  %v1452_v2 = vadd.f32 1.0, %v2624_v63  ;;  %v1196_v3 = vmul.f32 1.442695, %v914_v60  ;;  %v645_v4 = vpop.f32.mrf.mxu2 }
 0x1cd   :  { %v792_v5 = vpop.f32.mrf.mxu3  ;;  %v2628_v6 = vpop.eup %2627  ;;  %1990 = vst.msk [vmem:[%s4278_s2 + $0x5a8] sm:$0xff] %vm1808_vm0, %v2626_v1  ;;  %2639 = vpow2.f32 %v1390_v54  ;;  %v963_v7 = vsub.f32 0.0, %v645_v4 }
 0x1ce   :  { %v1012_v8 = vsub.f32 0.0, %v792_v5  ;;  %v2630_v9 = vpop.eup %2629  ;;  %1844 = vst.msk [vmem:[%s4278_s2 + $0x118] sm:$0xff] %vm1808_vm0, %v2628_v6  ;;  %2641 = vrcp.f32 %v1452_v2 }
 0x1cf   :  { %v2632_v10 = vpop.eup %2631  ;;  %1893 = vst.msk [vmem:[%s4278_s2 + $0x2a0] sm:$0xff] %vm1808_vm0, %v2630_v9  ;;  %2643 = vpow2.f32 %v1098_v0  ;;  %v1294_v11 = vmul.f32 1.442695, %v963_v7 }
 0x1d0   :  { %v2634_v12 = vpop.eup %2633  ;;  %v1501_v13 = vadd.f32 1.0, %v2632_v10  ;;  %2645 = vpow2.f32 %v1196_v3  ;;  %v1392_v14 = vmul.f32 1.442695, %v1012_v8  ;;  %v354_v15 = vpop.f32.mrf.mxu0 }
 0x1d1   :  { %v501_v16 = vpop.f32.mrf.mxu1  ;;  %v2636_v17 = vpop.eup %2635  ;;  %v1550_v18 = vadd.f32 1.0, %v2634_v12  ;;  %2647 = vpow2.f32 %v1294_v11  ;;  %v866_v19 = vsub.f32 0.0, %v354_v15 }
 0x1d2   :  { %v915_v20 = vsub.f32 0.0, %v501_v16  ;;  %v2638_v21 = vpop.eup %2637  ;;  %1942 = vst.msk [vmem:[%s4278_s2 + $0x428] sm:$0xff] %vm1808_vm0, %v2636_v17  ;;  %2649 = vrcp.f32 %v1501_v13 }
 0x1d3   :  { %v2640_v22 = vpop.eup %2639  ;;  %1991 = vst.msk [vmem:[%s4278_s2 + $0x5b0] sm:$0xff] %vm1808_vm0, %v2638_v21  ;;  %2651 = vrcp.f32 %v1550_v18  ;;  %v1100_v23 = vmul.f32 1.442695, %v866_v19 }
 0x1d4   :  { %v1198_v24 = vmul.f32 1.442695, %v915_v20  ;;  %v2642_v25 = vpop.eup %2641  ;;  %v1599_v26 = vadd.f32 1.0, %v2640_v22  ;;  %2653 = vpow2.f32 %v1392_v14  ;;  %v648_v27 = vpop.f32.mrf.mxu2 }
 0x1d5   :  { %v795_v28 = vpop.f32.mrf.mxu3  ;;  %v2644_v29 = vpop.eup %2643  ;;  %1845 = vst.msk [vmem:[%s4278_s2 + $0x120] sm:$0xff] %vm1808_vm0, %v2642_v25  ;;  %2655 = vpow2.f32 %v1100_v23  ;;  %v964_v30 = vsub.f32 0.0, %v648_v27 }
 0x1d6   :  { %v1013_v31 = vsub.f32 0.0, %v795_v28  ;;  %v2646_v32 = vpop.eup %2645  ;;  %2657 = vrcp.f32 %v1599_v26  ;;  %v1453_v33 = vadd.f32 1.0, %v2644_v29 }
 0x1d7   :  { %v2648_v34 = vpop.eup %2647  ;;  %v1502_v35 = vadd.f32 1.0, %v2646_v32  ;;  %2659 = vpow2.f32 %v1198_v24  ;;  %v1296_v36 = vmul.f32 1.442695, %v964_v30 }
 0x1d8   :  { %v2650_v37 = vpop.eup %2649  ;;  %2661 = vrcp.f32 %v1453_v33  ;;  %v1551_v38 = vadd.f32 1.0, %v2648_v34  ;;  %v1394_v39 = vmul.f32 1.442695, %v1013_v31  ;;  %v357_v40 = vpop.f32.mrf.mxu0 }
 0x1d9   :  { %v504_v41 = vpop.f32.mrf.mxu1  ;;  %v2652_v42 = vpop.eup %2651  ;;  %1894 = vst.msk [vmem:[%s4278_s2 + $0x2a8] sm:$0xff] %vm1808_vm0, %v2650_v37  ;;  %2663 = vrcp.f32 %v1502_v35  ;;  %v867_v43 = vsub.f32 0.0, %v357_v40 }
 0x1da   :  { %v916_v44 = vsub.f32 0.0, %v504_v41  ;;  %v2654_v45 = vpop.eup %2653  ;;  %1943 = vst.msk [vmem:[%s4278_s2 + $0x430] sm:$0xff] %vm1808_vm0, %v2652_v42  ;;  %2665 = vrcp.f32 %v1551_v38 }
 0x1db   :  { %v2656_v46 = vpop.eup %2655  ;;  %v1600_v47 = vadd.f32 1.0, %v2654_v45  ;;  %2667 = vpow2.f32 %v1296_v36  ;;  %v1102_v48 = vmul.f32 1.442695, %v867_v43 }
 0x1dc   :  { %v2658_v49 = vpop.eup %2657  ;;  %v1454_v50 = vadd.f32 1.0, %v2656_v46  ;;  %2669 = vpow2.f32 %v1394_v39  ;;  %v651_v51 = vpop.f32.mrf.mxu2  ;;  %v1200_v54 = vmul.f32 1.442695, %v916_v44 }
 0x1dd   :  { %v798_v52 = vpop.f32.mrf.mxu3  ;;  %v2660_v53 = vpop.eup %2659  ;;  %1992 = vst.msk [vmem:[%s4278_s2 + $0x5b8] sm:$0xff] %vm1808_vm0, %v2658_v49  ;;  %2671 = vrcp.f32 %v1600_v47  ;;  %v965_v55 = vsub.f32 0.0, %v651_v51 }
 0x1de   :  { %v1014_v56 = vsub.f32 0.0, %v798_v52  ;;  %v2662_v57 = vpop.eup %2661  ;;  %2673 = vrcp.f32 %v1454_v50  ;;  %v1503_v58 = vadd.f32 1.0, %v2660_v53 }
 0x1df   :  { %v2664_v59 = vpop.eup %2663  ;;  %1846 = vst.msk [vmem:[%s4278_s2 + $0x128] sm:$0xff] %vm1808_vm0, %v2662_v57  ;;  %2675 = vpow2.f32 %v1102_v48  ;;  %v1298_v60 = vmul.f32 1.442695, %v965_v55 }
 0x1e0   :  { %v1396_v61 = vmul.f32 1.442695, %v1014_v56  ;;  %v2666_v62 = vpop.eup %2665  ;;  %1895 = vst.msk [vmem:[%s4278_s2 + $0x2b0] sm:$0xff] %vm1808_vm0, %v2664_v59  ;;  %2677 = vrcp.f32 %v1503_v58  ;;  %v360_v63 = vpop.f32.mrf.mxu0 }
 0x1e1   :  { %v507_v0 = vpop.f32.mrf.mxu1  ;;  %v2668_v1 = vpop.eup %2667  ;;  %1944 = vst.msk [vmem:[%s4278_s2 + $0x438] sm:$0xff] %vm1808_vm0, %v2666_v62  ;;  %2679 = vpow2.f32 %v1200_v54  ;;  %v868_v2 = vsub.f32 0.0, %v360_v63 }
 0x1e2   :  { %v917_v3 = vsub.f32 0.0, %v507_v0  ;;  %v2670_v4 = vpop.eup %2669  ;;  %v1552_v5 = vadd.f32 1.0, %v2668_v1  ;;  %2681 = vpow2.f32 %v1298_v60 }
 0x1e3   :  { %v2672_v6 = vpop.eup %2671  ;;  %v1601_v7 = vadd.f32 1.0, %v2670_v4  ;;  %2683 = vpow2.f32 %v1396_v61  ;;  %v1104_v8 = vmul.f32 1.442695, %v868_v2 }
 0x1e4   :  { %v1202_v9 = vmul.f32 1.442695, %v917_v3  ;;  %v2674_v10 = vpop.eup %2673  ;;  %1993 = vst.msk [vmem:[%s4278_s2 + $0x5c0] sm:$0xff] %vm1808_vm0, %v2672_v6  ;;  %2685 = vrcp.f32 %v1552_v5  ;;  %v654_v11 = vpop.f32.mrf.mxu2 }
 0x1e5   :  { %v801_v12 = vpop.f32.mrf.mxu3  ;;  %v2676_v13 = vpop.eup %2675  ;;  %1847 = vst.msk [vmem:[%s4278_s2 + $0x130] sm:$0xff] %vm1808_vm0, %v2674_v10  ;;  %2687 = vrcp.f32 %v1601_v7  ;;  %v966_v14 = vsub.f32 0.0, %v654_v11 }
 0x1e6   :  { %v1015_v15 = vsub.f32 0.0, %v801_v12  ;;  %v2678_v16 = vpop.eup %2677  ;;  %v1455_v17 = vadd.f32 1.0, %v2676_v13  ;;  %2689 = vpow2.f32 %v1104_v8 }
 0x1e7   :  { %v2680_v18 = vpop.eup %2679  ;;  %1896 = vst.msk [vmem:[%s4278_s2 + $0x2b8] sm:$0xff] %vm1808_vm0, %v2678_v16  ;;  %2691 = vpow2.f32 %v1202_v9  ;;  %v1300_v19 = vmul.f32 1.442695, %v966_v14 }
 0x1e8   :  { %v2682_v20 = vpop.eup %2681  ;;  %2693 = vrcp.f32 %v1455_v17  ;;  %v1504_v21 = vadd.f32 1.0, %v2680_v18  ;;  %v1398_v22 = vmul.f32 1.442695, %v1015_v15  ;;  %v363_v23 = vpop.f32.mrf.mxu0 }
 0x1e9   :  { %v510_v24 = vpop.f32.mrf.mxu1  ;;  %v2684_v25 = vpop.eup %2683  ;;  %v1553_v26 = vadd.f32 1.0, %v2682_v20  ;;  %2695 = vpow2.f32 %v1300_v19  ;;  %v869_v27 = vsub.f32 0.0, %v363_v23 }
 0x1ea   :  { %v918_v28 = vsub.f32 0.0, %v510_v24  ;;  %v2686_v29 = vpop.eup %2685  ;;  %2697 = vrcp.f32 %v1504_v21  ;;  %v1602_v30 = vadd.f32 1.0, %v2684_v25 }
 0x1eb   :  { %v2688_v31 = vpop.eup %2687  ;;  %1945 = vst.msk [vmem:[%s4278_s2 + $0x440] sm:$0xff] %vm1808_vm0, %v2686_v29  ;;  %2699 = vrcp.f32 %v1553_v26  ;;  %v1106_v32 = vmul.f32 1.442695, %v869_v27 }
 0x1ec   :  { %v2690_v33 = vpop.eup %2689  ;;  %1994 = vst.msk [vmem:[%s4278_s2 + $0x5c8] sm:$0xff] %vm1808_vm0, %v2688_v31  ;;  %2701 = vrcp.f32 %v1602_v30  ;;  %v1204_v34 = vmul.f32 1.442695, %v918_v28  ;;  %v657_v35 = vpop.f32.mrf.mxu2 }
 0x1ed   :  { %v804_v36 = vpop.f32.mrf.mxu3  ;;  %v2692_v37 = vpop.eup %2691  ;;  %v1456_v38 = vadd.f32 1.0, %v2690_v33  ;;  %2703 = vpow2.f32 %v1398_v22  ;;  %v967_v39 = vsub.f32 0.0, %v657_v35 }
 0x1ee   :  { %v1016_v40 = vsub.f32 0.0, %v804_v36  ;;  %v2694_v41 = vpop.eup %2693  ;;  %v1505_v42 = vadd.f32 1.0, %v2692_v37  ;;  %2705 = vpow2.f32 %v1106_v32 }
 0x1ef   :  { %v2696_v43 = vpop.eup %2695  ;;  %1848 = vst.msk [vmem:[%s4278_s2 + $0x138] sm:$0xff] %vm1808_vm0, %v2694_v41  ;;  %2707 = vrcp.f32 %v1456_v38  ;;  %v1302_v44 = vmul.f32 1.442695, %v967_v39 }
 0x1f0   :  { %v2698_v45 = vpop.eup %2697  ;;  %2709 = vrcp.f32 %v1505_v42  ;;  %v1554_v46 = vadd.f32 1.0, %v2696_v43  ;;  %v1400_v47 = vmul.f32 1.442695, %v1016_v40  ;;  %v366_v48 = vpop.f32.mrf.mxu0 }
 0x1f1   :  { %v513_v49 = vpop.f32.mrf.mxu1  ;;  %v2700_v50 = vpop.eup %2699  ;;  %1897 = vst.msk [vmem:[%s4278_s2 + $0x2c0] sm:$0xff] %vm1808_vm0, %v2698_v45  ;;  %2711 = vpow2.f32 %v1204_v34  ;;  %v870_v51 = vsub.f32 0.0, %v366_v48 }
 0x1f2   :  { %v919_v52 = vsub.f32 0.0, %v513_v49  ;;  %v2702_v53 = vpop.eup %2701  ;;  %1946 = vst.msk [vmem:[%s4278_s2 + $0x448] sm:$0xff] %vm1808_vm0, %v2700_v50  ;;  %2713 = vrcp.f32 %v1554_v46 }
 0x1f3   :  { %v2704_v54 = vpop.eup %2703  ;;  %1995 = vst.msk [vmem:[%s4278_s2 + $0x5d0] sm:$0xff] %vm1808_vm0, %v2702_v53  ;;  %2715 = vpow2.f32 %v1302_v44  ;;  %v1108_v55 = vmul.f32 1.442695, %v870_v51 }
 0x1f4   :  { %v2706_v56 = vpop.eup %2705  ;;  %v1603_v57 = vadd.f32 1.0, %v2704_v54  ;;  %2717 = vpow2.f32 %v1400_v47  ;;  %v1206_v58 = vmul.f32 1.442695, %v919_v52  ;;  %v660_v59 = vpop.f32.mrf.mxu2 }
 0x1f5   :  { %v807_v60 = vpop.f32.mrf.mxu3  ;;  %v2708_v61 = vpop.eup %2707  ;;  %v1457_v62 = vadd.f32 1.0, %v2706_v56  ;;  %2719 = vpow2.f32 %v1108_v55  ;;  %v968_v63 = vsub.f32 0.0, %v660_v59 }
 0x1f6   :  { %v1017_v0 = vsub.f32 0.0, %v807_v60  ;;  %v2710_v1 = vpop.eup %2709  ;;  %1849 = vst.msk [vmem:[%s4278_s2 + $0x140] sm:$0xff] %vm1808_vm0, %v2708_v61  ;;  %2721 = vrcp.f32 %v1603_v57 }
 0x1f7   :  { %v2712_v2 = vpop.eup %2711  ;;  %1898 = vst.msk [vmem:[%s4278_s2 + $0x2c8] sm:$0xff] %vm1808_vm0, %v2710_v1  ;;  %2723 = vrcp.f32 %v1457_v62  ;;  %v1304_v3 = vmul.f32 1.442695, %v968_v63 }
 0x1f8   :  { %v1402_v4 = vmul.f32 1.442695, %v1017_v0  ;;  %v2714_v5 = vpop.eup %2713  ;;  %v1506_v6 = vadd.f32 1.0, %v2712_v2  ;;  %2725 = vpow2.f32 %v1206_v58  ;;  %v369_v7 = vpop.f32.mrf.mxu0 }
 0x1f9   :  { %v516_v8 = vpop.f32.mrf.mxu1  ;;  %v2716_v9 = vpop.eup %2715  ;;  %1947 = vst.msk [vmem:[%s4278_s2 + $0x450] sm:$0xff] %vm1808_vm0, %v2714_v5  ;;  %2727 = vpow2.f32 %v1304_v3  ;;  %v871_v10 = vsub.f32 0.0, %v369_v7 }
 0x1fa   :  { %v920_v11 = vsub.f32 0.0, %v516_v8  ;;  %v2718_v12 = vpop.eup %2717  ;;  %2729 = vrcp.f32 %v1506_v6  ;;  %v1555_v13 = vadd.f32 1.0, %v2716_v9 }
 0x1fb   :  { %v2720_v14 = vpop.eup %2719  ;;  %v1604_v15 = vadd.f32 1.0, %v2718_v12  ;;  %2731 = vpow2.f32 %v1402_v4  ;;  %v1110_v16 = vmul.f32 1.442695, %v871_v10 }
 0x1fc   :  { %v2722_v17 = vpop.eup %2721  ;;  %2733 = vrcp.f32 %v1555_v13  ;;  %v1458_v18 = vadd.f32 1.0, %v2720_v14  ;;  %v1208_v19 = vmul.f32 1.442695, %v920_v11  ;;  %v663_v20 = vpop.f32.mrf.mxu2 }
 0x1fd   :  { %v810_v21 = vpop.f32.mrf.mxu3  ;;  %v2724_v22 = vpop.eup %2723  ;;  %1996 = vst.msk [vmem:[%s4278_s2 + $0x5d8] sm:$0xff] %vm1808_vm0, %v2722_v17  ;;  %2735 = vrcp.f32 %v1604_v15  ;;  %v969_v23 = vsub.f32 0.0, %v663_v20 }
 0x1fe   :  { %v1018_v24 = vsub.f32 0.0, %v810_v21  ;;  %v2726_v25 = vpop.eup %2725  ;;  %1850 = vst.msk [vmem:[%s4278_s2 + $0x148] sm:$0xff] %vm1808_vm0, %v2724_v22  ;;  %2737 = vrcp.f32 %v1458_v18 }
 0x1ff   :  { %v2728_v26 = vpop.eup %2727  ;;  %v1507_v27 = vadd.f32 1.0, %v2726_v25  ;;  %2739 = vpow2.f32 %v1110_v16  ;;  %v1306_v28 = vmul.f32 1.442695, %v969_v23 }
 0x200   :  { %v2730_v29 = vpop.eup %2729  ;;  %v1556_v30 = vadd.f32 1.0, %v2728_v26  ;;  %2741 = vpow2.f32 %v1208_v19  ;;  %v372_v31 = vpop.f32.mrf.mxu0  ;;  %v1404_v34 = vmul.f32 1.442695, %v1018_v24 }
 0x201   :  { %v519_v32 = vpop.f32.mrf.mxu1  ;;  %v2732_v33 = vpop.eup %2731  ;;  %1899 = vst.msk [vmem:[%s4278_s2 + $0x2d0] sm:$0xff] %vm1808_vm0, %v2730_v29  ;;  %2743 = vrcp.f32 %v1507_v27  ;;  %v872_v35 = vsub.f32 0.0, %v372_v31 }
 0x202   :  { %v921_v36 = vsub.f32 0.0, %v519_v32  ;;  %v2734_v37 = vpop.eup %2733  ;;  %2745 = vrcp.f32 %v1556_v30  ;;  %v1605_v38 = vadd.f32 1.0, %v2732_v33 }
 0x203   :  { %v2736_v39 = vpop.eup %2735  ;;  %1948 = vst.msk [vmem:[%s4278_s2 + $0x458] sm:$0xff] %vm1808_vm0, %v2734_v37  ;;  %2747 = vpow2.f32 %v1306_v28  ;;  %v1112_v40 = vmul.f32 1.442695, %v872_v35 }
 0x204   :  { %v1210_v41 = vmul.f32 1.442695, %v921_v36  ;;  %v2738_v42 = vpop.eup %2737  ;;  %1997 = vst.msk [vmem:[%s4278_s2 + $0x5e0] sm:$0xff] %vm1808_vm0, %v2736_v39  ;;  %2749 = vrcp.f32 %v1605_v38  ;;  %v666_v43 = vpop.f32.mrf.mxu2 }
 0x205   :  { %v813_v44 = vpop.f32.mrf.mxu3  ;;  %v2740_v45 = vpop.eup %2739  ;;  %1851 = vst.msk [vmem:[%s4278_s2 + $0x150] sm:$0xff] %vm1808_vm0, %v2738_v42  ;;  %2751 = vpow2.f32 %v1404_v34  ;;  %v970_v46 = vsub.f32 0.0, %v666_v43 }
 0x206   :  { %v1019_v47 = vsub.f32 0.0, %v813_v44  ;;  %v2742_v48 = vpop.eup %2741  ;;  %v1459_v49 = vadd.f32 1.0, %v2740_v45  ;;  %2753 = vpow2.f32 %v1112_v40 }
 0x207   :  { %v2744_v50 = vpop.eup %2743  ;;  %v1508_v51 = vadd.f32 1.0, %v2742_v48  ;;  %2755 = vpow2.f32 %v1210_v41  ;;  %v1308_v52 = vmul.f32 1.442695, %v970_v46 }
 0x208   :  { %v1406_v53 = vmul.f32 1.442695, %v1019_v47  ;;  %v2746_v54 = vpop.eup %2745  ;;  %1900 = vst.msk [vmem:[%s4278_s2 + $0x2d8] sm:$0xff] %vm1808_vm0, %v2744_v50  ;;  %2757 = vrcp.f32 %v1459_v49  ;;  %v375_v55 = vpop.f32.mrf.mxu0 }
 0x209   :  { %v522_v56 = vpop.f32.mrf.mxu1  ;;  %v2748_v57 = vpop.eup %2747  ;;  %1949 = vst.msk [vmem:[%s4278_s2 + $0x460] sm:$0xff] %vm1808_vm0, %v2746_v54  ;;  %2759 = vrcp.f32 %v1508_v51  ;;  %v873_v58 = vsub.f32 0.0, %v375_v55 }
 0x20a   :  { %v922_v59 = vsub.f32 0.0, %v522_v56  ;;  %v2750_v60 = vpop.eup %2749  ;;  %v1557_v61 = vadd.f32 1.0, %v2748_v57  ;;  %2761 = vpow2.f32 %v1308_v52 }
 0x20b   :  { %v2752_v62 = vpop.eup %2751  ;;  %1998 = vst.msk [vmem:[%s4278_s2 + $0x5e8] sm:$0xff] %vm1808_vm0, %v2750_v60  ;;  %2763 = vpow2.f32 %v1406_v53  ;;  %v1114_v63 = vmul.f32 1.442695, %v873_v58 }
 0x20c   :  { %v2754_v0 = vpop.eup %2753  ;;  %2765 = vrcp.f32 %v1557_v61  ;;  %v1606_v1 = vadd.f32 1.0, %v2752_v62  ;;  %v1212_v2 = vmul.f32 1.442695, %v922_v59  ;;  %v669_v3 = vpop.f32.mrf.mxu2 }
 0x20d   :  { %v816_v4 = vpop.f32.mrf.mxu3  ;;  %v2756_v5 = vpop.eup %2755  ;;  %v1460_v6 = vadd.f32 1.0, %v2754_v0  ;;  %2767 = vpow2.f32 %v1114_v63  ;;  %v971_v7 = vsub.f32 0.0, %v669_v3 }
 0x20e   :  { %v1020_v8 = vsub.f32 0.0, %v816_v4  ;;  %v2758_v9 = vpop.eup %2757  ;;  %2769 = vrcp.f32 %v1606_v1  ;;  %v1509_v10 = vadd.f32 1.0, %v2756_v5 }
 0x20f   :  { %v2760_v11 = vpop.eup %2759  ;;  %1852 = vst.msk [vmem:[%s4278_s2 + $0x158] sm:$0xff] %vm1808_vm0, %v2758_v9  ;;  %2771 = vrcp.f32 %v1460_v6  ;;  %v1310_v12 = vmul.f32 1.442695, %v971_v7 }
 0x210   :  { %v2762_v13 = vpop.eup %2761  ;;  %1901 = vst.msk [vmem:[%s4278_s2 + $0x2e0] sm:$0xff] %vm1808_vm0, %v2760_v11  ;;  %2773 = vrcp.f32 %v1509_v10  ;;  %v1408_v14 = vmul.f32 1.442695, %v1020_v8  ;;  %v378_v15 = vpop.f32.mrf.mxu0 }
 0x211   :  { %v525_v16 = vpop.f32.mrf.mxu1  ;;  %v2764_v17 = vpop.eup %2763  ;;  %v1558_v18 = vadd.f32 1.0, %v2762_v13  ;;  %2775 = vpow2.f32 %v1212_v2  ;;  %v874_v19 = vsub.f32 0.0, %v378_v15 }
 0x212   :  { %v923_v20 = vsub.f32 0.0, %v525_v16  ;;  %v2766_v21 = vpop.eup %2765  ;;  %v1607_v22 = vadd.f32 1.0, %v2764_v17  ;;  %2777 = vpow2.f32 %v1310_v12 }
 0x213   :  { %v2768_v23 = vpop.eup %2767  ;;  %1950 = vst.msk [vmem:[%s4278_s2 + $0x468] sm:$0xff] %vm1808_vm0, %v2766_v21  ;;  %2779 = vrcp.f32 %v1558_v18  ;;  %v1116_v24 = vmul.f32 1.442695, %v874_v19 }
 0x214   :  { %v2770_v25 = vpop.eup %2769  ;;  %2781 = vrcp.f32 %v1607_v22  ;;  %v1461_v26 = vadd.f32 1.0, %v2768_v23  ;;  %v1214_v27 = vmul.f32 1.442695, %v923_v20  ;;  %v672_v28 = vpop.f32.mrf.mxu2 }
 0x215   :  { %v819_v29 = vpop.f32.mrf.mxu3  ;;  %v2772_v30 = vpop.eup %2771  ;;  %1999 = vst.msk [vmem:[%s4278_s2 + $0x5f0] sm:$0xff] %vm1808_vm0, %v2770_v25  ;;  %2783 = vpow2.f32 %v1408_v14  ;;  %v972_v31 = vsub.f32 0.0, %v672_v28 }
 0x216   :  { %v1021_v32 = vsub.f32 0.0, %v819_v29  ;;  %v2774_v33 = vpop.eup %2773  ;;  %1853 = vst.msk [vmem:[%s4278_s2 + $0x160] sm:$0xff] %vm1808_vm0, %v2772_v30  ;;  %2785 = vrcp.f32 %v1461_v26 }
 0x217   :  { %v2776_v34 = vpop.eup %2775  ;;  %1902 = vst.msk [vmem:[%s4278_s2 + $0x2e8] sm:$0xff] %vm1808_vm0, %v2774_v33  ;;  %2787 = vpow2.f32 %v1116_v24  ;;  %v1312_v35 = vmul.f32 1.442695, %v972_v31 }
 0x218   :  { %v2778_v36 = vpop.eup %2777  ;;  %v1510_v37 = vadd.f32 1.0, %v2776_v34  ;;  %2789 = vpow2.f32 %v1214_v27  ;;  %v1410_v38 = vmul.f32 1.442695, %v1021_v32  ;;  %v381_v39 = vpop.f32.mrf.mxu0 }
 0x219   :  { %v528_v40 = vpop.f32.mrf.mxu1  ;;  %v2780_v41 = vpop.eup %2779  ;;  %v1559_v42 = vadd.f32 1.0, %v2778_v36  ;;  %2791 = vpow2.f32 %v1312_v35  ;;  %v875_v43 = vsub.f32 0.0, %v381_v39 }
 0x21a   :  { %v924_v44 = vsub.f32 0.0, %v528_v40  ;;  %v2782_v45 = vpop.eup %2781  ;;  %1951 = vst.msk [vmem:[%s4278_s2 + $0x470] sm:$0xff] %vm1808_vm0, %v2780_v41  ;;  %2793 = vrcp.f32 %v1510_v37 }
 0x21b   :  { %v2784_v46 = vpop.eup %2783  ;;  %2000 = vst.msk [vmem:[%s4278_s2 + $0x5f8] sm:$0xff] %vm1808_vm0, %v2782_v45  ;;  %2795 = vrcp.f32 %v1559_v42  ;;  %v1118_v47 = vmul.f32 1.442695, %v875_v43 }
 0x21c   :  { %v1216_v48 = vmul.f32 1.442695, %v924_v44  ;;  %v2786_v49 = vpop.eup %2785  ;;  %v1608_v50 = vadd.f32 1.0, %v2784_v46  ;;  %2797 = vpow2.f32 %v1410_v38  ;;  %v675_v51 = vpop.f32.mrf.mxu2 }
 0x21d   :  { %v822_v52 = vpop.f32.mrf.mxu3  ;;  %v2788_v53 = vpop.eup %2787  ;;  %1854 = vst.msk [vmem:[%s4278_s2 + $0x168] sm:$0xff] %vm1808_vm0, %v2786_v49  ;;  %2799 = vpow2.f32 %v1118_v47  ;;  %v973_v54 = vsub.f32 0.0, %v675_v51 }
 0x21e   :  { %v1022_v55 = vsub.f32 0.0, %v822_v52  ;;  %v2790_v56 = vpop.eup %2789  ;;  %2801 = vrcp.f32 %v1608_v50  ;;  %v1462_v57 = vadd.f32 1.0, %v2788_v53 }
 0x21f   :  { %v2792_v58 = vpop.eup %2791  ;;  %v1511_v59 = vadd.f32 1.0, %v2790_v56  ;;  %2803 = vpow2.f32 %v1216_v48  ;;  %v1314_v60 = vmul.f32 1.442695, %v973_v54 }
 0x220   :  { %v2794_v61 = vpop.eup %2793  ;;  %2805 = vrcp.f32 %v1462_v57  ;;  %v1560_v62 = vadd.f32 1.0, %v2792_v58  ;;  %v1412_v63 = vmul.f32 1.442695, %v1022_v55  ;;  %v384_v0 = vpop.f32.mrf.mxu0 }
 0x221   :  { %v531_v1 = vpop.f32.mrf.mxu1  ;;  %v2796_v2 = vpop.eup %2795  ;;  %1903 = vst.msk [vmem:[%s4278_s2 + $0x2f0] sm:$0xff] %vm1808_vm0, %v2794_v61  ;;  %2807 = vrcp.f32 %v1511_v59  ;;  %v876_v3 = vsub.f32 0.0, %v384_v0 }
 0x222   :  { %v925_v4 = vsub.f32 0.0, %v531_v1  ;;  %v2798_v5 = vpop.eup %2797  ;;  %1952 = vst.msk [vmem:[%s4278_s2 + $0x478] sm:$0xff] %vm1808_vm0, %v2796_v2  ;;  %2809 = vrcp.f32 %v1560_v62 }
 0x223   :  { %v2800_v6 = vpop.eup %2799  ;;  %v1609_v7 = vadd.f32 1.0, %v2798_v5  ;;  %2811 = vpow2.f32 %v1314_v60  ;;  %v1120_v8 = vmul.f32 1.442695, %v876_v3 }
 0x224   :  { %v2802_v9 = vpop.eup %2801  ;;  %v1463_v10 = vadd.f32 1.0, %v2800_v6  ;;  %2813 = vpow2.f32 %v1412_v63  ;;  %v678_v11 = vpop.f32.mrf.mxu2  ;;  %v1218_v14 = vmul.f32 1.442695, %v925_v4 }
 0x225   :  { %v825_v12 = vpop.f32.mrf.mxu3  ;;  %v2804_v13 = vpop.eup %2803  ;;  %2001 = vst.msk [vmem:[%s4278_s2 + $0x600] sm:$0xff] %vm1808_vm0, %v2802_v9  ;;  %2815 = vrcp.f32 %v1609_v7  ;;  %v974_v15 = vsub.f32 0.0, %v678_v11 }
 0x226   :  { %v1023_v16 = vsub.f32 0.0, %v825_v12  ;;  %v2806_v17 = vpop.eup %2805  ;;  %2817 = vrcp.f32 %v1463_v10  ;;  %v1512_v18 = vadd.f32 1.0, %v2804_v13 }
 0x227   :  { %v2808_v19 = vpop.eup %2807  ;;  %1855 = vst.msk [vmem:[%s4278_s2 + $0x170] sm:$0xff] %vm1808_vm0, %v2806_v17  ;;  %2819 = vpow2.f32 %v1120_v8  ;;  %v1316_v20 = vmul.f32 1.442695, %v974_v15 }
 0x228   :  { %v1414_v21 = vmul.f32 1.442695, %v1023_v16  ;;  %v2810_v22 = vpop.eup %2809  ;;  %1904 = vst.msk [vmem:[%s4278_s2 + $0x2f8] sm:$0xff] %vm1808_vm0, %v2808_v19  ;;  %2821 = vrcp.f32 %v1512_v18 }
 0x229   :  { %v2812_v23 = vpop.eup %2811  ;;  %1953 = vst.msk [vmem:[%s4278_s2 + $0x480] sm:$0xff] %vm1808_vm0, %v2810_v22  ;;  %2823 = vpow2.f32 %v1218_v14 }
 0x22a   :  { %v2814_v24 = vpop.eup %2813  ;;  %v1561_v25 = vadd.f32 1.0, %v2812_v23  ;;  %2825 = vpow2.f32 %v1316_v20 }
 0x22b   :  { %v2816_v26 = vpop.eup %2815  ;;  %v1610_v27 = vadd.f32 1.0, %v2814_v24  ;;  %2827 = vpow2.f32 %v1414_v21 }
 0x22c   :  { %v2818_v28 = vpop.eup %2817  ;;  %2002 = vst.msk [vmem:[%s4278_s2 + $0x608] sm:$0xff] %vm1808_vm0, %v2816_v26  ;;  %2829 = vrcp.f32 %v1561_v25 }
 0x22d   :  { %v2820_v29 = vpop.eup %2819  ;;  %1856 = vst.msk [vmem:[%s4278_s2 + $0x178] sm:$0xff] %vm1808_vm0, %v2818_v28  ;;  %2831 = vrcp.f32 %v1610_v27 }
 0x22e   :  { %v2822_v30 = vpop.eup %2821  ;;  %v1464_v31 = vadd.f32 1.0, %v2820_v29 }
 0x22f   :  { %v2824_v32 = vpop.eup %2823  ;;  %1905 = vst.msk [vmem:[%s4278_s2 + $0x300] sm:$0xff] %vm1808_vm0, %v2822_v30 }
 0x230   :  { %v2826_v33 = vpop.eup %2825  ;;  %2833 = vrcp.f32 %v1464_v31  ;;  %v1513_v34 = vadd.f32 1.0, %v2824_v32 }
 0x231   :  { %v2828_v35 = vpop.eup %2827  ;;  %v1562_v36 = vadd.f32 1.0, %v2826_v33 }
 0x232   :  { %v2830_v37 = vpop.eup %2829  ;;  %2835 = vrcp.f32 %v1513_v34  ;;  %v1611_v38 = vadd.f32 1.0, %v2828_v35 }
 0x233   :  { %v2832_v39 = vpop.eup %2831  ;;  %1954 = vst.msk [vmem:[%s4278_s2 + $0x488] sm:$0xff] %vm1808_vm0, %v2830_v37  ;;  %2837 = vrcp.f32 %v1562_v36 }
 0x234   :  { %2003 = vst.msk [vmem:[%s4278_s2 + $0x610] sm:$0xff] %vm1808_vm0, %v2832_v39  ;;  %2839 = vrcp.f32 %v1611_v38 }
 0x236   :  { %v2834_v40 = vpop.eup %2833 }
 0x237   :  { %1857 = vst.msk [vmem:[%s4278_s2 + $0x180] sm:$0xff] %vm1808_vm0, %v2834_v40 }
 0x238   :  { %v2836_v41 = vpop.eup %2835 }
 0x239   :  { %v2838_v42 = vpop.eup %2837  ;;  %1906 = vst.msk [vmem:[%s4278_s2 + $0x308] sm:$0xff] %vm1808_vm0, %v2836_v41 }
 0x23a   :  { %v2840_v43 = vpop.eup %2839  ;;  %1955 = vst.msk [vmem:[%s4278_s2 + $0x490] sm:$0xff] %vm1808_vm0, %v2838_v42 }
 0x23b   :  { %2004 = vst.msk [vmem:[%s4278_s2 + $0x618] sm:$0xff] %vm1808_vm0, %v2840_v43 }

</bundles_post_ra>
